<compile_context>
chip_gen: v7x
topology: tpu7x:2x2x1
jax: 0.10.0
libtpu: 0.0.40
codegen_flags: <defaults>
</compile_context>

<pallas_src>
import jax
import jax.numpy as jnp
from jax.experimental import pallas as pl
from jax.experimental.pallas import tpu as pltpu


_VMEM = pl.BlockSpec(memory_space=pltpu.MemorySpace.VMEM)
_SMEM = pl.BlockSpec(memory_space=pltpu.MemorySpace.SMEM)


# ----------------------------------------------------------------------------
# The single fused kernel
# ----------------------------------------------------------------------------
def _action_bilstm_kernel(
    # SMEM (eval-mode BatchNorm affine, per original timestep)
    bnsc1_ref, bnsh1_ref, bnsc2_ref, bnsh2_ref,
    # VMEM inputs
    x_ref,
    wihf1_ref, wihb1_ref, bf1_ref, bb1_ref, whh1_ref,
    wihf2_ref, wihb2_ref, bf2_ref, bb2_ref, whh2_ref,
    wihf3_ref, wihb3_ref, bf3_ref, bb3_ref, whh3_ref,
    w1f_ref, w1b_ref, b1_ref, w2_ref, b2_ref, w3_ref, b3_ref,
    # output
    out_ref,
    # VMEM scratch
    act_ref,    # (T*B, 2*H)  inter-layer activation (reused by layers 1 & 2)
    gpair_ref,  # (T*2B, 4*H) direction-paired input pre-activations
):
    f32 = jnp.float32
    bf16 = jnp.bfloat16
    T = bnsc1_ref.shape[0]
    Bb = x_ref.shape[0] // T

    def bilstm_layer(x_bf16, wf_ref, wb_ref, bfv_ref, bbv_ref, whh_ref,
                     sc_ref, sh_ref):
        """One bidirectional LSTM layer with direction stacking + BN epilogue.

        x_bf16:   (T*B, Din) bf16 value (time-major, flattened)
        whh_ref:  (2H, 4H)   stacked [W_hh_fw ; W_hh_bw] (bf16)
        Writes the BatchNorm'd (T*B, 2H) output into act_ref.
        """
        H = whh_ref.shape[0] // 2

        # ---- hoisted input projections: one big dot per direction ----
        gx_f = jnp.dot(x_bf16, wf_ref[...], preferred_element_type=f32) + bfv_ref[...]
        gx_b = jnp.dot(x_bf16, wb_ref[...], preferred_element_type=f32) + bbv_ref[...]

        # ---- paired layout: pair s -> rows [0:B) = fwd time s,
        #                                rows [B:2B) = bwd time T-1-s ----
        for s in range(T):
            gpair_ref[pl.ds(s * 2 * Bb, Bb), :] = gx_f[s * Bb:(s + 1) * Bb, :]
            gpair_ref[pl.ds(s * 2 * Bb + Bb, Bb), :] = \
                gx_b[(T - 1 - s) * Bb:(T - s) * Bb, :]

        row = jax.lax.broadcasted_iota(jnp.int32, (2 * Bb, H), 0)
        is_fwd = row < Bb

        # ---- stacked recurrence: both directions in one (2B, H) state ----
        c = jnp.zeros((2 * Bb, H), f32)
        h_blk = None  # block-structured LHS [h_f | 0 ; 0 | h_b], bf16
        for s in range(T):
            gx = gpair_ref[pl.ds(s * 2 * Bb, 2 * Bb), :]
            if s == 0:
                g = gx                      # h0 = 0 -> skip the recurrent dot
            else:
                g = gx + jnp.dot(h_blk, whh_ref[...], preferred_element_type=f32)
            i = jax.nn.sigmoid(g[:, 0:H])
            f = jax.nn.sigmoid(g[:, H:2 * H])
            ch = jnp.tanh(g[:, 2 * H:3 * H])
            o = jax.nn.sigmoid(g[:, 3 * H:4 * H])
            c = f * c + i * ch
            h = o * jnp.tanh(c)             # (2B, H) f32

            # eval-mode BatchNorm1d affine folded into the output stores:
            # fwd half belongs to original time s, bwd half to time T-1-s.
            sb = T - 1 - s
            act_ref[pl.ds(s * Bb, Bb), 0:H] = h[0:Bb] * sc_ref[s] + sh_ref[s]
            act_ref[pl.ds(sb * Bb, Bb), H:2 * H] = \
                h[Bb:2 * Bb] * sc_ref[sb] + sh_ref[sb]

            # rebuild the block-structured LHS for the next stacked-K matmul
            zero = jnp.zeros_like(h)
            h_blk = jnp.concatenate(
                [jnp.where(is_fwd, h, zero), jnp.where(is_fwd, zero, h)],
                axis=-1).astype(bf16)

    # ------------------------- layer 1 (+ dropout1 id + BN1) -------------------------
    bilstm_layer(x_ref[...].astype(bf16), wihf1_ref, wihb1_ref, bf1_ref, bb1_ref,
                 whh1_ref, bnsc1_ref, bnsh1_ref)
    # ------------------------- layer 2 (+ dropout2 id + BN2) -------------------------
    bilstm_layer(act_ref[...].astype(bf16), wihf2_ref, wihb2_ref, bf2_ref, bb2_ref,
                 whh2_ref, bnsc2_ref, bnsh2_ref)

    # ---------------- layer 3: only x[:, -1, :] is consumed ----------------
    act2 = act_ref[...].astype(bf16)                                # (T*B, 2H)
    H3 = whh3_ref.shape[0]

    # forward direction: full recurrence, keep only the final hidden state.
    gx3 = jnp.dot(act2, wihf3_ref[...], preferred_element_type=f32) + bf3_ref[...]
    h = jnp.zeros((Bb, H3), f32)
    c = jnp.zeros((Bb, H3), f32)
    for t in range(T):
        gx = gx3[t * Bb:(t + 1) * Bb, :]
        if t == 0:
            g = gx
        else:
            g = gx + jnp.dot(h.astype(bf16), whh3_ref[...],
                             preferred_element_type=f32)
        i = jax.nn.sigmoid(g[:, 0:H3])
        f = jax.nn.sigmoid(g[:, H3:2 * H3])
        ch = jnp.tanh(g[:, 2 * H3:3 * H3])
        o = jax.nn.sigmoid(g[:, 3 * H3:4 * H3])
        c = f * c + i * ch
        h = o * jnp.tanh(c)
    h_fw = h

    # backward direction: only its FIRST step reaches x[:, -1, :]
    # (processes original x[T-1] with zero state => c = i*g, h = o*tanh(c)).
    x_last = act_ref[pl.ds((T - 1) * Bb, Bb), :].astype(bf16)       # (B, 2H)
    gb = jnp.dot(x_last, wihb3_ref[...], preferred_element_type=f32) + bb3_ref[...]
    i = jax.nn.sigmoid(gb[:, 0:H3])
    ch = jnp.tanh(gb[:, 2 * H3:3 * H3])
    o = jax.nn.sigmoid(gb[:, 3 * H3:4 * H3])
    h_bw = o * jnp.tanh(i * ch)

    # ---------------- FC head (dropout3 / dropout_fc*: identity in eval) ---
    # fc1 on concat(h_fw, h_bw) without a lane concat: split-weight matmuls.
    h1 = (jnp.dot(h_fw.astype(bf16), w1f_ref[...], preferred_element_type=f32)
          + jnp.dot(h_bw.astype(bf16), w1b_ref[...], preferred_element_type=f32)
          + b1_ref[...])
    h1 = jnp.maximum(h1, 0.0)
    h2 = jnp.dot(h1.astype(bf16), w2_ref[...], preferred_element_type=f32) + b2_ref[...]
    h2 = jnp.maximum(h2, 0.0)
    logits = (jnp.dot(h2.astype(bf16), w3_ref[...], preferred_element_type=f32)
              + b3_ref[...])
    m = jnp.max(logits, axis=1, keepdims=True)
    e = jnp.exp(logits - m)
    out_ref[...] = e / jnp.sum(e, axis=1, keepdims=True)            # softmax dim=1


# ----------------------------------------------------------------------------
# Wrapper: one pallas_call for the whole forward pass
# ----------------------------------------------------------------------------
def action_bilstm_forward(x_btd, p):
    """x_btd: (B, T, input_size) f32, batch_first like PyTorch. p: prepared params."""
    Bb, T, D = x_btd.shape
    x_flat = jnp.transpose(x_btd, (1, 0, 2)).reshape(T * Bb, D).astype(jnp.float32)

    H1 = p["whh1"].shape[0] // 2        # 128
    C = p["w3"].shape[1]

    args = [
        p["bnsc1"], p["bnsh1"], p["bnsc2"], p["bnsh2"],
        x_flat,
        p["wihf1"], p["wihb1"], p["bf1"], p["bb1"], p["whh1"],
        p["wihf2"], p["wihb2"], p["bf2"], p["bb2"], p["whh2"],
        p["wihf3"], p["wihb3"], p["bf3"], p["bb3"], p["whh3"],
        p["w1f"], p["w1b"], p["b1"], p["w2"], p["b2"], p["w3"], p["b3"],
    ]
    return pl.pallas_call(
        _action_bilstm_kernel,
        out_shape=jax.ShapeDtypeStruct((Bb, C), jnp.float32),
        in_specs=[_SMEM] * 4 + [_VMEM] * (len(args) - 4),
        out_specs=_VMEM,
        scratch_shapes=[
            pltpu.VMEM((T * Bb, 2 * H1), jnp.float32),        # act
            pltpu.VMEM((T * 2 * Bb, 4 * H1), jnp.float32),    # gpair
        ],
    )(*args)


# ----------------------------------------------------------------------------
# Parameters (PyTorch-default-like init) and kernel-ready preparation
# ----------------------------------------------------------------------------
def _bn_affine(bn, eps=1e-5):
    """Eval-mode BatchNorm1d -> per-timestep scalar scale/shift."""
    inv = jax.lax.rsqrt(bn["var"] + eps)
    scale = bn["gamma"] * inv
    shift = bn["beta"] - bn["mean"] * scale
    return scale, shift


def init_params(key, input_size, seq_len, num_classes):
    keys = iter(jax.random.split(key, 64))

    def uniform(shape, bound):
        return jax.random.uniform(next(keys), shape, jnp.float32, -bound, bound)

    def lstm_dir_params(in_size, hidden):
        bound = 1.0 / float(hidden) ** 0.5
        w_ih = uniform((in_size, 4 * hidden), bound)   # stored pre-transposed
        w_hh = uniform((hidden, 4 * hidden), bound)
        b = uniform((1, 4 * hidden), bound) + uniform((1, 4 * hidden), bound)
        return (w_ih, w_hh, b)

    def bilstm_params(in_size, hidden):
        return (lstm_dir_params(in_size, hidden), lstm_dir_params(in_size, hidden))

    def linear_params(in_f, out_f):
        bound = 1.0 / float(in_f) ** 0.5
        return uniform((in_f, out_f), bound), uniform((1, out_f), bound)

    def bn_params(n):
        return dict(gamma=jnp.ones((n,), jnp.float32),
                    beta=jnp.zeros((n,), jnp.float32),
                    mean=jnp.zeros((n,), jnp.float32),
                    var=jnp.ones((n,), jnp.float32))

    return dict(
        bilstm1=bilstm_params(input_size, 128),
        bn1=bn_params(seq_len),
        bilstm2=bilstm_params(256, 128),
        bn2=bn_params(seq_len),
        bilstm3=bilstm_params(256, 64),
        fc1=linear_params(128, 128),
        fc2=linear_params(128, 64),
        fc_out=linear_params(64, num_classes),
    )


def prepare_params(params):
    """Kernel-ready tensors: bf16 matmul weights, stacked W_hh, BN affine, fc1 split."""
    bf16 = jnp.bfloat16
    p = {}
    for layer in (1, 2):
        (wf, hf, bfv), (wb, hb, bbv) = params[f"bilstm{layer}"]
        p[f"wihf{layer}"] = wf.astype(bf16)
        p[f"wihb{layer}"] = wb.astype(bf16)
        p[f"bf{layer}"] = bfv
        p[f"bb{layer}"] = bbv
        p[f"whh{layer}"] = jnp.concatenate([hf, hb], axis=0).astype(bf16)  # (2H,4H)
        sc, sh = _bn_affine(params[f"bn{layer}"])
        p[f"bnsc{layer}"] = sc
        p[f"bnsh{layer}"] = sh
    (wf3, hf3, bf3v), (wb3, _hb3_unused, bb3v) = params["bilstm3"]
    p["wihf3"] = wf3.astype(bf16)
    p["wihb3"] = wb3.astype(bf16)
    p["bf3"] = bf3v
    p["bb3"] = bb3v
    p["whh3"] = hf3.astype(bf16)
    H3 = hf3.shape[0]
    w1, b1 = params["fc1"]
    p["w1f"] = w1[:H3].astype(bf16)
    p["w1b"] = w1[H3:].astype(bf16)
    p["b1"] = b1
    w2, b2 = params["fc2"]
    p["w2"] = w2.astype(bf16)
    p["b2"] = b2
    w3, b3 = params["fc_out"]
    p["w3"] = w3.astype(bf16)
    p["b3"] = b3
    return p


if __name__ == "__main__":
    B, T, D, NUM_CLASSES = 4, 8, 64, 10
    key = jax.random.PRNGKey(0)
    k_x, k_p = jax.random.split(key)
    x = jax.random.normal(k_x, (B, T, D), dtype=jnp.float32)
    params = init_params(k_p, input_size=D, seq_len=T, num_classes=NUM_CLASSES)
    kparams = prepare_params(params)

    fwd = jax.jit(action_bilstm_forward)
    out = fwd(x, kparams)
    out = jax.block_until_ready(out)

    assert out.shape == (B, NUM_CLASSES), out.shape
    assert bool(jnp.all(jnp.isfinite(out)))
    # probabilities from softmax should sum to ~1 per row
    assert bool(jnp.allclose(jnp.sum(out, axis=1), 1.0, atol=1e-5))
    print("KERNEL_OK")
</pallas_src>

<mosaic_0001>
module attributes {stable_mosaic.version = 11 : i64} {
  func.func @_action_bilstm_kernel(%arg0: memref<8xf32, #tpu.memory_space<smem>>, %arg1: memref<8xf32, #tpu.memory_space<smem>>, %arg2: memref<8xf32, #tpu.memory_space<smem>>, %arg3: memref<8xf32, #tpu.memory_space<smem>>, %arg4: memref<32x64xf32, #tpu.memory_space<vmem>>, %arg5: memref<64x512xbf16, #tpu.memory_space<vmem>>, %arg6: memref<64x512xbf16, #tpu.memory_space<vmem>>, %arg7: memref<1x512xf32, #tpu.memory_space<vmem>>, %arg8: memref<1x512xf32, #tpu.memory_space<vmem>>, %arg9: memref<256x512xbf16, #tpu.memory_space<vmem>>, %arg10: memref<256x512xbf16, #tpu.memory_space<vmem>>, %arg11: memref<256x512xbf16, #tpu.memory_space<vmem>>, %arg12: memref<1x512xf32, #tpu.memory_space<vmem>>, %arg13: memref<1x512xf32, #tpu.memory_space<vmem>>, %arg14: memref<256x512xbf16, #tpu.memory_space<vmem>>, %arg15: memref<256x256xbf16, #tpu.memory_space<vmem>>, %arg16: memref<256x256xbf16, #tpu.memory_space<vmem>>, %arg17: memref<1x256xf32, #tpu.memory_space<vmem>>, %arg18: memref<1x256xf32, #tpu.memory_space<vmem>>, %arg19: memref<64x256xbf16, #tpu.memory_space<vmem>>, %arg20: memref<64x128xbf16, #tpu.memory_space<vmem>>, %arg21: memref<64x128xbf16, #tpu.memory_space<vmem>>, %arg22: memref<1x128xf32, #tpu.memory_space<vmem>>, %arg23: memref<128x64xbf16, #tpu.memory_space<vmem>>, %arg24: memref<1x64xf32, #tpu.memory_space<vmem>>, %arg25: memref<64x10xbf16, #tpu.memory_space<vmem>>, %arg26: memref<1x10xf32, #tpu.memory_space<vmem>>, %arg27: memref<4x10xf32, #tpu.memory_space<vmem>>, %arg28: memref<32x256xf32, #tpu.memory_space<vmem>>, %arg29: memref<64x512xf32, #tpu.memory_space<vmem>>) attributes {dimension_semantics = [], scalar_prefetch = 0 : i64, scratch_operands = 2 : i64, tpu.core_type = #tpu.core_type<tc>} {
    %c0 = arith.constant 0 : index
    %c0_0 = arith.constant 0 : index
    %0 = vector.load %arg4[%c0, %c0_0] : memref<32x64xf32, #tpu.memory_space<vmem>>, vector<32x64xf32>
    %1 = arith.truncf %0 : vector<32x64xf32> to vector<32x64xbf16>
    %c0_1 = arith.constant 0 : index
    %c0_2 = arith.constant 0 : index
    %2 = vector.load %arg5[%c0_1, %c0_2] : memref<64x512xbf16, #tpu.memory_space<vmem>>, vector<64x512xbf16>
    %cst = arith.constant dense<0.000000e+00> : vector<32x512xf32>
    %3 = tpu.matmul %1, %2, %cst {dimension_numbers = #tpu.dot_dimension_numbers<[1], [0], [0], [1], [0, 0, 1, 1], [], []>} : vector<32x64xbf16>, vector<64x512xbf16>, vector<32x512xf32> -> vector<32x512xf32>
    %c0_3 = arith.constant 0 : index
    %c0_4 = arith.constant 0 : index
    %4 = vector.load %arg7[%c0_3, %c0_4] : memref<1x512xf32, #tpu.memory_space<vmem>>, vector<1x512xf32>
    %5 = vector.broadcast %4 : vector<1x512xf32> to vector<32x512xf32>
    %6 = arith.addf %3, %5 : vector<32x512xf32>
    %c0_5 = arith.constant 0 : index
    %c0_6 = arith.constant 0 : index
    %7 = vector.load %arg6[%c0_5, %c0_6] : memref<64x512xbf16, #tpu.memory_space<vmem>>, vector<64x512xbf16>
    %cst_7 = arith.constant dense<0.000000e+00> : vector<32x512xf32>
    %8 = tpu.matmul %1, %7, %cst_7 {dimension_numbers = #tpu.dot_dimension_numbers<[1], [0], [0], [1], [0, 0, 1, 1], [], []>} : vector<32x64xbf16>, vector<64x512xbf16>, vector<32x512xf32> -> vector<32x512xf32>
    %c0_8 = arith.constant 0 : index
    %c0_9 = arith.constant 0 : index
    %9 = vector.load %arg8[%c0_8, %c0_9] : memref<1x512xf32, #tpu.memory_space<vmem>>, vector<1x512xf32>
    %10 = vector.broadcast %9 : vector<1x512xf32> to vector<32x512xf32>
    %11 = arith.addf %8, %10 : vector<32x512xf32>
    %12 = vector.extract_strided_slice %6 {offsets = [0, 0], sizes = [4, 512], strides = [1, 1]} : vector<32x512xf32> to vector<4x512xf32>
    %c0_10 = arith.constant 0 : index
    %c0_11 = arith.constant 0 : index
    %13 = vector.load %arg29[%c0_10, %c0_11] : memref<64x512xf32, #tpu.memory_space<vmem>>, vector<4x512xf32>
    tpu.vector_store %arg29[%c0_10, %c0_11], %12 {strides = array<i32>} : memref<64x512xf32, #tpu.memory_space<vmem>>, vector<4x512xf32>,
    %14 = vector.extract_strided_slice %11 {offsets = [28, 0], sizes = [4, 512], strides = [1, 1]} : vector<32x512xf32> to vector<4x512xf32>
    %c4 = arith.constant 4 : index
    %c0_12 = arith.constant 0 : index
    %15 = vector.load %arg29[%c4, %c0_12] : memref<64x512xf32, #tpu.memory_space<vmem>>, vector<4x512xf32>
    tpu.vector_store %arg29[%c4, %c0_12], %14 {strides = array<i32>} : memref<64x512xf32, #tpu.memory_space<vmem>>, vector<4x512xf32>,
    %16 = vector.extract_strided_slice %6 {offsets = [4, 0], sizes = [4, 512], strides = [1, 1]} : vector<32x512xf32> to vector<4x512xf32>
    %c8 = arith.constant 8 : index
    %c0_13 = arith.constant 0 : index
    %17 = vector.load %arg29[%c8, %c0_13] : memref<64x512xf32, #tpu.memory_space<vmem>>, vector<4x512xf32>
    tpu.vector_store %arg29[%c8, %c0_13], %16 {strides = array<i32>} : memref<64x512xf32, #tpu.memory_space<vmem>>, vector<4x512xf32>,
    %18 = vector.extract_strided_slice %11 {offsets = [24, 0], sizes = [4, 512], strides = [1, 1]} : vector<32x512xf32> to vector<4x512xf32>
    %c12 = arith.constant 12 : index
    %c0_14 = arith.constant 0 : index
    %19 = vector.load %arg29[%c12, %c0_14] : memref<64x512xf32, #tpu.memory_space<vmem>>, vector<4x512xf32>
    tpu.vector_store %arg29[%c12, %c0_14], %18 {strides = array<i32>} : memref<64x512xf32, #tpu.memory_space<vmem>>, vector<4x512xf32>,
    %20 = vector.extract_strided_slice %6 {offsets = [8, 0], sizes = [4, 512], strides = [1, 1]} : vector<32x512xf32> to vector<4x512xf32>
    %c16 = arith.constant 16 : index
    %c0_15 = arith.constant 0 : index
    %21 = vector.load %arg29[%c16, %c0_15] : memref<64x512xf32, #tpu.memory_space<vmem>>, vector<4x512xf32>
    tpu.vector_store %arg29[%c16, %c0_15], %20 {strides = array<i32>} : memref<64x512xf32, #tpu.memory_space<vmem>>, vector<4x512xf32>,
    %22 = vector.extract_strided_slice %11 {offsets = [20, 0], sizes = [4, 512], strides = [1, 1]} : vector<32x512xf32> to vector<4x512xf32>
    %c20 = arith.constant 20 : index
    %c0_16 = arith.constant 0 : index
    %23 = vector.load %arg29[%c20, %c0_16] : memref<64x512xf32, #tpu.memory_space<vmem>>, vector<4x512xf32>
    tpu.vector_store %arg29[%c20, %c0_16], %22 {strides = array<i32>} : memref<64x512xf32, #tpu.memory_space<vmem>>, vector<4x512xf32>,
    %24 = vector.extract_strided_slice %6 {offsets = [12, 0], sizes = [4, 512], strides = [1, 1]} : vector<32x512xf32> to vector<4x512xf32>
    %c24 = arith.constant 24 : index
    %c0_17 = arith.constant 0 : index
    %25 = vector.load %arg29[%c24, %c0_17] : memref<64x512xf32, #tpu.memory_space<vmem>>, vector<4x512xf32>
    tpu.vector_store %arg29[%c24, %c0_17], %24 {strides = array<i32>} : memref<64x512xf32, #tpu.memory_space<vmem>>, vector<4x512xf32>,
    %26 = vector.extract_strided_slice %11 {offsets = [16, 0], sizes = [4, 512], strides = [1, 1]} : vector<32x512xf32> to vector<4x512xf32>
    %c28 = arith.constant 28 : index
    %c0_18 = arith.constant 0 : index
    %27 = vector.load %arg29[%c28, %c0_18] : memref<64x512xf32, #tpu.memory_space<vmem>>, vector<4x512xf32>
    tpu.vector_store %arg29[%c28, %c0_18], %26 {strides = array<i32>} : memref<64x512xf32, #tpu.memory_space<vmem>>, vector<4x512xf32>,
    %28 = vector.extract_strided_slice %6 {offsets = [16, 0], sizes = [4, 512], strides = [1, 1]} : vector<32x512xf32> to vector<4x512xf32>
    %c32 = arith.constant 32 : index
    %c0_19 = arith.constant 0 : index
    %29 = vector.load %arg29[%c32, %c0_19] : memref<64x512xf32, #tpu.memory_space<vmem>>, vector<4x512xf32>
    tpu.vector_store %arg29[%c32, %c0_19], %28 {strides = array<i32>} : memref<64x512xf32, #tpu.memory_space<vmem>>, vector<4x512xf32>,
    %30 = vector.extract_strided_slice %11 {offsets = [12, 0], sizes = [4, 512], strides = [1, 1]} : vector<32x512xf32> to vector<4x512xf32>
    %c36 = arith.constant 36 : index
    %c0_20 = arith.constant 0 : index
    %31 = vector.load %arg29[%c36, %c0_20] : memref<64x512xf32, #tpu.memory_space<vmem>>, vector<4x512xf32>
    tpu.vector_store %arg29[%c36, %c0_20], %30 {strides = array<i32>} : memref<64x512xf32, #tpu.memory_space<vmem>>, vector<4x512xf32>,
    %32 = vector.extract_strided_slice %6 {offsets = [20, 0], sizes = [4, 512], strides = [1, 1]} : vector<32x512xf32> to vector<4x512xf32>
    %c40 = arith.constant 40 : index
    %c0_21 = arith.constant 0 : index
    %33 = vector.load %arg29[%c40, %c0_21] : memref<64x512xf32, #tpu.memory_space<vmem>>, vector<4x512xf32>
    tpu.vector_store %arg29[%c40, %c0_21], %32 {strides = array<i32>} : memref<64x512xf32, #tpu.memory_space<vmem>>, vector<4x512xf32>,
    %34 = vector.extract_strided_slice %11 {offsets = [8, 0], sizes = [4, 512], strides = [1, 1]} : vector<32x512xf32> to vector<4x512xf32>
    %c44 = arith.constant 44 : index
    %c0_22 = arith.constant 0 : index
    %35 = vector.load %arg29[%c44, %c0_22] : memref<64x512xf32, #tpu.memory_space<vmem>>, vector<4x512xf32>
    tpu.vector_store %arg29[%c44, %c0_22], %34 {strides = array<i32>} : memref<64x512xf32, #tpu.memory_space<vmem>>, vector<4x512xf32>,
    %36 = vector.extract_strided_slice %6 {offsets = [24, 0], sizes = [4, 512], strides = [1, 1]} : vector<32x512xf32> to vector<4x512xf32>
    %c48 = arith.constant 48 : index
    %c0_23 = arith.constant 0 : index
    %37 = vector.load %arg29[%c48, %c0_23] : memref<64x512xf32, #tpu.memory_space<vmem>>, vector<4x512xf32>
    tpu.vector_store %arg29[%c48, %c0_23], %36 {strides = array<i32>} : memref<64x512xf32, #tpu.memory_space<vmem>>, vector<4x512xf32>,
    %38 = vector.extract_strided_slice %11 {offsets = [4, 0], sizes = [4, 512], strides = [1, 1]} : vector<32x512xf32> to vector<4x512xf32>
    %c52 = arith.constant 52 : index
    %c0_24 = arith.constant 0 : index
    %39 = vector.load %arg29[%c52, %c0_24] : memref<64x512xf32, #tpu.memory_space<vmem>>, vector<4x512xf32>
    tpu.vector_store %arg29[%c52, %c0_24], %38 {strides = array<i32>} : memref<64x512xf32, #tpu.memory_space<vmem>>, vector<4x512xf32>,
    %40 = vector.extract_strided_slice %6 {offsets = [28, 0], sizes = [4, 512], strides = [1, 1]} : vector<32x512xf32> to vector<4x512xf32>
    %c56 = arith.constant 56 : index
    %c0_25 = arith.constant 0 : index
    %41 = vector.load %arg29[%c56, %c0_25] : memref<64x512xf32, #tpu.memory_space<vmem>>, vector<4x512xf32>
    tpu.vector_store %arg29[%c56, %c0_25], %40 {strides = array<i32>} : memref<64x512xf32, #tpu.memory_space<vmem>>, vector<4x512xf32>,
    %42 = vector.extract_strided_slice %11 {offsets = [0, 0], sizes = [4, 512], strides = [1, 1]} : vector<32x512xf32> to vector<4x512xf32>
    %c60 = arith.constant 60 : index
    %c0_26 = arith.constant 0 : index
    %43 = vector.load %arg29[%c60, %c0_26] : memref<64x512xf32, #tpu.memory_space<vmem>>, vector<4x512xf32>
    tpu.vector_store %arg29[%c60, %c0_26], %42 {strides = array<i32>} : memref<64x512xf32, #tpu.memory_space<vmem>>, vector<4x512xf32>,
    %44 = tpu.iota {dimensions = array<i32: 0>} : vector<8x128xi32>
    %c4_i32 = arith.constant 4 : i32
    %45 = vector.broadcast %c4_i32 : i32 to vector<8x128xi32>
    %46 = arith.cmpi slt, %44, %45 : vector<8x128xi32>
    %cst_27 = arith.constant 0.000000e+00 : f32
    %47 = vector.broadcast %cst_27 : f32 to vector<8x128xf32>
    %c0_28 = arith.constant 0 : index
    %c0_29 = arith.constant 0 : index
    %48 = vector.load %arg29[%c0_28, %c0_29] : memref<64x512xf32, #tpu.memory_space<vmem>>, vector<8x512xf32>
    %49 = vector.extract_strided_slice %48 {offsets = [0, 0], sizes = [8, 128], strides = [1, 1]} : vector<8x512xf32> to vector<8x128xf32>
    %50 = arith.negf %49 : vector<8x128xf32>
    %51 = math.exp %50 : vector<8x128xf32>
    %cst_30 = arith.constant 1.000000e+00 : f32
    %52 = vector.broadcast %cst_30 : f32 to vector<8x128xf32>
    %53 = arith.addf %52, %51 : vector<8x128xf32>
    %54 = arith.divf %52, %53 : vector<8x128xf32>
    %55 = vector.extract_strided_slice %48 {offsets = [0, 128], sizes = [8, 128], strides = [1, 1]} : vector<8x512xf32> to vector<8x128xf32>
    %56 = arith.negf %55 : vector<8x128xf32>
    %57 = math.exp %56 : vector<8x128xf32>
    %cst_31 = arith.constant 1.000000e+00 : f32
    %58 = vector.broadcast %cst_31 : f32 to vector<8x128xf32>
    %59 = arith.addf %58, %57 : vector<8x128xf32>
    %60 = arith.divf %58, %59 : vector<8x128xf32>
    %61 = vector.extract_strided_slice %48 {offsets = [0, 256], sizes = [8, 128], strides = [1, 1]} : vector<8x512xf32> to vector<8x128xf32>
    %62 = math.tanh %61 : vector<8x128xf32>
    %63 = vector.extract_strided_slice %48 {offsets = [0, 384], sizes = [8, 128], strides = [1, 1]} : vector<8x512xf32> to vector<8x128xf32>
    %64 = arith.negf %63 : vector<8x128xf32>
    %65 = math.exp %64 : vector<8x128xf32>
    %cst_32 = arith.constant 1.000000e+00 : f32
    %66 = vector.broadcast %cst_32 : f32 to vector<8x128xf32>
    %67 = arith.addf %66, %65 : vector<8x128xf32>
    %68 = arith.divf %66, %67 : vector<8x128xf32>
    %69 = arith.mulf %60, %47 : vector<8x128xf32>
    %70 = arith.mulf %54, %62 : vector<8x128xf32>
    %71 = arith.addf %69, %70 : vector<8x128xf32>
    %72 = math.tanh %71 : vector<8x128xf32>
    %73 = arith.mulf %68, %72 : vector<8x128xf32>
    %74 = vector.extract_strided_slice %73 {offsets = [0, 0], sizes = [4, 128], strides = [1, 1]} : vector<8x128xf32> to vector<4x128xf32>
    %c0_33 = arith.constant 0 : index
    %75 = memref.load %arg0[%c0_33] : memref<8xf32, #tpu.memory_space<smem>>
    %76 = vector.broadcast %75 : f32 to vector<4x128xf32>
    %77 = arith.mulf %74, %76 : vector<4x128xf32>
    %c0_34 = arith.constant 0 : index
    %78 = memref.load %arg1[%c0_34] : memref<8xf32, #tpu.memory_space<smem>>
    %79 = vector.broadcast %78 : f32 to vector<4x128xf32>
    %80 = arith.addf %77, %79 : vector<4x128xf32>
    %c0_35 = arith.constant 0 : index
    %c0_36 = arith.constant 0 : index
    %81 = vector.load %arg28[%c0_35, %c0_36] : memref<32x256xf32, #tpu.memory_space<vmem>>, vector<4x128xf32>
    tpu.vector_store %arg28[%c0_35, %c0_36], %80 {strides = array<i32>} : memref<32x256xf32, #tpu.memory_space<vmem>>, vector<4x128xf32>,
    %82 = vector.extract_strided_slice %73 {offsets = [4, 0], sizes = [4, 128], strides = [1, 1]} : vector<8x128xf32> to vector<4x128xf32>
    %c7 = arith.constant 7 : index
    %83 = memref.load %arg0[%c7] : memref<8xf32, #tpu.memory_space<smem>>
    %84 = vector.broadcast %83 : f32 to vector<4x128xf32>
    %85 = arith.mulf %82, %84 : vector<4x128xf32>
    %c7_37 = arith.constant 7 : index
    %86 = memref.load %arg1[%c7_37] : memref<8xf32, #tpu.memory_space<smem>>
    %87 = vector.broadcast %86 : f32 to vector<4x128xf32>
    %88 = arith.addf %85, %87 : vector<4x128xf32>
    %c28_38 = arith.constant 28 : index
    %c128 = arith.constant 128 : index
    %89 = vector.load %arg28[%c28_38, %c128] : memref<32x256xf32, #tpu.memory_space<vmem>>, vector<4x128xf32>
    tpu.vector_store %arg28[%c28_38, %c128], %88 {strides = array<i32>} : memref<32x256xf32, #tpu.memory_space<vmem>>, vector<4x128xf32>,
    %cst_39 = arith.constant 0.000000e+00 : f32
    %90 = vector.broadcast %cst_39 : f32 to vector<8x128xf32>
    %91 = arith.select %46, %73, %90 : vector<8x128xi1>, vector<8x128xf32>
    %92 = arith.select %46, %90, %73 : vector<8x128xi1>, vector<8x128xf32>
    %93 = tpu.concatenate %91, %92 in 1 : vector<8x128xf32>, vector<8x128xf32> -> vector<8x256xf32>
    %94 = arith.truncf %93 : vector<8x256xf32> to vector<8x256xbf16>
    %c8_40 = arith.constant 8 : index
    %c0_41 = arith.constant 0 : index
    %95 = vector.load %arg29[%c8_40, %c0_41] : memref<64x512xf32, #tpu.memory_space<vmem>>, vector<8x512xf32>
    %c0_42 = arith.constant 0 : index
    %c0_43 = arith.constant 0 : index
    %96 = vector.load %arg9[%c0_42, %c0_43] : memref<256x512xbf16, #tpu.memory_space<vmem>>, vector<256x512xbf16>
    %cst_44 = arith.constant dense<0.000000e+00> : vector<8x512xf32>
    %97 = tpu.matmul %94, %96, %cst_44 {dimension_numbers = #tpu.dot_dimension_numbers<[1], [0], [0], [1], [0, 0, 1, 1], [], []>} : vector<8x256xbf16>, vector<256x512xbf16>, vector<8x512xf32> -> vector<8x512xf32>
    %98 = arith.addf %95, %97 : vector<8x512xf32>
    %99 = vector.extract_strided_slice %98 {offsets = [0, 0], sizes = [8, 128], strides = [1, 1]} : vector<8x512xf32> to vector<8x128xf32>
    %100 = arith.negf %99 : vector<8x128xf32>
    %101 = math.exp %100 : vector<8x128xf32>
    %cst_45 = arith.constant 1.000000e+00 : f32
    %102 = vector.broadcast %cst_45 : f32 to vector<8x128xf32>
    %103 = arith.addf %102, %101 : vector<8x128xf32>
    %104 = arith.divf %102, %103 : vector<8x128xf32>
    %105 = vector.extract_strided_slice %98 {offsets = [0, 128], sizes = [8, 128], strides = [1, 1]} : vector<8x512xf32> to vector<8x128xf32>
    %106 = arith.negf %105 : vector<8x128xf32>
    %107 = math.exp %106 : vector<8x128xf32>
    %cst_46 = arith.constant 1.000000e+00 : f32
    %108 = vector.broadcast %cst_46 : f32 to vector<8x128xf32>
    %109 = arith.addf %108, %107 : vector<8x128xf32>
    %110 = arith.divf %108, %109 : vector<8x128xf32>
    %111 = vector.extract_strided_slice %98 {offsets = [0, 256], sizes = [8, 128], strides = [1, 1]} : vector<8x512xf32> to vector<8x128xf32>
    %112 = math.tanh %111 : vector<8x128xf32>
    %113 = vector.extract_strided_slice %98 {offsets = [0, 384], sizes = [8, 128], strides = [1, 1]} : vector<8x512xf32> to vector<8x128xf32>
    %114 = arith.negf %113 : vector<8x128xf32>
    %115 = math.exp %114 : vector<8x128xf32>
    %cst_47 = arith.constant 1.000000e+00 : f32
    %116 = vector.broadcast %cst_47 : f32 to vector<8x128xf32>
    %117 = arith.addf %116, %115 : vector<8x128xf32>
    %118 = arith.divf %116, %117 : vector<8x128xf32>
    %119 = arith.mulf %110, %71 : vector<8x128xf32>
    %120 = arith.mulf %104, %112 : vector<8x128xf32>
    %121 = arith.addf %119, %120 : vector<8x128xf32>
    %122 = math.tanh %121 : vector<8x128xf32>
    %123 = arith.mulf %118, %122 : vector<8x128xf32>
    %124 = vector.extract_strided_slice %123 {offsets = [0, 0], sizes = [4, 128], strides = [1, 1]} : vector<8x128xf32> to vector<4x128xf32>
    %c1 = arith.constant 1 : index
    %125 = memref.load %arg0[%c1] : memref<8xf32, #tpu.memory_space<smem>>
    %126 = vector.broadcast %125 : f32 to vector<4x128xf32>
    %127 = arith.mulf %124, %126 : vector<4x128xf32>
    %c1_48 = arith.constant 1 : index
    %128 = memref.load %arg1[%c1_48] : memref<8xf32, #tpu.memory_space<smem>>
    %129 = vector.broadcast %128 : f32 to vector<4x128xf32>
    %130 = arith.addf %127, %129 : vector<4x128xf32>
    %c4_49 = arith.constant 4 : index
    %c0_50 = arith.constant 0 : index
    %131 = vector.load %arg28[%c4_49, %c0_50] : memref<32x256xf32, #tpu.memory_space<vmem>>, vector<4x128xf32>
    tpu.vector_store %arg28[%c4_49, %c0_50], %130 {strides = array<i32>} : memref<32x256xf32, #tpu.memory_space<vmem>>, vector<4x128xf32>,
    %132 = vector.extract_strided_slice %123 {offsets = [4, 0], sizes = [4, 128], strides = [1, 1]} : vector<8x128xf32> to vector<4x128xf32>
    %c6 = arith.constant 6 : index
    %133 = memref.load %arg0[%c6] : memref<8xf32, #tpu.memory_space<smem>>
    %134 = vector.broadcast %133 : f32 to vector<4x128xf32>
    %135 = arith.mulf %132, %134 : vector<4x128xf32>
    %c6_51 = arith.constant 6 : index
    %136 = memref.load %arg1[%c6_51] : memref<8xf32, #tpu.memory_space<smem>>
    %137 = vector.broadcast %136 : f32 to vector<4x128xf32>
    %138 = arith.addf %135, %137 : vector<4x128xf32>
    %c24_52 = arith.constant 24 : index
    %c128_53 = arith.constant 128 : index
    %139 = vector.load %arg28[%c24_52, %c128_53] : memref<32x256xf32, #tpu.memory_space<vmem>>, vector<4x128xf32>
    tpu.vector_store %arg28[%c24_52, %c128_53], %138 {strides = array<i32>} : memref<32x256xf32, #tpu.memory_space<vmem>>, vector<4x128xf32>,
    %cst_54 = arith.constant 0.000000e+00 : f32
    %140 = vector.broadcast %cst_54 : f32 to vector<8x128xf32>
    %141 = arith.select %46, %123, %140 : vector<8x128xi1>, vector<8x128xf32>
    %142 = arith.select %46, %140, %123 : vector<8x128xi1>, vector<8x128xf32>
    %143 = tpu.concatenate %141, %142 in 1 : vector<8x128xf32>, vector<8x128xf32> -> vector<8x256xf32>
    %144 = arith.truncf %143 : vector<8x256xf32> to vector<8x256xbf16>
    %c16_55 = arith.constant 16 : index
    %c0_56 = arith.constant 0 : index
    %145 = vector.load %arg29[%c16_55, %c0_56] : memref<64x512xf32, #tpu.memory_space<vmem>>, vector<8x512xf32>
    %c0_57 = arith.constant 0 : index
    %c0_58 = arith.constant 0 : index
    %146 = vector.load %arg9[%c0_57, %c0_58] : memref<256x512xbf16, #tpu.memory_space<vmem>>, vector<256x512xbf16>
    %cst_59 = arith.constant dense<0.000000e+00> : vector<8x512xf32>
    %147 = tpu.matmul %144, %146, %cst_59 {dimension_numbers = #tpu.dot_dimension_numbers<[1], [0], [0], [1], [0, 0, 1, 1], [], []>} : vector<8x256xbf16>, vector<256x512xbf16>, vector<8x512xf32> -> vector<8x512xf32>
    %148 = arith.addf %145, %147 : vector<8x512xf32>
    %149 = vector.extract_strided_slice %148 {offsets = [0, 0], sizes = [8, 128], strides = [1, 1]} : vector<8x512xf32> to vector<8x128xf32>
    %150 = arith.negf %149 : vector<8x128xf32>
    %151 = math.exp %150 : vector<8x128xf32>
    %cst_60 = arith.constant 1.000000e+00 : f32
    %152 = vector.broadcast %cst_60 : f32 to vector<8x128xf32>
    %153 = arith.addf %152, %151 : vector<8x128xf32>
    %154 = arith.divf %152, %153 : vector<8x128xf32>
    %155 = vector.extract_strided_slice %148 {offsets = [0, 128], sizes = [8, 128], strides = [1, 1]} : vector<8x512xf32> to vector<8x128xf32>
    %156 = arith.negf %155 : vector<8x128xf32>
    %157 = math.exp %156 : vector<8x128xf32>
    %cst_61 = arith.constant 1.000000e+00 : f32
    %158 = vector.broadcast %cst_61 : f32 to vector<8x128xf32>
    %159 = arith.addf %158, %157 : vector<8x128xf32>
    %160 = arith.divf %158, %159 : vector<8x128xf32>
    %161 = vector.extract_strided_slice %148 {offsets = [0, 256], sizes = [8, 128], strides = [1, 1]} : vector<8x512xf32> to vector<8x128xf32>
    %162 = math.tanh %161 : vector<8x128xf32>
    %163 = vector.extract_strided_slice %148 {offsets = [0, 384], sizes = [8, 128], strides = [1, 1]} : vector<8x512xf32> to vector<8x128xf32>
    %164 = arith.negf %163 : vector<8x128xf32>
    %165 = math.exp %164 : vector<8x128xf32>
    %cst_62 = arith.constant 1.000000e+00 : f32
    %166 = vector.broadcast %cst_62 : f32 to vector<8x128xf32>
    %167 = arith.addf %166, %165 : vector<8x128xf32>
    %168 = arith.divf %166, %167 : vector<8x128xf32>
    %169 = arith.mulf %160, %121 : vector<8x128xf32>
    %170 = arith.mulf %154, %162 : vector<8x128xf32>
    %171 = arith.addf %169, %170 : vector<8x128xf32>
    %172 = math.tanh %171 : vector<8x128xf32>
    %173 = arith.mulf %168, %172 : vector<8x128xf32>
    %174 = vector.extract_strided_slice %173 {offsets = [0, 0], sizes = [4, 128], strides = [1, 1]} : vector<8x128xf32> to vector<4x128xf32>
    %c2 = arith.constant 2 : index
    %175 = memref.load %arg0[%c2] : memref<8xf32, #tpu.memory_space<smem>>
    %176 = vector.broadcast %175 : f32 to vector<4x128xf32>
    %177 = arith.mulf %174, %176 : vector<4x128xf32>
    %c2_63 = arith.constant 2 : index
    %178 = memref.load %arg1[%c2_63] : memref<8xf32, #tpu.memory_space<smem>>
    %179 = vector.broadcast %178 : f32 to vector<4x128xf32>
    %180 = arith.addf %177, %179 : vector<4x128xf32>
    %c8_64 = arith.constant 8 : index
    %c0_65 = arith.constant 0 : index
    %181 = vector.load %arg28[%c8_64, %c0_65] : memref<32x256xf32, #tpu.memory_space<vmem>>, vector<4x128xf32>
    tpu.vector_store %arg28[%c8_64, %c0_65], %180 {strides = array<i32>} : memref<32x256xf32, #tpu.memory_space<vmem>>, vector<4x128xf32>,
    %182 = vector.extract_strided_slice %173 {offsets = [4, 0], sizes = [4, 128], strides = [1, 1]} : vector<8x128xf32> to vector<4x128xf32>
    %c5 = arith.constant 5 : index
    %183 = memref.load %arg0[%c5] : memref<8xf32, #tpu.memory_space<smem>>
    %184 = vector.broadcast %183 : f32 to vector<4x128xf32>
    %185 = arith.mulf %182, %184 : vector<4x128xf32>
    %c5_66 = arith.constant 5 : index
    %186 = memref.load %arg1[%c5_66] : memref<8xf32, #tpu.memory_space<smem>>
    %187 = vector.broadcast %186 : f32 to vector<4x128xf32>
    %188 = arith.addf %185, %187 : vector<4x128xf32>
    %c20_67 = arith.constant 20 : index
    %c128_68 = arith.constant 128 : index
    %189 = vector.load %arg28[%c20_67, %c128_68] : memref<32x256xf32, #tpu.memory_space<vmem>>, vector<4x128xf32>
    tpu.vector_store %arg28[%c20_67, %c128_68], %188 {strides = array<i32>} : memref<32x256xf32, #tpu.memory_space<vmem>>, vector<4x128xf32>,
    %cst_69 = arith.constant 0.000000e+00 : f32
    %190 = vector.broadcast %cst_69 : f32 to vector<8x128xf32>
    %191 = arith.select %46, %173, %190 : vector<8x128xi1>, vector<8x128xf32>
    %192 = arith.select %46, %190, %173 : vector<8x128xi1>, vector<8x128xf32>
    %193 = tpu.concatenate %191, %192 in 1 : vector<8x128xf32>, vector<8x128xf32> -> vector<8x256xf32>
    %194 = arith.truncf %193 : vector<8x256xf32> to vector<8x256xbf16>
    %c24_70 = arith.constant 24 : index
    %c0_71 = arith.constant 0 : index
    %195 = vector.load %arg29[%c24_70, %c0_71] : memref<64x512xf32, #tpu.memory_space<vmem>>, vector<8x512xf32>
    %c0_72 = arith.constant 0 : index
    %c0_73 = arith.constant 0 : index
    %196 = vector.load %arg9[%c0_72, %c0_73] : memref<256x512xbf16, #tpu.memory_space<vmem>>, vector<256x512xbf16>
    %cst_74 = arith.constant dense<0.000000e+00> : vector<8x512xf32>
    %197 = tpu.matmul %194, %196, %cst_74 {dimension_numbers = #tpu.dot_dimension_numbers<[1], [0], [0], [1], [0, 0, 1, 1], [], []>} : vector<8x256xbf16>, vector<256x512xbf16>, vector<8x512xf32> -> vector<8x512xf32>
    %198 = arith.addf %195, %197 : vector<8x512xf32>
    %199 = vector.extract_strided_slice %198 {offsets = [0, 0], sizes = [8, 128], strides = [1, 1]} : vector<8x512xf32> to vector<8x128xf32>
    %200 = arith.negf %199 : vector<8x128xf32>
    %201 = math.exp %200 : vector<8x128xf32>
    %cst_75 = arith.constant 1.000000e+00 : f32
    %202 = vector.broadcast %cst_75 : f32 to vector<8x128xf32>
    %203 = arith.addf %202, %201 : vector<8x128xf32>
    %204 = arith.divf %202, %203 : vector<8x128xf32>
    %205 = vector.extract_strided_slice %198 {offsets = [0, 128], sizes = [8, 128], strides = [1, 1]} : vector<8x512xf32> to vector<8x128xf32>
    %206 = arith.negf %205 : vector<8x128xf32>
    %207 = math.exp %206 : vector<8x128xf32>
    %cst_76 = arith.constant 1.000000e+00 : f32
    %208 = vector.broadcast %cst_76 : f32 to vector<8x128xf32>
    %209 = arith.addf %208, %207 : vector<8x128xf32>
    %210 = arith.divf %208, %209 : vector<8x128xf32>
    %211 = vector.extract_strided_slice %198 {offsets = [0, 256], sizes = [8, 128], strides = [1, 1]} : vector<8x512xf32> to vector<8x128xf32>
    %212 = math.tanh %211 : vector<8x128xf32>
    %213 = vector.extract_strided_slice %198 {offsets = [0, 384], sizes = [8, 128], strides = [1, 1]} : vector<8x512xf32> to vector<8x128xf32>
    %214 = arith.negf %213 : vector<8x128xf32>
    %215 = math.exp %214 : vector<8x128xf32>
    %cst_77 = arith.constant 1.000000e+00 : f32
    %216 = vector.broadcast %cst_77 : f32 to vector<8x128xf32>
    %217 = arith.addf %216, %215 : vector<8x128xf32>
    %218 = arith.divf %216, %217 : vector<8x128xf32>
    %219 = arith.mulf %210, %171 : vector<8x128xf32>
    %220 = arith.mulf %204, %212 : vector<8x128xf32>
    %221 = arith.addf %219, %220 : vector<8x128xf32>
    %222 = math.tanh %221 : vector<8x128xf32>
    %223 = arith.mulf %218, %222 : vector<8x128xf32>
    %224 = vector.extract_strided_slice %223 {offsets = [0, 0], sizes = [4, 128], strides = [1, 1]} : vector<8x128xf32> to vector<4x128xf32>
    %c3 = arith.constant 3 : index
    %225 = memref.load %arg0[%c3] : memref<8xf32, #tpu.memory_space<smem>>
    %226 = vector.broadcast %225 : f32 to vector<4x128xf32>
    %227 = arith.mulf %224, %226 : vector<4x128xf32>
    %c3_78 = arith.constant 3 : index
    %228 = memref.load %arg1[%c3_78] : memref<8xf32, #tpu.memory_space<smem>>
    %229 = vector.broadcast %228 : f32 to vector<4x128xf32>
    %230 = arith.addf %227, %229 : vector<4x128xf32>
    %c12_79 = arith.constant 12 : index
    %c0_80 = arith.constant 0 : index
    %231 = vector.load %arg28[%c12_79, %c0_80] : memref<32x256xf32, #tpu.memory_space<vmem>>, vector<4x128xf32>
    tpu.vector_store %arg28[%c12_79, %c0_80], %230 {strides = array<i32>} : memref<32x256xf32, #tpu.memory_space<vmem>>, vector<4x128xf32>,
    %232 = vector.extract_strided_slice %223 {offsets = [4, 0], sizes = [4, 128], strides = [1, 1]} : vector<8x128xf32> to vector<4x128xf32>
    %c4_81 = arith.constant 4 : index
    %233 = memref.load %arg0[%c4_81] : memref<8xf32, #tpu.memory_space<smem>>
    %234 = vector.broadcast %233 : f32 to vector<4x128xf32>
    %235 = arith.mulf %232, %234 : vector<4x128xf32>
    %c4_82 = arith.constant 4 : index
    %236 = memref.load %arg1[%c4_82] : memref<8xf32, #tpu.memory_space<smem>>
    %237 = vector.broadcast %236 : f32 to vector<4x128xf32>
    %238 = arith.addf %235, %237 : vector<4x128xf32>
    %c16_83 = arith.constant 16 : index
    %c128_84 = arith.constant 128 : index
    %239 = vector.load %arg28[%c16_83, %c128_84] : memref<32x256xf32, #tpu.memory_space<vmem>>, vector<4x128xf32>
    tpu.vector_store %arg28[%c16_83, %c128_84], %238 {strides = array<i32>} : memref<32x256xf32, #tpu.memory_space<vmem>>, vector<4x128xf32>,
    %cst_85 = arith.constant 0.000000e+00 : f32
    %240 = vector.broadcast %cst_85 : f32 to vector<8x128xf32>
    %241 = arith.select %46, %223, %240 : vector<8x128xi1>, vector<8x128xf32>
    %242 = arith.select %46, %240, %223 : vector<8x128xi1>, vector<8x128xf32>
    %243 = tpu.concatenate %241, %242 in 1 : vector<8x128xf32>, vector<8x128xf32> -> vector<8x256xf32>
    %244 = arith.truncf %243 : vector<8x256xf32> to vector<8x256xbf16>
    %c32_86 = arith.constant 32 : index
    %c0_87 = arith.constant 0 : index
    %245 = vector.load %arg29[%c32_86, %c0_87] : memref<64x512xf32, #tpu.memory_space<vmem>>, vector<8x512xf32>
    %c0_88 = arith.constant 0 : index
    %c0_89 = arith.constant 0 : index
    %246 = vector.load %arg9[%c0_88, %c0_89] : memref<256x512xbf16, #tpu.memory_space<vmem>>, vector<256x512xbf16>
    %cst_90 = arith.constant dense<0.000000e+00> : vector<8x512xf32>
    %247 = tpu.matmul %244, %246, %cst_90 {dimension_numbers = #tpu.dot_dimension_numbers<[1], [0], [0], [1], [0, 0, 1, 1], [], []>} : vector<8x256xbf16>, vector<256x512xbf16>, vector<8x512xf32> -> vector<8x512xf32>
    %248 = arith.addf %245, %247 : vector<8x512xf32>
    %249 = vector.extract_strided_slice %248 {offsets = [0, 0], sizes = [8, 128], strides = [1, 1]} : vector<8x512xf32> to vector<8x128xf32>
    %250 = arith.negf %249 : vector<8x128xf32>
    %251 = math.exp %250 : vector<8x128xf32>
    %cst_91 = arith.constant 1.000000e+00 : f32
    %252 = vector.broadcast %cst_91 : f32 to vector<8x128xf32>
    %253 = arith.addf %252, %251 : vector<8x128xf32>
    %254 = arith.divf %252, %253 : vector<8x128xf32>
    %255 = vector.extract_strided_slice %248 {offsets = [0, 128], sizes = [8, 128], strides = [1, 1]} : vector<8x512xf32> to vector<8x128xf32>
    %256 = arith.negf %255 : vector<8x128xf32>
    %257 = math.exp %256 : vector<8x128xf32>
    %cst_92 = arith.constant 1.000000e+00 : f32
    %258 = vector.broadcast %cst_92 : f32 to vector<8x128xf32>
    %259 = arith.addf %258, %257 : vector<8x128xf32>
    %260 = arith.divf %258, %259 : vector<8x128xf32>
    %261 = vector.extract_strided_slice %248 {offsets = [0, 256], sizes = [8, 128], strides = [1, 1]} : vector<8x512xf32> to vector<8x128xf32>
    %262 = math.tanh %261 : vector<8x128xf32>
    %263 = vector.extract_strided_slice %248 {offsets = [0, 384], sizes = [8, 128], strides = [1, 1]} : vector<8x512xf32> to vector<8x128xf32>
    %264 = arith.negf %263 : vector<8x128xf32>
    %265 = math.exp %264 : vector<8x128xf32>
    %cst_93 = arith.constant 1.000000e+00 : f32
    %266 = vector.broadcast %cst_93 : f32 to vector<8x128xf32>
    %267 = arith.addf %266, %265 : vector<8x128xf32>
    %268 = arith.divf %266, %267 : vector<8x128xf32>
    %269 = arith.mulf %260, %221 : vector<8x128xf32>
    %270 = arith.mulf %254, %262 : vector<8x128xf32>
    %271 = arith.addf %269, %270 : vector<8x128xf32>
    %272 = math.tanh %271 : vector<8x128xf32>
    %273 = arith.mulf %268, %272 : vector<8x128xf32>
    %274 = vector.extract_strided_slice %273 {offsets = [0, 0], sizes = [4, 128], strides = [1, 1]} : vector<8x128xf32> to vector<4x128xf32>
    %c4_94 = arith.constant 4 : index
    %275 = memref.load %arg0[%c4_94] : memref<8xf32, #tpu.memory_space<smem>>
    %276 = vector.broadcast %275 : f32 to vector<4x128xf32>
    %277 = arith.mulf %274, %276 : vector<4x128xf32>
    %c4_95 = arith.constant 4 : index
    %278 = memref.load %arg1[%c4_95] : memref<8xf32, #tpu.memory_space<smem>>
    %279 = vector.broadcast %278 : f32 to vector<4x128xf32>
    %280 = arith.addf %277, %279 : vector<4x128xf32>
    %c16_96 = arith.constant 16 : index
    %c0_97 = arith.constant 0 : index
    %281 = vector.load %arg28[%c16_96, %c0_97] : memref<32x256xf32, #tpu.memory_space<vmem>>, vector<4x128xf32>
    tpu.vector_store %arg28[%c16_96, %c0_97], %280 {strides = array<i32>} : memref<32x256xf32, #tpu.memory_space<vmem>>, vector<4x128xf32>,
    %282 = vector.extract_strided_slice %273 {offsets = [4, 0], sizes = [4, 128], strides = [1, 1]} : vector<8x128xf32> to vector<4x128xf32>
    %c3_98 = arith.constant 3 : index
    %283 = memref.load %arg0[%c3_98] : memref<8xf32, #tpu.memory_space<smem>>
    %284 = vector.broadcast %283 : f32 to vector<4x128xf32>
    %285 = arith.mulf %282, %284 : vector<4x128xf32>
    %c3_99 = arith.constant 3 : index
    %286 = memref.load %arg1[%c3_99] : memref<8xf32, #tpu.memory_space<smem>>
    %287 = vector.broadcast %286 : f32 to vector<4x128xf32>
    %288 = arith.addf %285, %287 : vector<4x128xf32>
    %c12_100 = arith.constant 12 : index
    %c128_101 = arith.constant 128 : index
    %289 = vector.load %arg28[%c12_100, %c128_101] : memref<32x256xf32, #tpu.memory_space<vmem>>, vector<4x128xf32>
    tpu.vector_store %arg28[%c12_100, %c128_101], %288 {strides = array<i32>} : memref<32x256xf32, #tpu.memory_space<vmem>>, vector<4x128xf32>,
    %cst_102 = arith.constant 0.000000e+00 : f32
    %290 = vector.broadcast %cst_102 : f32 to vector<8x128xf32>
    %291 = arith.select %46, %273, %290 : vector<8x128xi1>, vector<8x128xf32>
    %292 = arith.select %46, %290, %273 : vector<8x128xi1>, vector<8x128xf32>
    %293 = tpu.concatenate %291, %292 in 1 : vector<8x128xf32>, vector<8x128xf32> -> vector<8x256xf32>
    %294 = arith.truncf %293 : vector<8x256xf32> to vector<8x256xbf16>
    %c40_103 = arith.constant 40 : index
    %c0_104 = arith.constant 0 : index
    %295 = vector.load %arg29[%c40_103, %c0_104] : memref<64x512xf32, #tpu.memory_space<vmem>>, vector<8x512xf32>
    %c0_105 = arith.constant 0 : index
    %c0_106 = arith.constant 0 : index
    %296 = vector.load %arg9[%c0_105, %c0_106] : memref<256x512xbf16, #tpu.memory_space<vmem>>, vector<256x512xbf16>
    %cst_107 = arith.constant dense<0.000000e+00> : vector<8x512xf32>
    %297 = tpu.matmul %294, %296, %cst_107 {dimension_numbers = #tpu.dot_dimension_numbers<[1], [0], [0], [1], [0, 0, 1, 1], [], []>} : vector<8x256xbf16>, vector<256x512xbf16>, vector<8x512xf32> -> vector<8x512xf32>
    %298 = arith.addf %295, %297 : vector<8x512xf32>
    %299 = vector.extract_strided_slice %298 {offsets = [0, 0], sizes = [8, 128], strides = [1, 1]} : vector<8x512xf32> to vector<8x128xf32>
    %300 = arith.negf %299 : vector<8x128xf32>
    %301 = math.exp %300 : vector<8x128xf32>
    %cst_108 = arith.constant 1.000000e+00 : f32
    %302 = vector.broadcast %cst_108 : f32 to vector<8x128xf32>
    %303 = arith.addf %302, %301 : vector<8x128xf32>
    %304 = arith.divf %302, %303 : vector<8x128xf32>
    %305 = vector.extract_strided_slice %298 {offsets = [0, 128], sizes = [8, 128], strides = [1, 1]} : vector<8x512xf32> to vector<8x128xf32>
    %306 = arith.negf %305 : vector<8x128xf32>
    %307 = math.exp %306 : vector<8x128xf32>
    %cst_109 = arith.constant 1.000000e+00 : f32
    %308 = vector.broadcast %cst_109 : f32 to vector<8x128xf32>
    %309 = arith.addf %308, %307 : vector<8x128xf32>
    %310 = arith.divf %308, %309 : vector<8x128xf32>
    %311 = vector.extract_strided_slice %298 {offsets = [0, 256], sizes = [8, 128], strides = [1, 1]} : vector<8x512xf32> to vector<8x128xf32>
    %312 = math.tanh %311 : vector<8x128xf32>
    %313 = vector.extract_strided_slice %298 {offsets = [0, 384], sizes = [8, 128], strides = [1, 1]} : vector<8x512xf32> to vector<8x128xf32>
    %314 = arith.negf %313 : vector<8x128xf32>
    %315 = math.exp %314 : vector<8x128xf32>
    %cst_110 = arith.constant 1.000000e+00 : f32
    %316 = vector.broadcast %cst_110 : f32 to vector<8x128xf32>
    %317 = arith.addf %316, %315 : vector<8x128xf32>
    %318 = arith.divf %316, %317 : vector<8x128xf32>
    %319 = arith.mulf %310, %271 : vector<8x128xf32>
    %320 = arith.mulf %304, %312 : vector<8x128xf32>
    %321 = arith.addf %319, %320 : vector<8x128xf32>
    %322 = math.tanh %321 : vector<8x128xf32>
    %323 = arith.mulf %318, %322 : vector<8x128xf32>
    %324 = vector.extract_strided_slice %323 {offsets = [0, 0], sizes = [4, 128], strides = [1, 1]} : vector<8x128xf32> to vector<4x128xf32>
    %c5_111 = arith.constant 5 : index
    %325 = memref.load %arg0[%c5_111] : memref<8xf32, #tpu.memory_space<smem>>
    %326 = vector.broadcast %325 : f32 to vector<4x128xf32>
    %327 = arith.mulf %324, %326 : vector<4x128xf32>
    %c5_112 = arith.constant 5 : index
    %328 = memref.load %arg1[%c5_112] : memref<8xf32, #tpu.memory_space<smem>>
    %329 = vector.broadcast %328 : f32 to vector<4x128xf32>
    %330 = arith.addf %327, %329 : vector<4x128xf32>
    %c20_113 = arith.constant 20 : index
    %c0_114 = arith.constant 0 : index
    %331 = vector.load %arg28[%c20_113, %c0_114] : memref<32x256xf32, #tpu.memory_space<vmem>>, vector<4x128xf32>
    tpu.vector_store %arg28[%c20_113, %c0_114], %330 {strides = array<i32>} : memref<32x256xf32, #tpu.memory_space<vmem>>, vector<4x128xf32>,
    %332 = vector.extract_strided_slice %323 {offsets = [4, 0], sizes = [4, 128], strides = [1, 1]} : vector<8x128xf32> to vector<4x128xf32>
    %c2_115 = arith.constant 2 : index
    %333 = memref.load %arg0[%c2_115] : memref<8xf32, #tpu.memory_space<smem>>
    %334 = vector.broadcast %333 : f32 to vector<4x128xf32>
    %335 = arith.mulf %332, %334 : vector<4x128xf32>
    %c2_116 = arith.constant 2 : index
    %336 = memref.load %arg1[%c2_116] : memref<8xf32, #tpu.memory_space<smem>>
    %337 = vector.broadcast %336 : f32 to vector<4x128xf32>
    %338 = arith.addf %335, %337 : vector<4x128xf32>
    %c8_117 = arith.constant 8 : index
    %c128_118 = arith.constant 128 : index
    %339 = vector.load %arg28[%c8_117, %c128_118] : memref<32x256xf32, #tpu.memory_space<vmem>>, vector<4x128xf32>
    tpu.vector_store %arg28[%c8_117, %c128_118], %338 {strides = array<i32>} : memref<32x256xf32, #tpu.memory_space<vmem>>, vector<4x128xf32>,
    %cst_119 = arith.constant 0.000000e+00 : f32
    %340 = vector.broadcast %cst_119 : f32 to vector<8x128xf32>
    %341 = arith.select %46, %323, %340 : vector<8x128xi1>, vector<8x128xf32>
    %342 = arith.select %46, %340, %323 : vector<8x128xi1>, vector<8x128xf32>
    %343 = tpu.concatenate %341, %342 in 1 : vector<8x128xf32>, vector<8x128xf32> -> vector<8x256xf32>
    %344 = arith.truncf %343 : vector<8x256xf32> to vector<8x256xbf16>
    %c48_120 = arith.constant 48 : index
    %c0_121 = arith.constant 0 : index
    %345 = vector.load %arg29[%c48_120, %c0_121] : memref<64x512xf32, #tpu.memory_space<vmem>>, vector<8x512xf32>
    %c0_122 = arith.constant 0 : index
    %c0_123 = arith.constant 0 : index
    %346 = vector.load %arg9[%c0_122, %c0_123] : memref<256x512xbf16, #tpu.memory_space<vmem>>, vector<256x512xbf16>
    %cst_124 = arith.constant dense<0.000000e+00> : vector<8x512xf32>
    %347 = tpu.matmul %344, %346, %cst_124 {dimension_numbers = #tpu.dot_dimension_numbers<[1], [0], [0], [1], [0, 0, 1, 1], [], []>} : vector<8x256xbf16>, vector<256x512xbf16>, vector<8x512xf32> -> vector<8x512xf32>
    %348 = arith.addf %345, %347 : vector<8x512xf32>
    %349 = vector.extract_strided_slice %348 {offsets = [0, 0], sizes = [8, 128], strides = [1, 1]} : vector<8x512xf32> to vector<8x128xf32>
    %350 = arith.negf %349 : vector<8x128xf32>
    %351 = math.exp %350 : vector<8x128xf32>
    %cst_125 = arith.constant 1.000000e+00 : f32
    %352 = vector.broadcast %cst_125 : f32 to vector<8x128xf32>
    %353 = arith.addf %352, %351 : vector<8x128xf32>
    %354 = arith.divf %352, %353 : vector<8x128xf32>
    %355 = vector.extract_strided_slice %348 {offsets = [0, 128], sizes = [8, 128], strides = [1, 1]} : vector<8x512xf32> to vector<8x128xf32>
    %356 = arith.negf %355 : vector<8x128xf32>
    %357 = math.exp %356 : vector<8x128xf32>
    %cst_126 = arith.constant 1.000000e+00 : f32
    %358 = vector.broadcast %cst_126 : f32 to vector<8x128xf32>
    %359 = arith.addf %358, %357 : vector<8x128xf32>
    %360 = arith.divf %358, %359 : vector<8x128xf32>
    %361 = vector.extract_strided_slice %348 {offsets = [0, 256], sizes = [8, 128], strides = [1, 1]} : vector<8x512xf32> to vector<8x128xf32>
    %362 = math.tanh %361 : vector<8x128xf32>
    %363 = vector.extract_strided_slice %348 {offsets = [0, 384], sizes = [8, 128], strides = [1, 1]} : vector<8x512xf32> to vector<8x128xf32>
    %364 = arith.negf %363 : vector<8x128xf32>
    %365 = math.exp %364 : vector<8x128xf32>
    %cst_127 = arith.constant 1.000000e+00 : f32
    %366 = vector.broadcast %cst_127 : f32 to vector<8x128xf32>
    %367 = arith.addf %366, %365 : vector<8x128xf32>
    %368 = arith.divf %366, %367 : vector<8x128xf32>
    %369 = arith.mulf %360, %321 : vector<8x128xf32>
    %370 = arith.mulf %354, %362 : vector<8x128xf32>
    %371 = arith.addf %369, %370 : vector<8x128xf32>
    %372 = math.tanh %371 : vector<8x128xf32>
    %373 = arith.mulf %368, %372 : vector<8x128xf32>
    %374 = vector.extract_strided_slice %373 {offsets = [0, 0], sizes = [4, 128], strides = [1, 1]} : vector<8x128xf32> to vector<4x128xf32>
    %c6_128 = arith.constant 6 : index
    %375 = memref.load %arg0[%c6_128] : memref<8xf32, #tpu.memory_space<smem>>
    %376 = vector.broadcast %375 : f32 to vector<4x128xf32>
    %377 = arith.mulf %374, %376 : vector<4x128xf32>
    %c6_129 = arith.constant 6 : index
    %378 = memref.load %arg1[%c6_129] : memref<8xf32, #tpu.memory_space<smem>>
    %379 = vector.broadcast %378 : f32 to vector<4x128xf32>
    %380 = arith.addf %377, %379 : vector<4x128xf32>
    %c24_130 = arith.constant 24 : index
    %c0_131 = arith.constant 0 : index
    %381 = vector.load %arg28[%c24_130, %c0_131] : memref<32x256xf32, #tpu.memory_space<vmem>>, vector<4x128xf32>
    tpu.vector_store %arg28[%c24_130, %c0_131], %380 {strides = array<i32>} : memref<32x256xf32, #tpu.memory_space<vmem>>, vector<4x128xf32>,
    %382 = vector.extract_strided_slice %373 {offsets = [4, 0], sizes = [4, 128], strides = [1, 1]} : vector<8x128xf32> to vector<4x128xf32>
    %c1_132 = arith.constant 1 : index
    %383 = memref.load %arg0[%c1_132] : memref<8xf32, #tpu.memory_space<smem>>
    %384 = vector.broadcast %383 : f32 to vector<4x128xf32>
    %385 = arith.mulf %382, %384 : vector<4x128xf32>
    %c1_133 = arith.constant 1 : index
    %386 = memref.load %arg1[%c1_133] : memref<8xf32, #tpu.memory_space<smem>>
    %387 = vector.broadcast %386 : f32 to vector<4x128xf32>
    %388 = arith.addf %385, %387 : vector<4x128xf32>
    %c4_134 = arith.constant 4 : index
    %c128_135 = arith.constant 128 : index
    %389 = vector.load %arg28[%c4_134, %c128_135] : memref<32x256xf32, #tpu.memory_space<vmem>>, vector<4x128xf32>
    tpu.vector_store %arg28[%c4_134, %c128_135], %388 {strides = array<i32>} : memref<32x256xf32, #tpu.memory_space<vmem>>, vector<4x128xf32>,
    %cst_136 = arith.constant 0.000000e+00 : f32
    %390 = vector.broadcast %cst_136 : f32 to vector<8x128xf32>
    %391 = arith.select %46, %373, %390 : vector<8x128xi1>, vector<8x128xf32>
    %392 = arith.select %46, %390, %373 : vector<8x128xi1>, vector<8x128xf32>
    %393 = tpu.concatenate %391, %392 in 1 : vector<8x128xf32>, vector<8x128xf32> -> vector<8x256xf32>
    %394 = arith.truncf %393 : vector<8x256xf32> to vector<8x256xbf16>
    %c56_137 = arith.constant 56 : index
    %c0_138 = arith.constant 0 : index
    %395 = vector.load %arg29[%c56_137, %c0_138] : memref<64x512xf32, #tpu.memory_space<vmem>>, vector<8x512xf32>
    %c0_139 = arith.constant 0 : index
    %c0_140 = arith.constant 0 : index
    %396 = vector.load %arg9[%c0_139, %c0_140] : memref<256x512xbf16, #tpu.memory_space<vmem>>, vector<256x512xbf16>
    %cst_141 = arith.constant dense<0.000000e+00> : vector<8x512xf32>
    %397 = tpu.matmul %394, %396, %cst_141 {dimension_numbers = #tpu.dot_dimension_numbers<[1], [0], [0], [1], [0, 0, 1, 1], [], []>} : vector<8x256xbf16>, vector<256x512xbf16>, vector<8x512xf32> -> vector<8x512xf32>
    %398 = arith.addf %395, %397 : vector<8x512xf32>
    %399 = vector.extract_strided_slice %398 {offsets = [0, 0], sizes = [8, 128], strides = [1, 1]} : vector<8x512xf32> to vector<8x128xf32>
    %400 = arith.negf %399 : vector<8x128xf32>
    %401 = math.exp %400 : vector<8x128xf32>
    %cst_142 = arith.constant 1.000000e+00 : f32
    %402 = vector.broadcast %cst_142 : f32 to vector<8x128xf32>
    %403 = arith.addf %402, %401 : vector<8x128xf32>
    %404 = arith.divf %402, %403 : vector<8x128xf32>
    %405 = vector.extract_strided_slice %398 {offsets = [0, 128], sizes = [8, 128], strides = [1, 1]} : vector<8x512xf32> to vector<8x128xf32>
    %406 = arith.negf %405 : vector<8x128xf32>
    %407 = math.exp %406 : vector<8x128xf32>
    %cst_143 = arith.constant 1.000000e+00 : f32
    %408 = vector.broadcast %cst_143 : f32 to vector<8x128xf32>
    %409 = arith.addf %408, %407 : vector<8x128xf32>
    %410 = arith.divf %408, %409 : vector<8x128xf32>
    %411 = vector.extract_strided_slice %398 {offsets = [0, 256], sizes = [8, 128], strides = [1, 1]} : vector<8x512xf32> to vector<8x128xf32>
    %412 = math.tanh %411 : vector<8x128xf32>
    %413 = vector.extract_strided_slice %398 {offsets = [0, 384], sizes = [8, 128], strides = [1, 1]} : vector<8x512xf32> to vector<8x128xf32>
    %414 = arith.negf %413 : vector<8x128xf32>
    %415 = math.exp %414 : vector<8x128xf32>
    %cst_144 = arith.constant 1.000000e+00 : f32
    %416 = vector.broadcast %cst_144 : f32 to vector<8x128xf32>
    %417 = arith.addf %416, %415 : vector<8x128xf32>
    %418 = arith.divf %416, %417 : vector<8x128xf32>
    %419 = arith.mulf %410, %371 : vector<8x128xf32>
    %420 = arith.mulf %404, %412 : vector<8x128xf32>
    %421 = arith.addf %419, %420 : vector<8x128xf32>
    %422 = math.tanh %421 : vector<8x128xf32>
    %423 = arith.mulf %418, %422 : vector<8x128xf32>
    %424 = vector.extract_strided_slice %423 {offsets = [0, 0], sizes = [4, 128], strides = [1, 1]} : vector<8x128xf32> to vector<4x128xf32>
    %c7_145 = arith.constant 7 : index
    %425 = memref.load %arg0[%c7_145] : memref<8xf32, #tpu.memory_space<smem>>
    %426 = vector.broadcast %425 : f32 to vector<4x128xf32>
    %427 = arith.mulf %424, %426 : vector<4x128xf32>
    %c7_146 = arith.constant 7 : index
    %428 = memref.load %arg1[%c7_146] : memref<8xf32, #tpu.memory_space<smem>>
    %429 = vector.broadcast %428 : f32 to vector<4x128xf32>
    %430 = arith.addf %427, %429 : vector<4x128xf32>
    %c28_147 = arith.constant 28 : index
    %c0_148 = arith.constant 0 : index
    %431 = vector.load %arg28[%c28_147, %c0_148] : memref<32x256xf32, #tpu.memory_space<vmem>>, vector<4x128xf32>
    tpu.vector_store %arg28[%c28_147, %c0_148], %430 {strides = array<i32>} : memref<32x256xf32, #tpu.memory_space<vmem>>, vector<4x128xf32>,
    %432 = vector.extract_strided_slice %423 {offsets = [4, 0], sizes = [4, 128], strides = [1, 1]} : vector<8x128xf32> to vector<4x128xf32>
    %c0_149 = arith.constant 0 : index
    %433 = memref.load %arg0[%c0_149] : memref<8xf32, #tpu.memory_space<smem>>
    %434 = vector.broadcast %433 : f32 to vector<4x128xf32>
    %435 = arith.mulf %432, %434 : vector<4x128xf32>
    %c0_150 = arith.constant 0 : index
    %436 = memref.load %arg1[%c0_150] : memref<8xf32, #tpu.memory_space<smem>>
    %437 = vector.broadcast %436 : f32 to vector<4x128xf32>
    %438 = arith.addf %435, %437 : vector<4x128xf32>
    %c0_151 = arith.constant 0 : index
    %c128_152 = arith.constant 128 : index
    %439 = vector.load %arg28[%c0_151, %c128_152] : memref<32x256xf32, #tpu.memory_space<vmem>>, vector<4x128xf32>
    tpu.vector_store %arg28[%c0_151, %c128_152], %438 {strides = array<i32>} : memref<32x256xf32, #tpu.memory_space<vmem>>, vector<4x128xf32>,
    %c0_153 = arith.constant 0 : index
    %c0_154 = arith.constant 0 : index
    %440 = vector.load %arg28[%c0_153, %c0_154] : memref<32x256xf32, #tpu.memory_space<vmem>>, vector<32x256xf32>
    %441 = arith.truncf %440 : vector<32x256xf32> to vector<32x256xbf16>
    %c0_155 = arith.constant 0 : index
    %c0_156 = arith.constant 0 : index
    %442 = vector.load %arg10[%c0_155, %c0_156] : memref<256x512xbf16, #tpu.memory_space<vmem>>, vector<256x512xbf16>
    %cst_157 = arith.constant dense<0.000000e+00> : vector<32x512xf32>
    %443 = tpu.matmul %441, %442, %cst_157 {dimension_numbers = #tpu.dot_dimension_numbers<[1], [0], [0], [1], [0, 0, 1, 1], [], []>} : vector<32x256xbf16>, vector<256x512xbf16>, vector<32x512xf32> -> vector<32x512xf32>
    %c0_158 = arith.constant 0 : index
    %c0_159 = arith.constant 0 : index
    %444 = vector.load %arg12[%c0_158, %c0_159] : memref<1x512xf32, #tpu.memory_space<vmem>>, vector<1x512xf32>
    %445 = vector.broadcast %444 : vector<1x512xf32> to vector<32x512xf32>
    %446 = arith.addf %443, %445 : vector<32x512xf32>
    %c0_160 = arith.constant 0 : index
    %c0_161 = arith.constant 0 : index
    %447 = vector.load %arg11[%c0_160, %c0_161] : memref<256x512xbf16, #tpu.memory_space<vmem>>, vector<256x512xbf16>
    %cst_162 = arith.constant dense<0.000000e+00> : vector<32x512xf32>
    %448 = tpu.matmul %441, %447, %cst_162 {dimension_numbers = #tpu.dot_dimension_numbers<[1], [0], [0], [1], [0, 0, 1, 1], [], []>} : vector<32x256xbf16>, vector<256x512xbf16>, vector<32x512xf32> -> vector<32x512xf32>
    %c0_163 = arith.constant 0 : index
    %c0_164 = arith.constant 0 : index
    %449 = vector.load %arg13[%c0_163, %c0_164] : memref<1x512xf32, #tpu.memory_space<vmem>>, vector<1x512xf32>
    %450 = vector.broadcast %449 : vector<1x512xf32> to vector<32x512xf32>
    %451 = arith.addf %448, %450 : vector<32x512xf32>
    %452 = vector.extract_strided_slice %446 {offsets = [0, 0], sizes = [4, 512], strides = [1, 1]} : vector<32x512xf32> to vector<4x512xf32>
    %c0_165 = arith.constant 0 : index
    %c0_166 = arith.constant 0 : index
    %453 = vector.load %arg29[%c0_165, %c0_166] : memref<64x512xf32, #tpu.memory_space<vmem>>, vector<4x512xf32>
    tpu.vector_store %arg29[%c0_165, %c0_166], %452 {strides = array<i32>} : memref<64x512xf32, #tpu.memory_space<vmem>>, vector<4x512xf32>,
    %454 = vector.extract_strided_slice %451 {offsets = [28, 0], sizes = [4, 512], strides = [1, 1]} : vector<32x512xf32> to vector<4x512xf32>
    %c4_167 = arith.constant 4 : index
    %c0_168 = arith.constant 0 : index
    %455 = vector.load %arg29[%c4_167, %c0_168] : memref<64x512xf32, #tpu.memory_space<vmem>>, vector<4x512xf32>
    tpu.vector_store %arg29[%c4_167, %c0_168], %454 {strides = array<i32>} : memref<64x512xf32, #tpu.memory_space<vmem>>, vector<4x512xf32>,
    %456 = vector.extract_strided_slice %446 {offsets = [4, 0], sizes = [4, 512], strides = [1, 1]} : vector<32x512xf32> to vector<4x512xf32>
    %c8_169 = arith.constant 8 : index
    %c0_170 = arith.constant 0 : index
    %457 = vector.load %arg29[%c8_169, %c0_170] : memref<64x512xf32, #tpu.memory_space<vmem>>, vector<4x512xf32>
    tpu.vector_store %arg29[%c8_169, %c0_170], %456 {strides = array<i32>} : memref<64x512xf32, #tpu.memory_space<vmem>>, vector<4x512xf32>,
    %458 = vector.extract_strided_slice %451 {offsets = [24, 0], sizes = [4, 512], strides = [1, 1]} : vector<32x512xf32> to vector<4x512xf32>
    %c12_171 = arith.constant 12 : index
    %c0_172 = arith.constant 0 : index
    %459 = vector.load %arg29[%c12_171, %c0_172] : memref<64x512xf32, #tpu.memory_space<vmem>>, vector<4x512xf32>
    tpu.vector_store %arg29[%c12_171, %c0_172], %458 {strides = array<i32>} : memref<64x512xf32, #tpu.memory_space<vmem>>, vector<4x512xf32>,
    %460 = vector.extract_strided_slice %446 {offsets = [8, 0], sizes = [4, 512], strides = [1, 1]} : vector<32x512xf32> to vector<4x512xf32>
    %c16_173 = arith.constant 16 : index
    %c0_174 = arith.constant 0 : index
    %461 = vector.load %arg29[%c16_173, %c0_174] : memref<64x512xf32, #tpu.memory_space<vmem>>, vector<4x512xf32>
    tpu.vector_store %arg29[%c16_173, %c0_174], %460 {strides = array<i32>} : memref<64x512xf32, #tpu.memory_space<vmem>>, vector<4x512xf32>,
    %462 = vector.extract_strided_slice %451 {offsets = [20, 0], sizes = [4, 512], strides = [1, 1]} : vector<32x512xf32> to vector<4x512xf32>
    %c20_175 = arith.constant 20 : index
    %c0_176 = arith.constant 0 : index
    %463 = vector.load %arg29[%c20_175, %c0_176] : memref<64x512xf32, #tpu.memory_space<vmem>>, vector<4x512xf32>
    tpu.vector_store %arg29[%c20_175, %c0_176], %462 {strides = array<i32>} : memref<64x512xf32, #tpu.memory_space<vmem>>, vector<4x512xf32>,
    %464 = vector.extract_strided_slice %446 {offsets = [12, 0], sizes = [4, 512], strides = [1, 1]} : vector<32x512xf32> to vector<4x512xf32>
    %c24_177 = arith.constant 24 : index
    %c0_178 = arith.constant 0 : index
    %465 = vector.load %arg29[%c24_177, %c0_178] : memref<64x512xf32, #tpu.memory_space<vmem>>, vector<4x512xf32>
    tpu.vector_store %arg29[%c24_177, %c0_178], %464 {strides = array<i32>} : memref<64x512xf32, #tpu.memory_space<vmem>>, vector<4x512xf32>,
    %466 = vector.extract_strided_slice %451 {offsets = [16, 0], sizes = [4, 512], strides = [1, 1]} : vector<32x512xf32> to vector<4x512xf32>
    %c28_179 = arith.constant 28 : index
    %c0_180 = arith.constant 0 : index
    %467 = vector.load %arg29[%c28_179, %c0_180] : memref<64x512xf32, #tpu.memory_space<vmem>>, vector<4x512xf32>
    tpu.vector_store %arg29[%c28_179, %c0_180], %466 {strides = array<i32>} : memref<64x512xf32, #tpu.memory_space<vmem>>, vector<4x512xf32>,
    %468 = vector.extract_strided_slice %446 {offsets = [16, 0], sizes = [4, 512], strides = [1, 1]} : vector<32x512xf32> to vector<4x512xf32>
    %c32_181 = arith.constant 32 : index
    %c0_182 = arith.constant 0 : index
    %469 = vector.load %arg29[%c32_181, %c0_182] : memref<64x512xf32, #tpu.memory_space<vmem>>, vector<4x512xf32>
    tpu.vector_store %arg29[%c32_181, %c0_182], %468 {strides = array<i32>} : memref<64x512xf32, #tpu.memory_space<vmem>>, vector<4x512xf32>,
    %470 = vector.extract_strided_slice %451 {offsets = [12, 0], sizes = [4, 512], strides = [1, 1]} : vector<32x512xf32> to vector<4x512xf32>
    %c36_183 = arith.constant 36 : index
    %c0_184 = arith.constant 0 : index
    %471 = vector.load %arg29[%c36_183, %c0_184] : memref<64x512xf32, #tpu.memory_space<vmem>>, vector<4x512xf32>
    tpu.vector_store %arg29[%c36_183, %c0_184], %470 {strides = array<i32>} : memref<64x512xf32, #tpu.memory_space<vmem>>, vector<4x512xf32>,
    %472 = vector.extract_strided_slice %446 {offsets = [20, 0], sizes = [4, 512], strides = [1, 1]} : vector<32x512xf32> to vector<4x512xf32>
    %c40_185 = arith.constant 40 : index
    %c0_186 = arith.constant 0 : index
    %473 = vector.load %arg29[%c40_185, %c0_186] : memref<64x512xf32, #tpu.memory_space<vmem>>, vector<4x512xf32>
    tpu.vector_store %arg29[%c40_185, %c0_186], %472 {strides = array<i32>} : memref<64x512xf32, #tpu.memory_space<vmem>>, vector<4x512xf32>,
    %474 = vector.extract_strided_slice %451 {offsets = [8, 0], sizes = [4, 512], strides = [1, 1]} : vector<32x512xf32> to vector<4x512xf32>
    %c44_187 = arith.constant 44 : index
    %c0_188 = arith.constant 0 : index
    %475 = vector.load %arg29[%c44_187, %c0_188] : memref<64x512xf32, #tpu.memory_space<vmem>>, vector<4x512xf32>
    tpu.vector_store %arg29[%c44_187, %c0_188], %474 {strides = array<i32>} : memref<64x512xf32, #tpu.memory_space<vmem>>, vector<4x512xf32>,
    %476 = vector.extract_strided_slice %446 {offsets = [24, 0], sizes = [4, 512], strides = [1, 1]} : vector<32x512xf32> to vector<4x512xf32>
    %c48_189 = arith.constant 48 : index
    %c0_190 = arith.constant 0 : index
    %477 = vector.load %arg29[%c48_189, %c0_190] : memref<64x512xf32, #tpu.memory_space<vmem>>, vector<4x512xf32>
    tpu.vector_store %arg29[%c48_189, %c0_190], %476 {strides = array<i32>} : memref<64x512xf32, #tpu.memory_space<vmem>>, vector<4x512xf32>,
    %478 = vector.extract_strided_slice %451 {offsets = [4, 0], sizes = [4, 512], strides = [1, 1]} : vector<32x512xf32> to vector<4x512xf32>
    %c52_191 = arith.constant 52 : index
    %c0_192 = arith.constant 0 : index
    %479 = vector.load %arg29[%c52_191, %c0_192] : memref<64x512xf32, #tpu.memory_space<vmem>>, vector<4x512xf32>
    tpu.vector_store %arg29[%c52_191, %c0_192], %478 {strides = array<i32>} : memref<64x512xf32, #tpu.memory_space<vmem>>, vector<4x512xf32>,
    %480 = vector.extract_strided_slice %446 {offsets = [28, 0], sizes = [4, 512], strides = [1, 1]} : vector<32x512xf32> to vector<4x512xf32>
    %c56_193 = arith.constant 56 : index
    %c0_194 = arith.constant 0 : index
    %481 = vector.load %arg29[%c56_193, %c0_194] : memref<64x512xf32, #tpu.memory_space<vmem>>, vector<4x512xf32>
    tpu.vector_store %arg29[%c56_193, %c0_194], %480 {strides = array<i32>} : memref<64x512xf32, #tpu.memory_space<vmem>>, vector<4x512xf32>,
    %482 = vector.extract_strided_slice %451 {offsets = [0, 0], sizes = [4, 512], strides = [1, 1]} : vector<32x512xf32> to vector<4x512xf32>
    %c60_195 = arith.constant 60 : index
    %c0_196 = arith.constant 0 : index
    %483 = vector.load %arg29[%c60_195, %c0_196] : memref<64x512xf32, #tpu.memory_space<vmem>>, vector<4x512xf32>
    tpu.vector_store %arg29[%c60_195, %c0_196], %482 {strides = array<i32>} : memref<64x512xf32, #tpu.memory_space<vmem>>, vector<4x512xf32>,
    %484 = tpu.iota {dimensions = array<i32: 0>} : vector<8x128xi32>
    %c4_i32_197 = arith.constant 4 : i32
    %485 = vector.broadcast %c4_i32_197 : i32 to vector<8x128xi32>
    %486 = arith.cmpi slt, %484, %485 : vector<8x128xi32>
    %cst_198 = arith.constant 0.000000e+00 : f32
    %487 = vector.broadcast %cst_198 : f32 to vector<8x128xf32>
    %c0_199 = arith.constant 0 : index
    %c0_200 = arith.constant 0 : index
    %488 = vector.load %arg29[%c0_199, %c0_200] : memref<64x512xf32, #tpu.memory_space<vmem>>, vector<8x512xf32>
    %489 = vector.extract_strided_slice %488 {offsets = [0, 0], sizes = [8, 128], strides = [1, 1]} : vector<8x512xf32> to vector<8x128xf32>
    %490 = arith.negf %489 : vector<8x128xf32>
    %491 = math.exp %490 : vector<8x128xf32>
    %cst_201 = arith.constant 1.000000e+00 : f32
    %492 = vector.broadcast %cst_201 : f32 to vector<8x128xf32>
    %493 = arith.addf %492, %491 : vector<8x128xf32>
    %494 = arith.divf %492, %493 : vector<8x128xf32>
    %495 = vector.extract_strided_slice %488 {offsets = [0, 128], sizes = [8, 128], strides = [1, 1]} : vector<8x512xf32> to vector<8x128xf32>
    %496 = arith.negf %495 : vector<8x128xf32>
    %497 = math.exp %496 : vector<8x128xf32>
    %cst_202 = arith.constant 1.000000e+00 : f32
    %498 = vector.broadcast %cst_202 : f32 to vector<8x128xf32>
    %499 = arith.addf %498, %497 : vector<8x128xf32>
    %500 = arith.divf %498, %499 : vector<8x128xf32>
    %501 = vector.extract_strided_slice %488 {offsets = [0, 256], sizes = [8, 128], strides = [1, 1]} : vector<8x512xf32> to vector<8x128xf32>
    %502 = math.tanh %501 : vector<8x128xf32>
    %503 = vector.extract_strided_slice %488 {offsets = [0, 384], sizes = [8, 128], strides = [1, 1]} : vector<8x512xf32> to vector<8x128xf32>
    %504 = arith.negf %503 : vector<8x128xf32>
    %505 = math.exp %504 : vector<8x128xf32>
    %cst_203 = arith.constant 1.000000e+00 : f32
    %506 = vector.broadcast %cst_203 : f32 to vector<8x128xf32>
    %507 = arith.addf %506, %505 : vector<8x128xf32>
    %508 = arith.divf %506, %507 : vector<8x128xf32>
    %509 = arith.mulf %500, %487 : vector<8x128xf32>
    %510 = arith.mulf %494, %502 : vector<8x128xf32>
    %511 = arith.addf %509, %510 : vector<8x128xf32>
    %512 = math.tanh %511 : vector<8x128xf32>
    %513 = arith.mulf %508, %512 : vector<8x128xf32>
    %514 = vector.extract_strided_slice %513 {offsets = [0, 0], sizes = [4, 128], strides = [1, 1]} : vector<8x128xf32> to vector<4x128xf32>
    %c0_204 = arith.constant 0 : index
    %515 = memref.load %arg2[%c0_204] : memref<8xf32, #tpu.memory_space<smem>>
    %516 = vector.broadcast %515 : f32 to vector<4x128xf32>
    %517 = arith.mulf %514, %516 : vector<4x128xf32>
    %c0_205 = arith.constant 0 : index
    %518 = memref.load %arg3[%c0_205] : memref<8xf32, #tpu.memory_space<smem>>
    %519 = vector.broadcast %518 : f32 to vector<4x128xf32>
    %520 = arith.addf %517, %519 : vector<4x128xf32>
    %c0_206 = arith.constant 0 : index
    %c0_207 = arith.constant 0 : index
    %521 = vector.load %arg28[%c0_206, %c0_207] : memref<32x256xf32, #tpu.memory_space<vmem>>, vector<4x128xf32>
    tpu.vector_store %arg28[%c0_206, %c0_207], %520 {strides = array<i32>} : memref<32x256xf32, #tpu.memory_space<vmem>>, vector<4x128xf32>,
    %522 = vector.extract_strided_slice %513 {offsets = [4, 0], sizes = [4, 128], strides = [1, 1]} : vector<8x128xf32> to vector<4x128xf32>
    %c7_208 = arith.constant 7 : index
    %523 = memref.load %arg2[%c7_208] : memref<8xf32, #tpu.memory_space<smem>>
    %524 = vector.broadcast %523 : f32 to vector<4x128xf32>
    %525 = arith.mulf %522, %524 : vector<4x128xf32>
    %c7_209 = arith.constant 7 : index
    %526 = memref.load %arg3[%c7_209] : memref<8xf32, #tpu.memory_space<smem>>
    %527 = vector.broadcast %526 : f32 to vector<4x128xf32>
    %528 = arith.addf %525, %527 : vector<4x128xf32>
    %c28_210 = arith.constant 28 : index
    %c128_211 = arith.constant 128 : index
    %529 = vector.load %arg28[%c28_210, %c128_211] : memref<32x256xf32, #tpu.memory_space<vmem>>, vector<4x128xf32>
    tpu.vector_store %arg28[%c28_210, %c128_211], %528 {strides = array<i32>} : memref<32x256xf32, #tpu.memory_space<vmem>>, vector<4x128xf32>,
    %cst_212 = arith.constant 0.000000e+00 : f32
    %530 = vector.broadcast %cst_212 : f32 to vector<8x128xf32>
    %531 = arith.select %486, %513, %530 : vector<8x128xi1>, vector<8x128xf32>
    %532 = arith.select %486, %530, %513 : vector<8x128xi1>, vector<8x128xf32>
    %533 = tpu.concatenate %531, %532 in 1 : vector<8x128xf32>, vector<8x128xf32> -> vector<8x256xf32>
    %534 = arith.truncf %533 : vector<8x256xf32> to vector<8x256xbf16>
    %c8_213 = arith.constant 8 : index
    %c0_214 = arith.constant 0 : index
    %535 = vector.load %arg29[%c8_213, %c0_214] : memref<64x512xf32, #tpu.memory_space<vmem>>, vector<8x512xf32>
    %c0_215 = arith.constant 0 : index
    %c0_216 = arith.constant 0 : index
    %536 = vector.load %arg14[%c0_215, %c0_216] : memref<256x512xbf16, #tpu.memory_space<vmem>>, vector<256x512xbf16>
    %cst_217 = arith.constant dense<0.000000e+00> : vector<8x512xf32>
    %537 = tpu.matmul %534, %536, %cst_217 {dimension_numbers = #tpu.dot_dimension_numbers<[1], [0], [0], [1], [0, 0, 1, 1], [], []>} : vector<8x256xbf16>, vector<256x512xbf16>, vector<8x512xf32> -> vector<8x512xf32>
    %538 = arith.addf %535, %537 : vector<8x512xf32>
    %539 = vector.extract_strided_slice %538 {offsets = [0, 0], sizes = [8, 128], strides = [1, 1]} : vector<8x512xf32> to vector<8x128xf32>
    %540 = arith.negf %539 : vector<8x128xf32>
    %541 = math.exp %540 : vector<8x128xf32>
    %cst_218 = arith.constant 1.000000e+00 : f32
    %542 = vector.broadcast %cst_218 : f32 to vector<8x128xf32>
    %543 = arith.addf %542, %541 : vector<8x128xf32>
    %544 = arith.divf %542, %543 : vector<8x128xf32>
    %545 = vector.extract_strided_slice %538 {offsets = [0, 128], sizes = [8, 128], strides = [1, 1]} : vector<8x512xf32> to vector<8x128xf32>
    %546 = arith.negf %545 : vector<8x128xf32>
    %547 = math.exp %546 : vector<8x128xf32>
    %cst_219 = arith.constant 1.000000e+00 : f32
    %548 = vector.broadcast %cst_219 : f32 to vector<8x128xf32>
    %549 = arith.addf %548, %547 : vector<8x128xf32>
    %550 = arith.divf %548, %549 : vector<8x128xf32>
    %551 = vector.extract_strided_slice %538 {offsets = [0, 256], sizes = [8, 128], strides = [1, 1]} : vector<8x512xf32> to vector<8x128xf32>
    %552 = math.tanh %551 : vector<8x128xf32>
    %553 = vector.extract_strided_slice %538 {offsets = [0, 384], sizes = [8, 128], strides = [1, 1]} : vector<8x512xf32> to vector<8x128xf32>
    %554 = arith.negf %553 : vector<8x128xf32>
    %555 = math.exp %554 : vector<8x128xf32>
    %cst_220 = arith.constant 1.000000e+00 : f32
    %556 = vector.broadcast %cst_220 : f32 to vector<8x128xf32>
    %557 = arith.addf %556, %555 : vector<8x128xf32>
    %558 = arith.divf %556, %557 : vector<8x128xf32>
    %559 = arith.mulf %550, %511 : vector<8x128xf32>
    %560 = arith.mulf %544, %552 : vector<8x128xf32>
    %561 = arith.addf %559, %560 : vector<8x128xf32>
    %562 = math.tanh %561 : vector<8x128xf32>
    %563 = arith.mulf %558, %562 : vector<8x128xf32>
    %564 = vector.extract_strided_slice %563 {offsets = [0, 0], sizes = [4, 128], strides = [1, 1]} : vector<8x128xf32> to vector<4x128xf32>
    %c1_221 = arith.constant 1 : index
    %565 = memref.load %arg2[%c1_221] : memref<8xf32, #tpu.memory_space<smem>>
    %566 = vector.broadcast %565 : f32 to vector<4x128xf32>
    %567 = arith.mulf %564, %566 : vector<4x128xf32>
    %c1_222 = arith.constant 1 : index
    %568 = memref.load %arg3[%c1_222] : memref<8xf32, #tpu.memory_space<smem>>
    %569 = vector.broadcast %568 : f32 to vector<4x128xf32>
    %570 = arith.addf %567, %569 : vector<4x128xf32>
    %c4_223 = arith.constant 4 : index
    %c0_224 = arith.constant 0 : index
    %571 = vector.load %arg28[%c4_223, %c0_224] : memref<32x256xf32, #tpu.memory_space<vmem>>, vector<4x128xf32>
    tpu.vector_store %arg28[%c4_223, %c0_224], %570 {strides = array<i32>} : memref<32x256xf32, #tpu.memory_space<vmem>>, vector<4x128xf32>,
    %572 = vector.extract_strided_slice %563 {offsets = [4, 0], sizes = [4, 128], strides = [1, 1]} : vector<8x128xf32> to vector<4x128xf32>
    %c6_225 = arith.constant 6 : index
    %573 = memref.load %arg2[%c6_225] : memref<8xf32, #tpu.memory_space<smem>>
    %574 = vector.broadcast %573 : f32 to vector<4x128xf32>
    %575 = arith.mulf %572, %574 : vector<4x128xf32>
    %c6_226 = arith.constant 6 : index
    %576 = memref.load %arg3[%c6_226] : memref<8xf32, #tpu.memory_space<smem>>
    %577 = vector.broadcast %576 : f32 to vector<4x128xf32>
    %578 = arith.addf %575, %577 : vector<4x128xf32>
    %c24_227 = arith.constant 24 : index
    %c128_228 = arith.constant 128 : index
    %579 = vector.load %arg28[%c24_227, %c128_228] : memref<32x256xf32, #tpu.memory_space<vmem>>, vector<4x128xf32>
    tpu.vector_store %arg28[%c24_227, %c128_228], %578 {strides = array<i32>} : memref<32x256xf32, #tpu.memory_space<vmem>>, vector<4x128xf32>,
    %cst_229 = arith.constant 0.000000e+00 : f32
    %580 = vector.broadcast %cst_229 : f32 to vector<8x128xf32>
    %581 = arith.select %486, %563, %580 : vector<8x128xi1>, vector<8x128xf32>
    %582 = arith.select %486, %580, %563 : vector<8x128xi1>, vector<8x128xf32>
    %583 = tpu.concatenate %581, %582 in 1 : vector<8x128xf32>, vector<8x128xf32> -> vector<8x256xf32>
    %584 = arith.truncf %583 : vector<8x256xf32> to vector<8x256xbf16>
    %c16_230 = arith.constant 16 : index
    %c0_231 = arith.constant 0 : index
    %585 = vector.load %arg29[%c16_230, %c0_231] : memref<64x512xf32, #tpu.memory_space<vmem>>, vector<8x512xf32>
    %c0_232 = arith.constant 0 : index
    %c0_233 = arith.constant 0 : index
    %586 = vector.load %arg14[%c0_232, %c0_233] : memref<256x512xbf16, #tpu.memory_space<vmem>>, vector<256x512xbf16>
    %cst_234 = arith.constant dense<0.000000e+00> : vector<8x512xf32>
    %587 = tpu.matmul %584, %586, %cst_234 {dimension_numbers = #tpu.dot_dimension_numbers<[1], [0], [0], [1], [0, 0, 1, 1], [], []>} : vector<8x256xbf16>, vector<256x512xbf16>, vector<8x512xf32> -> vector<8x512xf32>
    %588 = arith.addf %585, %587 : vector<8x512xf32>
    %589 = vector.extract_strided_slice %588 {offsets = [0, 0], sizes = [8, 128], strides = [1, 1]} : vector<8x512xf32> to vector<8x128xf32>
    %590 = arith.negf %589 : vector<8x128xf32>
    %591 = math.exp %590 : vector<8x128xf32>
    %cst_235 = arith.constant 1.000000e+00 : f32
    %592 = vector.broadcast %cst_235 : f32 to vector<8x128xf32>
    %593 = arith.addf %592, %591 : vector<8x128xf32>
    %594 = arith.divf %592, %593 : vector<8x128xf32>
    %595 = vector.extract_strided_slice %588 {offsets = [0, 128], sizes = [8, 128], strides = [1, 1]} : vector<8x512xf32> to vector<8x128xf32>
    %596 = arith.negf %595 : vector<8x128xf32>
    %597 = math.exp %596 : vector<8x128xf32>
    %cst_236 = arith.constant 1.000000e+00 : f32
    %598 = vector.broadcast %cst_236 : f32 to vector<8x128xf32>
    %599 = arith.addf %598, %597 : vector<8x128xf32>
    %600 = arith.divf %598, %599 : vector<8x128xf32>
    %601 = vector.extract_strided_slice %588 {offsets = [0, 256], sizes = [8, 128], strides = [1, 1]} : vector<8x512xf32> to vector<8x128xf32>
    %602 = math.tanh %601 : vector<8x128xf32>
    %603 = vector.extract_strided_slice %588 {offsets = [0, 384], sizes = [8, 128], strides = [1, 1]} : vector<8x512xf32> to vector<8x128xf32>
    %604 = arith.negf %603 : vector<8x128xf32>
    %605 = math.exp %604 : vector<8x128xf32>
    %cst_237 = arith.constant 1.000000e+00 : f32
    %606 = vector.broadcast %cst_237 : f32 to vector<8x128xf32>
    %607 = arith.addf %606, %605 : vector<8x128xf32>
    %608 = arith.divf %606, %607 : vector<8x128xf32>
    %609 = arith.mulf %600, %561 : vector<8x128xf32>
    %610 = arith.mulf %594, %602 : vector<8x128xf32>
    %611 = arith.addf %609, %610 : vector<8x128xf32>
    %612 = math.tanh %611 : vector<8x128xf32>
    %613 = arith.mulf %608, %612 : vector<8x128xf32>
    %614 = vector.extract_strided_slice %613 {offsets = [0, 0], sizes = [4, 128], strides = [1, 1]} : vector<8x128xf32> to vector<4x128xf32>
    %c2_238 = arith.constant 2 : index
    %615 = memref.load %arg2[%c2_238] : memref<8xf32, #tpu.memory_space<smem>>
    %616 = vector.broadcast %615 : f32 to vector<4x128xf32>
    %617 = arith.mulf %614, %616 : vector<4x128xf32>
    %c2_239 = arith.constant 2 : index
    %618 = memref.load %arg3[%c2_239] : memref<8xf32, #tpu.memory_space<smem>>
    %619 = vector.broadcast %618 : f32 to vector<4x128xf32>
    %620 = arith.addf %617, %619 : vector<4x128xf32>
    %c8_240 = arith.constant 8 : index
    %c0_241 = arith.constant 0 : index
    %621 = vector.load %arg28[%c8_240, %c0_241] : memref<32x256xf32, #tpu.memory_space<vmem>>, vector<4x128xf32>
    tpu.vector_store %arg28[%c8_240, %c0_241], %620 {strides = array<i32>} : memref<32x256xf32, #tpu.memory_space<vmem>>, vector<4x128xf32>,
    %622 = vector.extract_strided_slice %613 {offsets = [4, 0], sizes = [4, 128], strides = [1, 1]} : vector<8x128xf32> to vector<4x128xf32>
    %c5_242 = arith.constant 5 : index
    %623 = memref.load %arg2[%c5_242] : memref<8xf32, #tpu.memory_space<smem>>
    %624 = vector.broadcast %623 : f32 to vector<4x128xf32>
    %625 = arith.mulf %622, %624 : vector<4x128xf32>
    %c5_243 = arith.constant 5 : index
    %626 = memref.load %arg3[%c5_243] : memref<8xf32, #tpu.memory_space<smem>>
    %627 = vector.broadcast %626 : f32 to vector<4x128xf32>
    %628 = arith.addf %625, %627 : vector<4x128xf32>
    %c20_244 = arith.constant 20 : index
    %c128_245 = arith.constant 128 : index
    %629 = vector.load %arg28[%c20_244, %c128_245] : memref<32x256xf32, #tpu.memory_space<vmem>>, vector<4x128xf32>
    tpu.vector_store %arg28[%c20_244, %c128_245], %628 {strides = array<i32>} : memref<32x256xf32, #tpu.memory_space<vmem>>, vector<4x128xf32>,
    %cst_246 = arith.constant 0.000000e+00 : f32
    %630 = vector.broadcast %cst_246 : f32 to vector<8x128xf32>
    %631 = arith.select %486, %613, %630 : vector<8x128xi1>, vector<8x128xf32>
    %632 = arith.select %486, %630, %613 : vector<8x128xi1>, vector<8x128xf32>
    %633 = tpu.concatenate %631, %632 in 1 : vector<8x128xf32>, vector<8x128xf32> -> vector<8x256xf32>
    %634 = arith.truncf %633 : vector<8x256xf32> to vector<8x256xbf16>
    %c24_247 = arith.constant 24 : index
    %c0_248 = arith.constant 0 : index
    %635 = vector.load %arg29[%c24_247, %c0_248] : memref<64x512xf32, #tpu.memory_space<vmem>>, vector<8x512xf32>
    %c0_249 = arith.constant 0 : index
    %c0_250 = arith.constant 0 : index
    %636 = vector.load %arg14[%c0_249, %c0_250] : memref<256x512xbf16, #tpu.memory_space<vmem>>, vector<256x512xbf16>
    %cst_251 = arith.constant dense<0.000000e+00> : vector<8x512xf32>
    %637 = tpu.matmul %634, %636, %cst_251 {dimension_numbers = #tpu.dot_dimension_numbers<[1], [0], [0], [1], [0, 0, 1, 1], [], []>} : vector<8x256xbf16>, vector<256x512xbf16>, vector<8x512xf32> -> vector<8x512xf32>
    %638 = arith.addf %635, %637 : vector<8x512xf32>
    %639 = vector.extract_strided_slice %638 {offsets = [0, 0], sizes = [8, 128], strides = [1, 1]} : vector<8x512xf32> to vector<8x128xf32>
    %640 = arith.negf %639 : vector<8x128xf32>
    %641 = math.exp %640 : vector<8x128xf32>
    %cst_252 = arith.constant 1.000000e+00 : f32
    %642 = vector.broadcast %cst_252 : f32 to vector<8x128xf32>
    %643 = arith.addf %642, %641 : vector<8x128xf32>
    %644 = arith.divf %642, %643 : vector<8x128xf32>
    %645 = vector.extract_strided_slice %638 {offsets = [0, 128], sizes = [8, 128], strides = [1, 1]} : vector<8x512xf32> to vector<8x128xf32>
    %646 = arith.negf %645 : vector<8x128xf32>
    %647 = math.exp %646 : vector<8x128xf32>
    %cst_253 = arith.constant 1.000000e+00 : f32
    %648 = vector.broadcast %cst_253 : f32 to vector<8x128xf32>
    %649 = arith.addf %648, %647 : vector<8x128xf32>
    %650 = arith.divf %648, %649 : vector<8x128xf32>
    %651 = vector.extract_strided_slice %638 {offsets = [0, 256], sizes = [8, 128], strides = [1, 1]} : vector<8x512xf32> to vector<8x128xf32>
    %652 = math.tanh %651 : vector<8x128xf32>
    %653 = vector.extract_strided_slice %638 {offsets = [0, 384], sizes = [8, 128], strides = [1, 1]} : vector<8x512xf32> to vector<8x128xf32>
    %654 = arith.negf %653 : vector<8x128xf32>
    %655 = math.exp %654 : vector<8x128xf32>
    %cst_254 = arith.constant 1.000000e+00 : f32
    %656 = vector.broadcast %cst_254 : f32 to vector<8x128xf32>
    %657 = arith.addf %656, %655 : vector<8x128xf32>
    %658 = arith.divf %656, %657 : vector<8x128xf32>
    %659 = arith.mulf %650, %611 : vector<8x128xf32>
    %660 = arith.mulf %644, %652 : vector<8x128xf32>
    %661 = arith.addf %659, %660 : vector<8x128xf32>
    %662 = math.tanh %661 : vector<8x128xf32>
    %663 = arith.mulf %658, %662 : vector<8x128xf32>
    %664 = vector.extract_strided_slice %663 {offsets = [0, 0], sizes = [4, 128], strides = [1, 1]} : vector<8x128xf32> to vector<4x128xf32>
    %c3_255 = arith.constant 3 : index
    %665 = memref.load %arg2[%c3_255] : memref<8xf32, #tpu.memory_space<smem>>
    %666 = vector.broadcast %665 : f32 to vector<4x128xf32>
    %667 = arith.mulf %664, %666 : vector<4x128xf32>
    %c3_256 = arith.constant 3 : index
    %668 = memref.load %arg3[%c3_256] : memref<8xf32, #tpu.memory_space<smem>>
    %669 = vector.broadcast %668 : f32 to vector<4x128xf32>
    %670 = arith.addf %667, %669 : vector<4x128xf32>
    %c12_257 = arith.constant 12 : index
    %c0_258 = arith.constant 0 : index
    %671 = vector.load %arg28[%c12_257, %c0_258] : memref<32x256xf32, #tpu.memory_space<vmem>>, vector<4x128xf32>
    tpu.vector_store %arg28[%c12_257, %c0_258], %670 {strides = array<i32>} : memref<32x256xf32, #tpu.memory_space<vmem>>, vector<4x128xf32>,
    %672 = vector.extract_strided_slice %663 {offsets = [4, 0], sizes = [4, 128], strides = [1, 1]} : vector<8x128xf32> to vector<4x128xf32>
    %c4_259 = arith.constant 4 : index
    %673 = memref.load %arg2[%c4_259] : memref<8xf32, #tpu.memory_space<smem>>
    %674 = vector.broadcast %673 : f32 to vector<4x128xf32>
    %675 = arith.mulf %672, %674 : vector<4x128xf32>
    %c4_260 = arith.constant 4 : index
    %676 = memref.load %arg3[%c4_260] : memref<8xf32, #tpu.memory_space<smem>>
    %677 = vector.broadcast %676 : f32 to vector<4x128xf32>
    %678 = arith.addf %675, %677 : vector<4x128xf32>
    %c16_261 = arith.constant 16 : index
    %c128_262 = arith.constant 128 : index
    %679 = vector.load %arg28[%c16_261, %c128_262] : memref<32x256xf32, #tpu.memory_space<vmem>>, vector<4x128xf32>
    tpu.vector_store %arg28[%c16_261, %c128_262], %678 {strides = array<i32>} : memref<32x256xf32, #tpu.memory_space<vmem>>, vector<4x128xf32>,
    %cst_263 = arith.constant 0.000000e+00 : f32
    %680 = vector.broadcast %cst_263 : f32 to vector<8x128xf32>
    %681 = arith.select %486, %663, %680 : vector<8x128xi1>, vector<8x128xf32>
    %682 = arith.select %486, %680, %663 : vector<8x128xi1>, vector<8x128xf32>
    %683 = tpu.concatenate %681, %682 in 1 : vector<8x128xf32>, vector<8x128xf32> -> vector<8x256xf32>
    %684 = arith.truncf %683 : vector<8x256xf32> to vector<8x256xbf16>
    %c32_264 = arith.constant 32 : index
    %c0_265 = arith.constant 0 : index
    %685 = vector.load %arg29[%c32_264, %c0_265] : memref<64x512xf32, #tpu.memory_space<vmem>>, vector<8x512xf32>
    %c0_266 = arith.constant 0 : index
    %c0_267 = arith.constant 0 : index
    %686 = vector.load %arg14[%c0_266, %c0_267] : memref<256x512xbf16, #tpu.memory_space<vmem>>, vector<256x512xbf16>
    %cst_268 = arith.constant dense<0.000000e+00> : vector<8x512xf32>
    %687 = tpu.matmul %684, %686, %cst_268 {dimension_numbers = #tpu.dot_dimension_numbers<[1], [0], [0], [1], [0, 0, 1, 1], [], []>} : vector<8x256xbf16>, vector<256x512xbf16>, vector<8x512xf32> -> vector<8x512xf32>
    %688 = arith.addf %685, %687 : vector<8x512xf32>
    %689 = vector.extract_strided_slice %688 {offsets = [0, 0], sizes = [8, 128], strides = [1, 1]} : vector<8x512xf32> to vector<8x128xf32>
    %690 = arith.negf %689 : vector<8x128xf32>
    %691 = math.exp %690 : vector<8x128xf32>
    %cst_269 = arith.constant 1.000000e+00 : f32
    %692 = vector.broadcast %cst_269 : f32 to vector<8x128xf32>
    %693 = arith.addf %692, %691 : vector<8x128xf32>
    %694 = arith.divf %692, %693 : vector<8x128xf32>
    %695 = vector.extract_strided_slice %688 {offsets = [0, 128], sizes = [8, 128], strides = [1, 1]} : vector<8x512xf32> to vector<8x128xf32>
    %696 = arith.negf %695 : vector<8x128xf32>
    %697 = math.exp %696 : vector<8x128xf32>
    %cst_270 = arith.constant 1.000000e+00 : f32
    %698 = vector.broadcast %cst_270 : f32 to vector<8x128xf32>
    %699 = arith.addf %698, %697 : vector<8x128xf32>
    %700 = arith.divf %698, %699 : vector<8x128xf32>
    %701 = vector.extract_strided_slice %688 {offsets = [0, 256], sizes = [8, 128], strides = [1, 1]} : vector<8x512xf32> to vector<8x128xf32>
    %702 = math.tanh %701 : vector<8x128xf32>
    %703 = vector.extract_strided_slice %688 {offsets = [0, 384], sizes = [8, 128], strides = [1, 1]} : vector<8x512xf32> to vector<8x128xf32>
    %704 = arith.negf %703 : vector<8x128xf32>
    %705 = math.exp %704 : vector<8x128xf32>
    %cst_271 = arith.constant 1.000000e+00 : f32
    %706 = vector.broadcast %cst_271 : f32 to vector<8x128xf32>
    %707 = arith.addf %706, %705 : vector<8x128xf32>
    %708 = arith.divf %706, %707 : vector<8x128xf32>
    %709 = arith.mulf %700, %661 : vector<8x128xf32>
    %710 = arith.mulf %694, %702 : vector<8x128xf32>
    %711 = arith.addf %709, %710 : vector<8x128xf32>
    %712 = math.tanh %711 : vector<8x128xf32>
    %713 = arith.mulf %708, %712 : vector<8x128xf32>
    %714 = vector.extract_strided_slice %713 {offsets = [0, 0], sizes = [4, 128], strides = [1, 1]} : vector<8x128xf32> to vector<4x128xf32>
    %c4_272 = arith.constant 4 : index
    %715 = memref.load %arg2[%c4_272] : memref<8xf32, #tpu.memory_space<smem>>
    %716 = vector.broadcast %715 : f32 to vector<4x128xf32>
    %717 = arith.mulf %714, %716 : vector<4x128xf32>
    %c4_273 = arith.constant 4 : index
    %718 = memref.load %arg3[%c4_273] : memref<8xf32, #tpu.memory_space<smem>>
    %719 = vector.broadcast %718 : f32 to vector<4x128xf32>
    %720 = arith.addf %717, %719 : vector<4x128xf32>
    %c16_274 = arith.constant 16 : index
    %c0_275 = arith.constant 0 : index
    %721 = vector.load %arg28[%c16_274, %c0_275] : memref<32x256xf32, #tpu.memory_space<vmem>>, vector<4x128xf32>
    tpu.vector_store %arg28[%c16_274, %c0_275], %720 {strides = array<i32>} : memref<32x256xf32, #tpu.memory_space<vmem>>, vector<4x128xf32>,
    %722 = vector.extract_strided_slice %713 {offsets = [4, 0], sizes = [4, 128], strides = [1, 1]} : vector<8x128xf32> to vector<4x128xf32>
    %c3_276 = arith.constant 3 : index
    %723 = memref.load %arg2[%c3_276] : memref<8xf32, #tpu.memory_space<smem>>
    %724 = vector.broadcast %723 : f32 to vector<4x128xf32>
    %725 = arith.mulf %722, %724 : vector<4x128xf32>
    %c3_277 = arith.constant 3 : index
    %726 = memref.load %arg3[%c3_277] : memref<8xf32, #tpu.memory_space<smem>>
    %727 = vector.broadcast %726 : f32 to vector<4x128xf32>
    %728 = arith.addf %725, %727 : vector<4x128xf32>
    %c12_278 = arith.constant 12 : index
    %c128_279 = arith.constant 128 : index
    %729 = vector.load %arg28[%c12_278, %c128_279] : memref<32x256xf32, #tpu.memory_space<vmem>>, vector<4x128xf32>
    tpu.vector_store %arg28[%c12_278, %c128_279], %728 {strides = array<i32>} : memref<32x256xf32, #tpu.memory_space<vmem>>, vector<4x128xf32>,
    %cst_280 = arith.constant 0.000000e+00 : f32
    %730 = vector.broadcast %cst_280 : f32 to vector<8x128xf32>
    %731 = arith.select %486, %713, %730 : vector<8x128xi1>, vector<8x128xf32>
    %732 = arith.select %486, %730, %713 : vector<8x128xi1>, vector<8x128xf32>
    %733 = tpu.concatenate %731, %732 in 1 : vector<8x128xf32>, vector<8x128xf32> -> vector<8x256xf32>
    %734 = arith.truncf %733 : vector<8x256xf32> to vector<8x256xbf16>
    %c40_281 = arith.constant 40 : index
    %c0_282 = arith.constant 0 : index
    %735 = vector.load %arg29[%c40_281, %c0_282] : memref<64x512xf32, #tpu.memory_space<vmem>>, vector<8x512xf32>
    %c0_283 = arith.constant 0 : index
    %c0_284 = arith.constant 0 : index
    %736 = vector.load %arg14[%c0_283, %c0_284] : memref<256x512xbf16, #tpu.memory_space<vmem>>, vector<256x512xbf16>
    %cst_285 = arith.constant dense<0.000000e+00> : vector<8x512xf32>
    %737 = tpu.matmul %734, %736, %cst_285 {dimension_numbers = #tpu.dot_dimension_numbers<[1], [0], [0], [1], [0, 0, 1, 1], [], []>} : vector<8x256xbf16>, vector<256x512xbf16>, vector<8x512xf32> -> vector<8x512xf32>
    %738 = arith.addf %735, %737 : vector<8x512xf32>
    %739 = vector.extract_strided_slice %738 {offsets = [0, 0], sizes = [8, 128], strides = [1, 1]} : vector<8x512xf32> to vector<8x128xf32>
    %740 = arith.negf %739 : vector<8x128xf32>
    %741 = math.exp %740 : vector<8x128xf32>
    %cst_286 = arith.constant 1.000000e+00 : f32
    %742 = vector.broadcast %cst_286 : f32 to vector<8x128xf32>
    %743 = arith.addf %742, %741 : vector<8x128xf32>
    %744 = arith.divf %742, %743 : vector<8x128xf32>
    %745 = vector.extract_strided_slice %738 {offsets = [0, 128], sizes = [8, 128], strides = [1, 1]} : vector<8x512xf32> to vector<8x128xf32>
    %746 = arith.negf %745 : vector<8x128xf32>
    %747 = math.exp %746 : vector<8x128xf32>
    %cst_287 = arith.constant 1.000000e+00 : f32
    %748 = vector.broadcast %cst_287 : f32 to vector<8x128xf32>
    %749 = arith.addf %748, %747 : vector<8x128xf32>
    %750 = arith.divf %748, %749 : vector<8x128xf32>
    %751 = vector.extract_strided_slice %738 {offsets = [0, 256], sizes = [8, 128], strides = [1, 1]} : vector<8x512xf32> to vector<8x128xf32>
    %752 = math.tanh %751 : vector<8x128xf32>
    %753 = vector.extract_strided_slice %738 {offsets = [0, 384], sizes = [8, 128], strides = [1, 1]} : vector<8x512xf32> to vector<8x128xf32>
    %754 = arith.negf %753 : vector<8x128xf32>
    %755 = math.exp %754 : vector<8x128xf32>
    %cst_288 = arith.constant 1.000000e+00 : f32
    %756 = vector.broadcast %cst_288 : f32 to vector<8x128xf32>
    %757 = arith.addf %756, %755 : vector<8x128xf32>
    %758 = arith.divf %756, %757 : vector<8x128xf32>
    %759 = arith.mulf %750, %711 : vector<8x128xf32>
    %760 = arith.mulf %744, %752 : vector<8x128xf32>
    %761 = arith.addf %759, %760 : vector<8x128xf32>
    %762 = math.tanh %761 : vector<8x128xf32>
    %763 = arith.mulf %758, %762 : vector<8x128xf32>
    %764 = vector.extract_strided_slice %763 {offsets = [0, 0], sizes = [4, 128], strides = [1, 1]} : vector<8x128xf32> to vector<4x128xf32>
    %c5_289 = arith.constant 5 : index
    %765 = memref.load %arg2[%c5_289] : memref<8xf32, #tpu.memory_space<smem>>
    %766 = vector.broadcast %765 : f32 to vector<4x128xf32>
    %767 = arith.mulf %764, %766 : vector<4x128xf32>
    %c5_290 = arith.constant 5 : index
    %768 = memref.load %arg3[%c5_290] : memref<8xf32, #tpu.memory_space<smem>>
    %769 = vector.broadcast %768 : f32 to vector<4x128xf32>
    %770 = arith.addf %767, %769 : vector<4x128xf32>
    %c20_291 = arith.constant 20 : index
    %c0_292 = arith.constant 0 : index
    %771 = vector.load %arg28[%c20_291, %c0_292] : memref<32x256xf32, #tpu.memory_space<vmem>>, vector<4x128xf32>
    tpu.vector_store %arg28[%c20_291, %c0_292], %770 {strides = array<i32>} : memref<32x256xf32, #tpu.memory_space<vmem>>, vector<4x128xf32>,
    %772 = vector.extract_strided_slice %763 {offsets = [4, 0], sizes = [4, 128], strides = [1, 1]} : vector<8x128xf32> to vector<4x128xf32>
    %c2_293 = arith.constant 2 : index
    %773 = memref.load %arg2[%c2_293] : memref<8xf32, #tpu.memory_space<smem>>
    %774 = vector.broadcast %773 : f32 to vector<4x128xf32>
    %775 = arith.mulf %772, %774 : vector<4x128xf32>
    %c2_294 = arith.constant 2 : index
    %776 = memref.load %arg3[%c2_294] : memref<8xf32, #tpu.memory_space<smem>>
    %777 = vector.broadcast %776 : f32 to vector<4x128xf32>
    %778 = arith.addf %775, %777 : vector<4x128xf32>
    %c8_295 = arith.constant 8 : index
    %c128_296 = arith.constant 128 : index
    %779 = vector.load %arg28[%c8_295, %c128_296] : memref<32x256xf32, #tpu.memory_space<vmem>>, vector<4x128xf32>
    tpu.vector_store %arg28[%c8_295, %c128_296], %778 {strides = array<i32>} : memref<32x256xf32, #tpu.memory_space<vmem>>, vector<4x128xf32>,
    %cst_297 = arith.constant 0.000000e+00 : f32
    %780 = vector.broadcast %cst_297 : f32 to vector<8x128xf32>
    %781 = arith.select %486, %763, %780 : vector<8x128xi1>, vector<8x128xf32>
    %782 = arith.select %486, %780, %763 : vector<8x128xi1>, vector<8x128xf32>
    %783 = tpu.concatenate %781, %782 in 1 : vector<8x128xf32>, vector<8x128xf32> -> vector<8x256xf32>
    %784 = arith.truncf %783 : vector<8x256xf32> to vector<8x256xbf16>
    %c48_298 = arith.constant 48 : index
    %c0_299 = arith.constant 0 : index
    %785 = vector.load %arg29[%c48_298, %c0_299] : memref<64x512xf32, #tpu.memory_space<vmem>>, vector<8x512xf32>
    %c0_300 = arith.constant 0 : index
    %c0_301 = arith.constant 0 : index
    %786 = vector.load %arg14[%c0_300, %c0_301] : memref<256x512xbf16, #tpu.memory_space<vmem>>, vector<256x512xbf16>
    %cst_302 = arith.constant dense<0.000000e+00> : vector<8x512xf32>
    %787 = tpu.matmul %784, %786, %cst_302 {dimension_numbers = #tpu.dot_dimension_numbers<[1], [0], [0], [1], [0, 0, 1, 1], [], []>} : vector<8x256xbf16>, vector<256x512xbf16>, vector<8x512xf32> -> vector<8x512xf32>
    %788 = arith.addf %785, %787 : vector<8x512xf32>
    %789 = vector.extract_strided_slice %788 {offsets = [0, 0], sizes = [8, 128], strides = [1, 1]} : vector<8x512xf32> to vector<8x128xf32>
    %790 = arith.negf %789 : vector<8x128xf32>
    %791 = math.exp %790 : vector<8x128xf32>
    %cst_303 = arith.constant 1.000000e+00 : f32
    %792 = vector.broadcast %cst_303 : f32 to vector<8x128xf32>
    %793 = arith.addf %792, %791 : vector<8x128xf32>
    %794 = arith.divf %792, %793 : vector<8x128xf32>
    %795 = vector.extract_strided_slice %788 {offsets = [0, 128], sizes = [8, 128], strides = [1, 1]} : vector<8x512xf32> to vector<8x128xf32>
    %796 = arith.negf %795 : vector<8x128xf32>
    %797 = math.exp %796 : vector<8x128xf32>
    %cst_304 = arith.constant 1.000000e+00 : f32
    %798 = vector.broadcast %cst_304 : f32 to vector<8x128xf32>
    %799 = arith.addf %798, %797 : vector<8x128xf32>
    %800 = arith.divf %798, %799 : vector<8x128xf32>
    %801 = vector.extract_strided_slice %788 {offsets = [0, 256], sizes = [8, 128], strides = [1, 1]} : vector<8x512xf32> to vector<8x128xf32>
    %802 = math.tanh %801 : vector<8x128xf32>
    %803 = vector.extract_strided_slice %788 {offsets = [0, 384], sizes = [8, 128], strides = [1, 1]} : vector<8x512xf32> to vector<8x128xf32>
    %804 = arith.negf %803 : vector<8x128xf32>
    %805 = math.exp %804 : vector<8x128xf32>
    %cst_305 = arith.constant 1.000000e+00 : f32
    %806 = vector.broadcast %cst_305 : f32 to vector<8x128xf32>
    %807 = arith.addf %806, %805 : vector<8x128xf32>
    %808 = arith.divf %806, %807 : vector<8x128xf32>
    %809 = arith.mulf %800, %761 : vector<8x128xf32>
    %810 = arith.mulf %794, %802 : vector<8x128xf32>
    %811 = arith.addf %809, %810 : vector<8x128xf32>
    %812 = math.tanh %811 : vector<8x128xf32>
    %813 = arith.mulf %808, %812 : vector<8x128xf32>
    %814 = vector.extract_strided_slice %813 {offsets = [0, 0], sizes = [4, 128], strides = [1, 1]} : vector<8x128xf32> to vector<4x128xf32>
    %c6_306 = arith.constant 6 : index
    %815 = memref.load %arg2[%c6_306] : memref<8xf32, #tpu.memory_space<smem>>
    %816 = vector.broadcast %815 : f32 to vector<4x128xf32>
    %817 = arith.mulf %814, %816 : vector<4x128xf32>
    %c6_307 = arith.constant 6 : index
    %818 = memref.load %arg3[%c6_307] : memref<8xf32, #tpu.memory_space<smem>>
    %819 = vector.broadcast %818 : f32 to vector<4x128xf32>
    %820 = arith.addf %817, %819 : vector<4x128xf32>
    %c24_308 = arith.constant 24 : index
    %c0_309 = arith.constant 0 : index
    %821 = vector.load %arg28[%c24_308, %c0_309] : memref<32x256xf32, #tpu.memory_space<vmem>>, vector<4x128xf32>
    tpu.vector_store %arg28[%c24_308, %c0_309], %820 {strides = array<i32>} : memref<32x256xf32, #tpu.memory_space<vmem>>, vector<4x128xf32>,
    %822 = vector.extract_strided_slice %813 {offsets = [4, 0], sizes = [4, 128], strides = [1, 1]} : vector<8x128xf32> to vector<4x128xf32>
    %c1_310 = arith.constant 1 : index
    %823 = memref.load %arg2[%c1_310] : memref<8xf32, #tpu.memory_space<smem>>
    %824 = vector.broadcast %823 : f32 to vector<4x128xf32>
    %825 = arith.mulf %822, %824 : vector<4x128xf32>
    %c1_311 = arith.constant 1 : index
    %826 = memref.load %arg3[%c1_311] : memref<8xf32, #tpu.memory_space<smem>>
    %827 = vector.broadcast %826 : f32 to vector<4x128xf32>
    %828 = arith.addf %825, %827 : vector<4x128xf32>
    %c4_312 = arith.constant 4 : index
    %c128_313 = arith.constant 128 : index
    %829 = vector.load %arg28[%c4_312, %c128_313] : memref<32x256xf32, #tpu.memory_space<vmem>>, vector<4x128xf32>
    tpu.vector_store %arg28[%c4_312, %c128_313], %828 {strides = array<i32>} : memref<32x256xf32, #tpu.memory_space<vmem>>, vector<4x128xf32>,
    %cst_314 = arith.constant 0.000000e+00 : f32
    %830 = vector.broadcast %cst_314 : f32 to vector<8x128xf32>
    %831 = arith.select %486, %813, %830 : vector<8x128xi1>, vector<8x128xf32>
    %832 = arith.select %486, %830, %813 : vector<8x128xi1>, vector<8x128xf32>
    %833 = tpu.concatenate %831, %832 in 1 : vector<8x128xf32>, vector<8x128xf32> -> vector<8x256xf32>
    %834 = arith.truncf %833 : vector<8x256xf32> to vector<8x256xbf16>
    %c56_315 = arith.constant 56 : index
    %c0_316 = arith.constant 0 : index
    %835 = vector.load %arg29[%c56_315, %c0_316] : memref<64x512xf32, #tpu.memory_space<vmem>>, vector<8x512xf32>
    %c0_317 = arith.constant 0 : index
    %c0_318 = arith.constant 0 : index
    %836 = vector.load %arg14[%c0_317, %c0_318] : memref<256x512xbf16, #tpu.memory_space<vmem>>, vector<256x512xbf16>
    %cst_319 = arith.constant dense<0.000000e+00> : vector<8x512xf32>
    %837 = tpu.matmul %834, %836, %cst_319 {dimension_numbers = #tpu.dot_dimension_numbers<[1], [0], [0], [1], [0, 0, 1, 1], [], []>} : vector<8x256xbf16>, vector<256x512xbf16>, vector<8x512xf32> -> vector<8x512xf32>
    %838 = arith.addf %835, %837 : vector<8x512xf32>
    %839 = vector.extract_strided_slice %838 {offsets = [0, 0], sizes = [8, 128], strides = [1, 1]} : vector<8x512xf32> to vector<8x128xf32>
    %840 = arith.negf %839 : vector<8x128xf32>
    %841 = math.exp %840 : vector<8x128xf32>
    %cst_320 = arith.constant 1.000000e+00 : f32
    %842 = vector.broadcast %cst_320 : f32 to vector<8x128xf32>
    %843 = arith.addf %842, %841 : vector<8x128xf32>
    %844 = arith.divf %842, %843 : vector<8x128xf32>
    %845 = vector.extract_strided_slice %838 {offsets = [0, 128], sizes = [8, 128], strides = [1, 1]} : vector<8x512xf32> to vector<8x128xf32>
    %846 = arith.negf %845 : vector<8x128xf32>
    %847 = math.exp %846 : vector<8x128xf32>
    %cst_321 = arith.constant 1.000000e+00 : f32
    %848 = vector.broadcast %cst_321 : f32 to vector<8x128xf32>
    %849 = arith.addf %848, %847 : vector<8x128xf32>
    %850 = arith.divf %848, %849 : vector<8x128xf32>
    %851 = vector.extract_strided_slice %838 {offsets = [0, 256], sizes = [8, 128], strides = [1, 1]} : vector<8x512xf32> to vector<8x128xf32>
    %852 = math.tanh %851 : vector<8x128xf32>
    %853 = vector.extract_strided_slice %838 {offsets = [0, 384], sizes = [8, 128], strides = [1, 1]} : vector<8x512xf32> to vector<8x128xf32>
    %854 = arith.negf %853 : vector<8x128xf32>
    %855 = math.exp %854 : vector<8x128xf32>
    %cst_322 = arith.constant 1.000000e+00 : f32
    %856 = vector.broadcast %cst_322 : f32 to vector<8x128xf32>
    %857 = arith.addf %856, %855 : vector<8x128xf32>
    %858 = arith.divf %856, %857 : vector<8x128xf32>
    %859 = arith.mulf %850, %811 : vector<8x128xf32>
    %860 = arith.mulf %844, %852 : vector<8x128xf32>
    %861 = arith.addf %859, %860 : vector<8x128xf32>
    %862 = math.tanh %861 : vector<8x128xf32>
    %863 = arith.mulf %858, %862 : vector<8x128xf32>
    %864 = vector.extract_strided_slice %863 {offsets = [0, 0], sizes = [4, 128], strides = [1, 1]} : vector<8x128xf32> to vector<4x128xf32>
    %c7_323 = arith.constant 7 : index
    %865 = memref.load %arg2[%c7_323] : memref<8xf32, #tpu.memory_space<smem>>
    %866 = vector.broadcast %865 : f32 to vector<4x128xf32>
    %867 = arith.mulf %864, %866 : vector<4x128xf32>
    %c7_324 = arith.constant 7 : index
    %868 = memref.load %arg3[%c7_324] : memref<8xf32, #tpu.memory_space<smem>>
    %869 = vector.broadcast %868 : f32 to vector<4x128xf32>
    %870 = arith.addf %867, %869 : vector<4x128xf32>
    %c28_325 = arith.constant 28 : index
    %c0_326 = arith.constant 0 : index
    %871 = vector.load %arg28[%c28_325, %c0_326] : memref<32x256xf32, #tpu.memory_space<vmem>>, vector<4x128xf32>
    tpu.vector_store %arg28[%c28_325, %c0_326], %870 {strides = array<i32>} : memref<32x256xf32, #tpu.memory_space<vmem>>, vector<4x128xf32>,
    %872 = vector.extract_strided_slice %863 {offsets = [4, 0], sizes = [4, 128], strides = [1, 1]} : vector<8x128xf32> to vector<4x128xf32>
    %c0_327 = arith.constant 0 : index
    %873 = memref.load %arg2[%c0_327] : memref<8xf32, #tpu.memory_space<smem>>
    %874 = vector.broadcast %873 : f32 to vector<4x128xf32>
    %875 = arith.mulf %872, %874 : vector<4x128xf32>
    %c0_328 = arith.constant 0 : index
    %876 = memref.load %arg3[%c0_328] : memref<8xf32, #tpu.memory_space<smem>>
    %877 = vector.broadcast %876 : f32 to vector<4x128xf32>
    %878 = arith.addf %875, %877 : vector<4x128xf32>
    %c0_329 = arith.constant 0 : index
    %c128_330 = arith.constant 128 : index
    %879 = vector.load %arg28[%c0_329, %c128_330] : memref<32x256xf32, #tpu.memory_space<vmem>>, vector<4x128xf32>
    tpu.vector_store %arg28[%c0_329, %c128_330], %878 {strides = array<i32>} : memref<32x256xf32, #tpu.memory_space<vmem>>, vector<4x128xf32>,
    %c0_331 = arith.constant 0 : index
    %c0_332 = arith.constant 0 : index
    %880 = vector.load %arg28[%c0_331, %c0_332] : memref<32x256xf32, #tpu.memory_space<vmem>>, vector<32x256xf32>
    %881 = arith.truncf %880 : vector<32x256xf32> to vector<32x256xbf16>
    %c0_333 = arith.constant 0 : index
    %c0_334 = arith.constant 0 : index
    %882 = vector.load %arg15[%c0_333, %c0_334] : memref<256x256xbf16, #tpu.memory_space<vmem>>, vector<256x256xbf16>
    %cst_335 = arith.constant dense<0.000000e+00> : vector<32x256xf32>
    %883 = tpu.matmul %881, %882, %cst_335 {dimension_numbers = #tpu.dot_dimension_numbers<[1], [0], [0], [1], [0, 0, 1, 1], [], []>} : vector<32x256xbf16>, vector<256x256xbf16>, vector<32x256xf32> -> vector<32x256xf32>
    %c0_336 = arith.constant 0 : index
    %c0_337 = arith.constant 0 : index
    %884 = vector.load %arg17[%c0_336, %c0_337] : memref<1x256xf32, #tpu.memory_space<vmem>>, vector<1x256xf32>
    %885 = vector.broadcast %884 : vector<1x256xf32> to vector<32x256xf32>
    %886 = arith.addf %883, %885 : vector<32x256xf32>
    %cst_338 = arith.constant 0.000000e+00 : f32
    %887 = vector.broadcast %cst_338 : f32 to vector<4x64xf32>
    %888 = vector.extract_strided_slice %886 {offsets = [0, 0], sizes = [4, 256], strides = [1, 1]} : vector<32x256xf32> to vector<4x256xf32>
    %889 = vector.extract_strided_slice %888 {offsets = [0, 0], sizes = [4, 64], strides = [1, 1]} : vector<4x256xf32> to vector<4x64xf32>
    %890 = arith.negf %889 : vector<4x64xf32>
    %891 = math.exp %890 : vector<4x64xf32>
    %cst_339 = arith.constant 1.000000e+00 : f32
    %892 = vector.broadcast %cst_339 : f32 to vector<4x64xf32>
    %893 = arith.addf %892, %891 : vector<4x64xf32>
    %894 = arith.divf %892, %893 : vector<4x64xf32>
    %895 = vector.extract_strided_slice %888 {offsets = [0, 64], sizes = [4, 64], strides = [1, 1]} : vector<4x256xf32> to vector<4x64xf32>
    %896 = arith.negf %895 : vector<4x64xf32>
    %897 = math.exp %896 : vector<4x64xf32>
    %cst_340 = arith.constant 1.000000e+00 : f32
    %898 = vector.broadcast %cst_340 : f32 to vector<4x64xf32>
    %899 = arith.addf %898, %897 : vector<4x64xf32>
    %900 = arith.divf %898, %899 : vector<4x64xf32>
    %901 = vector.extract_strided_slice %888 {offsets = [0, 128], sizes = [4, 64], strides = [1, 1]} : vector<4x256xf32> to vector<4x64xf32>
    %902 = math.tanh %901 : vector<4x64xf32>
    %903 = vector.extract_strided_slice %888 {offsets = [0, 192], sizes = [4, 64], strides = [1, 1]} : vector<4x256xf32> to vector<4x64xf32>
    %904 = arith.negf %903 : vector<4x64xf32>
    %905 = math.exp %904 : vector<4x64xf32>
    %cst_341 = arith.constant 1.000000e+00 : f32
    %906 = vector.broadcast %cst_341 : f32 to vector<4x64xf32>
    %907 = arith.addf %906, %905 : vector<4x64xf32>
    %908 = arith.divf %906, %907 : vector<4x64xf32>
    %909 = arith.mulf %900, %887 : vector<4x64xf32>
    %910 = arith.mulf %894, %902 : vector<4x64xf32>
    %911 = arith.addf %909, %910 : vector<4x64xf32>
    %912 = math.tanh %911 : vector<4x64xf32>
    %913 = arith.mulf %908, %912 : vector<4x64xf32>
    %914 = vector.extract_strided_slice %886 {offsets = [4, 0], sizes = [4, 256], strides = [1, 1]} : vector<32x256xf32> to vector<4x256xf32>
    %915 = arith.truncf %913 : vector<4x64xf32> to vector<4x64xbf16>
    %c0_342 = arith.constant 0 : index
    %c0_343 = arith.constant 0 : index
    %916 = vector.load %arg19[%c0_342, %c0_343] : memref<64x256xbf16, #tpu.memory_space<vmem>>, vector<64x256xbf16>
    %cst_344 = arith.constant dense<0.000000e+00> : vector<4x256xf32>
    %917 = tpu.matmul %915, %916, %cst_344 {dimension_numbers = #tpu.dot_dimension_numbers<[1], [0], [0], [1], [0, 0, 1, 1], [], []>} : vector<4x64xbf16>, vector<64x256xbf16>, vector<4x256xf32> -> vector<4x256xf32>
    %918 = arith.addf %914, %917 : vector<4x256xf32>
    %919 = vector.extract_strided_slice %918 {offsets = [0, 0], sizes = [4, 64], strides = [1, 1]} : vector<4x256xf32> to vector<4x64xf32>
    %920 = arith.negf %919 : vector<4x64xf32>
    %921 = math.exp %920 : vector<4x64xf32>
    %cst_345 = arith.constant 1.000000e+00 : f32
    %922 = vector.broadcast %cst_345 : f32 to vector<4x64xf32>
    %923 = arith.addf %922, %921 : vector<4x64xf32>
    %924 = arith.divf %922, %923 : vector<4x64xf32>
    %925 = vector.extract_strided_slice %918 {offsets = [0, 64], sizes = [4, 64], strides = [1, 1]} : vector<4x256xf32> to vector<4x64xf32>
    %926 = arith.negf %925 : vector<4x64xf32>
    %927 = math.exp %926 : vector<4x64xf32>
    %cst_346 = arith.constant 1.000000e+00 : f32
    %928 = vector.broadcast %cst_346 : f32 to vector<4x64xf32>
    %929 = arith.addf %928, %927 : vector<4x64xf32>
    %930 = arith.divf %928, %929 : vector<4x64xf32>
    %931 = vector.extract_strided_slice %918 {offsets = [0, 128], sizes = [4, 64], strides = [1, 1]} : vector<4x256xf32> to vector<4x64xf32>
    %932 = math.tanh %931 : vector<4x64xf32>
    %933 = vector.extract_strided_slice %918 {offsets = [0, 192], sizes = [4, 64], strides = [1, 1]} : vector<4x256xf32> to vector<4x64xf32>
    %934 = arith.negf %933 : vector<4x64xf32>
    %935 = math.exp %934 : vector<4x64xf32>
    %cst_347 = arith.constant 1.000000e+00 : f32
    %936 = vector.broadcast %cst_347 : f32 to vector<4x64xf32>
    %937 = arith.addf %936, %935 : vector<4x64xf32>
    %938 = arith.divf %936, %937 : vector<4x64xf32>
    %939 = arith.mulf %930, %911 : vector<4x64xf32>
    %940 = arith.mulf %924, %932 : vector<4x64xf32>
    %941 = arith.addf %939, %940 : vector<4x64xf32>
    %942 = math.tanh %941 : vector<4x64xf32>
    %943 = arith.mulf %938, %942 : vector<4x64xf32>
    %944 = vector.extract_strided_slice %886 {offsets = [8, 0], sizes = [4, 256], strides = [1, 1]} : vector<32x256xf32> to vector<4x256xf32>
    %945 = arith.truncf %943 : vector<4x64xf32> to vector<4x64xbf16>
    %c0_348 = arith.constant 0 : index
    %c0_349 = arith.constant 0 : index
    %946 = vector.load %arg19[%c0_348, %c0_349] : memref<64x256xbf16, #tpu.memory_space<vmem>>, vector<64x256xbf16>
    %cst_350 = arith.constant dense<0.000000e+00> : vector<4x256xf32>
    %947 = tpu.matmul %945, %946, %cst_350 {dimension_numbers = #tpu.dot_dimension_numbers<[1], [0], [0], [1], [0, 0, 1, 1], [], []>} : vector<4x64xbf16>, vector<64x256xbf16>, vector<4x256xf32> -> vector<4x256xf32>
    %948 = arith.addf %944, %947 : vector<4x256xf32>
    %949 = vector.extract_strided_slice %948 {offsets = [0, 0], sizes = [4, 64], strides = [1, 1]} : vector<4x256xf32> to vector<4x64xf32>
    %950 = arith.negf %949 : vector<4x64xf32>
    %951 = math.exp %950 : vector<4x64xf32>
    %cst_351 = arith.constant 1.000000e+00 : f32
    %952 = vector.broadcast %cst_351 : f32 to vector<4x64xf32>
    %953 = arith.addf %952, %951 : vector<4x64xf32>
    %954 = arith.divf %952, %953 : vector<4x64xf32>
    %955 = vector.extract_strided_slice %948 {offsets = [0, 64], sizes = [4, 64], strides = [1, 1]} : vector<4x256xf32> to vector<4x64xf32>
    %956 = arith.negf %955 : vector<4x64xf32>
    %957 = math.exp %956 : vector<4x64xf32>
    %cst_352 = arith.constant 1.000000e+00 : f32
    %958 = vector.broadcast %cst_352 : f32 to vector<4x64xf32>
    %959 = arith.addf %958, %957 : vector<4x64xf32>
    %960 = arith.divf %958, %959 : vector<4x64xf32>
    %961 = vector.extract_strided_slice %948 {offsets = [0, 128], sizes = [4, 64], strides = [1, 1]} : vector<4x256xf32> to vector<4x64xf32>
    %962 = math.tanh %961 : vector<4x64xf32>
    %963 = vector.extract_strided_slice %948 {offsets = [0, 192], sizes = [4, 64], strides = [1, 1]} : vector<4x256xf32> to vector<4x64xf32>
    %964 = arith.negf %963 : vector<4x64xf32>
    %965 = math.exp %964 : vector<4x64xf32>
    %cst_353 = arith.constant 1.000000e+00 : f32
    %966 = vector.broadcast %cst_353 : f32 to vector<4x64xf32>
    %967 = arith.addf %966, %965 : vector<4x64xf32>
    %968 = arith.divf %966, %967 : vector<4x64xf32>
    %969 = arith.mulf %960, %941 : vector<4x64xf32>
    %970 = arith.mulf %954, %962 : vector<4x64xf32>
    %971 = arith.addf %969, %970 : vector<4x64xf32>
    %972 = math.tanh %971 : vector<4x64xf32>
    %973 = arith.mulf %968, %972 : vector<4x64xf32>
    %974 = vector.extract_strided_slice %886 {offsets = [12, 0], sizes = [4, 256], strides = [1, 1]} : vector<32x256xf32> to vector<4x256xf32>
    %975 = arith.truncf %973 : vector<4x64xf32> to vector<4x64xbf16>
    %c0_354 = arith.constant 0 : index
    %c0_355 = arith.constant 0 : index
    %976 = vector.load %arg19[%c0_354, %c0_355] : memref<64x256xbf16, #tpu.memory_space<vmem>>, vector<64x256xbf16>
    %cst_356 = arith.constant dense<0.000000e+00> : vector<4x256xf32>
    %977 = tpu.matmul %975, %976, %cst_356 {dimension_numbers = #tpu.dot_dimension_numbers<[1], [0], [0], [1], [0, 0, 1, 1], [], []>} : vector<4x64xbf16>, vector<64x256xbf16>, vector<4x256xf32> -> vector<4x256xf32>
    %978 = arith.addf %974, %977 : vector<4x256xf32>
    %979 = vector.extract_strided_slice %978 {offsets = [0, 0], sizes = [4, 64], strides = [1, 1]} : vector<4x256xf32> to vector<4x64xf32>
    %980 = arith.negf %979 : vector<4x64xf32>
    %981 = math.exp %980 : vector<4x64xf32>
    %cst_357 = arith.constant 1.000000e+00 : f32
    %982 = vector.broadcast %cst_357 : f32 to vector<4x64xf32>
    %983 = arith.addf %982, %981 : vector<4x64xf32>
    %984 = arith.divf %982, %983 : vector<4x64xf32>
    %985 = vector.extract_strided_slice %978 {offsets = [0, 64], sizes = [4, 64], strides = [1, 1]} : vector<4x256xf32> to vector<4x64xf32>
    %986 = arith.negf %985 : vector<4x64xf32>
    %987 = math.exp %986 : vector<4x64xf32>
    %cst_358 = arith.constant 1.000000e+00 : f32
    %988 = vector.broadcast %cst_358 : f32 to vector<4x64xf32>
    %989 = arith.addf %988, %987 : vector<4x64xf32>
    %990 = arith.divf %988, %989 : vector<4x64xf32>
    %991 = vector.extract_strided_slice %978 {offsets = [0, 128], sizes = [4, 64], strides = [1, 1]} : vector<4x256xf32> to vector<4x64xf32>
    %992 = math.tanh %991 : vector<4x64xf32>
    %993 = vector.extract_strided_slice %978 {offsets = [0, 192], sizes = [4, 64], strides = [1, 1]} : vector<4x256xf32> to vector<4x64xf32>
    %994 = arith.negf %993 : vector<4x64xf32>
    %995 = math.exp %994 : vector<4x64xf32>
    %cst_359 = arith.constant 1.000000e+00 : f32
    %996 = vector.broadcast %cst_359 : f32 to vector<4x64xf32>
    %997 = arith.addf %996, %995 : vector<4x64xf32>
    %998 = arith.divf %996, %997 : vector<4x64xf32>
    %999 = arith.mulf %990, %971 : vector<4x64xf32>
    %1000 = arith.mulf %984, %992 : vector<4x64xf32>
    %1001 = arith.addf %999, %1000 : vector<4x64xf32>
    %1002 = math.tanh %1001 : vector<4x64xf32>
    %1003 = arith.mulf %998, %1002 : vector<4x64xf32>
    %1004 = vector.extract_strided_slice %886 {offsets = [16, 0], sizes = [4, 256], strides = [1, 1]} : vector<32x256xf32> to vector<4x256xf32>
    %1005 = arith.truncf %1003 : vector<4x64xf32> to vector<4x64xbf16>
    %c0_360 = arith.constant 0 : index
    %c0_361 = arith.constant 0 : index
    %1006 = vector.load %arg19[%c0_360, %c0_361] : memref<64x256xbf16, #tpu.memory_space<vmem>>, vector<64x256xbf16>
    %cst_362 = arith.constant dense<0.000000e+00> : vector<4x256xf32>
    %1007 = tpu.matmul %1005, %1006, %cst_362 {dimension_numbers = #tpu.dot_dimension_numbers<[1], [0], [0], [1], [0, 0, 1, 1], [], []>} : vector<4x64xbf16>, vector<64x256xbf16>, vector<4x256xf32> -> vector<4x256xf32>
    %1008 = arith.addf %1004, %1007 : vector<4x256xf32>
    %1009 = vector.extract_strided_slice %1008 {offsets = [0, 0], sizes = [4, 64], strides = [1, 1]} : vector<4x256xf32> to vector<4x64xf32>
    %1010 = arith.negf %1009 : vector<4x64xf32>
    %1011 = math.exp %1010 : vector<4x64xf32>
    %cst_363 = arith.constant 1.000000e+00 : f32
    %1012 = vector.broadcast %cst_363 : f32 to vector<4x64xf32>
    %1013 = arith.addf %1012, %1011 : vector<4x64xf32>
    %1014 = arith.divf %1012, %1013 : vector<4x64xf32>
    %1015 = vector.extract_strided_slice %1008 {offsets = [0, 64], sizes = [4, 64], strides = [1, 1]} : vector<4x256xf32> to vector<4x64xf32>
    %1016 = arith.negf %1015 : vector<4x64xf32>
    %1017 = math.exp %1016 : vector<4x64xf32>
    %cst_364 = arith.constant 1.000000e+00 : f32
    %1018 = vector.broadcast %cst_364 : f32 to vector<4x64xf32>
    %1019 = arith.addf %1018, %1017 : vector<4x64xf32>
    %1020 = arith.divf %1018, %1019 : vector<4x64xf32>
    %1021 = vector.extract_strided_slice %1008 {offsets = [0, 128], sizes = [4, 64], strides = [1, 1]} : vector<4x256xf32> to vector<4x64xf32>
    %1022 = math.tanh %1021 : vector<4x64xf32>
    %1023 = vector.extract_strided_slice %1008 {offsets = [0, 192], sizes = [4, 64], strides = [1, 1]} : vector<4x256xf32> to vector<4x64xf32>
    %1024 = arith.negf %1023 : vector<4x64xf32>
    %1025 = math.exp %1024 : vector<4x64xf32>
    %cst_365 = arith.constant 1.000000e+00 : f32
    %1026 = vector.broadcast %cst_365 : f32 to vector<4x64xf32>
    %1027 = arith.addf %1026, %1025 : vector<4x64xf32>
    %1028 = arith.divf %1026, %1027 : vector<4x64xf32>
    %1029 = arith.mulf %1020, %1001 : vector<4x64xf32>
    %1030 = arith.mulf %1014, %1022 : vector<4x64xf32>
    %1031 = arith.addf %1029, %1030 : vector<4x64xf32>
    %1032 = math.tanh %1031 : vector<4x64xf32>
    %1033 = arith.mulf %1028, %1032 : vector<4x64xf32>
    %1034 = vector.extract_strided_slice %886 {offsets = [20, 0], sizes = [4, 256], strides = [1, 1]} : vector<32x256xf32> to vector<4x256xf32>
    %1035 = arith.truncf %1033 : vector<4x64xf32> to vector<4x64xbf16>
    %c0_366 = arith.constant 0 : index
    %c0_367 = arith.constant 0 : index
    %1036 = vector.load %arg19[%c0_366, %c0_367] : memref<64x256xbf16, #tpu.memory_space<vmem>>, vector<64x256xbf16>
    %cst_368 = arith.constant dense<0.000000e+00> : vector<4x256xf32>
    %1037 = tpu.matmul %1035, %1036, %cst_368 {dimension_numbers = #tpu.dot_dimension_numbers<[1], [0], [0], [1], [0, 0, 1, 1], [], []>} : vector<4x64xbf16>, vector<64x256xbf16>, vector<4x256xf32> -> vector<4x256xf32>
    %1038 = arith.addf %1034, %1037 : vector<4x256xf32>
    %1039 = vector.extract_strided_slice %1038 {offsets = [0, 0], sizes = [4, 64], strides = [1, 1]} : vector<4x256xf32> to vector<4x64xf32>
    %1040 = arith.negf %1039 : vector<4x64xf32>
    %1041 = math.exp %1040 : vector<4x64xf32>
    %cst_369 = arith.constant 1.000000e+00 : f32
    %1042 = vector.broadcast %cst_369 : f32 to vector<4x64xf32>
    %1043 = arith.addf %1042, %1041 : vector<4x64xf32>
    %1044 = arith.divf %1042, %1043 : vector<4x64xf32>
    %1045 = vector.extract_strided_slice %1038 {offsets = [0, 64], sizes = [4, 64], strides = [1, 1]} : vector<4x256xf32> to vector<4x64xf32>
    %1046 = arith.negf %1045 : vector<4x64xf32>
    %1047 = math.exp %1046 : vector<4x64xf32>
    %cst_370 = arith.constant 1.000000e+00 : f32
    %1048 = vector.broadcast %cst_370 : f32 to vector<4x64xf32>
    %1049 = arith.addf %1048, %1047 : vector<4x64xf32>
    %1050 = arith.divf %1048, %1049 : vector<4x64xf32>
    %1051 = vector.extract_strided_slice %1038 {offsets = [0, 128], sizes = [4, 64], strides = [1, 1]} : vector<4x256xf32> to vector<4x64xf32>
    %1052 = math.tanh %1051 : vector<4x64xf32>
    %1053 = vector.extract_strided_slice %1038 {offsets = [0, 192], sizes = [4, 64], strides = [1, 1]} : vector<4x256xf32> to vector<4x64xf32>
    %1054 = arith.negf %1053 : vector<4x64xf32>
    %1055 = math.exp %1054 : vector<4x64xf32>
    %cst_371 = arith.constant 1.000000e+00 : f32
    %1056 = vector.broadcast %cst_371 : f32 to vector<4x64xf32>
    %1057 = arith.addf %1056, %1055 : vector<4x64xf32>
    %1058 = arith.divf %1056, %1057 : vector<4x64xf32>
    %1059 = arith.mulf %1050, %1031 : vector<4x64xf32>
    %1060 = arith.mulf %1044, %1052 : vector<4x64xf32>
    %1061 = arith.addf %1059, %1060 : vector<4x64xf32>
    %1062 = math.tanh %1061 : vector<4x64xf32>
    %1063 = arith.mulf %1058, %1062 : vector<4x64xf32>
    %1064 = vector.extract_strided_slice %886 {offsets = [24, 0], sizes = [4, 256], strides = [1, 1]} : vector<32x256xf32> to vector<4x256xf32>
    %1065 = arith.truncf %1063 : vector<4x64xf32> to vector<4x64xbf16>
    %c0_372 = arith.constant 0 : index
    %c0_373 = arith.constant 0 : index
    %1066 = vector.load %arg19[%c0_372, %c0_373] : memref<64x256xbf16, #tpu.memory_space<vmem>>, vector<64x256xbf16>
    %cst_374 = arith.constant dense<0.000000e+00> : vector<4x256xf32>
    %1067 = tpu.matmul %1065, %1066, %cst_374 {dimension_numbers = #tpu.dot_dimension_numbers<[1], [0], [0], [1], [0, 0, 1, 1], [], []>} : vector<4x64xbf16>, vector<64x256xbf16>, vector<4x256xf32> -> vector<4x256xf32>
    %1068 = arith.addf %1064, %1067 : vector<4x256xf32>
    %1069 = vector.extract_strided_slice %1068 {offsets = [0, 0], sizes = [4, 64], strides = [1, 1]} : vector<4x256xf32> to vector<4x64xf32>
    %1070 = arith.negf %1069 : vector<4x64xf32>
    %1071 = math.exp %1070 : vector<4x64xf32>
    %cst_375 = arith.constant 1.000000e+00 : f32
    %1072 = vector.broadcast %cst_375 : f32 to vector<4x64xf32>
    %1073 = arith.addf %1072, %1071 : vector<4x64xf32>
    %1074 = arith.divf %1072, %1073 : vector<4x64xf32>
    %1075 = vector.extract_strided_slice %1068 {offsets = [0, 64], sizes = [4, 64], strides = [1, 1]} : vector<4x256xf32> to vector<4x64xf32>
    %1076 = arith.negf %1075 : vector<4x64xf32>
    %1077 = math.exp %1076 : vector<4x64xf32>
    %cst_376 = arith.constant 1.000000e+00 : f32
    %1078 = vector.broadcast %cst_376 : f32 to vector<4x64xf32>
    %1079 = arith.addf %1078, %1077 : vector<4x64xf32>
    %1080 = arith.divf %1078, %1079 : vector<4x64xf32>
    %1081 = vector.extract_strided_slice %1068 {offsets = [0, 128], sizes = [4, 64], strides = [1, 1]} : vector<4x256xf32> to vector<4x64xf32>
    %1082 = math.tanh %1081 : vector<4x64xf32>
    %1083 = vector.extract_strided_slice %1068 {offsets = [0, 192], sizes = [4, 64], strides = [1, 1]} : vector<4x256xf32> to vector<4x64xf32>
    %1084 = arith.negf %1083 : vector<4x64xf32>
    %1085 = math.exp %1084 : vector<4x64xf32>
    %cst_377 = arith.constant 1.000000e+00 : f32
    %1086 = vector.broadcast %cst_377 : f32 to vector<4x64xf32>
    %1087 = arith.addf %1086, %1085 : vector<4x64xf32>
    %1088 = arith.divf %1086, %1087 : vector<4x64xf32>
    %1089 = arith.mulf %1080, %1061 : vector<4x64xf32>
    %1090 = arith.mulf %1074, %1082 : vector<4x64xf32>
    %1091 = arith.addf %1089, %1090 : vector<4x64xf32>
    %1092 = math.tanh %1091 : vector<4x64xf32>
    %1093 = arith.mulf %1088, %1092 : vector<4x64xf32>
    %1094 = vector.extract_strided_slice %886 {offsets = [28, 0], sizes = [4, 256], strides = [1, 1]} : vector<32x256xf32> to vector<4x256xf32>
    %1095 = arith.truncf %1093 : vector<4x64xf32> to vector<4x64xbf16>
    %c0_378 = arith.constant 0 : index
    %c0_379 = arith.constant 0 : index
    %1096 = vector.load %arg19[%c0_378, %c0_379] : memref<64x256xbf16, #tpu.memory_space<vmem>>, vector<64x256xbf16>
    %cst_380 = arith.constant dense<0.000000e+00> : vector<4x256xf32>
    %1097 = tpu.matmul %1095, %1096, %cst_380 {dimension_numbers = #tpu.dot_dimension_numbers<[1], [0], [0], [1], [0, 0, 1, 1], [], []>} : vector<4x64xbf16>, vector<64x256xbf16>, vector<4x256xf32> -> vector<4x256xf32>
    %1098 = arith.addf %1094, %1097 : vector<4x256xf32>
    %1099 = vector.extract_strided_slice %1098 {offsets = [0, 0], sizes = [4, 64], strides = [1, 1]} : vector<4x256xf32> to vector<4x64xf32>
    %1100 = arith.negf %1099 : vector<4x64xf32>
    %1101 = math.exp %1100 : vector<4x64xf32>
    %cst_381 = arith.constant 1.000000e+00 : f32
    %1102 = vector.broadcast %cst_381 : f32 to vector<4x64xf32>
    %1103 = arith.addf %1102, %1101 : vector<4x64xf32>
    %1104 = arith.divf %1102, %1103 : vector<4x64xf32>
    %1105 = vector.extract_strided_slice %1098 {offsets = [0, 64], sizes = [4, 64], strides = [1, 1]} : vector<4x256xf32> to vector<4x64xf32>
    %1106 = arith.negf %1105 : vector<4x64xf32>
    %1107 = math.exp %1106 : vector<4x64xf32>
    %cst_382 = arith.constant 1.000000e+00 : f32
    %1108 = vector.broadcast %cst_382 : f32 to vector<4x64xf32>
    %1109 = arith.addf %1108, %1107 : vector<4x64xf32>
    %1110 = arith.divf %1108, %1109 : vector<4x64xf32>
    %1111 = vector.extract_strided_slice %1098 {offsets = [0, 128], sizes = [4, 64], strides = [1, 1]} : vector<4x256xf32> to vector<4x64xf32>
    %1112 = math.tanh %1111 : vector<4x64xf32>
    %1113 = vector.extract_strided_slice %1098 {offsets = [0, 192], sizes = [4, 64], strides = [1, 1]} : vector<4x256xf32> to vector<4x64xf32>
    %1114 = arith.negf %1113 : vector<4x64xf32>
    %1115 = math.exp %1114 : vector<4x64xf32>
    %cst_383 = arith.constant 1.000000e+00 : f32
    %1116 = vector.broadcast %cst_383 : f32 to vector<4x64xf32>
    %1117 = arith.addf %1116, %1115 : vector<4x64xf32>
    %1118 = arith.divf %1116, %1117 : vector<4x64xf32>
    %1119 = arith.mulf %1110, %1091 : vector<4x64xf32>
    %1120 = arith.mulf %1104, %1112 : vector<4x64xf32>
    %1121 = arith.addf %1119, %1120 : vector<4x64xf32>
    %1122 = math.tanh %1121 : vector<4x64xf32>
    %1123 = arith.mulf %1118, %1122 : vector<4x64xf32>
    %c28_384 = arith.constant 28 : index
    %c0_385 = arith.constant 0 : index
    %1124 = vector.load %arg28[%c28_384, %c0_385] : memref<32x256xf32, #tpu.memory_space<vmem>>, vector<4x256xf32>
    %1125 = arith.truncf %1124 : vector<4x256xf32> to vector<4x256xbf16>
    %c0_386 = arith.constant 0 : index
    %c0_387 = arith.constant 0 : index
    %1126 = vector.load %arg16[%c0_386, %c0_387] : memref<256x256xbf16, #tpu.memory_space<vmem>>, vector<256x256xbf16>
    %cst_388 = arith.constant dense<0.000000e+00> : vector<4x256xf32>
    %1127 = tpu.matmul %1125, %1126, %cst_388 {dimension_numbers = #tpu.dot_dimension_numbers<[1], [0], [0], [1], [0, 0, 1, 1], [], []>} : vector<4x256xbf16>, vector<256x256xbf16>, vector<4x256xf32> -> vector<4x256xf32>
    %c0_389 = arith.constant 0 : index
    %c0_390 = arith.constant 0 : index
    %1128 = vector.load %arg18[%c0_389, %c0_390] : memref<1x256xf32, #tpu.memory_space<vmem>>, vector<1x256xf32>
    %1129 = vector.broadcast %1128 : vector<1x256xf32> to vector<4x256xf32>
    %1130 = arith.addf %1127, %1129 : vector<4x256xf32>
    %1131 = vector.extract_strided_slice %1130 {offsets = [0, 0], sizes = [4, 64], strides = [1, 1]} : vector<4x256xf32> to vector<4x64xf32>
    %1132 = arith.negf %1131 : vector<4x64xf32>
    %1133 = math.exp %1132 : vector<4x64xf32>
    %cst_391 = arith.constant 1.000000e+00 : f32
    %1134 = vector.broadcast %cst_391 : f32 to vector<4x64xf32>
    %1135 = arith.addf %1134, %1133 : vector<4x64xf32>
    %1136 = arith.divf %1134, %1135 : vector<4x64xf32>
    %1137 = vector.extract_strided_slice %1130 {offsets = [0, 128], sizes = [4, 64], strides = [1, 1]} : vector<4x256xf32> to vector<4x64xf32>
    %1138 = math.tanh %1137 : vector<4x64xf32>
    %1139 = vector.extract_strided_slice %1130 {offsets = [0, 192], sizes = [4, 64], strides = [1, 1]} : vector<4x256xf32> to vector<4x64xf32>
    %1140 = arith.negf %1139 : vector<4x64xf32>
    %1141 = math.exp %1140 : vector<4x64xf32>
    %cst_392 = arith.constant 1.000000e+00 : f32
    %1142 = vector.broadcast %cst_392 : f32 to vector<4x64xf32>
    %1143 = arith.addf %1142, %1141 : vector<4x64xf32>
    %1144 = arith.divf %1142, %1143 : vector<4x64xf32>
    %1145 = arith.mulf %1136, %1138 : vector<4x64xf32>
    %1146 = math.tanh %1145 : vector<4x64xf32>
    %1147 = arith.mulf %1144, %1146 : vector<4x64xf32>
    %1148 = arith.truncf %1123 : vector<4x64xf32> to vector<4x64xbf16>
    %c0_393 = arith.constant 0 : index
    %c0_394 = arith.constant 0 : index
    %1149 = vector.load %arg20[%c0_393, %c0_394] : memref<64x128xbf16, #tpu.memory_space<vmem>>, vector<64x128xbf16>
    %cst_395 = arith.constant dense<0.000000e+00> : vector<4x128xf32>
    %1150 = tpu.matmul %1148, %1149, %cst_395 {dimension_numbers = #tpu.dot_dimension_numbers<[1], [0], [0], [1], [0, 0, 1, 1], [], []>} : vector<4x64xbf16>, vector<64x128xbf16>, vector<4x128xf32> -> vector<4x128xf32>
    %1151 = arith.truncf %1147 : vector<4x64xf32> to vector<4x64xbf16>
    %c0_396 = arith.constant 0 : index
    %c0_397 = arith.constant 0 : index
    %1152 = vector.load %arg21[%c0_396, %c0_397] : memref<64x128xbf16, #tpu.memory_space<vmem>>, vector<64x128xbf16>
    %cst_398 = arith.constant dense<0.000000e+00> : vector<4x128xf32>
    %1153 = tpu.matmul %1151, %1152, %cst_398 {dimension_numbers = #tpu.dot_dimension_numbers<[1], [0], [0], [1], [0, 0, 1, 1], [], []>} : vector<4x64xbf16>, vector<64x128xbf16>, vector<4x128xf32> -> vector<4x128xf32>
    %1154 = arith.addf %1150, %1153 : vector<4x128xf32>
    %c0_399 = arith.constant 0 : index
    %c0_400 = arith.constant 0 : index
    %1155 = vector.load %arg22[%c0_399, %c0_400] : memref<1x128xf32, #tpu.memory_space<vmem>>, vector<1x128xf32>
    %1156 = vector.broadcast %1155 : vector<1x128xf32> to vector<4x128xf32>
    %1157 = arith.addf %1154, %1156 : vector<4x128xf32>
    %cst_401 = arith.constant 0.000000e+00 : f32
    %1158 = vector.broadcast %cst_401 : f32 to vector<4x128xf32>
    %1159 = arith.maximumf %1157, %1158 : vector<4x128xf32>
    %1160 = arith.truncf %1159 : vector<4x128xf32> to vector<4x128xbf16>
    %c0_402 = arith.constant 0 : index
    %c0_403 = arith.constant 0 : index
    %1161 = vector.load %arg23[%c0_402, %c0_403] : memref<128x64xbf16, #tpu.memory_space<vmem>>, vector<128x64xbf16>
    %cst_404 = arith.constant dense<0.000000e+00> : vector<4x64xf32>
    %1162 = tpu.matmul %1160, %1161, %cst_404 {dimension_numbers = #tpu.dot_dimension_numbers<[1], [0], [0], [1], [0, 0, 1, 1], [], []>} : vector<4x128xbf16>, vector<128x64xbf16>, vector<4x64xf32> -> vector<4x64xf32>
    %c0_405 = arith.constant 0 : index
    %c0_406 = arith.constant 0 : index
    %1163 = vector.load %arg24[%c0_405, %c0_406] : memref<1x64xf32, #tpu.memory_space<vmem>>, vector<1x64xf32>
    %1164 = vector.broadcast %1163 : vector<1x64xf32> to vector<4x64xf32>
    %1165 = arith.addf %1162, %1164 : vector<4x64xf32>
    %cst_407 = arith.constant 0.000000e+00 : f32
    %1166 = vector.broadcast %cst_407 : f32 to vector<4x64xf32>
    %1167 = arith.maximumf %1165, %1166 : vector<4x64xf32>
    %1168 = arith.truncf %1167 : vector<4x64xf32> to vector<4x64xbf16>
    %c0_408 = arith.constant 0 : index
    %c0_409 = arith.constant 0 : index
    %1169 = vector.load %arg25[%c0_408, %c0_409] : memref<64x10xbf16, #tpu.memory_space<vmem>>, vector<64x10xbf16>
    %cst_410 = arith.constant dense<0.000000e+00> : vector<4x10xf32>
    %1170 = tpu.matmul %1168, %1169, %cst_410 {dimension_numbers = #tpu.dot_dimension_numbers<[1], [0], [0], [1], [0, 0, 1, 1], [], []>} : vector<4x64xbf16>, vector<64x10xbf16>, vector<4x10xf32> -> vector<4x10xf32>
    %c0_411 = arith.constant 0 : index
    %c0_412 = arith.constant 0 : index
    %1171 = vector.load %arg26[%c0_411, %c0_412] : memref<1x10xf32, #tpu.memory_space<vmem>>, vector<1x10xf32>
    %1172 = vector.broadcast %1171 : vector<1x10xf32> to vector<4x10xf32>
    %1173 = arith.addf %1170, %1172 : vector<4x10xf32>
    %cst_413 = arith.constant dense<0xFF800000> : vector<4xf32>
    %1174 = vector.multi_reduction <maximumf>, %1173, %cst_413 [1] : vector<4x10xf32> to vector<4xf32>
    %1175 = vector.shape_cast %1174 : vector<4xf32> to vector<4x1xf32>
    %1176 = vector.broadcast %1175 : vector<4x1xf32> to vector<4x10xf32>
    %1177 = arith.subf %1173, %1176 : vector<4x10xf32>
    %1178 = math.exp %1177 : vector<4x10xf32>
    %cst_414 = arith.constant dense<0.000000e+00> : vector<4xf32>
    %1179 = vector.multi_reduction <add>, %1178, %cst_414 [1] : vector<4x10xf32> to vector<4xf32>
    %1180 = vector.shape_cast %1179 : vector<4xf32> to vector<4x1xf32>
    %1181 = vector.broadcast %1180 : vector<4x1xf32> to vector<4x10xf32>
    %1182 = arith.divf %1178, %1181 : vector<4x10xf32>
    %c0_415 = arith.constant 0 : index
    %c0_416 = arith.constant 0 : index
    %1183 = vector.load %arg27[%c0_415, %c0_416] : memref<4x10xf32, #tpu.memory_space<vmem>>, vector<4x10xf32>
    tpu.vector_store %arg27[%c0_415, %c0_416], %1182 {strides = array<i32>} : memref<4x10xf32, #tpu.memory_space<vmem>>, vector<4x10xf32>,
    return
  }
}

</mosaic_0001>

<bundles_post_ra>
// kernel: action_bilstm_forward.1
= control target key start
LH: loop header
LB: loop body
LE: loop exit
PB: predicated region body
PF: predicated region fallthrough
CT: control target
= control target key end

     0   :  { %s16847_s0 = inlined_call_operand.vmem [shape: f32[8], index: 0, kind: input, shape index: {}]   ;;  %s16848_s1 = inlined_call_operand.vmem [shape: f32[8], index: 1, kind: input, shape index: {}]   ;;  %s16849_s2 = inlined_call_operand.hbm [shape: f32[8], index: 2, kind: input, shape index: {}]   ;;  %s16850_s3 = inlined_call_operand.hbm [shape: f32[8], index: 3, kind: input, shape index: {}]   ;;  %s16851_s4 = inlined_call_operand.vmem [shape: f32[32,64], index: 4, kind: input, shape index: {}]   ;;  %s16852_s5 = inlined_call_operand.hbm [shape: bf16[64,512], index: 5, kind: input, shape index: {}]   ;;  %s16853_s6 = inlined_call_operand.hbm [shape: bf16[64,512], index: 6, kind: input, shape index: {}]   ;;  %s16854_s7 = inlined_call_operand.vmem [shape: f32[1,512], index: 7, kind: input, shape index: {}]   ;;  %s16855_s8 = inlined_call_operand.vmem [shape: f32[1,512], index: 8, kind: input, shape index: {}]   ;;  %s16856_s9 = inlined_call_operand.hbm [shape: bf16[256,512], index: 9, kind: input, shape index: {}]   ;;  %s16857_s10 = inlined_call_operand.hbm [shape: bf16[256,512], index: 10, kind: input, shape index: {}]   ;;  %s16858_s11 = inlined_call_operand.hbm [shape: bf16[256,512], index: 11, kind: input, shape index: {}]   ;;  %s16859_s12 = inlined_call_operand.vmem [shape: f32[1,512], index: 12, kind: input, shape index: {}]   ;;  %s16860_s13 = inlined_call_operand.vmem [shape: f32[1,512], index: 13, kind: input, shape index: {}]   ;;  %s16861_s14 = inlined_call_operand.hbm [shape: bf16[256,512], index: 14, kind: input, shape index: {}]   ;;  %s16862_s15 = inlined_call_operand.vmem [shape: bf16[256,256], index: 15, kind: input, shape index: {}]   ;;  %s16863_s16 = inlined_call_operand.hbm [shape: bf16[256,256], index: 16, kind: input, shape index: {}]   ;;  %s16864_s17 = inlined_call_operand.hbm [shape: f32[1,256], index: 17, kind: input, shape index: {}]   ;;  %s16865_s18 = inlined_call_operand.hbm [shape: f32[1,256], index: 18, kind: input, shape index: {}]   ;;  %s16866_s19 = inlined_call_operand.hbm [shape: bf16[64,256], index: 19, kind: input, shape index: {}]   ;;  %s16867_s20 = inlined_call_operand.vmem [shape: bf16[64,128], index: 20, kind: input, shape index: {}]   ;;  %s16868_s21 = inlined_call_operand.hbm [shape: bf16[64,128], index: 21, kind: input, shape index: {}]   ;;  %s16869_s22 = inlined_call_operand.hbm [shape: f32[1,128], index: 22, kind: input, shape index: {}]   ;;  %s16870_s23 = inlined_call_operand.vmem [shape: bf16[128,64], index: 23, kind: input, shape index: {}]   ;;  %s16871_s24 = inlined_call_operand.hbm [shape: f32[1,64], index: 24, kind: input, shape index: {}]   ;;  %s16872_s25 = inlined_call_operand.vmem [shape: bf16[64,10], index: 25, kind: input, shape index: {}]   ;;  %s16873_s26 = inlined_call_operand.hbm [shape: f32[1,10], index: 26, kind: input, shape index: {}]   ;;  %s16874_s27 = inlined_call_operand.hbm [shape: f32[4,10], index: 27, kind: output, shape index: {}]  }
   0x1   :  { %17073 = sst [smem:[#allocation78_spill]] %s16847_s0 }
   0x2   :  { %17074 = sst [smem:[#allocation79_spill]] %s16848_s1 }
   0x3   :  { %17075 = sst [smem:[#allocation80_spill]] %s16849_s2 }
   0x4   :  { %17076 = sst [smem:[#allocation81_spill]] %s16850_s3 }
   0x5   :  { %17077 = sst [smem:[#allocation82_spill]] %s16851_s4 }
   0x6   :  { %17078 = sst [smem:[#allocation83_spill]] %s16852_s5 }
   0x7   :  { %17079 = sst [smem:[#allocation84_spill]] %s16853_s6 }
   0x8   :  { %17080 = sst [smem:[#allocation85_spill]] %s16854_s7 }
   0x9   :  { %17081 = sst [smem:[#allocation86_spill]] %s16855_s8 }
   0xa   :  { %17082 = sst [smem:[#allocation87_spill]] %s16856_s9 }
   0xb   :  { %17083 = sst [smem:[#allocation88_spill]] %s16857_s10 }
   0xc   :  { %17084 = sst [smem:[#allocation89_spill]] %s16858_s11 }
   0xd   :  { %17085 = sst [smem:[#allocation90_spill]] %s16872_s25 }
   0xe   :  { %17086 = sst [smem:[#allocation91_spill]] %s16874_s27 }
   0xf   :  { %32 = vsyncpa [#allocation8], 0 }
  0x10   :  { %33 = vsyncpa [#allocation10], 0 }
  0x11   :  { %34 = vsyncpa [#allocation7], 0 }
  0x12   :  { %35 = vsyncpa [#allocation13], 0 }
  0x13   :  { %36 = vsyncpa [#allocation5], 0 }
  0x14   :  { %37 = vsyncpa [#allocation16], 0 }
  0x15   :  { %38 = vsyncpa [#allocation19], 0 }
  0x16   :  { %39 = vsyncpa [#allocation22], 0 }
  0x17   :  { %40 = vsyncpa [#allocation25], 0 }
  0x18   :  { %41 = vsyncpa [#allocation28], 0 }
  0x19   :  { %42 = vsyncpa [#allocation31], 0 }
  0x1a   :  { %43 = vsyncpa [#allocation34], 0 }
  0x1b   :  { %44 = vsyncpa [#allocation6], 0  ;;  %s14455_s7 = smov [#allocation15]   ;;  %s14456_s8 = smov [#allocation18]  }
  0x1c   :  { %s100_s4 = sshll.u32 %s14455_s7, 4  ;;  %s128_s30 = sshll.u32 %s14456_s8, 4  ;;  %s101_s4 = int_to_ptr.vmem [resolvable:$true] %s100_s4  ;;  %s14623_s30 = int_to_ptr.vmem [resolvable:$true] %s128_s30 }
  0x1d   :  { %s17087_s28 = sld [smem:[#allocation84_spill]] }
  0x23   :  { %s14055_s0 = scalar_lea.hbm %s17087_s28, 2048 }
  0x24   :  { %p14056_p0 = scmp.ne.s32.totalorder %s17087_s28, %s14055_s0  ;;  %p14059_p1 = scmp.lt.u32.totalorder %s14055_s0, %s17087_s28 }
  0x26   :  { %p14061_p2 = pnand %p14059_p1, %p14056_p0 }
  0x28   :  { %14064 = shalt.err (!%p14061_p2)
}
  0x29   :  { %s14065_s11 = scalar_lea.vmem %s101_s4, 2048  ;;  %p14070_p4 = scmp.lt.s32.totalorder %s101_s4, %s101_s4 }
  0x2a   :  { %p14066_p3 = scmp.ne.s32.totalorder %s101_s4, %s14065_s11  ;;  %p14071_p5 = scmp.lt.s32.totalorder %s14065_s11, %s14065_s11 }
  0x2c   :  { %p14072_p6 = por %p14071_p5, %p14070_p4 }
  0x2e   :  { %p14073_p7 = pnand %p14072_p6, %p14066_p3 }
  0x30   :  { %14076 = shalt.err (!%p14073_p7)
}
  0x31   :  { %s14457_s2 = smov 256   ;;  %s14458_s3 = smov 16  }
  0x32   :  { %106 = dma.hbm_to_vmem [thread:$0]  %s17087_s28, 2048, %s101_s4, [#allocation16], %s14457_s2, %s14457_s2, %s14458_s3  }
  0x33   :  { %s17088_s0 = sld [smem:[#allocation88_spill]] }
  0x39   :  { %s14077_s10 = scalar_lea.hbm %s17088_s0, 8192 }
  0x3a   :  { %p14078_p8 = scmp.ne.s32.totalorder %s17088_s0, %s14077_s10  ;;  %p14081_p9 = scmp.lt.u32.totalorder %s14077_s10, %s17088_s0 }
  0x3c   :  { %p14083_p10 = pnand %p14081_p9, %p14078_p8 }
  0x3e   :  { %14086 = shalt.err (!%p14083_p10)
}
  0x3f   :  { %s14087_s27 = scalar_lea.vmem %s14623_s30, 8192  ;;  %p14092_p12 = scmp.lt.s32.totalorder %s14623_s30, %s14623_s30 }
  0x40   :  { %p14088_p11 = scmp.ne.s32.totalorder %s14623_s30, %s14087_s27  ;;  %p14093_p13 = scmp.lt.s32.totalorder %s14087_s27, %s14087_s27 }
  0x42   :  { %p14094_p0 = por %p14093_p13, %p14092_p12 }
  0x44   :  { %p14095_p1 = pnand %p14094_p0, %p14088_p11 }
  0x46   :  { %14098 = shalt.err (!%p14095_p1)
}
  0x47   :  { %134 = dma.hbm_to_vmem [thread:$0]  %s17088_s0, 8192, %s14623_s30, [#allocation19], %s14457_s2, %s14457_s2, %s14458_s3  }
  0x48   :  { %s14459_s7 = smov [#allocation21]   ;;  %s14460_s9 = smov [#allocation24]  }
  0x49   :  { %s156_s8 = sshll.u32 %s14459_s7, 4  ;;  %s183_s5 = sshll.u32 %s14460_s9, 4  ;;  %s157_s8 = int_to_ptr.vmem [resolvable:$true] %s156_s8  ;;  %s184_s5 = int_to_ptr.vmem [resolvable:$true] %s183_s5 }
  0x4a   :  { %s14099_s27 = scalar_lea.hbm %s16861_s14, 8192 }
  0x4b   :  { %p14100_p2 = scmp.ne.s32.totalorder %s16861_s14, %s14099_s27  ;;  %p14103_p3 = scmp.lt.u32.totalorder %s14099_s27, %s16861_s14 }
  0x4d   :  { %p14105_p4 = pnand %p14103_p3, %p14100_p2 }
  0x4f   :  { %14108 = shalt.err (!%p14105_p4)
}
  0x50   :  { %s14109_s30 = scalar_lea.vmem %s157_s8, 8192  ;;  %p14114_p6 = scmp.lt.s32.totalorder %s157_s8, %s157_s8 }
  0x51   :  { %p14110_p5 = scmp.ne.s32.totalorder %s157_s8, %s14109_s30  ;;  %p14115_p7 = scmp.lt.s32.totalorder %s14109_s30, %s14109_s30 }
  0x53   :  { %p14116_p8 = por %p14115_p7, %p14114_p6 }
  0x55   :  { %p14117_p9 = pnand %p14116_p8, %p14110_p5 }
  0x57   :  { %14120 = shalt.err (!%p14117_p9)
}
  0x58   :  { %162 = dma.hbm_to_vmem [thread:$0]  %s16861_s14, 8192, %s157_s8, [#allocation22], %s14457_s2, %s14457_s2, %s14458_s3  }
  0x59   :  { %s14121_s25 = scalar_lea.hbm %s16864_s17, 32 }
  0x5a   :  { %p14122_p10 = scmp.ne.s32.totalorder %s16864_s17, %s14121_s25  ;;  %p14125_p11 = scmp.lt.u32.totalorder %s14121_s25, %s16864_s17 }
  0x5c   :  { %p14127_p12 = pnand %p14125_p11, %p14122_p10 }
  0x5e   :  { %14130 = shalt.err (!%p14127_p12)
}
  0x5f   :  { %s14131_s1 = scalar_lea.vmem %s184_s5, 32  ;;  %p14136_p0 = scmp.lt.s32.totalorder %s184_s5, %s184_s5 }
  0x60   :  { %p14132_p13 = scmp.ne.s32.totalorder %s184_s5, %s14131_s1  ;;  %p14137_p1 = scmp.lt.s32.totalorder %s14131_s1, %s14131_s1 }
  0x62   :  { %p14138_p2 = por %p14137_p1, %p14136_p0 }
  0x64   :  { %p14139_p3 = pnand %p14138_p2, %p14132_p13 }
  0x66   :  { %14142 = shalt.err (!%p14139_p3)
}
  0x67   :  { %186 = dma.hbm_to_vmem [thread:$0]  %s16864_s17, 32, %s184_s5, [#allocation25]  }
  0x68   :  { %s14461_s6 = smov [#allocation27]   ;;  %s14462_s30 = smov [#allocation30]  }
  0x69   :  { %s202_s11 = sshll.u32 %s14461_s6, 4  ;;  %s229_s0 = sshll.u32 %s14462_s30, 4  ;;  %s203_s11 = int_to_ptr.vmem [resolvable:$true] %s202_s11  ;;  %s14687_s0 = int_to_ptr.vmem [resolvable:$true] %s229_s0 }
  0x6a   :  { %s14143_s7 = scalar_lea.hbm %s16866_s19, 1024 }
  0x6b   :  { %p14144_p4 = scmp.ne.s32.totalorder %s16866_s19, %s14143_s7  ;;  %p14147_p5 = scmp.lt.u32.totalorder %s14143_s7, %s16866_s19 }
  0x6d   :  { %p14149_p6 = pnand %p14147_p5, %p14144_p4 }
  0x6f   :  { %14152 = shalt.err (!%p14149_p6)
}
  0x70   :  { %s14153_s17 = scalar_lea.vmem %s203_s11, 1024  ;;  %p14158_p8 = scmp.lt.s32.totalorder %s203_s11, %s203_s11 }
  0x71   :  { %p14154_p7 = scmp.ne.s32.totalorder %s203_s11, %s14153_s17  ;;  %p14159_p9 = scmp.lt.s32.totalorder %s14153_s17, %s14153_s17 }
  0x73   :  { %p14160_p10 = por %p14159_p9, %p14158_p8 }
  0x75   :  { %p14161_p11 = pnand %p14160_p10, %p14154_p7 }
  0x77   :  { %14164 = shalt.err (!%p14161_p11)
}
  0x78   :  { %s14463_s5 = smov 128   ;;  %s14464_s27 = smov 8  }
  0x79   :  { %208 = dma.hbm_to_vmem [thread:$0]  %s16866_s19, 1024, %s203_s11, [#allocation28], %s14463_s5, %s14463_s5, %s14464_s27  }
  0x7a   :  { %s14165_s30 = scalar_lea.hbm %s16869_s22, 16 }
  0x7b   :  { %p14166_p12 = scmp.ne.s32.totalorder %s16869_s22, %s14165_s30  ;;  %p14169_p13 = scmp.lt.u32.totalorder %s14165_s30, %s16869_s22 }
  0x7d   :  { %p14171_p0 = pnand %p14169_p13, %p14166_p12 }
  0x7f   :  { %14174 = shalt.err (!%p14171_p0)
}
  0x80   :  { %s14175_s9 = scalar_lea.vmem %s14687_s0, 16  ;;  %s14179_s19 = scalar_lea.vmem %s14687_s0, 32 }
  0x81   :  { %p14176_p1 = scmp.ne.s32.totalorder %s14687_s0, %s14175_s9  ;;  %p14180_p2 = scmp.lt.s32.totalorder %s14687_s0, %s14687_s0 }
  0x82   :  { %p14181_p3 = scmp.lt.s32.totalorder %s14179_s19, %s14175_s9 }
  0x84   :  { %p14182_p4 = por %p14181_p3, %p14180_p2 }
  0x86   :  { %p14183_p5 = pnand %p14182_p4, %p14176_p1 }
  0x88   :  { %14186 = shalt.err (!%p14183_p5)
}
  0x89   :  { %232 = dma.hbm_to_vmem [thread:$0]  %s16869_s22, 16, %s14687_s0, [#allocation31]  }
  0x8a   :  { %s17089_s1 = sld [smem:[#allocation78_spill]]  ;;  %s17090_s30 = sld [smem:[#allocation79_spill]] }
  0x90   :  { %s51_s14 = sshll.u32 %s17089_s1, 4  ;;  %s61_s4 = sshll.u32 %s17090_s30, 4  ;;  %s52_s14 = int_to_ptr.vmem [resolvable:$true] %s51_s14  ;;  %s62_s4 = int_to_ptr.vmem [resolvable:$true] %s61_s4 }
  0x91   :  { %s14187_s28 = scalar_lea.vmem %s52_s14, 16  ;;  %p14192_p7 = scmp.lt.s32.totalorder %s52_s14, %s52_s14 }
  0x92   :  { %p14188_p6 = scmp.ne.s32.totalorder %s52_s14, %s14187_s28  ;;  %p14193_p8 = scmp.lt.s32.totalorder %s14187_s28, %s14187_s28 }
  0x94   :  { %p14194_p9 = por %p14193_p8, %p14192_p7 }
  0x96   :  { %p14195_p10 = pnand %p14194_p9, %p14188_p6 }
  0x98   :  { %14198 = shalt.err (!%p14195_p10)
}
  0x99   :  { %s14465_s7 = smov [#allocation4]   ;;  %s14199_s22 = scalar_lea.vmem %s62_s4, 16 }
  0x9a   :  { %54 = dma.vmem_to_smem %s52_s14, 16, %s14465_s7, [#allocation8]  }
  0x9b   :  { %p14200_p11 = scmp.ne.s32.totalorder %s62_s4, %s14199_s22  ;;  %p14204_p12 = scmp.lt.s32.totalorder %s62_s4, %s62_s4 }
  0x9c   :  { %p14205_p13 = scmp.lt.s32.totalorder %s14199_s22, %s14199_s22 }
  0x9e   :  { %p14206_p0 = por %p14205_p13, %p14204_p12 }
  0xa0   :  { %p14207_p1 = pnand %p14206_p0, %p14200_p11 }
  0xa2   :  { %14210 = shalt.err (!%p14207_p1)
}
  0xa3   :  { %s14466_s0 = smov [#allocation9]   ;;  %s17091_s19 = sld [smem:[#allocation80_spill]] }
  0xa4   :  { %64 = dma.vmem_to_smem %s62_s4, 16, %s14466_s0, [#allocation10]  }
  0xa9   :  { %s14211_s11 = scalar_lea.hbm %s17091_s19, 16 }
  0xaa   :  { %p14212_p2 = scmp.ne.s32.totalorder %s17091_s19, %s14211_s11  ;;  %p14215_p3 = scmp.lt.u32.totalorder %s14211_s11, %s17091_s19 }
  0xac   :  { %p14217_p4 = pnand %p14215_p3, %p14212_p2 }
  0xae   :  { %14220 = shalt.err (!%p14217_p4)
}
  0xaf   :  { %s14467_s14 = smov [#allocation11]   ;;  %s17092_s28 = sld [smem:[#allocation81_spill]] }
  0xb0   :  { %72 = dma.hbm_to_smem %s17091_s19, 16, %s14467_s14, [#allocation7]  }
  0xb5   :  { %s14221_s7 = scalar_lea.hbm %s17092_s28, 16 }
  0xb6   :  { %p14222_p5 = scmp.ne.s32.totalorder %s17092_s28, %s14221_s7  ;;  %p14225_p6 = scmp.lt.u32.totalorder %s14221_s7, %s17092_s28 }
  0xb8   :  { %p14227_p7 = pnand %p14225_p6, %p14222_p5 }
  0xba   :  { %14230 = shalt.err (!%p14227_p7)
}
  0xbb   :  { %s14468_s11 = smov [#allocation12]   ;;  %s14469_s19 = smov [#allocation14]  }
  0xbc   :  { %80 = dma.hbm_to_smem %s17092_s28, 16, %s14468_s11, [#allocation13]  }
  0xbd   :  { %s88_s17 = sshll.u32 %s14469_s19, 4  ;;  %s14470_s1 = smov [#allocation17]   ;;  %s89_s17 = int_to_ptr.vmem [resolvable:$true] %s88_s17 }
  0xbe   :  { %s116_s14 = sshll.u32 %s14470_s1, 4  ;;  %s17093_s30 = sld [smem:[#allocation83_spill]]  ;;  %s14752_s14 = int_to_ptr.vmem [resolvable:$true] %s116_s14 }
  0xc4   :  { %s14231_s4 = scalar_lea.hbm %s17093_s30, 2048 }
  0xc5   :  { %p14232_p8 = scmp.ne.s32.totalorder %s17093_s30, %s14231_s4  ;;  %p14235_p9 = scmp.lt.u32.totalorder %s14231_s4, %s17093_s30 }
  0xc7   :  { %p14237_p10 = pnand %p14235_p9, %p14232_p8 }
  0xc9   :  { %14240 = shalt.err (!%p14237_p10)
}
  0xca   :  { %s14241_s28 = scalar_lea.vmem %s89_s17, 2048  ;;  %p14246_p12 = scmp.lt.s32.totalorder %s89_s17, %s89_s17 }
  0xcb   :  { %p14242_p11 = scmp.ne.s32.totalorder %s89_s17, %s14241_s28  ;;  %p14247_p13 = scmp.lt.s32.totalorder %s14241_s28, %s14241_s28 }
  0xcd   :  { %p14248_p0 = por %p14247_p13, %p14246_p12 }
  0xcf   :  { %p14249_p1 = pnand %p14248_p0, %p14242_p11 }
  0xd1   :  { %14252 = shalt.err (!%p14249_p1)
}
  0xd2   :  { %94 = dma.hbm_to_vmem [thread:$0]  %s17093_s30, 2048, %s89_s17, [#allocation5], %s14457_s2, %s14457_s2, %s14458_s3  }
  0xd3   :  { %s17094_s19 = sld [smem:[#allocation87_spill]] }
  0xd9   :  { %s14253_s1 = scalar_lea.hbm %s17094_s19, 8192 }
  0xda   :  { %p14254_p2 = scmp.ne.s32.totalorder %s17094_s19, %s14253_s1  ;;  %p14257_p3 = scmp.lt.u32.totalorder %s14253_s1, %s17094_s19 }
  0xdc   :  { %p14259_p4 = pnand %p14257_p3, %p14254_p2 }
  0xde   :  { %14262 = shalt.err (!%p14259_p4)
}
  0xdf   :  { %s14263_s7 = scalar_lea.vmem %s14752_s14, 8192  ;;  %p14268_p6 = scmp.lt.s32.totalorder %s14752_s14, %s14752_s14 }
  0xe0   :  { %p14264_p5 = scmp.ne.s32.totalorder %s14752_s14, %s14263_s7  ;;  %p14269_p7 = scmp.lt.s32.totalorder %s14263_s7, %s14263_s7 }
  0xe2   :  { %p14270_p8 = por %p14269_p7, %p14268_p6 }
  0xe4   :  { %p14271_p9 = pnand %p14270_p8, %p14264_p5 }
  0xe6   :  { %14274 = shalt.err (!%p14271_p9)
}
  0xe7   :  { %122 = dma.hbm_to_vmem [thread:$0]  %s17094_s19, 8192, %s14752_s14, [#allocation16], %s14457_s2, %s14457_s2, %s14458_s3  }
  0xe8   :  { %s14471_s0 = smov [#allocation20]   ;;  %s14472_s28 = smov [#allocation23]  }
  0xe9   :  { %s140_s25 = sshll.u32 %s14471_s0, 4  ;;  %s170_s9 = sshll.u32 %s14472_s28, 4  ;;  %s141_s25 = int_to_ptr.vmem [resolvable:$true] %s140_s25  ;;  %s14789_s9 = int_to_ptr.vmem [resolvable:$true] %s170_s9 }
  0xea   :  { %s17095_s29 = sld [smem:[#allocation89_spill]] }
  0xf0   :  { %s14275_s1 = scalar_lea.hbm %s17095_s29, 8192 }
  0xf1   :  { %p14276_p10 = scmp.ne.s32.totalorder %s17095_s29, %s14275_s1  ;;  %p14279_p11 = scmp.lt.u32.totalorder %s14275_s1, %s17095_s29 }
  0xf3   :  { %p14281_p12 = pnand %p14279_p11, %p14276_p10 }
  0xf5   :  { %14284 = shalt.err (!%p14281_p12)
}
  0xf6   :  { %s14285_s14 = scalar_lea.vmem %s141_s25, 8192  ;;  %p14290_p0 = scmp.lt.s32.totalorder %s141_s25, %s141_s25 }
  0xf7   :  { %p14286_p13 = scmp.ne.s32.totalorder %s141_s25, %s14285_s14  ;;  %p14291_p1 = scmp.lt.s32.totalorder %s14285_s14, %s14285_s14 }
  0xf9   :  { %p14292_p2 = por %p14291_p1, %p14290_p0 }
  0xfb   :  { %p14293_p3 = pnand %p14292_p2, %p14286_p13 }
  0xfd   :  { %14296 = shalt.err (!%p14293_p3)
}
  0xfe   :  { %146 = dma.hbm_to_vmem [thread:$0]  %s17095_s29, 8192, %s141_s25, [#allocation19], %s14457_s2, %s14457_s2, %s14458_s3  }
  0xff   :  { %s14297_s0 = scalar_lea.hbm %s16863_s16, 4096 }
 0x100   :  { %p14298_p4 = scmp.ne.s32.totalorder %s16863_s16, %s14297_s0  ;;  %p14301_p5 = scmp.lt.u32.totalorder %s14297_s0, %s16863_s16 }
 0x102   :  { %p14303_p6 = pnand %p14301_p5, %p14298_p4 }
 0x104   :  { %14306 = shalt.err (!%p14303_p6)
}
 0x105   :  { %s14307_s8 = scalar_lea.vmem %s14789_s9, 4096  ;;  %p14312_p8 = scmp.lt.s32.totalorder %s14789_s9, %s14789_s9 }
 0x106   :  { %p14308_p7 = scmp.ne.s32.totalorder %s14789_s9, %s14307_s8  ;;  %p14313_p9 = scmp.lt.s32.totalorder %s14307_s8, %s14307_s8 }
 0x108   :  { %p14314_p10 = por %p14313_p9, %p14312_p8 }
 0x10a   :  { %p14315_p11 = pnand %p14314_p10, %p14308_p7 }
 0x10c   :  { %14318 = shalt.err (!%p14315_p11)
}
 0x10d   :  { %176 = dma.hbm_to_vmem [thread:$0]  %s16863_s16, 4096, %s14789_s9, [#allocation22], %s14463_s5, %s14463_s5, %s14464_s27  }
 0x10e   :  { %s14473_s25 = smov [#allocation26]   ;;  %s14474_s6 = smov [#allocation29]  }
 0x10f   :  { %s193_s29 = sshll.u32 %s14473_s25, 4  ;;  %s216_s4 = sshll.u32 %s14474_s6, 4  ;;  %s194_s29 = int_to_ptr.vmem [resolvable:$true] %s193_s29  ;;  %s14826_s4 = int_to_ptr.vmem [resolvable:$true] %s216_s4 }
 0x110   :  { %s14319_s19 = scalar_lea.hbm %s16865_s18, 32 }
 0x111   :  { %p14320_p12 = scmp.ne.s32.totalorder %s16865_s18, %s14319_s19  ;;  %p14323_p13 = scmp.lt.u32.totalorder %s14319_s19, %s16865_s18 }
 0x113   :  { %p14325_p0 = pnand %p14323_p13, %p14320_p12 }
 0x115   :  { %14328 = shalt.err (!%p14325_p0)
}
 0x116   :  { %s14329_s16 = scalar_lea.vmem %s194_s29, 32  ;;  %p14334_p2 = scmp.lt.s32.totalorder %s194_s29, %s194_s29 }
 0x117   :  { %p14330_p1 = scmp.ne.s32.totalorder %s194_s29, %s14329_s16  ;;  %p14335_p3 = scmp.lt.s32.totalorder %s14329_s16, %s14329_s16 }
 0x119   :  { %p14336_p4 = por %p14335_p3, %p14334_p2 }
 0x11b   :  { %p14337_p5 = pnand %p14336_p4, %p14330_p1 }
 0x11d   :  { %14340 = shalt.err (!%p14337_p5)
}
 0x11e   :  { %196 = dma.hbm_to_vmem [thread:$0]  %s16865_s18, 32, %s194_s29, [#allocation25]  }
 0x11f   :  { %s14341_s11 = scalar_lea.hbm %s16868_s21, 512 }
 0x120   :  { %p14342_p6 = scmp.ne.s32.totalorder %s16868_s21, %s14341_s11  ;;  %p14345_p7 = scmp.lt.u32.totalorder %s14341_s11, %s16868_s21 }
 0x122   :  { %p14347_p8 = pnand %p14345_p7, %p14342_p6 }
 0x124   :  { %14350 = shalt.err (!%p14347_p8)
}
 0x125   :  { %s14351_s3 = scalar_lea.vmem %s14826_s4, 512  ;;  %p14356_p10 = scmp.lt.s32.totalorder %s14826_s4, %s14826_s4 }
 0x126   :  { %p14352_p9 = scmp.ne.s32.totalorder %s14826_s4, %s14351_s3  ;;  %p14357_p11 = scmp.lt.s32.totalorder %s14351_s3, %s14351_s3 }
 0x128   :  { %p14358_p12 = por %p14357_p11, %p14356_p10 }
 0x12a   :  { %p14359_p13 = pnand %p14358_p12, %p14352_p9 }
 0x12c   :  { %14362 = shalt.err (!%p14359_p13)
}
 0x12d   :  { %s14475_s18 = smov 64   ;;  %s14476_s25 = smov 4  }
 0x12e   :  { %222 = dma.hbm_to_vmem [thread:$0]  %s16868_s21, 512, %s14826_s4, [#allocation28], %s14475_s18, %s14475_s18, %s14476_s25  }
 0x12f   :  { %s14477_s22 = smov [#allocation32]   ;;  %s14478_s19 = smov [#allocation33]  }
 0x130   :  { %s241_s14 = sshll.u32 %s14477_s22, 4  ;;  %s253_s7 = sshll.u32 %s14478_s19, 4  ;;  %s242_s14 = int_to_ptr.vmem [resolvable:$true] %s241_s14  ;;  %s254_s7 = int_to_ptr.vmem [resolvable:$true] %s253_s7 }
 0x131   :  { %s14363_s0 = scalar_lea.hbm %s16871_s24, 16 }
 0x132   :  { %p14364_p0 = scmp.ne.s32.totalorder %s16871_s24, %s14363_s0  ;;  %p14367_p1 = scmp.lt.u32.totalorder %s14363_s0, %s16871_s24 }
 0x134   :  { %p14369_p2 = pnand %p14367_p1, %p14364_p0 }
 0x136   :  { %14372 = shalt.err (!%p14369_p2)
}
 0x137   :  { %s14373_s21 = scalar_lea.vmem %s242_s14, 16  ;;  %s14377_s4 = scalar_lea.vmem %s242_s14, 32 }
 0x138   :  { %p14374_p3 = scmp.ne.s32.totalorder %s242_s14, %s14373_s21  ;;  %p14378_p4 = scmp.lt.s32.totalorder %s242_s14, %s242_s14 }
 0x139   :  { %p14379_p5 = scmp.lt.s32.totalorder %s14377_s4, %s14373_s21 }
 0x13b   :  { %p14380_p6 = por %p14379_p5, %p14378_p4 }
 0x13d   :  { %p14381_p7 = pnand %p14380_p6, %p14374_p3 }
 0x13f   :  { %14384 = shalt.err (!%p14381_p7)
}
 0x140   :  { %244 = dma.hbm_to_vmem [thread:$0]  %s16871_s24, 16, %s242_s14, [#allocation31]  }
 0x141   :  { %s14385_s8 = scalar_lea.hbm %s16873_s26, 16 }
 0x142   :  { %p14386_p8 = scmp.ne.s32.totalorder %s16873_s26, %s14385_s8  ;;  %p14389_p9 = scmp.lt.u32.totalorder %s14385_s8, %s16873_s26 }
 0x144   :  { %p14391_p10 = pnand %p14389_p9, %p14386_p8 }
 0x146   :  { %14394 = shalt.err (!%p14391_p10)
}
 0x147   :  { %s14395_s6 = scalar_lea.vmem %s254_s7, 16  ;;  %s14399_s22 = scalar_lea.vmem %s254_s7, 32 }
 0x148   :  { %p14396_p11 = scmp.ne.s32.totalorder %s254_s7, %s14395_s6  ;;  %p14400_p12 = scmp.lt.s32.totalorder %s254_s7, %s254_s7 }
 0x149   :  { %p14401_p13 = scmp.lt.s32.totalorder %s14399_s22, %s14395_s6 }
 0x14b   :  { %p14402_p0 = por %p14401_p13, %p14400_p12 }
 0x14d   :  { %p14403_p1 = pnand %p14402_p0, %p14396_p11 }
 0x14f   :  { %14406 = shalt.err (!%p14403_p1)
}
 0x150   :  { %256 = dma.hbm_to_vmem [thread:$0]  %s16873_s26, 16, %s254_s7, [#allocation34]  }
 0x151   :  { %14429 = dma.done.wait [#allocation8], 16  }
 0x152   :  { %14430 = vsyncadd [#allocation8], 4294967280 }
 0x153   :  { %14431 = dma.done.wait [#allocation10], 16  }
 0x154   :  { %14432 = vsyncadd [#allocation10], 4294967280 }
 0x155   :  { %14433 = dma.done.wait [#allocation7], 16  }
 0x156   :  { %14434 = vsyncadd [#allocation7], 4294967280 }
 0x157   :  { %14435 = dma.done.wait [#allocation13], 16  }
 0x158   :  { %14436 = vsyncadd [#allocation13], 4294967280 }
 0x159   :  { %14437 = dma.done.wait [#allocation5], 2048  }
 0x15a   :  { %14438 = vsyncadd [#allocation5], 4294965248 }
 0x15b   :  { %14439 = dma.done.wait [#allocation16], 10240  }
 0x15c   :  { %14440 = vsyncadd [#allocation16], 4294957056 }
 0x15d   :  { %14441 = dma.done.wait [#allocation19], 16384  }
 0x15e   :  { %14442 = vsyncadd [#allocation19], 4294950912 }
 0x15f   :  { %14443 = dma.done.wait [#allocation22], 12288  }
 0x160   :  { %14444 = vsyncadd [#allocation22], 4294955008 }
 0x161   :  { %14445 = dma.done.wait [#allocation25], 64  }
 0x162   :  { %14446 = vsyncadd [#allocation25], 4294967232 }
 0x163   :  { %14447 = dma.done.wait [#allocation28], 1536  }
 0x164   :  { %14448 = vsyncadd [#allocation28], 4294965760 }
 0x165   :  { %14449 = dma.done.wait [#allocation31], 32  }
 0x166   :  { %14450 = vsyncadd [#allocation31], 4294967264 }
 0x167   :  { %14451 = dma.done.wait [#allocation34], 16  }
 0x168   :  { %14452 = vsyncadd [#allocation34], 4294967280 }
 0x169   :  { %311 = sfence }
 0x16a   :  { %v12681_v0 = vld [vmem:[#allocation14 + $0x4] ss:$16 sps:$4 sm:$0xff]   ;;  %v12683_v1 = vld [vmem:[#allocation14 + $0xc] ss:$16 sps:$4 sm:$0xff]   ;;  %v16885_v2 = vmov 0   ;;  %s17096_s7 = sld [smem:[#allocation82_spill]] }
 0x16b   :  { %476 = vmatprep.mubr.bf16.mxu0 %v16885_v2  ;;  %529 = vmatprep.mubr.bf16.mxu1 %v16885_v2  ;;  %v12685_v3 = vld [vmem:[#allocation14] ss:$16 sps:$4 sm:$0xff]   ;;  %v12686_v4 = vld [vmem:[#allocation14 + $0x8] ss:$16 sps:$4 sm:$0xff]   ;;  %v12687_v5 = vld [vmem:[#allocation14 + $0x24] ss:$16 sps:$4 sm:$0xff]  }
 0x16c   :  { %444 = vmatprep.subr.bf16.mxu0 %v12681_v0  ;;  %497 = vmatprep.subr.bf16.mxu1 %v12683_v1  ;;  %v12689_v6 = vld [vmem:[#allocation14 + $0x2c] ss:$16 sps:$4 sm:$0xff]   ;;  %v12691_v7 = vld [vmem:[#allocation14 + $0x20] ss:$16 sps:$4 sm:$0xff]   ;;  %v12692_v8 = vld [vmem:[#allocation14 + $0x28] ss:$16 sps:$4 sm:$0xff]  }
 0x16d   :  { %445 = vmatpush1.bf16.msra.mxu0 %v12685_v3  ;;  %498 = vmatpush1.bf16.msra.mxu1 %v12686_v4  ;;  %v12693_v9 = vld [vmem:[#allocation14 + $0x44] ss:$16 sps:$4 sm:$0xff]   ;;  %v12695_v10 = vld [vmem:[#allocation14 + $0x4c] ss:$16 sps:$4 sm:$0xff]   ;;  %v12697_v11 = vld [vmem:[#allocation14 + $0x40] ss:$16 sps:$4 sm:$0xff]  }
 0x16e   :  { %446 = vmatprep.subr.bf16.mxu0 %v12687_v5  ;;  %499 = vmatprep.subr.bf16.mxu1 %v12689_v6  ;;  %v12698_v12 = vld [vmem:[#allocation14 + $0x48] ss:$16 sps:$4 sm:$0xff]   ;;  %v12699_v13 = vld [vmem:[#allocation14 + $0x64] ss:$16 sps:$4 sm:$0xff]   ;;  %v12701_v14 = vld [vmem:[#allocation14 + $0x6c] ss:$16 sps:$4 sm:$0xff]  }
 0x16f   :  { %v12703_v15 = vld [vmem:[#allocation14 + $0x60] ss:$16 sps:$4 sm:$0xff]   ;;  %v12704_v16 = vld [vmem:[#allocation14 + $0x68] ss:$16 sps:$4 sm:$0xff]   ;;  %v12707_v19 = vld [vmem:[#allocation15 + $0x4] ss:$16 sps:$4 sm:$0xff]  }
 0x170   :  { %v313_v17 = vld [vmem:[%s17096_s7] sm:$0xff]  ;;  %v314_v18 = vld [vmem:[%s17096_s7 + $0x8] sm:$0xff]  ;;  %vm437_vm0 = vcmask 523264   ;;  %v315_v28 = vld [vmem:[%s17096_s7 + $0x10] sm:$0xff]  ;;  %s17097_s4 = sld [smem:[#allocation85_spill]]  ;;  %s17102_s10 = sld [smem:[#allocation86_spill]] }
 0x171   :  { %447 = vmatpush1.bf16.msra.mxu0 %v12691_v7  ;;  %500 = vmatpush1.bf16.msra.mxu1 %v12692_v8  ;;  %v12710_v20 = vld [vmem:[#allocation15 + $0xc] ss:$16 sps:$4 sm:$0xff]   ;;  %v317_v21 = vpack.c.bf16 %v314_v18, %v313_v17  ;;  %v12705_v22 = vld [vmem:[#allocation15] ss:$16 sps:$4 sm:$0xff]   ;;  %v12708_v23 = vld [vmem:[#allocation15 + $0x8] ss:$16 sps:$4 sm:$0xff]  }
 0x172   :  { %448 = vmatprep.subr.bf16.mxu0 %v12693_v9  ;;  %501 = vmatprep.subr.bf16.mxu1 %v12695_v10  ;;  %v12713_v24 = vld [vmem:[#allocation15 + $0x24] ss:$16 sps:$4 sm:$0xff]   ;;  %v12716_v25 = vld [vmem:[#allocation15 + $0x2c] ss:$16 sps:$4 sm:$0xff]   ;;  %v12711_v26 = vld [vmem:[#allocation15 + $0x20] ss:$16 sps:$4 sm:$0xff]  }
 0x173   :  { %v12714_v27 = vld [vmem:[#allocation15 + $0x28] ss:$16 sps:$4 sm:$0xff]   ;;  %v12719_v30 = vld [vmem:[#allocation15 + $0x44] ss:$16 sps:$4 sm:$0xff]   ;;  %v12722_v31 = vld [vmem:[#allocation15 + $0x4c] ss:$16 sps:$4 sm:$0xff]  }
 0x174   :  { %v316_v29 = vld [vmem:[%s17096_s7 + $0x18] sm:$0xff]  ;;  %v12717_v32 = vld [vmem:[#allocation15 + $0x40] ss:$16 sps:$4 sm:$0xff]   ;;  %v12725_v35 = vld [vmem:[#allocation15 + $0x64] ss:$16 sps:$4 sm:$0xff]   ;;  %s965_s1 = sld [smem:[#allocation4]] }
 0x175   :  { %449 = vmatpush1.bf16.msra.mxu0 %v12697_v11  ;;  %502 = vmatpush1.bf16.msra.mxu1 %v12698_v12  ;;  %v12720_v33 = vld [vmem:[#allocation15 + $0x48] ss:$16 sps:$4 sm:$0xff]   ;;  %v318_v34 = vpack.c.bf16 %v316_v29, %v315_v28  ;;  %v12728_v36 = vld [vmem:[#allocation15 + $0x6c] ss:$16 sps:$4 sm:$0xff]   ;;  %v12723_v37 = vld [vmem:[#allocation15 + $0x60] ss:$16 sps:$4 sm:$0xff]  }
 0x176   :  { %450 = vmatprep.subr.bf16.mxu0 %v12699_v13  ;;  %503 = vmatprep.subr.bf16.mxu1 %v12701_v14  ;;  %v12726_v38 = vld [vmem:[#allocation15 + $0x68] ss:$16 sps:$4 sm:$0xff]   ;;  %v14911_v39 = vld [vmem:[#allocation17 + $0x4] ss:$16 sps:$4 sm:$0xff]   ;;  %v14913_v40 = vld [vmem:[#allocation17 + $0xc] ss:$16 sps:$4 sm:$0xff]  }
 0x177   :  { %v12729_v41 = vld [vmem:[#allocation17] ss:$16 sps:$4 sm:$0xff]   ;;  %v12732_v42 = vld [vmem:[#allocation17 + $0x8] ss:$16 sps:$4 sm:$0xff]   ;;  %v12737_v43 = vld [vmem:[#allocation17 + $0x24] ss:$16 sps:$4 sm:$0xff]  }
 0x178   :  { %v12740_v44 = vld [vmem:[#allocation17 + $0x2c] ss:$16 sps:$4 sm:$0xff]   ;;  %v12735_v45 = vld [vmem:[#allocation17 + $0x20] ss:$16 sps:$4 sm:$0xff]   ;;  %v12738_v46 = vld [vmem:[#allocation17 + $0x28] ss:$16 sps:$4 sm:$0xff]  }
 0x179   :  { %451 = vmatpush1.bf16.msra.mxu0 %v12703_v15  ;;  %504 = vmatpush1.bf16.msra.mxu1 %v12704_v16  ;;  %v12743_v47 = vld [vmem:[#allocation17 + $0x44] ss:$16 sps:$4 sm:$0xff]   ;;  %v12746_v48 = vld [vmem:[#allocation17 + $0x4c] ss:$16 sps:$4 sm:$0xff]   ;;  %v12741_v49 = vld [vmem:[#allocation17 + $0x40] ss:$16 sps:$4 sm:$0xff]  }
 0x17a   :  { %668 = vmatprep.subr.bf16.mxu0 %v12707_v19  ;;  %721 = vmatprep.subr.bf16.mxu1 %v12710_v20  ;;  %v12744_v50 = vld [vmem:[#allocation17 + $0x48] ss:$16 sps:$4 sm:$0xff]   ;;  %v12749_v51 = vld [vmem:[#allocation17 + $0x64] ss:$16 sps:$4 sm:$0xff]   ;;  %v12752_v52 = vld [vmem:[#allocation17 + $0x6c] ss:$16 sps:$4 sm:$0xff]  }
 0x17b   :  { %v12747_v53 = vld [vmem:[#allocation17 + $0x60] ss:$16 sps:$4 sm:$0xff]   ;;  %v12750_v54 = vld [vmem:[#allocation17 + $0x68] ss:$16 sps:$4 sm:$0xff]   ;;  %v12755_v55 = vld [vmem:[#allocation17 + $0x84] ss:$16 sps:$4 sm:$0xff]  }
 0x17c   :  { %11074 = vmatmul.mubr.msk.bf16.vlgmr.msra.gmra.mrb[0].mxu0 %vm437_vm0, %v317_v21  ;;  %11076 = vmatmul.mubr.msk.bf16.vlgmr.msra.gmra.mrb[0].mxu1 %vm437_vm0, %v317_v21  ;;  %v12758_v56 = vld [vmem:[#allocation17 + $0x8c] ss:$16 sps:$4 sm:$0xff]   ;;  %v12753_v57 = vld [vmem:[#allocation17 + $0x80] ss:$16 sps:$4 sm:$0xff]   ;;  %v12756_v58 = vld [vmem:[#allocation17 + $0x88] ss:$16 sps:$4 sm:$0xff]  }
 0x17d   :  { %669 = vmatpush1.bf16.msra.mxu0 %v12705_v22  ;;  %722 = vmatpush1.bf16.msra.mxu1 %v12708_v23  ;;  %v12761_v59 = vld [vmem:[#allocation17 + $0xa4] ss:$16 sps:$4 sm:$0xff]   ;;  %v12764_v60 = vld [vmem:[#allocation17 + $0xac] ss:$16 sps:$4 sm:$0xff]   ;;  %v12759_v61 = vld [vmem:[#allocation17 + $0xa0] ss:$16 sps:$4 sm:$0xff]  }
 0x17e   :  { %670 = vmatprep.subr.bf16.mxu0 %v12713_v24  ;;  %723 = vmatprep.subr.bf16.mxu1 %v12716_v25  ;;  %v12762_v62 = vld [vmem:[#allocation17 + $0xa8] ss:$16 sps:$4 sm:$0xff]   ;;  %v12767_v63 = vld [vmem:[#allocation17 + $0xc4] ss:$16 sps:$4 sm:$0xff]   ;;  %v12770_v0 = vld [vmem:[#allocation17 + $0xcc] ss:$16 sps:$4 sm:$0xff]  }
 0x17f   :  { %486 = vmatprep.mubr.bf16.mxu0 %v16885_v2  ;;  %539 = vmatprep.mubr.bf16.mxu1 %v16885_v2  ;;  %v12765_v1 = vld [vmem:[#allocation17 + $0xc0] ss:$16 sps:$4 sm:$0xff]   ;;  %v12768_v3 = vld [vmem:[#allocation17 + $0xc8] ss:$16 sps:$4 sm:$0xff]   ;;  %v12773_v4 = vld [vmem:[#allocation17 + $0xe4] ss:$16 sps:$4 sm:$0xff]  }
 0x180   :  { %v12776_v5 = vld [vmem:[#allocation17 + $0xec] ss:$16 sps:$4 sm:$0xff]   ;;  %v12771_v6 = vld [vmem:[#allocation17 + $0xe0] ss:$16 sps:$4 sm:$0xff]   ;;  %v12774_v7 = vld [vmem:[#allocation17 + $0xe8] ss:$16 sps:$4 sm:$0xff]  }
 0x181   :  { %671 = vmatpush1.bf16.msra.mxu0 %v12711_v26  ;;  %724 = vmatpush1.bf16.msra.mxu1 %v12714_v27  ;;  %v12779_v8 = vld [vmem:[#allocation17 + $0x104] ss:$16 sps:$4 sm:$0xff]   ;;  %v12782_v9 = vld [vmem:[#allocation17 + $0x10c] ss:$16 sps:$4 sm:$0xff]   ;;  %v12777_v10 = vld [vmem:[#allocation17 + $0x100] ss:$16 sps:$4 sm:$0xff]  }
 0x182   :  { %672 = vmatprep.subr.bf16.mxu0 %v12719_v30  ;;  %725 = vmatprep.subr.bf16.mxu1 %v12722_v31  ;;  %v12780_v11 = vld [vmem:[#allocation17 + $0x108] ss:$16 sps:$4 sm:$0xff]   ;;  %v12785_v12 = vld [vmem:[#allocation17 + $0x124] ss:$16 sps:$4 sm:$0xff]   ;;  %v12788_v13 = vld [vmem:[#allocation17 + $0x12c] ss:$16 sps:$4 sm:$0xff]  }
 0x183   :  { %v12783_v14 = vld [vmem:[#allocation17 + $0x120] ss:$16 sps:$4 sm:$0xff]   ;;  %v12786_v15 = vld [vmem:[#allocation17 + $0x128] ss:$16 sps:$4 sm:$0xff]   ;;  %v12791_v16 = vld [vmem:[#allocation17 + $0x144] ss:$16 sps:$4 sm:$0xff]  }
 0x184   :  { %11075 = vmatmul.mubr.msk.bf16.gmra.mrb[4].mxu0 %vm437_vm0, %v318_v34  ;;  %11077 = vmatmul.mubr.msk.bf16.gmra.mrb[4].mxu1 %vm437_vm0, %v318_v34  ;;  %v12794_v17 = vld [vmem:[#allocation17 + $0x14c] ss:$16 sps:$4 sm:$0xff]   ;;  %v12789_v18 = vld [vmem:[#allocation17 + $0x140] ss:$16 sps:$4 sm:$0xff]   ;;  %v12792_v19 = vld [vmem:[#allocation17 + $0x148] ss:$16 sps:$4 sm:$0xff]  }
 0x185   :  { %673 = vmatpush1.bf16.msra.mxu0 %v12717_v32  ;;  %726 = vmatpush1.bf16.msra.mxu1 %v12720_v33  ;;  %v12797_v20 = vld [vmem:[#allocation17 + $0x164] ss:$16 sps:$4 sm:$0xff]   ;;  %v12795_v22 = vld [vmem:[#allocation17 + $0x160] ss:$16 sps:$4 sm:$0xff]   ;;  %v12798_v23 = vld [vmem:[#allocation17 + $0x168] ss:$16 sps:$4 sm:$0xff]  }
 0x186   :  { %674 = vmatprep.subr.bf16.mxu0 %v12725_v35  ;;  %727 = vmatprep.subr.bf16.mxu1 %v12728_v36  ;;  %v12803_v24 = vld [vmem:[#allocation17 + $0x184] ss:$16 sps:$4 sm:$0xff]   ;;  %v12806_v25 = vld [vmem:[#allocation17 + $0x18c] ss:$16 sps:$4 sm:$0xff]   ;;  %v12801_v26 = vld [vmem:[#allocation17 + $0x180] ss:$16 sps:$4 sm:$0xff]  }
 0x187   :  { %700 = vmatprep.mubr.bf16.mxu0 %v16885_v2  ;;  %753 = vmatprep.mubr.bf16.mxu1 %v16885_v2  ;;  %v12804_v27 = vld [vmem:[#allocation17 + $0x188] ss:$16 sps:$4 sm:$0xff]   ;;  %v12809_v28 = vld [vmem:[#allocation17 + $0x1a4] ss:$16 sps:$4 sm:$0xff]   ;;  %v12812_v29 = vld [vmem:[#allocation17 + $0x1ac] ss:$16 sps:$4 sm:$0xff]  }
 0x188   :  { %v12807_v30 = vld [vmem:[#allocation17 + $0x1a0] ss:$16 sps:$4 sm:$0xff]   ;;  %v12810_v31 = vld [vmem:[#allocation17 + $0x1a8] ss:$16 sps:$4 sm:$0xff]   ;;  %v12815_v32 = vld [vmem:[#allocation17 + $0x1c4] ss:$16 sps:$4 sm:$0xff]  }
 0x189   :  { %675 = vmatpush1.bf16.msra.mxu0 %v12723_v37  ;;  %728 = vmatpush1.bf16.msra.mxu1 %v12726_v38  ;;  %v12818_v33 = vld [vmem:[#allocation17 + $0x1cc] ss:$16 sps:$4 sm:$0xff]   ;;  %v12816_v35 = vld [vmem:[#allocation17 + $0x1c8] ss:$16 sps:$4 sm:$0xff]   ;;  %v12821_v36 = vld [vmem:[#allocation17 + $0x1e4] ss:$16 sps:$4 sm:$0xff]  }
 0x18a   :  { %1371 = vmatprep.subr.bf16.mxu0 %v14911_v39  ;;  %1412 = vmatprep.subr.bf16.mxu1 %v14913_v40  ;;  %v12824_v37 = vld [vmem:[#allocation17 + $0x1ec] ss:$16 sps:$4 sm:$0xff]   ;;  %v12819_v38 = vld [vmem:[#allocation17 + $0x1e0] ss:$16 sps:$4 sm:$0xff]   ;;  %s11101_s8 = sld [smem:[#allocation4 + $0x7]]  ;;  %s968_s2 = sld [smem:[#allocation9]] }
 0x18b   :  { %s11102_s3 = sld [smem:[#allocation9 + $0x7]]  ;;  %s11186_s25 = sld [smem:[#allocation4 + $0x1]]  ;;  %vm14481_vm5 = vmmov 0   ;;  %vm11019_vm6 = vcmask 76800  }
 0x18c   :  { %11094 = vmatmul.mubr.msk.bf16.vlgmr.msra.gmra.mrb[8].mxu0 %vm437_vm0, %v317_v21  ;;  %11096 = vmatmul.mubr.msk.bf16.vlgmr.msra.gmra.mrb[8].mxu1 %vm437_vm0, %v317_v21  ;;  %v12800_v21 = vld [vmem:[#allocation17 + $0x16c] ss:$16 sps:$4 sm:$0xff]   ;;  %s11188_s29 = sld [smem:[#allocation4 + $0x6]]  ;;  %s11187_s6 = sld [smem:[#allocation9 + $0x1]] }
 0x18d   :  { %710 = vmatprep.mubr.bf16.mxu0 %v16885_v2  ;;  %763 = vmatprep.mubr.bf16.mxu1 %v16885_v2  ;;  %v15171_v2 = vld [vmem:[#allocation17 + $0x4] ss:$16 sps:$4 sm:$0xff]   ;;  %s11189_s22 = sld [smem:[#allocation9 + $0x6]]  ;;  %s11273_s24 = sld [smem:[#allocation4 + $0x2]] }
 0x18e   :  { %1372 = vmatpush1.bf16.msra.mxu0 %v12729_v41  ;;  %1413 = vmatpush1.bf16.msra.mxu1 %v12732_v42  ;;  %v12822_v41 = vld [vmem:[#allocation17 + $0x1e8] ss:$16 sps:$4 sm:$0xff]   ;;  %v337_v42 = vlaneseq  ;;  %17123 = vst [vmem:[#allocation69_spill] sm:$0xff] %v15171_v2  ;;  %s11275_s14 = sld [smem:[#allocation4 + $0x5]]  ;;  %s11274_s26 = sld [smem:[#allocation9 + $0x2]] }
 0x18f   :  { %1373 = vmatprep.subr.bf16.mxu0 %v12737_v43  ;;  %1414 = vmatprep.subr.bf16.mxu1 %v12740_v44  ;;  %v335_v44 = vld [vmem:[%s17097_s4] sm:$0xf]  ;;  %s11276_s19 = sld [smem:[#allocation9 + $0x5]]  ;;  %s15457_s7 = sld [smem:[#allocation4 + $0x3]] }
 0x190   :  { %v14919_v43 = vshrl.u32 %v337_v42, 7  ;;  %s15459_s17 = sld [smem:[#allocation4 + $0x4]]  ;;  %s15461_s30 = sld [smem:[#allocation9 + $0x3]] }
 0x191   :  { %s15463_s0 = sld [smem:[#allocation9 + $0x4]]  ;;  %s11534_s16 = sld [smem:[#allocation4 + $0x5]] }
 0x192   :  { %1374 = vmatpush1.bf16.msra.mxu0 %v12735_v45  ;;  %1415 = vmatpush1.bf16.msra.mxu1 %v12738_v46  ;;  %v14925_v45 = vsub.s32 0, %v14919_v43  ;;  %v14928_v46 = vsub.s32 2, %v14919_v43  ;;  %vm936_vm1 = vcmp.lt.s32.totalorder %v14919_v43, 4  ;;  %s11536_s5 = sld [smem:[#allocation4 + $0x2]]  ;;  %s11535_s27 = sld [smem:[#allocation9 + $0x5]] }
 0x193   :  { %1375 = vmatprep.subr.bf16.mxu0 %v12743_v47  ;;  %1416 = vmatprep.subr.bf16.mxu1 %v12746_v48  ;;  %v14931_v47 = vsub.s32 1, %v14919_v43  ;;  %vm11167_vm2 = vmneg %vm936_vm1  ;;  %s11537_s9 = sld [smem:[#allocation9 + $0x2]]  ;;  %s11621_s21 = sld [smem:[#allocation4 + $0x6]] }
 0x194   :  { %11095 = vmatmul.mubr.msk.bf16.gmra.mrb[12].mxu0 %vm437_vm0, %v318_v34  ;;  %11097 = vmatmul.mubr.msk.bf16.gmra.mrb[12].mxu1 %vm437_vm0, %v318_v34  ;;  %v12813_v34 = vld [vmem:[#allocation17 + $0x1c0] ss:$16 sps:$4 sm:$0xff]   ;;  %17098 = vst [vmem:[#allocation49_spill] sm:$0xff] %v14925_v45  ;;  %17099 = vst [vmem:[#allocation50_spill] sm:$0xff] %v14928_v46  ;;  %v348_v48 = vrot.slane %v335_v44, %v14928_v46  ;;  %s11623_s4 = sld [smem:[#allocation4 + $0x1]]  ;;  %s11622_s28 = sld [smem:[#allocation9 + $0x6]] }
 0x195   :  { %17100 = vst [vmem:[#allocation51_spill] sm:$0xff] %v14931_v47  ;;  %vm14987_vm3 = vmpackc.low %vm11167_vm2, %vm11167_vm2  ;;  %s11624_s11 = sld [smem:[#allocation9 + $0x1]] }
 0x196   :  { %1376 = vmatpush1.bf16.msra.mxu0 %v12741_v49  ;;  %1417 = vmatpush1.bf16.msra.mxu1 %v12744_v50  ;;  %v14939_v49 = vrot.slane %v335_v44, %v14931_v47  ;;  %vm14991_vm4 = vmpackc.low %vm936_vm1, %vm936_vm1 }
 0x197   :  { %1377 = vmatprep.subr.bf16.mxu0 %v12749_v51  ;;  %1418 = vmatprep.subr.bf16.mxu1 %v12752_v52 }
 0x19a   :  { %1378 = vmatpush1.bf16.msra.mxu0 %v12747_v53  ;;  %1419 = vmatpush1.bf16.msra.mxu1 %v12750_v54 }
 0x19b   :  { %1379 = vmatprep.subr.bf16.mxu0 %v12755_v55  ;;  %1420 = vmatprep.subr.bf16.mxu1 %v12758_v56 }
 0x19e   :  { %1380 = vmatpush1.bf16.msra.mxu0 %v12753_v57  ;;  %1421 = vmatpush1.bf16.msra.mxu1 %v12756_v58 }
 0x19f   :  { %1381 = vmatprep.subr.bf16.mxu0 %v12761_v59  ;;  %1422 = vmatprep.subr.bf16.mxu1 %v12764_v60 }
 0x1a2   :  { %1382 = vmatpush1.bf16.msra.mxu0 %v12759_v61  ;;  %1423 = vmatpush1.bf16.msra.mxu1 %v12762_v62 }
 0x1a3   :  { %1383 = vmatprep.subr.bf16.mxu0 %v12767_v63  ;;  %1424 = vmatprep.subr.bf16.mxu1 %v12770_v0 }
 0x1a6   :  { %1384 = vmatpush1.bf16.msra.mxu0 %v12765_v1  ;;  %1425 = vmatpush1.bf16.msra.mxu1 %v12768_v3 }
 0x1a7   :  { %1385 = vmatprep.subr.bf16.mxu0 %v12773_v4  ;;  %1426 = vmatprep.subr.bf16.mxu1 %v12776_v5 }
 0x1aa   :  { %1386 = vmatpush1.bf16.msra.mxu0 %v12771_v6  ;;  %1427 = vmatpush1.bf16.msra.mxu1 %v12774_v7 }
 0x1ab   :  { %1387 = vmatprep.subr.bf16.mxu0 %v12779_v8  ;;  %1428 = vmatprep.subr.bf16.mxu1 %v12782_v9 }
 0x1ae   :  { %1388 = vmatpush1.bf16.msra.mxu0 %v12777_v10  ;;  %1429 = vmatpush1.bf16.msra.mxu1 %v12780_v11 }
 0x1af   :  { %1389 = vmatprep.subr.bf16.mxu0 %v12785_v12  ;;  %1430 = vmatprep.subr.bf16.mxu1 %v12788_v13 }
 0x1b2   :  { %1390 = vmatpush1.bf16.msra.mxu0 %v12783_v14  ;;  %1431 = vmatpush1.bf16.msra.mxu1 %v12786_v15  ;;  %v566_v14 = vld [vmem:[%s17102_s10] sm:$0xf]  ;;  %s11708_s10 = sld [smem:[#allocation4 + $0x7]] }
 0x1b3   :  { %1391 = vmatprep.subr.bf16.mxu0 %v12791_v16  ;;  %1432 = vmatprep.subr.bf16.mxu1 %v12794_v17 }
 0x1b6   :  { %1392 = vmatpush1.bf16.msra.mxu0 %v12789_v18  ;;  %1433 = vmatpush1.bf16.msra.mxu1 %v12792_v19 }
 0x1b7   :  { %1393 = vmatprep.subr.bf16.mxu0 %v12797_v20  ;;  %1434 = vmatprep.subr.bf16.mxu1 %v12800_v21 }
 0x1ba   :  { %1394 = vmatpush1.bf16.msra.mxu0 %v12795_v22  ;;  %1435 = vmatpush1.bf16.msra.mxu1 %v12798_v23 }
 0x1bb   :  { %1395 = vmatprep.subr.bf16.mxu0 %v12803_v24  ;;  %1436 = vmatprep.subr.bf16.mxu1 %v12806_v25 }
 0x1be   :  { %1396 = vmatpush1.bf16.msra.mxu0 %v12801_v26  ;;  %1437 = vmatpush1.bf16.msra.mxu1 %v12804_v27 }
 0x1bf   :  { %1397 = vmatprep.subr.bf16.mxu0 %v12809_v28  ;;  %1438 = vmatprep.subr.bf16.mxu1 %v12812_v29 }
 0x1c2   :  { %1398 = vmatpush1.bf16.msra.mxu0 %v12807_v30  ;;  %1439 = vmatpush1.bf16.msra.mxu1 %v12810_v31 }
 0x1c3   :  { %1399 = vmatprep.subr.bf16.mxu0 %v12815_v32  ;;  %1440 = vmatprep.subr.bf16.mxu1 %v12818_v33 }
 0x1c6   :  { %1400 = vmatpush1.bf16.msra.mxu0 %v12813_v34  ;;  %1441 = vmatpush1.bf16.msra.mxu1 %v12816_v35  ;;  %v14956_v34 = vrot.slane %v566_v14, %v14925_v45 }
 0x1c7   :  { %1401 = vmatprep.subr.bf16.mxu0 %v12821_v36  ;;  %1442 = vmatprep.subr.bf16.mxu1 %v12824_v37  ;;  %v14959_v36 = vrot.slane %v566_v14, %v14928_v46 }
 0x1ca   :  { %1402 = vmatpush1.bf16.msra.mxu0 %v12819_v38  ;;  %1443 = vmatpush1.bf16.msra.mxu1 %v12822_v41  ;;  %v14962_v38 = vrot.slane %v566_v14, %v14931_v47 }
 0x1cb   :  { %1893 = vmatprep.subr.bf16.mxu0 %v14911_v39  ;;  %1934 = vmatprep.subr.bf16.mxu1 %v14913_v40  ;;  %v14934_v39 = vsub.s32 3, %v14919_v43  ;;  %v340_v40 = vrot.slane %v335_v44, %v14925_v45 }
 0x1cd   :  { %17101 = vst [vmem:[#allocation52_spill] sm:$0xff] %v14934_v39  ;;  %v14942_v50 = vrot.slane %v335_v44, %v14934_v39  ;;  %v14965_v42 = vrot.slane %v566_v14, %v14934_v39  ;;  %v15173_v39 = vld [vmem:[#allocation17 + $0xc] ss:$16 sps:$4 sm:$0xff]  }
 0x1ce   :  { %17124 = vst [vmem:[#allocation70_spill] sm:$0xff] %v15173_v39 }
 0x24f   :  { %v478_v51 = vpop.f32.mrb[0].mxu0  ;;  %v531_v52 = vpop.f32.mrb[0].mxu1 }
 0x250   :  { %v479_v53 = vadd.f32 %v478_v51, %v340_v40  ;;  %v480_v54 = vpop.f32.mrb[1].mxu0  ;;  %v532_v55 = vadd.f32 %v531_v52, %v348_v48  ;;  %v533_v56 = vpop.f32.mrb[1].mxu1 }
 0x251   :  { %v481_v57 = vadd.f32 %v480_v54, %v14939_v49  ;;  %v482_v58 = vpop.f32.mrb[2].mxu0  ;;  %v534_v59 = vadd.f32 %v533_v56, %v14942_v50  ;;  %v535_v60 = vpop.f32.mrb[2].mxu1 }
 0x252   :  { %774 = vst [vmem:[#allocation3] sm:$0xf] %v479_v53  ;;  %v786_v61 = vrot.slane %v479_v53, 4  ;;  %v483_v62 = vadd.f32 %v482_v58, %v340_v40  ;;  %v484_v63 = vpop.f32.mrb[3].mxu0  ;;  %776 = vst [vmem:[#allocation3 + $0x10] sm:$0xf] %v532_v55  ;;  %v536_v1 = vadd.f32 %v535_v60, %v348_v48 }
 0x253   :  { %v788_v0 = vrot.slane %v532_v55, 4  ;;  %v537_v3 = vpop.f32.mrb[3].mxu1  ;;  %775 = vst [vmem:[#allocation3 + $0x8] sm:$0xf] %v481_v57  ;;  %v787_v4 = vrot.slane %v481_v57, 4  ;;  %v485_v5 = vadd.f32 %v484_v63, %v14939_v49  ;;  %v789_v6 = vrot.slane %v534_v59, 4 }
 0x254   :  { %777 = vst [vmem:[#allocation3 + $0x18] sm:$0xf] %v534_v59  ;;  %v538_v7 = vadd.f32 %v537_v3, %v14942_v50  ;;  %794 = vst [vmem:[#allocation3 + $0x20] sm:$0xf] %v786_v61  ;;  %v826_v8 = vrot.slane %v483_v62, 4  ;;  %v828_v9 = vrot.slane %v536_v1, 4 }
 0x255   :  { %814 = vst [vmem:[#allocation3 + $0x40] sm:$0xf] %v483_v62  ;;  %796 = vst [vmem:[#allocation3 + $0x30] sm:$0xf] %v788_v0  ;;  %v827_v10 = vrot.slane %v485_v5, 4 }
 0x256   :  { %816 = vst [vmem:[#allocation3 + $0x50] sm:$0xf] %v536_v1  ;;  %795 = vst [vmem:[#allocation3 + $0x28] sm:$0xf] %v787_v4  ;;  %v829_v11 = vrot.slane %v538_v7, 4 }
 0x257   :  { %815 = vst [vmem:[#allocation3 + $0x48] sm:$0xf] %v485_v5  ;;  %797 = vst [vmem:[#allocation3 + $0x38] sm:$0xf] %v789_v6  ;;  %v488_v12 = vpop.f32.mrb[4].mxu0  ;;  %v541_v13 = vpop.f32.mrb[4].mxu1 }
 0x258   :  { %817 = vst [vmem:[#allocation3 + $0x58] sm:$0xf] %v538_v7  ;;  %834 = vst [vmem:[#allocation3 + $0x60] sm:$0xf] %v826_v8  ;;  %v489_v15 = vadd.f32 %v488_v12, %v340_v40  ;;  %v490_v16 = vpop.f32.mrb[5].mxu0  ;;  %v542_v17 = vadd.f32 %v541_v13, %v348_v48  ;;  %v543_v18 = vpop.f32.mrb[5].mxu1 }
 0x259   :  { %836 = vst [vmem:[#allocation3 + $0x70] sm:$0xf] %v828_v9  ;;  %835 = vst [vmem:[#allocation3 + $0x68] sm:$0xf] %v827_v10  ;;  %v491_v19 = vadd.f32 %v490_v16, %v14939_v49  ;;  %v492_v20 = vpop.f32.mrb[6].mxu0  ;;  %v544_v21 = vadd.f32 %v543_v18, %v14942_v50  ;;  %v545_v22 = vpop.f32.mrb[6].mxu1 }
 0x25a   :  { %837 = vst [vmem:[#allocation3 + $0x78] sm:$0xf] %v829_v11  ;;  %854 = vst [vmem:[#allocation3 + $0x80] sm:$0xf] %v489_v15  ;;  %v866_v23 = vrot.slane %v489_v15, 4  ;;  %v493_v24 = vadd.f32 %v492_v20, %v340_v40  ;;  %v494_v25 = vpop.f32.mrb[7].mxu0  ;;  %v546_v27 = vadd.f32 %v545_v22, %v348_v48 }
 0x25b   :  { %856 = vst [vmem:[#allocation3 + $0x90] sm:$0xf] %v542_v17  ;;  %v868_v26 = vrot.slane %v542_v17, 4  ;;  %v547_v28 = vpop.f32.mrb[7].mxu1  ;;  %855 = vst [vmem:[#allocation3 + $0x88] sm:$0xf] %v491_v19  ;;  %v495_v30 = vadd.f32 %v494_v25, %v14939_v49 }
 0x25c   :  { %v867_v29 = vrot.slane %v491_v19, 4  ;;  %857 = vst [vmem:[#allocation3 + $0x98] sm:$0xf] %v544_v21  ;;  %v869_v31 = vrot.slane %v544_v21, 4  ;;  %v548_v32 = vadd.f32 %v547_v28, %v14942_v50  ;;  %874 = vst [vmem:[#allocation3 + $0xa0] sm:$0xf] %v866_v23 }
 0x25d   :  { %894 = vst [vmem:[#allocation3 + $0xc0] sm:$0xf] %v493_v24  ;;  %v906_v33 = vrot.slane %v493_v24, 4  ;;  %876 = vst [vmem:[#allocation3 + $0xb0] sm:$0xf] %v868_v26  ;;  %v908_v35 = vrot.slane %v546_v27, 4 }
 0x25e   :  { %896 = vst [vmem:[#allocation3 + $0xd0] sm:$0xf] %v546_v27  ;;  %875 = vst [vmem:[#allocation3 + $0xa8] sm:$0xf] %v867_v29  ;;  %v907_v37 = vrot.slane %v495_v30, 4  ;;  %v909_v41 = vrot.slane %v548_v32, 4 }
 0x25f   :  { %895 = vst [vmem:[#allocation3 + $0xc8] sm:$0xf] %v495_v30  ;;  %877 = vst [vmem:[#allocation3 + $0xb8] sm:$0xf] %v869_v31  ;;  %v702_v44 = vpop.f32.mrb[8].mxu0  ;;  %v755_v40 = vpop.f32.mrb[8].mxu1 }
 0x260   :  { %897 = vst [vmem:[#allocation3 + $0xd8] sm:$0xf] %v548_v32  ;;  %914 = vst [vmem:[#allocation3 + $0xe0] sm:$0xf] %v906_v33  ;;  %v703_v48 = vadd.f32 %v702_v44, %v14956_v34  ;;  %v704_v49 = vpop.f32.mrb[9].mxu0  ;;  %v756_v50 = vadd.f32 %v755_v40, %v14959_v36  ;;  %v757_v51 = vpop.f32.mrb[9].mxu1 }
 0x261   :  { %916 = vst [vmem:[#allocation3 + $0xf0] sm:$0xf] %v908_v35  ;;  %915 = vst [vmem:[#allocation3 + $0xe8] sm:$0xf] %v907_v37  ;;  %v705_v52 = vadd.f32 %v704_v49, %v14962_v38  ;;  %v706_v53 = vpop.f32.mrb[10].mxu0  ;;  %v758_v54 = vadd.f32 %v757_v51, %v14965_v42  ;;  %v759_v55 = vpop.f32.mrb[10].mxu1 }
 0x262   :  { %917 = vst [vmem:[#allocation3 + $0xf8] sm:$0xf] %v909_v41  ;;  %898 = vst [vmem:[#allocation3 + $0xc0] sm:$0xf0] %v703_v48  ;;  %v922_v56 = vrot.slane %v703_v48, 4  ;;  %v707_v57 = vadd.f32 %v706_v53, %v14956_v34  ;;  %v708_v58 = vpop.f32.mrb[11].mxu0  ;;  %v760_v60 = vadd.f32 %v759_v55, %v14959_v36 }
 0x263   :  { %900 = vst [vmem:[#allocation3 + $0xd0] sm:$0xf0] %v756_v50  ;;  %v924_v59 = vrot.slane %v756_v50, 4  ;;  %v761_v61 = vpop.f32.mrb[11].mxu1  ;;  %899 = vst [vmem:[#allocation3 + $0xc8] sm:$0xf0] %v705_v52  ;;  %v709_v63 = vadd.f32 %v708_v58, %v14962_v38  ;;  %v973_v58 = vstv %s11101_s8 }
 0x264   :  { %v923_v62 = vrot.slane %v705_v52, 4  ;;  %901 = vst [vmem:[#allocation3 + $0xd8] sm:$0xf0] %v758_v54  ;;  %v925_v0 = vrot.slane %v758_v54, 4  ;;  %v762_v1 = vadd.f32 %v761_v61, %v14965_v42  ;;  %930 = vst [vmem:[#allocation3 + $0xe0] sm:$0xf0] %v922_v56  ;;  %v976_v61 = vstv %s11102_s3 }
 0x265   :  { %858 = vst [vmem:[#allocation3 + $0x80] sm:$0xf0] %v707_v57  ;;  %v882_v3 = vrot.slane %v707_v57, 4  ;;  %932 = vst [vmem:[#allocation3 + $0xf0] sm:$0xf0] %v924_v59  ;;  %v884_v4 = vrot.slane %v760_v60, 4  ;;  %v966_v57 = vstv %s965_s1 }
 0x266   :  { %860 = vst [vmem:[#allocation3 + $0x90] sm:$0xf0] %v760_v60  ;;  %931 = vst [vmem:[#allocation3 + $0xe8] sm:$0xf0] %v923_v62  ;;  %v883_v5 = vrot.slane %v709_v63, 4  ;;  %v885_v6 = vrot.slane %v762_v1, 4  ;;  %v969_v60 = vstv %s968_s2 }
 0x267   :  { %859 = vst [vmem:[#allocation3 + $0x88] sm:$0xf0] %v709_v63  ;;  %933 = vst [vmem:[#allocation3 + $0xf8] sm:$0xf0] %v925_v0  ;;  %v712_v7 = vpop.f32.mrb[12].mxu0  ;;  %v765_v8 = vpop.f32.mrb[12].mxu1 }
 0x268   :  { %861 = vst [vmem:[#allocation3 + $0x98] sm:$0xf0] %v762_v1  ;;  %890 = vst [vmem:[#allocation3 + $0xa0] sm:$0xf0] %v882_v3  ;;  %v713_v9 = vadd.f32 %v712_v7, %v14956_v34  ;;  %v766_v10 = vadd.f32 %v765_v8, %v14959_v36  ;;  %v714_v11 = vpop.f32.mrb[13].mxu0  ;;  %v767_v12 = vpop.f32.mrb[13].mxu1 }
 0x269   :  { %892 = vst [vmem:[#allocation3 + $0xb0] sm:$0xf0] %v884_v4  ;;  %891 = vst [vmem:[#allocation3 + $0xa8] sm:$0xf0] %v883_v5  ;;  %v715_v13 = vadd.f32 %v714_v11, %v14962_v38  ;;  %v768_v14 = vadd.f32 %v767_v12, %v14965_v42  ;;  %v716_v15 = vpop.f32.mrb[14].mxu0  ;;  %v769_v16 = vpop.f32.mrb[14].mxu1 }
 0x26a   :  { %893 = vst [vmem:[#allocation3 + $0xb8] sm:$0xf0] %v885_v6  ;;  %818 = vst [vmem:[#allocation3 + $0x40] sm:$0xf0] %v713_v9  ;;  %v842_v17 = vrot.slane %v713_v9, 4  ;;  %v844_v18 = vrot.slane %v766_v10, 4  ;;  %v717_v19 = vadd.f32 %v716_v15, %v14956_v34  ;;  %v770_v20 = vadd.f32 %v769_v16, %v14959_v36 }
 0x26b   :  { %820 = vst [vmem:[#allocation3 + $0x50] sm:$0xf0] %v766_v10  ;;  %v718_v21 = vpop.f32.mrb[15].mxu0  ;;  %v771_v22 = vpop.f32.mrb[15].mxu1  ;;  %819 = vst [vmem:[#allocation3 + $0x48] sm:$0xf0] %v715_v13 }
 0x26c   :  { %v843_v23 = vrot.slane %v715_v13, 4  ;;  %821 = vst [vmem:[#allocation3 + $0x58] sm:$0xf0] %v768_v14  ;;  %v845_v24 = vrot.slane %v768_v14, 4  ;;  %v719_v25 = vadd.f32 %v718_v21, %v14962_v38  ;;  %v772_v26 = vadd.f32 %v771_v22, %v14965_v42  ;;  %850 = vst [vmem:[#allocation3 + $0x60] sm:$0xf0] %v842_v17 }
 0x26d   :  { %852 = vst [vmem:[#allocation3 + $0x70] sm:$0xf0] %v844_v18  ;;  %778 = vst [vmem:[#allocation3] sm:$0xf0] %v717_v19  ;;  %v802_v27 = vrot.slane %v717_v19, 4  ;;  %v804_v28 = vrot.slane %v770_v20, 4 }
 0x26e   :  { %780 = vst [vmem:[#allocation3 + $0x10] sm:$0xf0] %v770_v20  ;;  %851 = vst [vmem:[#allocation3 + $0x68] sm:$0xf0] %v843_v23  ;;  %v803_v29 = vrot.slane %v719_v25, 4  ;;  %v805_v30 = vrot.slane %v772_v26, 4 }
 0x26f   :  { %853 = vst [vmem:[#allocation3 + $0x78] sm:$0xf0] %v845_v24  ;;  %779 = vst [vmem:[#allocation3 + $0x8] sm:$0xf0] %v719_v25  ;;  %v13993_v5 = vld [vmem:[#allocation17] ss:$16 sps:$4 sm:$0xff]  }
 0x270   :  { %781 = vst [vmem:[#allocation3 + $0x18] sm:$0xf0] %v772_v26  ;;  %810 = vst [vmem:[#allocation3 + $0x20] sm:$0xf0] %v802_v27  ;;  %v13994_v6 = vld [vmem:[#allocation17 + $0x8] ss:$16 sps:$4 sm:$0xff]  }
 0x271   :  { %812 = vst [vmem:[#allocation3 + $0x30] sm:$0xf0] %v804_v28  ;;  %811 = vst [vmem:[#allocation3 + $0x28] sm:$0xf0] %v803_v29  ;;  %v13995_v7 = vld [vmem:[#allocation17 + $0x24] ss:$16 sps:$4 sm:$0xff]  }
 0x272   :  { %813 = vst [vmem:[#allocation3 + $0x38] sm:$0xf0] %v805_v30  ;;  %v13996_v8 = vld [vmem:[#allocation17 + $0x2c] ss:$16 sps:$4 sm:$0xff]   ;;  %v13997_v9 = vld [vmem:[#allocation17 + $0x20] ss:$16 sps:$4 sm:$0xff]  }
 0x273   :  { %v13998_v10 = vld [vmem:[#allocation17 + $0x28] ss:$16 sps:$4 sm:$0xff]   ;;  %v15003_v11 = vld [vmem:[#allocation17 + $0x44] ss:$16 sps:$4 sm:$0xff]   ;;  %v15006_v12 = vld [vmem:[#allocation17 + $0x4c] ss:$16 sps:$4 sm:$0xff]  }
 0x274   :  { %v937_v31 = vld [vmem:[#allocation3] sm:$0xff]  ;;  %v15012_v14 = vld [vmem:[#allocation17 + $0x48] ss:$16 sps:$4 sm:$0xff]   ;;  %v15018_v16 = vld [vmem:[#allocation17 + $0x6c] ss:$16 sps:$4 sm:$0xff]   ;;  %s4605_s1 = sld [smem:[#allocation4]] }
 0x275   :  { %v11098_v32 = vmul.f32 -1.442695, %v937_v31  ;;  %v939_v37 = vld [vmem:[#allocation3 + $0x10] sm:$0xff]  ;;  %v15024_v18 = vld [vmem:[#allocation17 + $0x68] ss:$16 sps:$4 sm:$0xff]   ;;  %s11709_s8 = sld [smem:[#allocation9 + $0x7]] }
 0x276   :  { %v938_v33 = vld [vmem:[#allocation3 + $0x8] sm:$0xff]  ;;  %v15009_v13 = vld [vmem:[#allocation17 + $0x40] ss:$16 sps:$4 sm:$0xff]   ;;  %v15015_v15 = vld [vmem:[#allocation17 + $0x64] ss:$16 sps:$4 sm:$0xff]   ;;  %s4608_s2 = sld [smem:[#allocation9]] }
 0x277   :  { %v11099_v34 = vmul.f32 -1.442695, %v938_v33  ;;  %13625 = vpow2.f32 %v11098_v32  ;;  %v940_v35 = vld [vmem:[#allocation3 + $0x18] sm:$0xff]  ;;  %v15021_v17 = vld [vmem:[#allocation17 + $0x60] ss:$16 sps:$4 sm:$0xff]   ;;  %s12364_s3 = sld [smem:[#allocation12 + $0x1]] }
 0x278   :  { %v11100_v36 = vmul.f32 -1.442695, %v940_v35  ;;  %v15027_v19 = vld [vmem:[#allocation17 + $0x84] ss:$16 sps:$4 sm:$0xff]   ;;  %v15030_v20 = vld [vmem:[#allocation17 + $0x8c] ss:$16 sps:$4 sm:$0xff]  }
 0x279   :  { %13627 = vpow2.f32 %v11099_v34  ;;  %v15033_v21 = vld [vmem:[#allocation17 + $0x80] ss:$16 sps:$4 sm:$0xff]   ;;  %v15036_v22 = vld [vmem:[#allocation17 + $0x88] ss:$16 sps:$4 sm:$0xff]   ;;  %v15039_v23 = vld [vmem:[#allocation17 + $0xa4] ss:$16 sps:$4 sm:$0xff]  }
 0x27a   :  { %13629 = vpow2.f32 %v11100_v36  ;;  %v15042_v24 = vld [vmem:[#allocation17 + $0xac] ss:$16 sps:$4 sm:$0xff]   ;;  %v15045_v25 = vld [vmem:[#allocation17 + $0xa0] ss:$16 sps:$4 sm:$0xff]   ;;  %v15048_v26 = vld [vmem:[#allocation17 + $0xa8] ss:$16 sps:$4 sm:$0xff]  }
 0x27b   :  { %13631 = vtanh.f32 %v939_v37  ;;  %v15051_v27 = vld [vmem:[#allocation17 + $0xc4] ss:$16 sps:$4 sm:$0xff]   ;;  %v15054_v28 = vld [vmem:[#allocation17 + $0xcc] ss:$16 sps:$4 sm:$0xff]   ;;  %v15057_v29 = vld [vmem:[#allocation17 + $0xc0] ss:$16 sps:$4 sm:$0xff]  }
 0x27c   :  { %v15060_v30 = vld [vmem:[#allocation17 + $0xc8] ss:$16 sps:$4 sm:$0xff]   ;;  %v15063_v31 = vld [vmem:[#allocation17 + $0xe4] ss:$16 sps:$4 sm:$0xff]   ;;  %v15066_v32 = vld [vmem:[#allocation17 + $0xec] ss:$16 sps:$4 sm:$0xff]  }
 0x27d   :  { %v15069_v33 = vld [vmem:[#allocation17 + $0xe0] ss:$16 sps:$4 sm:$0xff]   ;;  %v15072_v34 = vld [vmem:[#allocation17 + $0xe8] ss:$16 sps:$4 sm:$0xff]   ;;  %v15075_v35 = vld [vmem:[#allocation17 + $0x104] ss:$16 sps:$4 sm:$0xff]  }
 0x27e   :  { %v15078_v36 = vld [vmem:[#allocation17 + $0x10c] ss:$16 sps:$4 sm:$0xff]   ;;  %v15081_v37 = vld [vmem:[#allocation17 + $0x100] ss:$16 sps:$4 sm:$0xff]  }
 0x27f   :  { %v983_v47 = vld [vmem:[#allocation3 + $0x20] sm:$0xff]  ;;  %v13502_v62 = vld [vmem:[%s16862_s15 + $0x14] ss:$8 sps:$4 sm:$0xff]   ;;  %v13500_v3 = vld [vmem:[%s16862_s15 + $0x10] ss:$8 sps:$4 sm:$0xff]  }
 0x281   :  { %v13626_v38 = vpop.eup %13625 }
 0x282   :  { %v944_v42 = vadd.f32 1.0, %v13626_v38  ;;  %v15084_v38 = vld [vmem:[#allocation17 + $0x108] ss:$16 sps:$4 sm:$0xff]  }
 0x283   :  { %v13628_v41 = vpop.eup %13627 }
 0x284   :  { %v950_v44 = vadd.f32 1.0, %v13628_v41  ;;  %13633 = vrcp.f32 %v944_v42  ;;  %v13630_v40 = vpop.eup %13629  ;;  %v15087_v41 = vld [vmem:[#allocation17 + $0x124] ss:$16 sps:$4 sm:$0xff]   ;;  %v15090_v42 = vld [vmem:[#allocation17 + $0x12c] ss:$16 sps:$4 sm:$0xff]  }
 0x285   :  { %v13632_v48 = vpop.eup %13631  ;;  %v957_v51 = vadd.f32 1.0, %v13630_v40  ;;  %v15096_v40 = vld [vmem:[#allocation17 + $0x128] ss:$16 sps:$4 sm:$0xff]  }
 0x286   :  { %13635 = vrcp.f32 %v950_v44  ;;  %v15093_v44 = vld [vmem:[#allocation17 + $0x120] ss:$16 sps:$4 sm:$0xff]  }
 0x287   :  { %13637 = vrcp.f32 %v957_v51  ;;  %v15108_v51 = vld [vmem:[#allocation17 + $0x148] ss:$16 sps:$4 sm:$0xff]  }
 0x28e   :  { %v13634_v49 = vpop.eup %13633 }
 0x28f   :  { %v961_v52 = vmul.f32 %v13634_v49, %v13632_v48  ;;  %v15099_v48 = vld [vmem:[#allocation17 + $0x144] ss:$16 sps:$4 sm:$0xff]   ;;  %v15102_v49 = vld [vmem:[#allocation17 + $0x14c] ss:$16 sps:$4 sm:$0xff]  }
 0x290   :  { %v13636_v50 = vpop.eup %13635 }
 0x291   :  { %v960_v53 = vmul.f32 0.0, %v13636_v50  ;;  %v13638_v55 = vpop.eup %13637  ;;  %v15105_v50 = vld [vmem:[#allocation17 + $0x140] ss:$16 sps:$4 sm:$0xff]  }
 0x293   :  { %v14983_v54 = vadd.f32 %v961_v52, %v960_v53  ;;  %v15111_v52 = vld [vmem:[#allocation17 + $0x164] ss:$16 sps:$4 sm:$0xff]   ;;  %v15114_v53 = vld [vmem:[#allocation17 + $0x16c] ss:$16 sps:$4 sm:$0xff]  }
 0x295   :  { %13639 = vtanh.f32 %v14983_v54 }
 0x29f   :  { %v13640_v56 = vpop.eup %13639 }
 0x2a0   :  { %v964_v59 = vmul.f32 %v13640_v56, %v13638_v55  ;;  %v15117_v55 = vld [vmem:[#allocation17 + $0x160] ss:$16 sps:$4 sm:$0xff]   ;;  %v15120_v56 = vld [vmem:[#allocation17 + $0x168] ss:$16 sps:$4 sm:$0xff]  }
 0x2a2   :  { %v967_v63 = vmul.f32 %v966_v57, %v964_v59  ;;  %v974_v0 = vmul.f32 %v973_v58, %v964_v59  ;;  %v11170_v1 = vpack.c.bf16 %v964_v59, %v964_v59  ;;  %v15123_v57 = vld [vmem:[#allocation17 + $0x184] ss:$16 sps:$4 sm:$0xff]   ;;  %v15126_v58 = vld [vmem:[#allocation17 + $0x18c] ss:$16 sps:$4 sm:$0xff]   ;;  %v15129_v59 = vld [vmem:[#allocation17 + $0x180] ss:$16 sps:$4 sm:$0xff]  }
 0x2a3   :  { %17107 = vst [vmem:[#allocation53_spill] sm:$0xff] %v15123_v57  ;;  %17108 = vst [vmem:[#allocation54_spill] sm:$0xff] %v15126_v58 }
 0x2a4   :  { %v970_v43 = vadd.f32 %v969_v60, %v967_v63  ;;  %v977_v4 = vadd.f32 %v976_v61, %v974_v0  ;;  %11171 = vmatprep.mubr.msk.bf16.mxu0 %vm14987_vm3, %v11170_v1  ;;  %11179 = vmatprep.mubr.msk.bf16.mxu1 %vm14987_vm3, %v11170_v1  ;;  %17109 = vst [vmem:[#allocation55_spill] sm:$0xff] %v15129_v59  ;;  %v15132_v60 = vld [vmem:[#allocation17 + $0x188] ss:$16 sps:$4 sm:$0xff]   ;;  %v15135_v61 = vld [vmem:[#allocation17 + $0x1a4] ss:$16 sps:$4 sm:$0xff]  }
 0x2a5   :  { %11174 = vmatmul.mubr.msk.bf16.vlgmr.msra.gmra.mrb[16].mxu0 %vm14991_vm4, %v11170_v1  ;;  %11182 = vmatmul.mubr.msk.bf16.vlgmr.msra.gmra.mrb[16].mxu1 %vm14991_vm4, %v11170_v1  ;;  %17110 = vst [vmem:[#allocation56_spill] sm:$0xff] %v15132_v60  ;;  %17111 = vst [vmem:[#allocation57_spill] sm:$0xff] %v15135_v61  ;;  %v15138_v63 = vld [vmem:[#allocation17 + $0x1ac] ss:$16 sps:$4 sm:$0xff]   ;;  %v15141_v0 = vld [vmem:[#allocation17 + $0x1a0] ss:$16 sps:$4 sm:$0xff]  }
 0x2a6   :  { %971 = vst [vmem:[#allocation2] sm:$0xf] %v970_v43  ;;  %978 = vst [vmem:[#allocation2 + $0x38] sm:$0xf0] %v977_v4  ;;  %1894 = vmatpush1.bf16.msra.mxu0 %v13993_v5  ;;  %1935 = vmatpush1.bf16.msra.mxu1 %v13994_v6  ;;  %v15144_v1 = vld [vmem:[#allocation17 + $0x1a8] ss:$16 sps:$4 sm:$0xff]  }
 0x2a7   :  { %1895 = vmatprep.subr.bf16.mxu0 %v13995_v7  ;;  %1936 = vmatprep.subr.bf16.mxu1 %v13996_v8  ;;  %17112 = vst [vmem:[#allocation58_spill] sm:$0xff] %v15138_v63  ;;  %17113 = vst [vmem:[#allocation59_spill] sm:$0xff] %v15141_v0  ;;  %v15147_v43 = vld [vmem:[#allocation17 + $0x1c4] ss:$16 sps:$4 sm:$0xff]   ;;  %v15150_v4 = vld [vmem:[#allocation17 + $0x1cc] ss:$16 sps:$4 sm:$0xff]  }
 0x2a8   :  { %17114 = vst [vmem:[#allocation60_spill] sm:$0xff] %v15144_v1  ;;  %17115 = vst [vmem:[#allocation61_spill] sm:$0xff] %v15147_v43  ;;  %v15153_v5 = vld [vmem:[#allocation17 + $0x1c0] ss:$16 sps:$4 sm:$0xff]   ;;  %v15156_v6 = vld [vmem:[#allocation17 + $0x1c8] ss:$16 sps:$4 sm:$0xff]  }
 0x2a9   :  { %17116 = vst [vmem:[#allocation62_spill] sm:$0xff] %v15150_v4  ;;  %17117 = vst [vmem:[#allocation63_spill] sm:$0xff] %v15153_v5  ;;  %v15159_v7 = vld [vmem:[#allocation17 + $0x1e4] ss:$16 sps:$4 sm:$0xff]   ;;  %v15162_v8 = vld [vmem:[#allocation17 + $0x1ec] ss:$16 sps:$4 sm:$0xff]  }
 0x2aa   :  { %1896 = vmatpush1.bf16.msra.mxu0 %v13997_v9  ;;  %1937 = vmatpush1.bf16.msra.mxu1 %v13998_v10  ;;  %17118 = vst [vmem:[#allocation64_spill] sm:$0xff] %v15156_v6  ;;  %17119 = vst [vmem:[#allocation65_spill] sm:$0xff] %v15159_v7  ;;  %v15165_v9 = vld [vmem:[#allocation17 + $0x1e0] ss:$16 sps:$4 sm:$0xff]   ;;  %v15168_v10 = vld [vmem:[#allocation17 + $0x1e8] ss:$16 sps:$4 sm:$0xff]  }
 0x2ab   :  { %1897 = vmatprep.subr.bf16.mxu0 %v15003_v11  ;;  %1938 = vmatprep.subr.bf16.mxu1 %v15006_v12  ;;  %17120 = vst [vmem:[#allocation66_spill] sm:$0xff] %v15162_v8  ;;  %17121 = vst [vmem:[#allocation67_spill] sm:$0xff] %v15165_v9 }
 0x2ac   :  { %17122 = vst [vmem:[#allocation68_spill] sm:$0xff] %v15168_v10 }
 0x2ae   :  { %1898 = vmatpush1.bf16.msra.mxu0 %v15009_v13  ;;  %1939 = vmatpush1.bf16.msra.mxu1 %v15012_v14 }
 0x2af   :  { %1899 = vmatprep.subr.bf16.mxu0 %v15015_v15  ;;  %1940 = vmatprep.subr.bf16.mxu1 %v15018_v16 }
 0x2b2   :  { %1900 = vmatpush1.bf16.msra.mxu0 %v15021_v17  ;;  %1941 = vmatpush1.bf16.msra.mxu1 %v15024_v18 }
 0x2b3   :  { %1901 = vmatprep.subr.bf16.mxu0 %v15027_v19  ;;  %1942 = vmatprep.subr.bf16.mxu1 %v15030_v20 }
 0x2b6   :  { %1902 = vmatpush1.bf16.msra.mxu0 %v15033_v21  ;;  %1943 = vmatpush1.bf16.msra.mxu1 %v15036_v22 }
 0x2b7   :  { %1903 = vmatprep.subr.bf16.mxu0 %v15039_v23  ;;  %1944 = vmatprep.subr.bf16.mxu1 %v15042_v24 }
 0x2ba   :  { %1904 = vmatpush1.bf16.msra.mxu0 %v15045_v25  ;;  %1945 = vmatpush1.bf16.msra.mxu1 %v15048_v26 }
 0x2bb   :  { %1905 = vmatprep.subr.bf16.mxu0 %v15051_v27  ;;  %1946 = vmatprep.subr.bf16.mxu1 %v15054_v28 }
 0x2be   :  { %1906 = vmatpush1.bf16.msra.mxu0 %v15057_v29  ;;  %1947 = vmatpush1.bf16.msra.mxu1 %v15060_v30 }
 0x2bf   :  { %1907 = vmatprep.subr.bf16.mxu0 %v15063_v31  ;;  %1948 = vmatprep.subr.bf16.mxu1 %v15066_v32 }
 0x2c2   :  { %1908 = vmatpush1.bf16.msra.mxu0 %v15069_v33  ;;  %1949 = vmatpush1.bf16.msra.mxu1 %v15072_v34 }
 0x2c3   :  { %1909 = vmatprep.subr.bf16.mxu0 %v15075_v35  ;;  %1950 = vmatprep.subr.bf16.mxu1 %v15078_v36 }
 0x2c6   :  { %1910 = vmatpush1.bf16.msra.mxu0 %v15081_v37  ;;  %1951 = vmatpush1.bf16.msra.mxu1 %v15084_v38 }
 0x2c7   :  { %1911 = vmatprep.subr.bf16.mxu0 %v15087_v41  ;;  %1952 = vmatprep.subr.bf16.mxu1 %v15090_v42 }
 0x2ca   :  { %1912 = vmatpush1.bf16.msra.mxu0 %v15093_v44  ;;  %1953 = vmatpush1.bf16.msra.mxu1 %v15096_v40 }
 0x2cb   :  { %1913 = vmatprep.subr.bf16.mxu0 %v15099_v48  ;;  %1954 = vmatprep.subr.bf16.mxu1 %v15102_v49 }
 0x2ce   :  { %1914 = vmatpush1.bf16.msra.mxu0 %v15105_v50  ;;  %1955 = vmatpush1.bf16.msra.mxu1 %v15108_v51 }
 0x2cf   :  { %1915 = vmatprep.subr.bf16.mxu0 %v15111_v52  ;;  %1956 = vmatprep.subr.bf16.mxu1 %v15114_v53 }
 0x2d2   :  { %1916 = vmatpush1.bf16.msra.mxu0 %v15117_v55  ;;  %1957 = vmatpush1.bf16.msra.mxu1 %v15120_v56 }
 0x2d3   :  { %1917 = vmatprep.subr.bf16.mxu0 %v15123_v57  ;;  %1958 = vmatprep.subr.bf16.mxu1 %v15126_v58 }
 0x2d6   :  { %1918 = vmatpush1.bf16.msra.mxu0 %v15129_v59  ;;  %1959 = vmatpush1.bf16.msra.mxu1 %v15132_v60  ;;  %v985_v60 = vld [vmem:[#allocation3 + $0x30] sm:$0xff] }
 0x2d7   :  { %1919 = vmatprep.subr.bf16.mxu0 %v15135_v61  ;;  %1960 = vmatprep.subr.bf16.mxu1 %v15138_v63  ;;  %v986_v61 = vld [vmem:[#allocation3 + $0x38] sm:$0xff] }
 0x2da   :  { %1920 = vmatpush1.bf16.msra.mxu0 %v15141_v0  ;;  %1961 = vmatpush1.bf16.msra.mxu1 %v15144_v1 }
 0x2db   :  { %1921 = vmatprep.subr.bf16.mxu0 %v15147_v43  ;;  %1962 = vmatprep.subr.bf16.mxu1 %v15150_v4 }
 0x2de   :  { %1922 = vmatpush1.bf16.msra.mxu0 %v15153_v5  ;;  %1963 = vmatpush1.bf16.msra.mxu1 %v15156_v6 }
 0x2df   :  { %1923 = vmatprep.subr.bf16.mxu0 %v15159_v7  ;;  %1964 = vmatprep.subr.bf16.mxu1 %v15162_v8  ;;  %v984_v7 = vld [vmem:[#allocation3 + $0x28] sm:$0xff] }
 0x2e2   :  { %1924 = vmatpush1.bf16.msra.mxu0 %v15165_v9  ;;  %1965 = vmatpush1.bf16.msra.mxu1 %v15168_v10 }
 0x2e3   :  { %2409 = vmatprep.subr.bf16.mxu0 %v15171_v2  ;;  %2450 = vmatprep.subr.bf16.mxu1 %v15173_v39 }
 0x378   :  { %v1405_v46 = vpop.f32.mrb[16].mxu0  ;;  %v1446_v45 = vpop.f32.mrb[16].mxu1 }
 0x379   :  { %v1453_v8 = vadd.f32 %v1405_v46, %v983_v47  ;;  %v1407_v6 = vpop.f32.mrb[17].mxu0  ;;  %v1448_v5 = vpop.f32.mrb[17].mxu1  ;;  %v1455_v59 = vadd.f32 %v1446_v45, %v985_v60  ;;  %v1495_v60 = vstv %s11189_s22  ;;  %s5842_s22 = sld [smem:[#allocation12]] }
 0x37a   :  { %v1454_v9 = vadd.f32 %v1407_v6, %v984_v7  ;;  %v1409_v4 = vpop.f32.mrb[18].mxu0  ;;  %v1450_v43 = vpop.f32.mrb[18].mxu1  ;;  %v1456_v2 = vadd.f32 %v1448_v5, %v986_v61 }
 0x37b   :  { %v11183_v1 = vmul.f32 -1.442695, %v1453_v8  ;;  %v1410_v10 = vpop.f32.mrb[19].mxu0  ;;  %v1451_v0 = vpop.f32.mrb[19].mxu1 }
 0x37c   :  { %v11184_v63 = vmul.f32 -1.442695, %v1454_v9  ;;  %v11185_v39 = vmul.f32 -1.442695, %v1456_v2  ;;  %v15183_v10 = vld [vmem:[#allocation17 + $0x8] ss:$16 sps:$4 sm:$0xff]  }
 0x37d   :  { %13641 = vpow2.f32 %v11183_v1 }
 0x37e   :  { %13643 = vpow2.f32 %v11184_v63 }
 0x37f   :  { %13645 = vpow2.f32 %v11185_v39  ;;  %v1482_v39 = vstv %s11186_s25 }
 0x380   :  { %13647 = vtanh.f32 %v1455_v59  ;;  %v1485_v59 = vstv %s11187_s6  ;;  %s11841_s6 = sld [smem:[#allocation11 + $0x7]] }
 0x387   :  { %v13642_v58 = vpop.eup %13641 }
 0x388   :  { %v13644_v57 = vpop.eup %13643  ;;  %v1460_v46 = vadd.f32 1.0, %v13642_v58 }
 0x389   :  { %v1466_v47 = vadd.f32 1.0, %v13644_v57  ;;  %v13646_v43 = vpop.eup %13645  ;;  %v1492_v57 = vstv %s11188_s29 }
 0x38a   :  { %13649 = vrcp.f32 %v1460_v46  ;;  %v13648_v4 = vpop.eup %13647  ;;  %v1473_v1 = vadd.f32 1.0, %v13646_v43  ;;  %v15185_v46 = vld [vmem:[#allocation17 + $0x24] ss:$16 sps:$4 sm:$0xff]  }
 0x38b   :  { %13651 = vrcp.f32 %v1466_v47  ;;  %v15187_v47 = vld [vmem:[#allocation17 + $0x2c] ss:$16 sps:$4 sm:$0xff]  }
 0x38c   :  { %13653 = vrcp.f32 %v1473_v1  ;;  %v15201_v1 = vld [vmem:[#allocation17 + $0x28] ss:$16 sps:$4 sm:$0xff]  }
 0x394   :  { %v13650_v6 = vpop.eup %13649 }
 0x395   :  { %v13652_v0 = vpop.eup %13651  ;;  %v1477_v7 = vmul.f32 %v13650_v6, %v13648_v4 }
 0x396   :  { %v1476_v63 = vmul.f32 %v13652_v0, %v14983_v54  ;;  %v13654_v2 = vpop.eup %13653  ;;  %v15181_v54 = vld [vmem:[#allocation17] ss:$16 sps:$4 sm:$0xff]  }
 0x398   :  { %v15178_v61 = vadd.f32 %v1477_v7, %v1476_v63  ;;  %v15199_v7 = vld [vmem:[#allocation17 + $0x20] ss:$16 sps:$4 sm:$0xff]  }
 0x39a   :  { %13655 = vtanh.f32 %v15178_v61 }
 0x3a4   :  { %v13656_v45 = vpop.eup %13655 }
 0x3a5   :  { %v1480_v58 = vmul.f32 %v13656_v45, %v13654_v2 }
 0x3a7   :  { %v1483_v5 = vmul.f32 %v1482_v39, %v1480_v58  ;;  %v1493_v8 = vmul.f32 %v1492_v57, %v1480_v58  ;;  %v11257_v9 = vpack.c.bf16 %v1480_v58, %v1480_v58 }
 0x3a9   :  { %v1486_v43 = vadd.f32 %v1485_v59, %v1483_v5  ;;  %v1496_v4 = vadd.f32 %v1495_v60, %v1493_v8  ;;  %11258 = vmatprep.mubr.msk.bf16.mxu0 %vm14987_vm3, %v11257_v9  ;;  %11266 = vmatprep.mubr.msk.bf16.mxu1 %vm14987_vm3, %v11257_v9 }
 0x3aa   :  { %11261 = vmatmul.mubr.msk.bf16.vlgmr.msra.gmra.mrb[20].mxu0 %vm14991_vm4, %v11257_v9  ;;  %11269 = vmatmul.mubr.msk.bf16.vlgmr.msra.gmra.mrb[20].mxu1 %vm14991_vm4, %v11257_v9 }
 0x3ab   :  { %v1488_v6 = vrot.slane %v1486_v43, 4  ;;  %v1498_v0 = vrot.slane %v1496_v4, 4  ;;  %2410 = vmatpush1.bf16.msra.mxu0 %v15181_v54  ;;  %2451 = vmatpush1.bf16.msra.mxu1 %v15183_v10  ;;  %v2004_v43 = vstv %s11273_s24  ;;  %v2011_v4 = vstv %s11275_s14  ;;  %s11842_s24 = sld [smem:[#allocation12 + $0x7]]  ;;  %s11926_s14 = sld [smem:[#allocation11 + $0x1]] }
 0x3ac   :  { %2411 = vmatprep.subr.bf16.mxu0 %v15185_v46  ;;  %2452 = vmatprep.subr.bf16.mxu1 %v15187_v47 }
 0x3ad   :  { %1490 = vst [vmem:[#allocation2] sm:$0xf0] %v1488_v6  ;;  %1500 = vst [vmem:[#allocation2 + $0x38] sm:$0xf] %v1498_v0  ;;  %v2007_v0 = vstv %s11274_s26  ;;  %s11928_s26 = sld [smem:[#allocation11 + $0x6]] }
 0x3af   :  { %2412 = vmatpush1.bf16.msra.mxu0 %v15199_v7  ;;  %2453 = vmatpush1.bf16.msra.mxu1 %v15201_v1 }
 0x3b0   :  { %2413 = vmatprep.subr.bf16.mxu0 %v15003_v11  ;;  %2454 = vmatprep.subr.bf16.mxu1 %v15006_v12  ;;  %v17125_v11 = vld [vmem:[#allocation53_spill] sm:$0xff]  ;;  %v17126_v12 = vld [vmem:[#allocation54_spill] sm:$0xff] }
 0x3b3   :  { %2414 = vmatpush1.bf16.msra.mxu0 %v15009_v13  ;;  %2455 = vmatpush1.bf16.msra.mxu1 %v15012_v14  ;;  %v17127_v13 = vld [vmem:[#allocation55_spill] sm:$0xff]  ;;  %v17128_v14 = vld [vmem:[#allocation56_spill] sm:$0xff] }
 0x3b4   :  { %2415 = vmatprep.subr.bf16.mxu0 %v15015_v15  ;;  %2456 = vmatprep.subr.bf16.mxu1 %v15018_v16  ;;  %v17129_v15 = vld [vmem:[#allocation57_spill] sm:$0xff]  ;;  %v17130_v16 = vld [vmem:[#allocation58_spill] sm:$0xff] }
 0x3b7   :  { %2416 = vmatpush1.bf16.msra.mxu0 %v15021_v17  ;;  %2457 = vmatpush1.bf16.msra.mxu1 %v15024_v18  ;;  %v17131_v17 = vld [vmem:[#allocation59_spill] sm:$0xff]  ;;  %v17132_v18 = vld [vmem:[#allocation60_spill] sm:$0xff] }
 0x3b8   :  { %2417 = vmatprep.subr.bf16.mxu0 %v15027_v19  ;;  %2458 = vmatprep.subr.bf16.mxu1 %v15030_v20  ;;  %v17133_v19 = vld [vmem:[#allocation61_spill] sm:$0xff]  ;;  %v17134_v20 = vld [vmem:[#allocation62_spill] sm:$0xff] }
 0x3bb   :  { %2418 = vmatpush1.bf16.msra.mxu0 %v15033_v21  ;;  %2459 = vmatpush1.bf16.msra.mxu1 %v15036_v22  ;;  %v17135_v21 = vld [vmem:[#allocation63_spill] sm:$0xff]  ;;  %v17136_v22 = vld [vmem:[#allocation64_spill] sm:$0xff] }
 0x3bc   :  { %2419 = vmatprep.subr.bf16.mxu0 %v15039_v23  ;;  %2460 = vmatprep.subr.bf16.mxu1 %v15042_v24  ;;  %v17137_v23 = vld [vmem:[#allocation65_spill] sm:$0xff]  ;;  %v17138_v24 = vld [vmem:[#allocation66_spill] sm:$0xff] }
 0x3bf   :  { %2420 = vmatpush1.bf16.msra.mxu0 %v15045_v25  ;;  %2461 = vmatpush1.bf16.msra.mxu1 %v15048_v26  ;;  %v17139_v25 = vld [vmem:[#allocation67_spill] sm:$0xff]  ;;  %v17140_v26 = vld [vmem:[#allocation68_spill] sm:$0xff] }
 0x3c0   :  { %2421 = vmatprep.subr.bf16.mxu0 %v15051_v27  ;;  %2462 = vmatprep.subr.bf16.mxu1 %v15054_v28  ;;  %v17141_v27 = vld [vmem:[#allocation69_spill] sm:$0xff]  ;;  %v17142_v28 = vld [vmem:[#allocation70_spill] sm:$0xff] }
 0x3c3   :  { %2422 = vmatpush1.bf16.msra.mxu0 %v15057_v29  ;;  %2463 = vmatpush1.bf16.msra.mxu1 %v15060_v30  ;;  %v1505_v29 = vld [vmem:[#allocation3 + $0x40] sm:$0xff] }
 0x3c4   :  { %2423 = vmatprep.subr.bf16.mxu0 %v15063_v31  ;;  %2464 = vmatprep.subr.bf16.mxu1 %v15066_v32 }
 0x3c7   :  { %2424 = vmatpush1.bf16.msra.mxu0 %v15069_v33  ;;  %2465 = vmatpush1.bf16.msra.mxu1 %v15072_v34  ;;  %v1506_v33 = vld [vmem:[#allocation3 + $0x48] sm:$0xff] }
 0x3c8   :  { %2425 = vmatprep.subr.bf16.mxu0 %v15075_v35  ;;  %2466 = vmatprep.subr.bf16.mxu1 %v15078_v36 }
 0x3cb   :  { %2426 = vmatpush1.bf16.msra.mxu0 %v15081_v37  ;;  %2467 = vmatpush1.bf16.msra.mxu1 %v15084_v38 }
 0x3cc   :  { %2427 = vmatprep.subr.bf16.mxu0 %v15087_v41  ;;  %2468 = vmatprep.subr.bf16.mxu1 %v15090_v42 }
 0x3cf   :  { %2428 = vmatpush1.bf16.msra.mxu0 %v15093_v44  ;;  %2469 = vmatpush1.bf16.msra.mxu1 %v15096_v40 }
 0x3d0   :  { %2429 = vmatprep.subr.bf16.mxu0 %v15099_v48  ;;  %2470 = vmatprep.subr.bf16.mxu1 %v15102_v49  ;;  %v1508_v48 = vld [vmem:[#allocation3 + $0x58] sm:$0xff] }
 0x3d3   :  { %2430 = vmatpush1.bf16.msra.mxu0 %v15105_v50  ;;  %2471 = vmatpush1.bf16.msra.mxu1 %v15108_v51  ;;  %v1507_v50 = vld [vmem:[#allocation3 + $0x50] sm:$0xff] }
 0x3d4   :  { %2431 = vmatprep.subr.bf16.mxu0 %v15111_v52  ;;  %2472 = vmatprep.subr.bf16.mxu1 %v15114_v53 }
 0x3d7   :  { %2432 = vmatpush1.bf16.msra.mxu0 %v15117_v55  ;;  %2473 = vmatpush1.bf16.msra.mxu1 %v15120_v56 }
 0x3d8   :  { %2433 = vmatprep.subr.bf16.mxu0 %v17125_v11  ;;  %2474 = vmatprep.subr.bf16.mxu1 %v17126_v12  ;;  %v2014_v11 = vstv %s11276_s19  ;;  %s11927_s19 = sld [smem:[#allocation12 + $0x1]] }
 0x3db   :  { %2434 = vmatpush1.bf16.msra.mxu0 %v17127_v13  ;;  %2475 = vmatpush1.bf16.msra.mxu1 %v17128_v14 }
 0x3dc   :  { %2435 = vmatprep.subr.bf16.mxu0 %v17129_v15  ;;  %2476 = vmatprep.subr.bf16.mxu1 %v17130_v16  ;;  %v15281_v16 = vld [vmem:[#allocation17 + $0x44] ss:$16 sps:$4 sm:$0xff]  }
 0x3df   :  { %2436 = vmatpush1.bf16.msra.mxu0 %v17131_v17  ;;  %2477 = vmatpush1.bf16.msra.mxu1 %v17132_v18  ;;  %v15283_v17 = vld [vmem:[#allocation17 + $0x4c] ss:$16 sps:$4 sm:$0xff]   ;;  %v15287_v18 = vld [vmem:[#allocation17 + $0x40] ss:$16 sps:$4 sm:$0xff]  }
 0x3e0   :  { %2437 = vmatprep.subr.bf16.mxu0 %v17133_v19  ;;  %2478 = vmatprep.subr.bf16.mxu1 %v17134_v20  ;;  %v15289_v19 = vld [vmem:[#allocation17 + $0x48] ss:$16 sps:$4 sm:$0xff]   ;;  %v15293_v20 = vld [vmem:[#allocation17 + $0x64] ss:$16 sps:$4 sm:$0xff]  }
 0x3e3   :  { %2438 = vmatpush1.bf16.msra.mxu0 %v17135_v21  ;;  %2479 = vmatpush1.bf16.msra.mxu1 %v17136_v22  ;;  %v15295_v21 = vld [vmem:[#allocation17 + $0x6c] ss:$16 sps:$4 sm:$0xff]   ;;  %v15299_v22 = vld [vmem:[#allocation17 + $0x60] ss:$16 sps:$4 sm:$0xff]  }
 0x3e4   :  { %2439 = vmatprep.subr.bf16.mxu0 %v17137_v23  ;;  %2480 = vmatprep.subr.bf16.mxu1 %v17138_v24  ;;  %v15301_v23 = vld [vmem:[#allocation17 + $0x68] ss:$16 sps:$4 sm:$0xff]   ;;  %v15307_v24 = vld [vmem:[#allocation17 + $0x84] ss:$16 sps:$4 sm:$0xff]  }
 0x3e7   :  { %2440 = vmatpush1.bf16.msra.mxu0 %v17139_v25  ;;  %2481 = vmatpush1.bf16.msra.mxu1 %v17140_v26  ;;  %v15309_v25 = vld [vmem:[#allocation17 + $0x8c] ss:$16 sps:$4 sm:$0xff]   ;;  %v15311_v26 = vld [vmem:[#allocation17 + $0x80] ss:$16 sps:$4 sm:$0xff]  }
 0x3e8   :  { %2931 = vmatprep.subr.bf16.mxu0 %v17141_v27  ;;  %2972 = vmatprep.subr.bf16.mxu1 %v17142_v28 }
 0x47d   :  { %v1927_v30 = vpop.f32.mrb[20].mxu0  ;;  %v1968_v31 = vpop.f32.mrb[20].mxu1 }
 0x47e   :  { %v1975_v32 = vadd.f32 %v1927_v30, %v1505_v29  ;;  %v1929_v34 = vpop.f32.mrb[21].mxu0  ;;  %v1970_v35 = vpop.f32.mrb[21].mxu1  ;;  %v1977_v52 = vadd.f32 %v1968_v31, %v1507_v50  ;;  %v15313_v29 = vld [vmem:[#allocation17 + $0x88] ss:$16 sps:$4 sm:$0xff]   ;;  %v15319_v30 = vld [vmem:[#allocation17 + $0xa4] ss:$16 sps:$4 sm:$0xff]  }
 0x47f   :  { %v1976_v36 = vadd.f32 %v1929_v34, %v1506_v33  ;;  %v1931_v37 = vpop.f32.mrb[22].mxu0  ;;  %v1972_v38 = vpop.f32.mrb[22].mxu1  ;;  %v1978_v49 = vadd.f32 %v1970_v35, %v1508_v48  ;;  %v15321_v31 = vld [vmem:[#allocation17 + $0xac] ss:$16 sps:$4 sm:$0xff]   ;;  %v15325_v33 = vld [vmem:[#allocation17 + $0xa8] ss:$16 sps:$4 sm:$0xff]  }
 0x480   :  { %v11270_v41 = vmul.f32 -1.442695, %v1975_v32  ;;  %v1932_v42 = vpop.f32.mrb[23].mxu0  ;;  %v1973_v44 = vpop.f32.mrb[23].mxu1  ;;  %v15323_v32 = vld [vmem:[#allocation17 + $0xa0] ss:$16 sps:$4 sm:$0xff]  }
 0x481   :  { %v11271_v40 = vmul.f32 -1.442695, %v1976_v36  ;;  %v11272_v51 = vmul.f32 -1.442695, %v1978_v49  ;;  %v15331_v34 = vld [vmem:[#allocation17 + $0xc4] ss:$16 sps:$4 sm:$0xff]  }
 0x482   :  { %13657 = vpow2.f32 %v11270_v41  ;;  %v15333_v35 = vld [vmem:[#allocation17 + $0xcc] ss:$16 sps:$4 sm:$0xff]   ;;  %v15335_v36 = vld [vmem:[#allocation17 + $0xc0] ss:$16 sps:$4 sm:$0xff]   ;;  %v15337_v37 = vld [vmem:[#allocation17 + $0xc8] ss:$16 sps:$4 sm:$0xff]  }
 0x483   :  { %13659 = vpow2.f32 %v11271_v40  ;;  %v15343_v38 = vld [vmem:[#allocation17 + $0xe4] ss:$16 sps:$4 sm:$0xff]   ;;  %v15345_v41 = vld [vmem:[#allocation17 + $0xec] ss:$16 sps:$4 sm:$0xff]   ;;  %v15347_v42 = vld [vmem:[#allocation17 + $0xe0] ss:$16 sps:$4 sm:$0xff]  }
 0x484   :  { %13661 = vpow2.f32 %v11272_v51  ;;  %v15349_v44 = vld [vmem:[#allocation17 + $0xe8] ss:$16 sps:$4 sm:$0xff]   ;;  %v15355_v40 = vld [vmem:[#allocation17 + $0x104] ss:$16 sps:$4 sm:$0xff]   ;;  %v15357_v48 = vld [vmem:[#allocation17 + $0x10c] ss:$16 sps:$4 sm:$0xff]  }
 0x485   :  { %13663 = vtanh.f32 %v1977_v52  ;;  %v15359_v49 = vld [vmem:[#allocation17 + $0x100] ss:$16 sps:$4 sm:$0xff]   ;;  %v15361_v50 = vld [vmem:[#allocation17 + $0x108] ss:$16 sps:$4 sm:$0xff]   ;;  %v15367_v51 = vld [vmem:[#allocation17 + $0x124] ss:$16 sps:$4 sm:$0xff]  }
 0x486   :  { %v15369_v52 = vld [vmem:[#allocation17 + $0x12c] ss:$16 sps:$4 sm:$0xff]  }
 0x48c   :  { %v13658_v53 = vpop.eup %13657 }
 0x48d   :  { %v13660_v55 = vpop.eup %13659  ;;  %v1982_v56 = vadd.f32 1.0, %v13658_v53  ;;  %v15371_v53 = vld [vmem:[#allocation17 + $0x120] ss:$16 sps:$4 sm:$0xff]  }
 0x48e   :  { %v1988_v63 = vadd.f32 1.0, %v13660_v55  ;;  %v13662_v2 = vpop.eup %13661  ;;  %v15373_v55 = vld [vmem:[#allocation17 + $0x128] ss:$16 sps:$4 sm:$0xff]  }
 0x48f   :  { %13665 = vrcp.f32 %v1982_v56  ;;  %v13664_v45 = vpop.eup %13663  ;;  %v1995_v59 = vadd.f32 1.0, %v13662_v2  ;;  %v15379_v56 = vld [vmem:[#allocation17 + $0x144] ss:$16 sps:$4 sm:$0xff]   ;;  %v15383_v2 = vld [vmem:[#allocation17 + $0x140] ss:$16 sps:$4 sm:$0xff]  }
 0x490   :  { %13667 = vrcp.f32 %v1988_v63  ;;  %v15381_v63 = vld [vmem:[#allocation17 + $0x14c] ss:$16 sps:$4 sm:$0xff]   ;;  %17143 = vst [vmem:[#allocation53_spill] sm:$0xff] %v15383_v2 }
 0x491   :  { %13669 = vrcp.f32 %v1995_v59  ;;  %v15397_v59 = vld [vmem:[#allocation17 + $0x168] ss:$16 sps:$4 sm:$0xff]  }
 0x492   :  { %17148 = vst [vmem:[#allocation58_spill] sm:$0xff] %v15397_v59 }
 0x499   :  { %v13666_v39 = vpop.eup %13665 }
 0x49a   :  { %v13668_v57 = vpop.eup %13667  ;;  %v1999_v58 = vmul.f32 %v13666_v39, %v13664_v45  ;;  %v15385_v45 = vld [vmem:[#allocation17 + $0x148] ss:$16 sps:$4 sm:$0xff]   ;;  %v15391_v39 = vld [vmem:[#allocation17 + $0x164] ss:$16 sps:$4 sm:$0xff]  }
 0x49b   :  { %v1998_v60 = vmul.f32 %v13668_v57, %v15178_v61  ;;  %v13670_v8 = vpop.eup %13669  ;;  %17144 = vst [vmem:[#allocation54_spill] sm:$0xff] %v15385_v45  ;;  %17145 = vst [vmem:[#allocation55_spill] sm:$0xff] %v15391_v39  ;;  %v15393_v57 = vld [vmem:[#allocation17 + $0x16c] ss:$16 sps:$4 sm:$0xff]  }
 0x49c   :  { %17146 = vst [vmem:[#allocation56_spill] sm:$0xff] %v15393_v57 }
 0x49d   :  { %v15266_v5 = vadd.f32 %v1999_v58, %v1998_v60  ;;  %v15395_v58 = vld [vmem:[#allocation17 + $0x160] ss:$16 sps:$4 sm:$0xff]  }
 0x49e   :  { %17147 = vst [vmem:[#allocation57_spill] sm:$0xff] %v15395_v58  ;;  %v15403_v60 = vld [vmem:[#allocation17 + $0x180] ss:$16 sps:$4 sm:$0xff]  }
 0x49f   :  { %13671 = vtanh.f32 %v15266_v5  ;;  %17149 = vst [vmem:[#allocation59_spill] sm:$0xff] %v15403_v60 }
 0x4a9   :  { %v13672_v9 = vpop.eup %13671 }
 0x4aa   :  { %v2002_v6 = vmul.f32 %v13672_v9, %v13670_v8  ;;  %v15405_v8 = vld [vmem:[#allocation17 + $0x184] ss:$16 sps:$4 sm:$0xff]   ;;  %v15407_v9 = vld [vmem:[#allocation17 + $0x188] ss:$16 sps:$4 sm:$0xff]  }
 0x4ab   :  { %17150 = vst [vmem:[#allocation60_spill] sm:$0xff] %v15405_v8  ;;  %17151 = vst [vmem:[#allocation61_spill] sm:$0xff] %v15407_v9 }
 0x4ac   :  { %v2005_v12 = vmul.f32 %v2004_v43, %v2002_v6  ;;  %v2012_v13 = vmul.f32 %v2011_v4, %v2002_v6  ;;  %v11344_v14 = vpack.c.bf16 %v2002_v6, %v2002_v6  ;;  %v15409_v43 = vld [vmem:[#allocation17 + $0x18c] ss:$16 sps:$4 sm:$0xff]   ;;  %v15411_v4 = vld [vmem:[#allocation17 + $0x1a4] ss:$16 sps:$4 sm:$0xff]  }
 0x4ad   :  { %17152 = vst [vmem:[#allocation62_spill] sm:$0xff] %v15409_v43  ;;  %17153 = vst [vmem:[#allocation63_spill] sm:$0xff] %v15411_v4  ;;  %v15414_v6 = vld [vmem:[#allocation17 + $0x1ac] ss:$16 sps:$4 sm:$0xff]  }
 0x4ae   :  { %v2008_v61 = vadd.f32 %v2007_v0, %v2005_v12  ;;  %v2015_v15 = vadd.f32 %v2014_v11, %v2012_v13  ;;  %11345 = vmatprep.mubr.msk.bf16.mxu0 %vm14987_vm3, %v11344_v14  ;;  %11353 = vmatprep.mubr.msk.bf16.mxu1 %vm14987_vm3, %v11344_v14  ;;  %17154 = vst [vmem:[#allocation64_spill] sm:$0xff] %v15414_v6  ;;  %v15419_v0 = vld [vmem:[#allocation17 + $0x1a0] ss:$16 sps:$4 sm:$0xff]   ;;  %v15421_v11 = vld [vmem:[#allocation17 + $0x1a8] ss:$16 sps:$4 sm:$0xff]  }
 0x4af   :  { %11348 = vmatmul.mubr.msk.bf16.vlgmr.msra.gmra.mrb[24].mxu0 %vm14991_vm4, %v11344_v14  ;;  %11356 = vmatmul.mubr.msk.bf16.vlgmr.msra.gmra.mrb[24].mxu1 %vm14991_vm4, %v11344_v14  ;;  %17155 = vst [vmem:[#allocation65_spill] sm:$0xff] %v15419_v0  ;;  %17156 = vst [vmem:[#allocation66_spill] sm:$0xff] %v15421_v11  ;;  %v15425_v12 = vld [vmem:[#allocation17 + $0x1c4] ss:$16 sps:$4 sm:$0xff]   ;;  %v15427_v13 = vld [vmem:[#allocation17 + $0x1cc] ss:$16 sps:$4 sm:$0xff]  }
 0x4b0   :  { %2009 = vst [vmem:[#allocation2 + $0x10] sm:$0xf] %v2008_v61  ;;  %2016 = vst [vmem:[#allocation2 + $0x28] sm:$0xf0] %v2015_v15  ;;  %2932 = vmatpush1.bf16.msra.mxu0 %v15181_v54  ;;  %2973 = vmatpush1.bf16.msra.mxu1 %v15183_v10  ;;  %v15431_v14 = vld [vmem:[#allocation17 + $0x1c0] ss:$16 sps:$4 sm:$0xff]  }
 0x4b1   :  { %2933 = vmatprep.subr.bf16.mxu0 %v15185_v46  ;;  %2974 = vmatprep.subr.bf16.mxu1 %v15187_v47  ;;  %17157 = vst [vmem:[#allocation67_spill] sm:$0xff] %v15425_v12  ;;  %17158 = vst [vmem:[#allocation68_spill] sm:$0xff] %v15427_v13  ;;  %v15433_v61 = vld [vmem:[#allocation17 + $0x1c8] ss:$16 sps:$4 sm:$0xff]   ;;  %v15437_v15 = vld [vmem:[#allocation17 + $0x1e4] ss:$16 sps:$4 sm:$0xff]  }
 0x4b2   :  { %17159 = vst [vmem:[#allocation69_spill] sm:$0xff] %v15431_v14  ;;  %17160 = vst [vmem:[#allocation70_spill] sm:$0xff] %v15433_v61 }
 0x4b3   :  { %17161 = vst [vmem:[#allocation71_spill] sm:$0xff] %v15437_v15 }
 0x4b4   :  { %2934 = vmatpush1.bf16.msra.mxu0 %v15199_v7  ;;  %2975 = vmatpush1.bf16.msra.mxu1 %v15201_v1 }
 0x4b5   :  { %2935 = vmatprep.subr.bf16.mxu0 %v15281_v16  ;;  %2976 = vmatprep.subr.bf16.mxu1 %v15283_v17 }
 0x4b8   :  { %2936 = vmatpush1.bf16.msra.mxu0 %v15287_v18  ;;  %2977 = vmatpush1.bf16.msra.mxu1 %v15289_v19 }
 0x4b9   :  { %2937 = vmatprep.subr.bf16.mxu0 %v15293_v20  ;;  %2978 = vmatprep.subr.bf16.mxu1 %v15295_v21 }
 0x4bc   :  { %2938 = vmatpush1.bf16.msra.mxu0 %v15299_v22  ;;  %2979 = vmatpush1.bf16.msra.mxu1 %v15301_v23 }
 0x4bd   :  { %2939 = vmatprep.subr.bf16.mxu0 %v15307_v24  ;;  %2980 = vmatprep.subr.bf16.mxu1 %v15309_v25 }
 0x4c0   :  { %2940 = vmatpush1.bf16.msra.mxu0 %v15311_v26  ;;  %2981 = vmatpush1.bf16.msra.mxu1 %v15313_v29 }
 0x4c1   :  { %2941 = vmatprep.subr.bf16.mxu0 %v15319_v30  ;;  %2982 = vmatprep.subr.bf16.mxu1 %v15321_v31 }
 0x4c4   :  { %2942 = vmatpush1.bf16.msra.mxu0 %v15323_v32  ;;  %2983 = vmatpush1.bf16.msra.mxu1 %v15325_v33 }
 0x4c5   :  { %2943 = vmatprep.subr.bf16.mxu0 %v15331_v34  ;;  %2984 = vmatprep.subr.bf16.mxu1 %v15333_v35 }
 0x4c8   :  { %2944 = vmatpush1.bf16.msra.mxu0 %v15335_v36  ;;  %2985 = vmatpush1.bf16.msra.mxu1 %v15337_v37 }
 0x4c9   :  { %2945 = vmatprep.subr.bf16.mxu0 %v15343_v38  ;;  %2986 = vmatprep.subr.bf16.mxu1 %v15345_v41 }
 0x4cc   :  { %2946 = vmatpush1.bf16.msra.mxu0 %v15347_v42  ;;  %2987 = vmatpush1.bf16.msra.mxu1 %v15349_v44 }
 0x4cd   :  { %2947 = vmatprep.subr.bf16.mxu0 %v15355_v40  ;;  %2988 = vmatprep.subr.bf16.mxu1 %v15357_v48 }
 0x4d0   :  { %2948 = vmatpush1.bf16.msra.mxu0 %v15359_v49  ;;  %2989 = vmatpush1.bf16.msra.mxu1 %v15361_v50 }
 0x4d1   :  { %2949 = vmatprep.subr.bf16.mxu0 %v15367_v51  ;;  %2990 = vmatprep.subr.bf16.mxu1 %v15369_v52 }
 0x4d4   :  { %2950 = vmatpush1.bf16.msra.mxu0 %v15371_v53  ;;  %2991 = vmatpush1.bf16.msra.mxu1 %v15373_v55 }
 0x4d5   :  { %2951 = vmatprep.subr.bf16.mxu0 %v15379_v56  ;;  %2992 = vmatprep.subr.bf16.mxu1 %v15381_v63 }
 0x4d8   :  { %2952 = vmatpush1.bf16.msra.mxu0 %v15383_v2  ;;  %2993 = vmatpush1.bf16.msra.mxu1 %v15385_v45 }
 0x4d9   :  { %2953 = vmatprep.subr.bf16.mxu0 %v15391_v39  ;;  %2994 = vmatprep.subr.bf16.mxu1 %v15393_v57  ;;  %v2023_v57 = vld [vmem:[#allocation3 + $0x70] sm:$0xff] }
 0x4dc   :  { %2954 = vmatpush1.bf16.msra.mxu0 %v15395_v58  ;;  %2995 = vmatpush1.bf16.msra.mxu1 %v15397_v59 }
 0x4dd   :  { %2955 = vmatprep.subr.bf16.mxu0 %v15405_v8  ;;  %2996 = vmatprep.subr.bf16.mxu1 %v15409_v43 }
 0x4e0   :  { %2956 = vmatpush1.bf16.msra.mxu0 %v15403_v60  ;;  %2997 = vmatpush1.bf16.msra.mxu1 %v15407_v9 }
 0x4e1   :  { %2957 = vmatprep.subr.bf16.mxu0 %v15411_v4  ;;  %2998 = vmatprep.subr.bf16.mxu1 %v15414_v6  ;;  %v15439_v4 = vld [vmem:[#allocation17 + $0x1ec] ss:$16 sps:$4 sm:$0xff]   ;;  %v15443_v6 = vld [vmem:[#allocation17 + $0x1e0] ss:$16 sps:$4 sm:$0xff]  }
 0x4e2   :  { %17162 = vst [vmem:[#allocation72_spill] sm:$0xff] %v15439_v4  ;;  %17163 = vst [vmem:[#allocation73_spill] sm:$0xff] %v15443_v6 }
 0x4e4   :  { %2958 = vmatpush1.bf16.msra.mxu0 %v15419_v0  ;;  %2999 = vmatpush1.bf16.msra.mxu1 %v15421_v11  ;;  %v15445_v0 = vld [vmem:[#allocation17 + $0x1e8] ss:$16 sps:$4 sm:$0xff]  }
 0x4e5   :  { %2959 = vmatprep.subr.bf16.mxu0 %v15425_v12  ;;  %3000 = vmatprep.subr.bf16.mxu1 %v15427_v13  ;;  %17164 = vst [vmem:[#allocation74_spill] sm:$0xff] %v15445_v0  ;;  %v2021_v13 = vld [vmem:[#allocation3 + $0x60] sm:$0xff]  ;;  %v2022_v11 = vld [vmem:[#allocation3 + $0x68] sm:$0xff] }
 0x4e8   :  { %2960 = vmatpush1.bf16.msra.mxu0 %v15431_v14  ;;  %3001 = vmatpush1.bf16.msra.mxu1 %v15433_v61 }
 0x4e9   :  { %2961 = vmatprep.subr.bf16.mxu0 %v15437_v15  ;;  %3002 = vmatprep.subr.bf16.mxu1 %v15439_v4 }
 0x4ec   :  { %2962 = vmatpush1.bf16.msra.mxu0 %v15443_v6  ;;  %3003 = vmatpush1.bf16.msra.mxu1 %v15445_v0  ;;  %v2024_v0 = vld [vmem:[#allocation3 + $0x78] sm:$0xff] }
 0x4ed   :  { %3447 = vmatprep.subr.bf16.mxu0 %v17141_v27  ;;  %3488 = vmatprep.subr.bf16.mxu1 %v17142_v28 }
 0x582   :  { %v2443_v14 = vpop.f32.mrb[24].mxu0  ;;  %v2484_v12 = vpop.f32.mrb[24].mxu1 }
 0x583   :  { %v2491_v61 = vadd.f32 %v2443_v14, %v2021_v13  ;;  %v2445_v9 = vpop.f32.mrb[25].mxu0  ;;  %v2486_v60 = vpop.f32.mrb[25].mxu1  ;;  %v2493_v39 = vadd.f32 %v2484_v12, %v2023_v57 }
 0x584   :  { %v2492_v43 = vadd.f32 %v2445_v9, %v2022_v11  ;;  %v2447_v8 = vpop.f32.mrb[26].mxu0  ;;  %v2488_v15 = vpop.f32.mrb[26].mxu1  ;;  %v2494_v27 = vadd.f32 %v2486_v60, %v2024_v0  ;;  %v16959_v0 = vstv %s15461_s30  ;;  %v16960_v11 = vstv %s15463_s0 }
 0x585   :  { %v11357_v59 = vmul.f32 -1.442695, %v2491_v61  ;;  %v2448_v4 = vpop.f32.mrb[27].mxu0  ;;  %v2489_v58 = vpop.f32.mrb[27].mxu1 }
 0x586   :  { %v11358_v6 = vmul.f32 -1.442695, %v2492_v43  ;;  %v11359_v28 = vmul.f32 -1.442695, %v2494_v27 }
 0x587   :  { %13673 = vpow2.f32 %v11357_v59 }
 0x588   :  { %13675 = vpow2.f32 %v11358_v6 }
 0x589   :  { %13677 = vpow2.f32 %v11359_v28 }
 0x58a   :  { %13679 = vtanh.f32 %v2493_v39  ;;  %v16962_v39 = vstv %s15459_s17 }
 0x591   :  { %v13674_v45 = vpop.eup %13673 }
 0x592   :  { %v13676_v2 = vpop.eup %13675  ;;  %v2498_v13 = vadd.f32 1.0, %v13674_v45  ;;  %v16961_v45 = vstv %s15457_s7 }
 0x593   :  { %v2504_v14 = vadd.f32 1.0, %v13676_v2  ;;  %v13678_v8 = vpop.eup %13677 }
 0x594   :  { %13681 = vrcp.f32 %v2498_v13  ;;  %v13680_v9 = vpop.eup %13679  ;;  %v2511_v59 = vadd.f32 1.0, %v13678_v8  ;;  %v17171_v8 = vld [vmem:[#allocation60_spill] sm:$0xff] }
 0x595   :  { %13683 = vrcp.f32 %v2504_v14 }
 0x596   :  { %13685 = vrcp.f32 %v2511_v59  ;;  %v17176_v59 = vld [vmem:[#allocation64_spill] sm:$0xff] }
 0x59e   :  { %v13682_v4 = vpop.eup %13681 }
 0x59f   :  { %v13684_v58 = vpop.eup %13683  ;;  %v2515_v43 = vmul.f32 %v13682_v4, %v13680_v9  ;;  %v17172_v9 = vld [vmem:[#allocation62_spill] sm:$0xff]  ;;  %v17173_v4 = vld [vmem:[#allocation59_spill] sm:$0xff] }
 0x5a0   :  { %v2514_v6 = vmul.f32 %v13684_v58, %v15266_v5  ;;  %v13686_v5 = vpop.eup %13685  ;;  %v17174_v58 = vld [vmem:[#allocation61_spill] sm:$0xff] }
 0x5a2   :  { %v15454_v60 = vadd.f32 %v2515_v43, %v2514_v6  ;;  %v17175_v43 = vld [vmem:[#allocation63_spill] sm:$0xff]  ;;  %v17177_v6 = vld [vmem:[#allocation65_spill] sm:$0xff] }
 0x5a4   :  { %13687 = vtanh.f32 %v15454_v60 }
 0x5ae   :  { %v13688_v2 = vpop.eup %13687 }
 0x5af   :  { %v2518_v57 = vmul.f32 %v13688_v2, %v13686_v5  ;;  %v17178_v5 = vld [vmem:[#allocation66_spill] sm:$0xff]  ;;  %v17179_v2 = vld [vmem:[#allocation67_spill] sm:$0xff] }
 0x5b1   :  { %v2521_v12 = vmul.f32 %v16961_v45, %v2518_v57  ;;  %v2531_v61 = vmul.f32 %v16962_v39, %v2518_v57  ;;  %v11431_v15 = vpack.c.bf16 %v2518_v57, %v2518_v57  ;;  %v17180_v57 = vld [vmem:[#allocation68_spill] sm:$0xff] }
 0x5b3   :  { %v2524_v27 = vadd.f32 %v16959_v0, %v2521_v12  ;;  %v2534_v28 = vadd.f32 %v16960_v11, %v2531_v61  ;;  %11432 = vmatprep.mubr.msk.bf16.mxu0 %vm14987_vm3, %v11431_v15  ;;  %11440 = vmatprep.mubr.msk.bf16.mxu1 %vm14987_vm3, %v11431_v15  ;;  %v17181_v12 = vld [vmem:[#allocation69_spill] sm:$0xff]  ;;  %v17182_v61 = vld [vmem:[#allocation70_spill] sm:$0xff]  ;;  %v2543_v11 = vld [vmem:[#allocation3 + $0x80] sm:$0xff] }
 0x5b4   :  { %11435 = vmatmul.mubr.msk.bf16.vlgmr.msra.gmra.mrb[28].mxu0 %vm14991_vm4, %v11431_v15  ;;  %11443 = vmatmul.mubr.msk.bf16.vlgmr.msra.gmra.mrb[28].mxu1 %vm14991_vm4, %v11431_v15  ;;  %v17183_v15 = vld [vmem:[#allocation71_spill] sm:$0xff] }
 0x5b5   :  { %v2526_v13 = vrot.slane %v2524_v27, 4  ;;  %v2536_v14 = vrot.slane %v2534_v28, 4  ;;  %3448 = vmatpush1.bf16.msra.mxu0 %v15181_v54  ;;  %3489 = vmatpush1.bf16.msra.mxu1 %v15183_v10  ;;  %v17165_v54 = vld [vmem:[#allocation53_spill] sm:$0xff]  ;;  %v17166_v10 = vld [vmem:[#allocation54_spill] sm:$0xff]  ;;  %v17184_v27 = vld [vmem:[#allocation72_spill] sm:$0xff] }
 0x5b6   :  { %3449 = vmatprep.subr.bf16.mxu0 %v15185_v46  ;;  %3490 = vmatprep.subr.bf16.mxu1 %v15187_v47  ;;  %v17167_v46 = vld [vmem:[#allocation55_spill] sm:$0xff]  ;;  %v17168_v47 = vld [vmem:[#allocation56_spill] sm:$0xff]  ;;  %v17185_v28 = vld [vmem:[#allocation73_spill] sm:$0xff] }
 0x5b7   :  { %2528 = vst [vmem:[#allocation2 + $0x10] sm:$0xf0] %v2526_v13  ;;  %2538 = vst [vmem:[#allocation2 + $0x28] sm:$0xf] %v2536_v14  ;;  %v17186_v13 = vld [vmem:[#allocation74_spill] sm:$0xff] }
 0x5b8   :  { %v15547_v14 = vld [vmem:[#allocation17 + $0x4] ss:$16 sps:$4 sm:$0xff]   ;;  %v15549_v0 = vld [vmem:[#allocation17 + $0xc] ss:$16 sps:$4 sm:$0xff]  }
 0x5b9   :  { %3450 = vmatpush1.bf16.msra.mxu0 %v15199_v7  ;;  %3491 = vmatpush1.bf16.msra.mxu1 %v15201_v1  ;;  %v17169_v7 = vld [vmem:[#allocation57_spill] sm:$0xff]  ;;  %v17170_v1 = vld [vmem:[#allocation58_spill] sm:$0xff]  ;;  %17187 = vst [vmem:[#allocation53_spill] sm:$0xff] %v15547_v14  ;;  %17188 = vst [vmem:[#allocation54_spill] sm:$0xff] %v15549_v0 }
 0x5ba   :  { %3451 = vmatprep.subr.bf16.mxu0 %v15281_v16  ;;  %3492 = vmatprep.subr.bf16.mxu1 %v15283_v17 }
 0x5bd   :  { %3452 = vmatpush1.bf16.msra.mxu0 %v15287_v18  ;;  %3493 = vmatpush1.bf16.msra.mxu1 %v15289_v19 }
 0x5be   :  { %3453 = vmatprep.subr.bf16.mxu0 %v15293_v20  ;;  %3494 = vmatprep.subr.bf16.mxu1 %v15295_v21 }
 0x5c1   :  { %3454 = vmatpush1.bf16.msra.mxu0 %v15299_v22  ;;  %3495 = vmatpush1.bf16.msra.mxu1 %v15301_v23 }
 0x5c2   :  { %3455 = vmatprep.subr.bf16.mxu0 %v15307_v24  ;;  %3496 = vmatprep.subr.bf16.mxu1 %v15309_v25 }
 0x5c5   :  { %3456 = vmatpush1.bf16.msra.mxu0 %v15311_v26  ;;  %3497 = vmatpush1.bf16.msra.mxu1 %v15313_v29 }
 0x5c6   :  { %3457 = vmatprep.subr.bf16.mxu0 %v15319_v30  ;;  %3498 = vmatprep.subr.bf16.mxu1 %v15321_v31 }
 0x5c9   :  { %3458 = vmatpush1.bf16.msra.mxu0 %v15323_v32  ;;  %3499 = vmatpush1.bf16.msra.mxu1 %v15325_v33 }
 0x5ca   :  { %3459 = vmatprep.subr.bf16.mxu0 %v15331_v34  ;;  %3500 = vmatprep.subr.bf16.mxu1 %v15333_v35 }
 0x5cd   :  { %3460 = vmatpush1.bf16.msra.mxu0 %v15335_v36  ;;  %3501 = vmatpush1.bf16.msra.mxu1 %v15337_v37 }
 0x5ce   :  { %3461 = vmatprep.subr.bf16.mxu0 %v15343_v38  ;;  %3502 = vmatprep.subr.bf16.mxu1 %v15345_v41 }
 0x5d1   :  { %3462 = vmatpush1.bf16.msra.mxu0 %v15347_v42  ;;  %3503 = vmatpush1.bf16.msra.mxu1 %v15349_v44 }
 0x5d2   :  { %3463 = vmatprep.subr.bf16.mxu0 %v15355_v40  ;;  %3504 = vmatprep.subr.bf16.mxu1 %v15357_v48 }
 0x5d5   :  { %3464 = vmatpush1.bf16.msra.mxu0 %v15359_v49  ;;  %3505 = vmatpush1.bf16.msra.mxu1 %v15361_v50 }
 0x5d6   :  { %3465 = vmatprep.subr.bf16.mxu0 %v15367_v51  ;;  %3506 = vmatprep.subr.bf16.mxu1 %v15369_v52 }
 0x5d9   :  { %3466 = vmatpush1.bf16.msra.mxu0 %v15371_v53  ;;  %3507 = vmatpush1.bf16.msra.mxu1 %v15373_v55 }
 0x5da   :  { %3467 = vmatprep.subr.bf16.mxu0 %v15379_v56  ;;  %3508 = vmatprep.subr.bf16.mxu1 %v15381_v63 }
 0x5dd   :  { %3468 = vmatpush1.bf16.msra.mxu0 %v17165_v54  ;;  %3509 = vmatpush1.bf16.msra.mxu1 %v17166_v10 }
 0x5de   :  { %3469 = vmatprep.subr.bf16.mxu0 %v17167_v46  ;;  %3510 = vmatprep.subr.bf16.mxu1 %v17168_v47 }
 0x5e1   :  { %3470 = vmatpush1.bf16.msra.mxu0 %v17169_v7  ;;  %3511 = vmatpush1.bf16.msra.mxu1 %v17170_v1 }
 0x5e2   :  { %3471 = vmatprep.subr.bf16.mxu0 %v17171_v8  ;;  %3512 = vmatprep.subr.bf16.mxu1 %v17172_v9 }
 0x5e5   :  { %3472 = vmatpush1.bf16.msra.mxu0 %v17173_v4  ;;  %3513 = vmatpush1.bf16.msra.mxu1 %v17174_v58  ;;  %v2545_v58 = vld [vmem:[#allocation3 + $0x90] sm:$0xff] }
 0x5e6   :  { %3473 = vmatprep.subr.bf16.mxu0 %v17175_v43  ;;  %3514 = vmatprep.subr.bf16.mxu1 %v17176_v59  ;;  %v2546_v43 = vld [vmem:[#allocation3 + $0x98] sm:$0xff] }
 0x5e9   :  { %3474 = vmatpush1.bf16.msra.mxu0 %v17177_v6  ;;  %3515 = vmatpush1.bf16.msra.mxu1 %v17178_v5 }
 0x5ea   :  { %3475 = vmatprep.subr.bf16.mxu0 %v17179_v2  ;;  %3516 = vmatprep.subr.bf16.mxu1 %v17180_v57 }
 0x5ed   :  { %3476 = vmatpush1.bf16.msra.mxu0 %v17181_v12  ;;  %3517 = vmatpush1.bf16.msra.mxu1 %v17182_v61  ;;  %v2544_v12 = vld [vmem:[#allocation3 + $0x88] sm:$0xff] }
 0x5ee   :  { %3477 = vmatprep.subr.bf16.mxu0 %v17183_v15  ;;  %3518 = vmatprep.subr.bf16.mxu1 %v17184_v27 }
 0x5f1   :  { %3478 = vmatpush1.bf16.msra.mxu0 %v17185_v28  ;;  %3519 = vmatpush1.bf16.msra.mxu1 %v17186_v13 }
 0x5f2   :  { %3969 = vmatprep.subr.bf16.mxu0 %v15547_v14  ;;  %4010 = vmatprep.subr.bf16.mxu1 %v15549_v0 }
 0x687   :  { %v2965_v45 = vpop.f32.mrb[28].mxu0  ;;  %v3006_v39 = vpop.f32.mrb[28].mxu1 }
 0x688   :  { %v3013_v61 = vadd.f32 %v2965_v45, %v2543_v11  ;;  %v2967_v15 = vpop.f32.mrb[29].mxu0  ;;  %v3008_v57 = vpop.f32.mrb[29].mxu1  ;;  %v3015_v4 = vadd.f32 %v3006_v39, %v2545_v58 }
 0x689   :  { %v3014_v27 = vadd.f32 %v2967_v15, %v2544_v12  ;;  %v2969_v2 = vpop.f32.mrb[30].mxu0  ;;  %v3010_v28 = vpop.f32.mrb[30].mxu1  ;;  %v3016_v14 = vadd.f32 %v3008_v57, %v2546_v43 }
 0x68a   :  { %v11444_v5 = vmul.f32 -1.442695, %v3013_v61  ;;  %v2970_v13 = vpop.f32.mrb[31].mxu0  ;;  %v3011_v6 = vpop.f32.mrb[31].mxu1  ;;  %v17190_v61 = vstv %s15457_s7  ;;  %v15561_v28 = vld [vmem:[#allocation17] ss:$16 sps:$4 sm:$0xff]  }
 0x68b   :  { %v11445_v59 = vmul.f32 -1.442695, %v3014_v27  ;;  %v11446_v0 = vmul.f32 -1.442695, %v3016_v14  ;;  %v15563_v13 = vld [vmem:[#allocation17 + $0x8] ss:$16 sps:$4 sm:$0xff]  }
 0x68c   :  { %13689 = vpow2.f32 %v11444_v5  ;;  %v15565_v14 = vld [vmem:[#allocation17 + $0x24] ss:$16 sps:$4 sm:$0xff]   ;;  %s11929_s7 = sld [smem:[#allocation12 + $0x6]] }
 0x68d   :  { %13691 = vpow2.f32 %v11445_v59 }
 0x68e   :  { %13693 = vpow2.f32 %v11446_v0 }
 0x68f   :  { %13695 = vtanh.f32 %v3015_v4  ;;  %v17189_v4 = vstv %s15459_s17  ;;  %s12013_s17 = sld [smem:[#allocation11 + $0x2]] }
 0x696   :  { %v13690_v9 = vpop.eup %13689 }
 0x697   :  { %v13692_v8 = vpop.eup %13691  ;;  %v3020_v45 = vadd.f32 1.0, %v13690_v9 }
 0x698   :  { %v3026_v11 = vadd.f32 1.0, %v13692_v8  ;;  %v13694_v2 = vpop.eup %13693 }
 0x699   :  { %13697 = vrcp.f32 %v3020_v45  ;;  %v13696_v6 = vpop.eup %13695  ;;  %v3033_v43 = vadd.f32 1.0, %v13694_v2  ;;  %v17191_v45 = vstv %s15463_s0  ;;  %v17192_v2 = vstv %s15461_s30  ;;  %s12015_s30 = sld [smem:[#allocation11 + $0x5]]  ;;  %s12014_s0 = sld [smem:[#allocation12 + $0x2]] }
 0x69a   :  { %13699 = vrcp.f32 %v3026_v11 }
 0x69b   :  { %13701 = vrcp.f32 %v3033_v43 }
 0x6a3   :  { %v13698_v12 = vpop.eup %13697 }
 0x6a4   :  { %v13700_v5 = vpop.eup %13699  ;;  %v3037_v59 = vmul.f32 %v13698_v12, %v13696_v6  ;;  %v15583_v12 = vld [vmem:[#allocation17 + $0x20] ss:$16 sps:$4 sm:$0xff]  }
 0x6a5   :  { %v3036_v39 = vmul.f32 %v13700_v5, %v15454_v60  ;;  %v13702_v0 = vpop.eup %13701  ;;  %v15567_v60 = vld [vmem:[#allocation17 + $0x2c] ss:$16 sps:$4 sm:$0xff]   ;;  %v15585_v5 = vld [vmem:[#allocation17 + $0x28] ss:$16 sps:$4 sm:$0xff]  }
 0x6a7   :  { %v15554_v58 = vadd.f32 %v3037_v59, %v3036_v39 }
 0x6a9   :  { %13703 = vtanh.f32 %v15554_v58 }
 0x6b3   :  { %v13704_v8 = vpop.eup %13703 }
 0x6b4   :  { %v3040_v9 = vmul.f32 %v13704_v8, %v13702_v0 }
 0x6b6   :  { %v3043_v57 = vmul.f32 %v3040_v9, %v17189_v4  ;;  %v3050_v15 = vmul.f32 %v3040_v9, %v17190_v61  ;;  %v11518_v27 = vpack.c.bf16 %v3040_v9, %v3040_v9 }
 0x6b8   :  { %v3046_v11 = vadd.f32 %v3043_v57, %v17191_v45  ;;  %v3053_v6 = vadd.f32 %v3050_v15, %v17192_v2  ;;  %11519 = vmatprep.mubr.msk.bf16.mxu0 %vm14987_vm3, %v11518_v27  ;;  %11527 = vmatprep.mubr.msk.bf16.mxu1 %vm14987_vm3, %v11518_v27  ;;  %v3558_v45 = vstv %s11534_s16  ;;  %s12016_s16 = sld [smem:[#allocation12 + $0x5]] }
 0x6b9   :  { %11522 = vmatmul.mubr.msk.bf16.vlgmr.msra.gmra.mrb[32].mxu0 %vm14991_vm4, %v11518_v27  ;;  %11530 = vmatmul.mubr.msk.bf16.vlgmr.msra.gmra.mrb[32].mxu1 %vm14991_vm4, %v11518_v27 }
 0x6ba   :  { %3047 = vst [vmem:[#allocation2 + $0x20] sm:$0xf] %v3046_v11  ;;  %3054 = vst [vmem:[#allocation2 + $0x18] sm:$0xf0] %v3053_v6  ;;  %3970 = vmatpush1.bf16.msra.mxu0 %v15561_v28  ;;  %4011 = vmatpush1.bf16.msra.mxu1 %v15563_v13  ;;  %v3568_v11 = vstv %s11536_s5  ;;  %v3561_v6 = vstv %s11535_s27  ;;  %s16301_s5 = sld [smem:[#allocation11 + $0x3]]  ;;  %s16303_s27 = sld [smem:[#allocation11 + $0x4]] }
 0x6bb   :  { %3971 = vmatprep.subr.bf16.mxu0 %v15565_v14  ;;  %4012 = vmatprep.subr.bf16.mxu1 %v15567_v60 }
 0x6be   :  { %3972 = vmatpush1.bf16.msra.mxu0 %v15583_v12  ;;  %4013 = vmatpush1.bf16.msra.mxu1 %v15585_v5 }
 0x6bf   :  { %3973 = vmatprep.subr.bf16.mxu0 %v15281_v16  ;;  %4014 = vmatprep.subr.bf16.mxu1 %v15283_v17  ;;  %v17193_v16 = vld [vmem:[#allocation60_spill] sm:$0xff]  ;;  %v17194_v17 = vld [vmem:[#allocation62_spill] sm:$0xff] }
 0x6c2   :  { %3974 = vmatpush1.bf16.msra.mxu0 %v15287_v18  ;;  %4015 = vmatpush1.bf16.msra.mxu1 %v15289_v19  ;;  %v17195_v18 = vld [vmem:[#allocation59_spill] sm:$0xff]  ;;  %v17196_v19 = vld [vmem:[#allocation61_spill] sm:$0xff] }
 0x6c3   :  { %3975 = vmatprep.subr.bf16.mxu0 %v15293_v20  ;;  %4016 = vmatprep.subr.bf16.mxu1 %v15295_v21  ;;  %v17197_v20 = vld [vmem:[#allocation63_spill] sm:$0xff]  ;;  %v17198_v21 = vld [vmem:[#allocation64_spill] sm:$0xff] }
 0x6c6   :  { %3976 = vmatpush1.bf16.msra.mxu0 %v15299_v22  ;;  %4017 = vmatpush1.bf16.msra.mxu1 %v15301_v23  ;;  %v17199_v22 = vld [vmem:[#allocation65_spill] sm:$0xff]  ;;  %v17200_v23 = vld [vmem:[#allocation66_spill] sm:$0xff] }
 0x6c7   :  { %3977 = vmatprep.subr.bf16.mxu0 %v15307_v24  ;;  %4018 = vmatprep.subr.bf16.mxu1 %v15309_v25  ;;  %v17201_v24 = vld [vmem:[#allocation67_spill] sm:$0xff]  ;;  %v17202_v25 = vld [vmem:[#allocation68_spill] sm:$0xff] }
 0x6ca   :  { %3978 = vmatpush1.bf16.msra.mxu0 %v15311_v26  ;;  %4019 = vmatpush1.bf16.msra.mxu1 %v15313_v29  ;;  %v17203_v26 = vld [vmem:[#allocation69_spill] sm:$0xff]  ;;  %v17204_v29 = vld [vmem:[#allocation70_spill] sm:$0xff] }
 0x6cb   :  { %3979 = vmatprep.subr.bf16.mxu0 %v15319_v30  ;;  %4020 = vmatprep.subr.bf16.mxu1 %v15321_v31  ;;  %v17205_v30 = vld [vmem:[#allocation71_spill] sm:$0xff]  ;;  %v17206_v31 = vld [vmem:[#allocation72_spill] sm:$0xff] }
 0x6ce   :  { %3980 = vmatpush1.bf16.msra.mxu0 %v15323_v32  ;;  %4021 = vmatpush1.bf16.msra.mxu1 %v15325_v33  ;;  %v17207_v32 = vld [vmem:[#allocation73_spill] sm:$0xff]  ;;  %v17208_v33 = vld [vmem:[#allocation74_spill] sm:$0xff] }
 0x6cf   :  { %3981 = vmatprep.subr.bf16.mxu0 %v15331_v34  ;;  %4022 = vmatprep.subr.bf16.mxu1 %v15333_v35  ;;  %v17209_v34 = vld [vmem:[#allocation53_spill] sm:$0xff]  ;;  %v17210_v35 = vld [vmem:[#allocation54_spill] sm:$0xff] }
 0x6d2   :  { %3982 = vmatpush1.bf16.msra.mxu0 %v15335_v36  ;;  %4023 = vmatpush1.bf16.msra.mxu1 %v15337_v37  ;;  %v3059_v36 = vld [vmem:[#allocation3 + $0xa0] sm:$0xff] }
 0x6d3   :  { %3983 = vmatprep.subr.bf16.mxu0 %v15343_v38  ;;  %4024 = vmatprep.subr.bf16.mxu1 %v15345_v41 }
 0x6d6   :  { %3984 = vmatpush1.bf16.msra.mxu0 %v15347_v42  ;;  %4025 = vmatpush1.bf16.msra.mxu1 %v15349_v44  ;;  %v3060_v42 = vld [vmem:[#allocation3 + $0xa8] sm:$0xff] }
 0x6d7   :  { %3985 = vmatprep.subr.bf16.mxu0 %v15355_v40  ;;  %4026 = vmatprep.subr.bf16.mxu1 %v15357_v48 }
 0x6da   :  { %3986 = vmatpush1.bf16.msra.mxu0 %v15359_v49  ;;  %4027 = vmatpush1.bf16.msra.mxu1 %v15361_v50 }
 0x6db   :  { %3987 = vmatprep.subr.bf16.mxu0 %v15367_v51  ;;  %4028 = vmatprep.subr.bf16.mxu1 %v15369_v52 }
 0x6de   :  { %3988 = vmatpush1.bf16.msra.mxu0 %v15371_v53  ;;  %4029 = vmatpush1.bf16.msra.mxu1 %v15373_v55 }
 0x6df   :  { %3989 = vmatprep.subr.bf16.mxu0 %v15379_v56  ;;  %4030 = vmatprep.subr.bf16.mxu1 %v15381_v63  ;;  %v3062_v56 = vld [vmem:[#allocation3 + $0xb8] sm:$0xff] }
 0x6e2   :  { %3990 = vmatpush1.bf16.msra.mxu0 %v17165_v54  ;;  %4031 = vmatpush1.bf16.msra.mxu1 %v17166_v10  ;;  %v3061_v54 = vld [vmem:[#allocation3 + $0xb0] sm:$0xff] }
 0x6e3   :  { %3991 = vmatprep.subr.bf16.mxu0 %v17167_v46  ;;  %4032 = vmatprep.subr.bf16.mxu1 %v17168_v47 }
 0x6e6   :  { %3992 = vmatpush1.bf16.msra.mxu0 %v17169_v7  ;;  %4033 = vmatpush1.bf16.msra.mxu1 %v17170_v1 }
 0x6e7   :  { %3993 = vmatprep.subr.bf16.mxu0 %v17193_v16  ;;  %4034 = vmatprep.subr.bf16.mxu1 %v17194_v17  ;;  %v3571_v16 = vstv %s11537_s9  ;;  %s16305_s9 = sld [smem:[#allocation12 + $0x3]] }
 0x6ea   :  { %3994 = vmatpush1.bf16.msra.mxu0 %v17195_v18  ;;  %4035 = vmatpush1.bf16.msra.mxu1 %v17196_v19 }
 0x6eb   :  { %3995 = vmatprep.subr.bf16.mxu0 %v17197_v20  ;;  %4036 = vmatprep.subr.bf16.mxu1 %v17198_v21 }
 0x6ee   :  { %3996 = vmatpush1.bf16.msra.mxu0 %v17199_v22  ;;  %4037 = vmatpush1.bf16.msra.mxu1 %v17200_v23  ;;  %v12935_v23 = vld [vmem:[#allocation17 + $0x44] ss:$16 sps:$4 sm:$0xff]  }
 0x6ef   :  { %3997 = vmatprep.subr.bf16.mxu0 %v17201_v24  ;;  %4038 = vmatprep.subr.bf16.mxu1 %v17202_v25  ;;  %v12938_v24 = vld [vmem:[#allocation17 + $0x4c] ss:$16 sps:$4 sm:$0xff]   ;;  %v12933_v25 = vld [vmem:[#allocation17 + $0x40] ss:$16 sps:$4 sm:$0xff]  }
 0x6f2   :  { %3998 = vmatpush1.bf16.msra.mxu0 %v17203_v26  ;;  %4039 = vmatpush1.bf16.msra.mxu1 %v17204_v29  ;;  %v12936_v26 = vld [vmem:[#allocation17 + $0x48] ss:$16 sps:$4 sm:$0xff]   ;;  %v12941_v29 = vld [vmem:[#allocation17 + $0x64] ss:$16 sps:$4 sm:$0xff]  }
 0x6f3   :  { %3999 = vmatprep.subr.bf16.mxu0 %v17205_v30  ;;  %4040 = vmatprep.subr.bf16.mxu1 %v17206_v31  ;;  %v12950_v30 = vld [vmem:[#allocation17 + $0x8c] ss:$16 sps:$4 sm:$0xff]   ;;  %v12945_v31 = vld [vmem:[#allocation17 + $0x80] ss:$16 sps:$4 sm:$0xff]  }
 0x6f6   :  { %4000 = vmatpush1.bf16.msra.mxu0 %v17207_v32  ;;  %4041 = vmatpush1.bf16.msra.mxu1 %v17208_v33  ;;  %v12956_v32 = vld [vmem:[#allocation17 + $0xac] ss:$16 sps:$4 sm:$0xff]   ;;  %v12951_v33 = vld [vmem:[#allocation17 + $0xa0] ss:$16 sps:$4 sm:$0xff]  }
 0x6f7   :  { %4485 = vmatprep.subr.bf16.mxu0 %v17209_v34  ;;  %4526 = vmatprep.subr.bf16.mxu1 %v17210_v35  ;;  %v12954_v34 = vld [vmem:[#allocation17 + $0xa8] ss:$16 sps:$4 sm:$0xff]   ;;  %v12959_v35 = vld [vmem:[#allocation17 + $0xc4] ss:$16 sps:$4 sm:$0xff]  }
 0x78c   :  { %v3481_v37 = vpop.f32.mrb[32].mxu0  ;;  %v3522_v38 = vpop.f32.mrb[32].mxu1 }
 0x78d   :  { %v3529_v41 = vadd.f32 %v3481_v37, %v3059_v36  ;;  %v3483_v44 = vpop.f32.mrb[33].mxu0  ;;  %v3524_v40 = vpop.f32.mrb[33].mxu1  ;;  %v3531_v46 = vadd.f32 %v3522_v38, %v3061_v54  ;;  %v12962_v36 = vld [vmem:[#allocation17 + $0xcc] ss:$16 sps:$4 sm:$0xff]   ;;  %v12957_v37 = vld [vmem:[#allocation17 + $0xc0] ss:$16 sps:$4 sm:$0xff]  }
 0x78e   :  { %v3530_v48 = vadd.f32 %v3483_v44, %v3060_v42  ;;  %v3485_v49 = vpop.f32.mrb[34].mxu0  ;;  %v3526_v50 = vpop.f32.mrb[34].mxu1  ;;  %v3532_v63 = vadd.f32 %v3524_v40, %v3062_v56  ;;  %v12960_v38 = vld [vmem:[#allocation17 + $0xc8] ss:$16 sps:$4 sm:$0xff]   ;;  %v12968_v42 = vld [vmem:[#allocation17 + $0xec] ss:$16 sps:$4 sm:$0xff]  }
 0x78f   :  { %v11531_v51 = vmul.f32 -1.442695, %v3529_v41  ;;  %v3486_v52 = vpop.f32.mrb[35].mxu0  ;;  %v3527_v53 = vpop.f32.mrb[35].mxu1  ;;  %v12965_v41 = vld [vmem:[#allocation17 + $0xe4] ss:$16 sps:$4 sm:$0xff]  }
 0x790   :  { %v11532_v55 = vmul.f32 -1.442695, %v3530_v48  ;;  %v11533_v10 = vmul.f32 -1.442695, %v3532_v63  ;;  %v12963_v44 = vld [vmem:[#allocation17 + $0xe0] ss:$16 sps:$4 sm:$0xff]  }
 0x791   :  { %13705 = vpow2.f32 %v11531_v51  ;;  %v12966_v40 = vld [vmem:[#allocation17 + $0xe8] ss:$16 sps:$4 sm:$0xff]   ;;  %v12971_v48 = vld [vmem:[#allocation17 + $0x104] ss:$16 sps:$4 sm:$0xff]   ;;  %v12974_v49 = vld [vmem:[#allocation17 + $0x10c] ss:$16 sps:$4 sm:$0xff]  }
 0x792   :  { %13707 = vpow2.f32 %v11532_v55  ;;  %v12969_v50 = vld [vmem:[#allocation17 + $0x100] ss:$16 sps:$4 sm:$0xff]   ;;  %v12972_v51 = vld [vmem:[#allocation17 + $0x108] ss:$16 sps:$4 sm:$0xff]   ;;  %v12977_v52 = vld [vmem:[#allocation17 + $0x124] ss:$16 sps:$4 sm:$0xff]  }
 0x793   :  { %13709 = vpow2.f32 %v11533_v10  ;;  %v12980_v53 = vld [vmem:[#allocation17 + $0x12c] ss:$16 sps:$4 sm:$0xff]   ;;  %v12975_v55 = vld [vmem:[#allocation17 + $0x120] ss:$16 sps:$4 sm:$0xff]   ;;  %v12978_v56 = vld [vmem:[#allocation17 + $0x128] ss:$16 sps:$4 sm:$0xff]  }
 0x794   :  { %13711 = vtanh.f32 %v3531_v46  ;;  %v12983_v63 = vld [vmem:[#allocation17 + $0x144] ss:$16 sps:$4 sm:$0xff]   ;;  %v12986_v54 = vld [vmem:[#allocation17 + $0x14c] ss:$16 sps:$4 sm:$0xff]   ;;  %v12981_v10 = vld [vmem:[#allocation17 + $0x140] ss:$16 sps:$4 sm:$0xff]  }
 0x795   :  { %v12984_v46 = vld [vmem:[#allocation17 + $0x148] ss:$16 sps:$4 sm:$0xff]  }
 0x79b   :  { %v13706_v47 = vpop.eup %13705 }
 0x79c   :  { %v13708_v7 = vpop.eup %13707  ;;  %v3536_v1 = vadd.f32 1.0, %v13706_v47  ;;  %v12989_v47 = vld [vmem:[#allocation17 + $0x164] ss:$16 sps:$4 sm:$0xff]  }
 0x79d   :  { %v3542_v59 = vadd.f32 1.0, %v13708_v7  ;;  %v13710_v43 = vpop.eup %13709  ;;  %v12992_v7 = vld [vmem:[#allocation17 + $0x16c] ss:$16 sps:$4 sm:$0xff]  }
 0x79e   :  { %13713 = vrcp.f32 %v3536_v1  ;;  %v13712_v39 = vpop.eup %13711  ;;  %v3549_v4 = vadd.f32 1.0, %v13710_v43  ;;  %v12987_v1 = vld [vmem:[#allocation17 + $0x160] ss:$16 sps:$4 sm:$0xff]  }
 0x79f   :  { %13715 = vrcp.f32 %v3542_v59  ;;  %v12990_v59 = vld [vmem:[#allocation17 + $0x168] ss:$16 sps:$4 sm:$0xff]   ;;  %v12993_v43 = vld [vmem:[#allocation17 + $0x180] ss:$16 sps:$4 sm:$0xff]  }
 0x7a0   :  { %13717 = vrcp.f32 %v3549_v4  ;;  %v13004_v4 = vld [vmem:[#allocation17 + $0x1ac] ss:$16 sps:$4 sm:$0xff]  }
 0x7a8   :  { %v13714_v0 = vpop.eup %13713 }
 0x7a9   :  { %v13716_v8 = vpop.eup %13715  ;;  %v3553_v9 = vmul.f32 %v13714_v0, %v13712_v39  ;;  %v12995_v39 = vld [vmem:[#allocation17 + $0x184] ss:$16 sps:$4 sm:$0xff]   ;;  %v12996_v0 = vld [vmem:[#allocation17 + $0x188] ss:$16 sps:$4 sm:$0xff]  }
 0x7aa   :  { %v3552_v57 = vmul.f32 %v13716_v8, %v15554_v58  ;;  %v13718_v15 = vpop.eup %13717  ;;  %v12998_v8 = vld [vmem:[#allocation17 + $0x18c] ss:$16 sps:$4 sm:$0xff]  }
 0x7ac   :  { %v15650_v61 = vadd.f32 %v3553_v9, %v3552_v57  ;;  %v13001_v9 = vld [vmem:[#allocation17 + $0x1a4] ss:$16 sps:$4 sm:$0xff]   ;;  %v12999_v57 = vld [vmem:[#allocation17 + $0x1a0] ss:$16 sps:$4 sm:$0xff]  }
 0x7ae   :  { %13719 = vtanh.f32 %v15650_v61 }
 0x7b8   :  { %v13720_v27 = vpop.eup %13719 }
 0x7b9   :  { %v3556_v2 = vmul.f32 %v13720_v27, %v13718_v15  ;;  %v13002_v15 = vld [vmem:[#allocation17 + $0x1a8] ss:$16 sps:$4 sm:$0xff]   ;;  %v13007_v27 = vld [vmem:[#allocation17 + $0x1c4] ss:$16 sps:$4 sm:$0xff]  }
 0x7bb   :  { %v3559_v17 = vmul.f32 %v3558_v45, %v3556_v2  ;;  %v3569_v18 = vmul.f32 %v3568_v11, %v3556_v2  ;;  %v11605_v19 = vpack.c.bf16 %v3556_v2, %v3556_v2  ;;  %v13010_v45 = vld [vmem:[#allocation17 + $0x1cc] ss:$16 sps:$4 sm:$0xff]   ;;  %v13005_v11 = vld [vmem:[#allocation17 + $0x1c0] ss:$16 sps:$4 sm:$0xff]   ;;  %v13008_v2 = vld [vmem:[#allocation17 + $0x1c8] ss:$16 sps:$4 sm:$0xff]  }
 0x7bd   :  { %v3562_v58 = vadd.f32 %v3561_v6, %v3559_v17  ;;  %v3572_v20 = vadd.f32 %v3571_v16, %v3569_v18  ;;  %11606 = vmatprep.mubr.msk.bf16.mxu0 %vm14987_vm3, %v11605_v19  ;;  %11614 = vmatprep.mubr.msk.bf16.mxu1 %vm14987_vm3, %v11605_v19  ;;  %v13013_v6 = vld [vmem:[#allocation17 + $0x1e4] ss:$16 sps:$4 sm:$0xff]   ;;  %v13016_v16 = vld [vmem:[#allocation17 + $0x1ec] ss:$16 sps:$4 sm:$0xff]   ;;  %v13011_v17 = vld [vmem:[#allocation17 + $0x1e0] ss:$16 sps:$4 sm:$0xff]  }
 0x7be   :  { %11609 = vmatmul.mubr.msk.bf16.vlgmr.msra.gmra.mrb[36].mxu0 %vm14991_vm4, %v11605_v19  ;;  %11617 = vmatmul.mubr.msk.bf16.vlgmr.msra.gmra.mrb[36].mxu1 %vm14991_vm4, %v11605_v19  ;;  %v13014_v18 = vld [vmem:[#allocation17 + $0x1e8] ss:$16 sps:$4 sm:$0xff]   ;;  %v13019_v19 = vld [vmem:[#allocation18 + $0x4] ss:$16 sps:$4 sm:$0xff]  }
 0x7bf   :  { %v3564_v21 = vrot.slane %v3562_v58, 4  ;;  %v3574_v22 = vrot.slane %v3572_v20, 4  ;;  %4486 = vmatpush1.bf16.msra.mxu0 %v15561_v28  ;;  %4527 = vmatpush1.bf16.msra.mxu1 %v15563_v13  ;;  %v12944_v28 = vld [vmem:[#allocation17 + $0x6c] ss:$16 sps:$4 sm:$0xff]   ;;  %v12939_v13 = vld [vmem:[#allocation17 + $0x60] ss:$16 sps:$4 sm:$0xff]  }
 0x7c0   :  { %4487 = vmatprep.subr.bf16.mxu0 %v15565_v14  ;;  %4528 = vmatprep.subr.bf16.mxu1 %v15567_v60  ;;  %v12942_v14 = vld [vmem:[#allocation17 + $0x68] ss:$16 sps:$4 sm:$0xff]   ;;  %v12947_v60 = vld [vmem:[#allocation17 + $0x84] ss:$16 sps:$4 sm:$0xff]   ;;  %v13022_v58 = vld [vmem:[#allocation18 + $0xc] ss:$16 sps:$4 sm:$0xff]  }
 0x7c1   :  { %3566 = vst [vmem:[#allocation2 + $0x20] sm:$0xf0] %v3564_v21  ;;  %3576 = vst [vmem:[#allocation2 + $0x18] sm:$0xf] %v3574_v22  ;;  %v3581_v20 = vld [vmem:[#allocation3 + $0xc0] sm:$0xff] }
 0x7c3   :  { %4488 = vmatpush1.bf16.msra.mxu0 %v15583_v12  ;;  %4529 = vmatpush1.bf16.msra.mxu1 %v15585_v5  ;;  %v12948_v12 = vld [vmem:[#allocation17 + $0x88] ss:$16 sps:$4 sm:$0xff]   ;;  %v12953_v5 = vld [vmem:[#allocation17 + $0xa4] ss:$16 sps:$4 sm:$0xff]  }
 0x7c4   :  { %4489 = vmatprep.subr.bf16.mxu0 %v12935_v23  ;;  %4530 = vmatprep.subr.bf16.mxu1 %v12938_v24  ;;  %v3582_v24 = vld [vmem:[#allocation3 + $0xc8] sm:$0xff] }
 0x7c7   :  { %4490 = vmatpush1.bf16.msra.mxu0 %v12933_v25  ;;  %4531 = vmatpush1.bf16.msra.mxu1 %v12936_v26 }
 0x7c8   :  { %4491 = vmatprep.subr.bf16.mxu0 %v12941_v29  ;;  %4532 = vmatprep.subr.bf16.mxu1 %v12944_v28 }
 0x7cb   :  { %4492 = vmatpush1.bf16.msra.mxu0 %v12939_v13  ;;  %4533 = vmatpush1.bf16.msra.mxu1 %v12942_v14 }
 0x7cc   :  { %4493 = vmatprep.subr.bf16.mxu0 %v12947_v60  ;;  %4534 = vmatprep.subr.bf16.mxu1 %v12950_v30 }
 0x7cf   :  { %4494 = vmatpush1.bf16.msra.mxu0 %v12945_v31  ;;  %4535 = vmatpush1.bf16.msra.mxu1 %v12948_v12  ;;  %v3584_v12 = vld [vmem:[#allocation3 + $0xd8] sm:$0xff] }
 0x7d0   :  { %4495 = vmatprep.subr.bf16.mxu0 %v12953_v5  ;;  %4536 = vmatprep.subr.bf16.mxu1 %v12956_v32  ;;  %v3583_v32 = vld [vmem:[#allocation3 + $0xd0] sm:$0xff] }
 0x7d3   :  { %4496 = vmatpush1.bf16.msra.mxu0 %v12951_v33  ;;  %4537 = vmatpush1.bf16.msra.mxu1 %v12954_v34 }
 0x7d4   :  { %4497 = vmatprep.subr.bf16.mxu0 %v12959_v35  ;;  %4538 = vmatprep.subr.bf16.mxu1 %v12962_v36 }
 0x7d7   :  { %4498 = vmatpush1.bf16.msra.mxu0 %v12957_v37  ;;  %4539 = vmatpush1.bf16.msra.mxu1 %v12960_v38 }
 0x7d8   :  { %4499 = vmatprep.subr.bf16.mxu0 %v12965_v41  ;;  %4540 = vmatprep.subr.bf16.mxu1 %v12968_v42 }
 0x7db   :  { %4500 = vmatpush1.bf16.msra.mxu0 %v12963_v44  ;;  %4541 = vmatpush1.bf16.msra.mxu1 %v12966_v40 }
 0x7dc   :  { %4501 = vmatprep.subr.bf16.mxu0 %v12971_v48  ;;  %4542 = vmatprep.subr.bf16.mxu1 %v12974_v49 }
 0x7df   :  { %4502 = vmatpush1.bf16.msra.mxu0 %v12969_v50  ;;  %4543 = vmatpush1.bf16.msra.mxu1 %v12972_v51 }
 0x7e0   :  { %4503 = vmatprep.subr.bf16.mxu0 %v12977_v52  ;;  %4544 = vmatprep.subr.bf16.mxu1 %v12980_v53 }
 0x7e3   :  { %4504 = vmatpush1.bf16.msra.mxu0 %v12975_v55  ;;  %4545 = vmatpush1.bf16.msra.mxu1 %v12978_v56  ;;  %v4080_v55 = vstv %s11621_s21  ;;  %v4087_v56 = vstv %s11623_s4  ;;  %s16307_s21 = sld [smem:[#allocation12 + $0x4]]  ;;  %s12274_s4 = sld [smem:[#allocation11 + $0x5]] }
 0x7e4   :  { %4505 = vmatprep.subr.bf16.mxu0 %v12983_v63  ;;  %4546 = vmatprep.subr.bf16.mxu1 %v12986_v54  ;;  %v4083_v54 = vstv %s11622_s28  ;;  %s12276_s28 = sld [smem:[#allocation11 + $0x2]] }
 0x7e7   :  { %4506 = vmatpush1.bf16.msra.mxu0 %v12981_v10  ;;  %4547 = vmatpush1.bf16.msra.mxu1 %v12984_v46  ;;  %v4090_v10 = vstv %s11624_s11  ;;  %s12275_s11 = sld [smem:[#allocation12 + $0x5]] }
 0x7e8   :  { %4507 = vmatprep.subr.bf16.mxu0 %v12989_v47  ;;  %4548 = vmatprep.subr.bf16.mxu1 %v12992_v7 }
 0x7eb   :  { %4508 = vmatpush1.bf16.msra.mxu0 %v12987_v1  ;;  %4549 = vmatpush1.bf16.msra.mxu1 %v12990_v59  ;;  %v13020_v1 = vld [vmem:[#allocation18 + $0x8] ss:$16 sps:$4 sm:$0xff]  }
 0x7ec   :  { %4509 = vmatprep.subr.bf16.mxu0 %v12995_v39  ;;  %4550 = vmatprep.subr.bf16.mxu1 %v12998_v8  ;;  %v13025_v39 = vld [vmem:[#allocation18 + $0x24] ss:$16 sps:$4 sm:$0xff]   ;;  %v13023_v8 = vld [vmem:[#allocation18 + $0x20] ss:$16 sps:$4 sm:$0xff]  }
 0x7ef   :  { %4510 = vmatpush1.bf16.msra.mxu0 %v12993_v43  ;;  %4551 = vmatpush1.bf16.msra.mxu1 %v12996_v0  ;;  %v13028_v0 = vld [vmem:[#allocation18 + $0x2c] ss:$16 sps:$4 sm:$0xff]  }
 0x7f0   :  { %4511 = vmatprep.subr.bf16.mxu0 %v13001_v9  ;;  %4552 = vmatprep.subr.bf16.mxu1 %v13004_v4  ;;  %v13026_v9 = vld [vmem:[#allocation18 + $0x28] ss:$16 sps:$4 sm:$0xff]   ;;  %v13031_v4 = vld [vmem:[#allocation18 + $0x44] ss:$16 sps:$4 sm:$0xff]  }
 0x7f3   :  { %4512 = vmatpush1.bf16.msra.mxu0 %v12999_v57  ;;  %4553 = vmatpush1.bf16.msra.mxu1 %v13002_v15  ;;  %v13034_v57 = vld [vmem:[#allocation18 + $0x4c] ss:$16 sps:$4 sm:$0xff]   ;;  %v13029_v15 = vld [vmem:[#allocation18 + $0x40] ss:$16 sps:$4 sm:$0xff]  }
 0x7f4   :  { %4513 = vmatprep.subr.bf16.mxu0 %v13007_v27  ;;  %4554 = vmatprep.subr.bf16.mxu1 %v13010_v45  ;;  %v13032_v27 = vld [vmem:[#allocation18 + $0x48] ss:$16 sps:$4 sm:$0xff]   ;;  %v13037_v45 = vld [vmem:[#allocation18 + $0x64] ss:$16 sps:$4 sm:$0xff]  }
 0x7f7   :  { %4514 = vmatpush1.bf16.msra.mxu0 %v13005_v11  ;;  %4555 = vmatpush1.bf16.msra.mxu1 %v13008_v2  ;;  %v13040_v11 = vld [vmem:[#allocation18 + $0x6c] ss:$16 sps:$4 sm:$0xff]   ;;  %v13035_v2 = vld [vmem:[#allocation18 + $0x60] ss:$16 sps:$4 sm:$0xff]  }
 0x7f8   :  { %4515 = vmatprep.subr.bf16.mxu0 %v13013_v6  ;;  %4556 = vmatprep.subr.bf16.mxu1 %v13016_v16  ;;  %v13038_v6 = vld [vmem:[#allocation18 + $0x68] ss:$16 sps:$4 sm:$0xff]   ;;  %v13043_v16 = vld [vmem:[#allocation18 + $0x84] ss:$16 sps:$4 sm:$0xff]  }
 0x7fb   :  { %4516 = vmatpush1.bf16.msra.mxu0 %v13011_v17  ;;  %4557 = vmatpush1.bf16.msra.mxu1 %v13014_v18  ;;  %v13046_v17 = vld [vmem:[#allocation18 + $0x8c] ss:$16 sps:$4 sm:$0xff]   ;;  %v13041_v18 = vld [vmem:[#allocation18 + $0x80] ss:$16 sps:$4 sm:$0xff]  }
 0x7fc   :  { %5033 = vmatprep.subr.bf16.mxu0 %v13019_v19  ;;  %5086 = vmatprep.subr.bf16.mxu1 %v13022_v58  ;;  %v13044_v19 = vld [vmem:[#allocation18 + $0x88] ss:$16 sps:$4 sm:$0xff]   ;;  %v13049_v58 = vld [vmem:[#allocation18 + $0xa4] ss:$16 sps:$4 sm:$0xff]  }
 0x891   :  { %v4003_v21 = vpop.f32.mrb[36].mxu0  ;;  %v4044_v22 = vpop.f32.mrb[36].mxu1 }
 0x892   :  { %v4051_v23 = vadd.f32 %v4003_v21, %v3581_v20  ;;  %v4005_v25 = vpop.f32.mrb[37].mxu0  ;;  %v4046_v26 = vpop.f32.mrb[37].mxu1  ;;  %v4053_v34 = vadd.f32 %v4044_v22, %v3583_v32  ;;  %v13052_v20 = vld [vmem:[#allocation18 + $0xac] ss:$16 sps:$4 sm:$0xff]   ;;  %v13047_v21 = vld [vmem:[#allocation18 + $0xa0] ss:$16 sps:$4 sm:$0xff]  }
 0x893   :  { %v4052_v29 = vadd.f32 %v4005_v25, %v3582_v24  ;;  %v4007_v28 = vpop.f32.mrb[38].mxu0  ;;  %v4048_v13 = vpop.f32.mrb[38].mxu1  ;;  %v4054_v5 = vadd.f32 %v4046_v26, %v3584_v12  ;;  %v13050_v22 = vld [vmem:[#allocation18 + $0xa8] ss:$16 sps:$4 sm:$0xff]   ;;  %v13058_v24 = vld [vmem:[#allocation18 + $0xcc] ss:$16 sps:$4 sm:$0xff]  }
 0x894   :  { %v11618_v14 = vmul.f32 -1.442695, %v4051_v23  ;;  %v4008_v60 = vpop.f32.mrb[39].mxu0  ;;  %v4049_v30 = vpop.f32.mrb[39].mxu1  ;;  %v13055_v23 = vld [vmem:[#allocation18 + $0xc4] ss:$16 sps:$4 sm:$0xff]  }
 0x895   :  { %v11619_v31 = vmul.f32 -1.442695, %v4052_v29  ;;  %v11620_v33 = vmul.f32 -1.442695, %v4054_v5  ;;  %v13053_v25 = vld [vmem:[#allocation18 + $0xc0] ss:$16 sps:$4 sm:$0xff]  }
 0x896   :  { %13721 = vpow2.f32 %v11618_v14  ;;  %v13056_v26 = vld [vmem:[#allocation18 + $0xc8] ss:$16 sps:$4 sm:$0xff]   ;;  %v13061_v29 = vld [vmem:[#allocation18 + $0xe4] ss:$16 sps:$4 sm:$0xff]   ;;  %v13064_v28 = vld [vmem:[#allocation18 + $0xec] ss:$16 sps:$4 sm:$0xff]  }
 0x897   :  { %13723 = vpow2.f32 %v11619_v31  ;;  %v13059_v13 = vld [vmem:[#allocation18 + $0xe0] ss:$16 sps:$4 sm:$0xff]   ;;  %v13062_v14 = vld [vmem:[#allocation18 + $0xe8] ss:$16 sps:$4 sm:$0xff]   ;;  %v13067_v60 = vld [vmem:[#allocation18 + $0x104] ss:$16 sps:$4 sm:$0xff]  }
 0x898   :  { %13725 = vpow2.f32 %v11620_v33  ;;  %v13070_v30 = vld [vmem:[#allocation18 + $0x10c] ss:$16 sps:$4 sm:$0xff]   ;;  %v13065_v31 = vld [vmem:[#allocation18 + $0x100] ss:$16 sps:$4 sm:$0xff]   ;;  %v13068_v12 = vld [vmem:[#allocation18 + $0x108] ss:$16 sps:$4 sm:$0xff]  }
 0x899   :  { %13727 = vtanh.f32 %v4053_v34  ;;  %v13073_v5 = vld [vmem:[#allocation18 + $0x124] ss:$16 sps:$4 sm:$0xff]   ;;  %v13076_v32 = vld [vmem:[#allocation18 + $0x12c] ss:$16 sps:$4 sm:$0xff]   ;;  %v13071_v33 = vld [vmem:[#allocation18 + $0x120] ss:$16 sps:$4 sm:$0xff]  }
 0x89a   :  { %v13074_v34 = vld [vmem:[#allocation18 + $0x128] ss:$16 sps:$4 sm:$0xff]  }
 0x8a0   :  { %v13722_v35 = vpop.eup %13721 }
 0x8a1   :  { %v13724_v36 = vpop.eup %13723  ;;  %v4058_v37 = vadd.f32 1.0, %v13722_v35  ;;  %v13079_v35 = vld [vmem:[#allocation18 + $0x144] ss:$16 sps:$4 sm:$0xff]  }
 0x8a2   :  { %v4064_v38 = vadd.f32 1.0, %v13724_v36  ;;  %v13726_v41 = vpop.eup %13725  ;;  %v13082_v36 = vld [vmem:[#allocation18 + $0x14c] ss:$16 sps:$4 sm:$0xff]  }
 0x8a3   :  { %13729 = vrcp.f32 %v4058_v37  ;;  %v13728_v42 = vpop.eup %13727  ;;  %v4071_v49 = vadd.f32 1.0, %v13726_v41  ;;  %v13077_v37 = vld [vmem:[#allocation18 + $0x140] ss:$16 sps:$4 sm:$0xff]   ;;  %v13085_v41 = vld [vmem:[#allocation18 + $0x164] ss:$16 sps:$4 sm:$0xff]  }
 0x8a4   :  { %13731 = vrcp.f32 %v4064_v38  ;;  %v13080_v38 = vld [vmem:[#allocation18 + $0x148] ss:$16 sps:$4 sm:$0xff]  }
 0x8a5   :  { %13733 = vrcp.f32 %v4071_v49  ;;  %v13094_v49 = vld [vmem:[#allocation18 + $0x18c] ss:$16 sps:$4 sm:$0xff]  }
 0x8ad   :  { %v13730_v44 = vpop.eup %13729 }
 0x8ae   :  { %v13732_v40 = vpop.eup %13731  ;;  %v4075_v48 = vmul.f32 %v13730_v44, %v13728_v42  ;;  %v13088_v42 = vld [vmem:[#allocation18 + $0x16c] ss:$16 sps:$4 sm:$0xff]   ;;  %v13083_v44 = vld [vmem:[#allocation18 + $0x160] ss:$16 sps:$4 sm:$0xff]  }
 0x8af   :  { %v4074_v50 = vmul.f32 %v13732_v40, %v15650_v61  ;;  %v13734_v52 = vpop.eup %13733  ;;  %v13017_v61 = vld [vmem:[#allocation18] ss:$16 sps:$4 sm:$0xff]   ;;  %v13086_v40 = vld [vmem:[#allocation18 + $0x168] ss:$16 sps:$4 sm:$0xff]  }
 0x8b1   :  { %v15668_v51 = vadd.f32 %v4075_v48, %v4074_v50  ;;  %v13091_v48 = vld [vmem:[#allocation18 + $0x184] ss:$16 sps:$4 sm:$0xff]   ;;  %v13089_v50 = vld [vmem:[#allocation18 + $0x180] ss:$16 sps:$4 sm:$0xff]  }
 0x8b3   :  { %13735 = vtanh.f32 %v15668_v51 }
 0x8bd   :  { %v13736_v53 = vpop.eup %13735 }
 0x8be   :  { %v4078_v63 = vmul.f32 %v13736_v53, %v13734_v52  ;;  %v13092_v52 = vld [vmem:[#allocation18 + $0x188] ss:$16 sps:$4 sm:$0xff]   ;;  %v13097_v53 = vld [vmem:[#allocation18 + $0x1a4] ss:$16 sps:$4 sm:$0xff]  }
 0x8c0   :  { %v4081_v46 = vmul.f32 %v4080_v55, %v4078_v63  ;;  %v4088_v47 = vmul.f32 %v4087_v56, %v4078_v63  ;;  %v11692_v7 = vpack.c.bf16 %v4078_v63, %v4078_v63  ;;  %v13100_v55 = vld [vmem:[#allocation18 + $0x1ac] ss:$16 sps:$4 sm:$0xff]   ;;  %v13095_v56 = vld [vmem:[#allocation18 + $0x1a0] ss:$16 sps:$4 sm:$0xff]   ;;  %v13098_v63 = vld [vmem:[#allocation18 + $0x1a8] ss:$16 sps:$4 sm:$0xff]  }
 0x8c2   :  { %v4084_v59 = vadd.f32 %v4083_v54, %v4081_v46  ;;  %v4091_v43 = vadd.f32 %v4090_v10, %v4088_v47  ;;  %11693 = vmatprep.mubr.msk.bf16.mxu0 %vm14987_vm3, %v11692_v7  ;;  %11701 = vmatprep.mubr.msk.bf16.mxu1 %vm14987_vm3, %v11692_v7  ;;  %v13103_v54 = vld [vmem:[#allocation18 + $0x1c4] ss:$16 sps:$4 sm:$0xff]   ;;  %v13106_v10 = vld [vmem:[#allocation18 + $0x1cc] ss:$16 sps:$4 sm:$0xff]   ;;  %v13101_v46 = vld [vmem:[#allocation18 + $0x1c0] ss:$16 sps:$4 sm:$0xff]  }
 0x8c3   :  { %11696 = vmatmul.mubr.msk.bf16.vlgmr.msra.gmra.mrb[40].mxu0 %vm14991_vm4, %v11692_v7  ;;  %11704 = vmatmul.mubr.msk.bf16.vlgmr.msra.gmra.mrb[40].mxu1 %vm14991_vm4, %v11692_v7  ;;  %v13104_v47 = vld [vmem:[#allocation18 + $0x1c8] ss:$16 sps:$4 sm:$0xff]   ;;  %v13109_v7 = vld [vmem:[#allocation18 + $0x1e4] ss:$16 sps:$4 sm:$0xff]  }
 0x8c4   :  { %4085 = vst [vmem:[#allocation2 + $0x30] sm:$0xf] %v4084_v59  ;;  %4092 = vst [vmem:[#allocation2 + $0x8] sm:$0xf0] %v4091_v43  ;;  %5034 = vmatpush1.bf16.msra.mxu0 %v13017_v61  ;;  %5087 = vmatpush1.bf16.msra.mxu1 %v13020_v1  ;;  %v13112_v61 = vld [vmem:[#allocation18 + $0x1ec] ss:$16 sps:$4 sm:$0xff]  }
 0x8c5   :  { %5035 = vmatprep.subr.bf16.mxu0 %v13025_v39  ;;  %5088 = vmatprep.subr.bf16.mxu1 %v13028_v0  ;;  %v13107_v1 = vld [vmem:[#allocation18 + $0x1e0] ss:$16 sps:$4 sm:$0xff]   ;;  %v13110_v59 = vld [vmem:[#allocation18 + $0x1e8] ss:$16 sps:$4 sm:$0xff]   ;;  %v13115_v43 = vld [vmem:[#allocation20 + $0x4] ss:$16 sps:$4 sm:$0xff]  }
 0x8c6   :  { %v13118_v39 = vld [vmem:[#allocation20 + $0xc] ss:$16 sps:$4 sm:$0xff]   ;;  %v4097_v0 = vld [vmem:[#allocation3 + $0xe0] sm:$0xff] }
 0x8c8   :  { %5036 = vmatpush1.bf16.msra.mxu0 %v13023_v8  ;;  %5089 = vmatpush1.bf16.msra.mxu1 %v13026_v9 }
 0x8c9   :  { %5037 = vmatprep.subr.bf16.mxu0 %v13031_v4  ;;  %5090 = vmatprep.subr.bf16.mxu1 %v13034_v57  ;;  %v4098_v57 = vld [vmem:[#allocation3 + $0xe8] sm:$0xff] }
 0x8cc   :  { %5038 = vmatpush1.bf16.msra.mxu0 %v13029_v15  ;;  %5091 = vmatpush1.bf16.msra.mxu1 %v13032_v27 }
 0x8cd   :  { %5039 = vmatprep.subr.bf16.mxu0 %v13037_v45  ;;  %5092 = vmatprep.subr.bf16.mxu1 %v13040_v11 }
 0x8d0   :  { %5040 = vmatpush1.bf16.msra.mxu0 %v13035_v2  ;;  %5093 = vmatpush1.bf16.msra.mxu1 %v13038_v6 }
 0x8d1   :  { %5041 = vmatprep.subr.bf16.mxu0 %v13043_v16  ;;  %5094 = vmatprep.subr.bf16.mxu1 %v13046_v17 }
 0x8d4   :  { %5042 = vmatpush1.bf16.msra.mxu0 %v13041_v18  ;;  %5095 = vmatpush1.bf16.msra.mxu1 %v13044_v19  ;;  %v4100_v19 = vld [vmem:[#allocation3 + $0xf8] sm:$0xff] }
 0x8d5   :  { %5043 = vmatprep.subr.bf16.mxu0 %v13049_v58  ;;  %5096 = vmatprep.subr.bf16.mxu1 %v13052_v20  ;;  %v4099_v20 = vld [vmem:[#allocation3 + $0xf0] sm:$0xff] }
 0x8d8   :  { %5044 = vmatpush1.bf16.msra.mxu0 %v13047_v21  ;;  %5097 = vmatpush1.bf16.msra.mxu1 %v13050_v22 }
 0x8d9   :  { %5045 = vmatprep.subr.bf16.mxu0 %v13055_v23  ;;  %5098 = vmatprep.subr.bf16.mxu1 %v13058_v24 }
 0x8dc   :  { %5046 = vmatpush1.bf16.msra.mxu0 %v13053_v25  ;;  %5099 = vmatpush1.bf16.msra.mxu1 %v13056_v26 }
 0x8dd   :  { %5047 = vmatprep.subr.bf16.mxu0 %v13061_v29  ;;  %5100 = vmatprep.subr.bf16.mxu1 %v13064_v28 }
 0x8e0   :  { %5048 = vmatpush1.bf16.msra.mxu0 %v13059_v13  ;;  %5101 = vmatpush1.bf16.msra.mxu1 %v13062_v14 }
 0x8e1   :  { %5049 = vmatprep.subr.bf16.mxu0 %v13067_v60  ;;  %5102 = vmatprep.subr.bf16.mxu1 %v13070_v30 }
 0x8e4   :  { %5050 = vmatpush1.bf16.msra.mxu0 %v13065_v31  ;;  %5103 = vmatpush1.bf16.msra.mxu1 %v13068_v12 }
 0x8e5   :  { %5051 = vmatprep.subr.bf16.mxu0 %v13073_v5  ;;  %5104 = vmatprep.subr.bf16.mxu1 %v13076_v32 }
 0x8e8   :  { %5052 = vmatpush1.bf16.msra.mxu0 %v13071_v33  ;;  %5105 = vmatpush1.bf16.msra.mxu1 %v13074_v34  ;;  %v4596_v33 = vstv %s11708_s10  ;;  %v4606_v34 = vstv %s4605_s1  ;;  %s12277_s10 = sld [smem:[#allocation12 + $0x2]]  ;;  %s12361_s1 = sld [smem:[#allocation11 + $0x6]] }
 0x8e9   :  { %5053 = vmatprep.subr.bf16.mxu0 %v13079_v35  ;;  %5106 = vmatprep.subr.bf16.mxu1 %v13082_v36  ;;  %v4599_v36 = vstv %s11709_s8  ;;  %s12363_s8 = sld [smem:[#allocation11 + $0x1]] }
 0x8ec   :  { %5054 = vmatpush1.bf16.msra.mxu0 %v13077_v37  ;;  %5107 = vmatpush1.bf16.msra.mxu1 %v13080_v38  ;;  %v4609_v37 = vstv %s4608_s2  ;;  %s12362_s2 = sld [smem:[#allocation12 + $0x6]] }
 0x8ed   :  { %5055 = vmatprep.subr.bf16.mxu0 %v13085_v41  ;;  %5108 = vmatprep.subr.bf16.mxu1 %v13088_v42 }
 0x8f0   :  { %5056 = vmatpush1.bf16.msra.mxu0 %v13083_v44  ;;  %5109 = vmatpush1.bf16.msra.mxu1 %v13086_v40 }
 0x8f1   :  { %5057 = vmatprep.subr.bf16.mxu0 %v13091_v48  ;;  %5110 = vmatprep.subr.bf16.mxu1 %v13094_v49  ;;  %v4617_v48 = vld [vmem:[#allocation2 + $0x10] sm:$0xff] }
 0x8f4   :  { %5058 = vmatpush1.bf16.msra.mxu0 %v13089_v50  ;;  %5111 = vmatpush1.bf16.msra.mxu1 %v13092_v52  ;;  %v4618_v50 = vld [vmem:[#allocation2 + $0x18] sm:$0xff]  ;;  %v4615_v52 = vld [vmem:[#allocation2] sm:$0xff] }
 0x8f5   :  { %5059 = vmatprep.subr.bf16.mxu0 %v13097_v53  ;;  %5112 = vmatprep.subr.bf16.mxu1 %v13100_v55  ;;  %v13113_v55 = vld [vmem:[#allocation20] ss:$16 sps:$4 sm:$0xff]  }
 0x8f8   :  { %5060 = vmatpush1.bf16.msra.mxu0 %v13095_v56  ;;  %5113 = vmatpush1.bf16.msra.mxu1 %v13098_v63  ;;  %v13116_v56 = vld [vmem:[#allocation20 + $0x8] ss:$16 sps:$4 sm:$0xff]  }
 0x8f9   :  { %5061 = vmatprep.subr.bf16.mxu0 %v13103_v54  ;;  %5114 = vmatprep.subr.bf16.mxu1 %v13106_v10  ;;  %v4620_v63 = vld [vmem:[#allocation2 + $0x28] sm:$0xff]  ;;  %v15680_v54 = vpack.c.bf16 %v4617_v48, %v4615_v52  ;;  %v4622_v10 = vld [vmem:[#allocation2 + $0x38] sm:$0xff]  ;;  %v13193_v48 = vld [vmem:[#allocation20 + $0x1a4] ss:$16 sps:$4 sm:$0xff]  }
 0x8fa   :  { %v13194_v52 = vld [vmem:[#allocation20 + $0x1a8] ss:$16 sps:$4 sm:$0xff]  }
 0x8fc   :  { %5062 = vmatpush1.bf16.msra.mxu0 %v13101_v46  ;;  %5115 = vmatpush1.bf16.msra.mxu1 %v13104_v47  ;;  %v13121_v46 = vld [vmem:[#allocation20 + $0x24] ss:$16 sps:$4 sm:$0xff]   ;;  %v13124_v47 = vld [vmem:[#allocation20 + $0x2c] ss:$16 sps:$4 sm:$0xff]  }
 0x8fd   :  { %5063 = vmatprep.subr.bf16.mxu0 %v13109_v7  ;;  %5116 = vmatprep.subr.bf16.mxu1 %v13112_v61  ;;  %v15684_v7 = vpack.c.bf16 %v4622_v10, %v4620_v63  ;;  %v13119_v61 = vld [vmem:[#allocation20 + $0x20] ss:$16 sps:$4 sm:$0xff]   ;;  %v13200_v63 = vld [vmem:[#allocation20 + $0x1c8] ss:$16 sps:$4 sm:$0xff]   ;;  %v13205_v10 = vld [vmem:[#allocation20 + $0x1e4] ss:$16 sps:$4 sm:$0xff]  }
 0x900   :  { %5064 = vmatpush1.bf16.msra.mxu0 %v13107_v1  ;;  %5117 = vmatpush1.bf16.msra.mxu1 %v13110_v59  ;;  %v13122_v1 = vld [vmem:[#allocation20 + $0x28] ss:$16 sps:$4 sm:$0xff]   ;;  %v13127_v59 = vld [vmem:[#allocation20 + $0x44] ss:$16 sps:$4 sm:$0xff]  }
 0x901   :  { %5545 = vmatprep.subr.bf16.mxu0 %v13115_v43  ;;  %5598 = vmatprep.subr.bf16.mxu1 %v13118_v39  ;;  %v13130_v43 = vld [vmem:[#allocation20 + $0x4c] ss:$16 sps:$4 sm:$0xff]  }
 0x996   :  { %v4519_v8 = vpop.f32.mrb[40].mxu0  ;;  %v4560_v9 = vpop.f32.mrb[40].mxu1 }
 0x997   :  { %v4567_v4 = vadd.f32 %v4519_v8, %v4097_v0  ;;  %v4521_v15 = vpop.f32.mrb[41].mxu0  ;;  %v4562_v27 = vpop.f32.mrb[41].mxu1  ;;  %v4569_v22 = vadd.f32 %v4560_v9, %v4099_v20  ;;  %v13125_v0 = vld [vmem:[#allocation20 + $0x40] ss:$16 sps:$4 sm:$0xff]   ;;  %v13128_v8 = vld [vmem:[#allocation20 + $0x48] ss:$16 sps:$4 sm:$0xff]  }
 0x998   :  { %v4568_v45 = vadd.f32 %v4521_v15, %v4098_v57  ;;  %v4523_v11 = vpop.f32.mrb[42].mxu0  ;;  %v4564_v2 = vpop.f32.mrb[42].mxu1  ;;  %v4570_v58 = vadd.f32 %v4562_v27, %v4100_v19  ;;  %v4619_v9 = vld [vmem:[#allocation2 + $0x20] sm:$0xff]  ;;  %v13136_v15 = vld [vmem:[#allocation20 + $0x6c] ss:$16 sps:$4 sm:$0xff]  }
 0x999   :  { %v11705_v6 = vmul.f32 -1.442695, %v4567_v4  ;;  %v4524_v16 = vpop.f32.mrb[43].mxu0  ;;  %v4565_v17 = vpop.f32.mrb[43].mxu1  ;;  %v13133_v57 = vld [vmem:[#allocation20 + $0x64] ss:$16 sps:$4 sm:$0xff]  }
 0x99a   :  { %v11706_v18 = vmul.f32 -1.442695, %v4568_v45  ;;  %v11707_v21 = vmul.f32 -1.442695, %v4570_v58  ;;  %v13131_v27 = vld [vmem:[#allocation20 + $0x60] ss:$16 sps:$4 sm:$0xff]  }
 0x99b   :  { %13737 = vpow2.f32 %v11705_v6  ;;  %v13134_v45 = vld [vmem:[#allocation20 + $0x68] ss:$16 sps:$4 sm:$0xff]   ;;  %v13139_v11 = vld [vmem:[#allocation20 + $0x84] ss:$16 sps:$4 sm:$0xff]   ;;  %v13142_v2 = vld [vmem:[#allocation20 + $0x8c] ss:$16 sps:$4 sm:$0xff]  }
 0x99c   :  { %13739 = vpow2.f32 %v11706_v18  ;;  %v13137_v6 = vld [vmem:[#allocation20 + $0x80] ss:$16 sps:$4 sm:$0xff]   ;;  %v13140_v16 = vld [vmem:[#allocation20 + $0x88] ss:$16 sps:$4 sm:$0xff]   ;;  %v13145_v17 = vld [vmem:[#allocation20 + $0xa4] ss:$16 sps:$4 sm:$0xff]  }
 0x99d   :  { %13741 = vpow2.f32 %v11707_v21  ;;  %v13148_v18 = vld [vmem:[#allocation20 + $0xac] ss:$16 sps:$4 sm:$0xff]   ;;  %v13143_v19 = vld [vmem:[#allocation20 + $0xa0] ss:$16 sps:$4 sm:$0xff]   ;;  %v13146_v58 = vld [vmem:[#allocation20 + $0xa8] ss:$16 sps:$4 sm:$0xff]  }
 0x99e   :  { %13743 = vtanh.f32 %v4569_v22  ;;  %v13151_v20 = vld [vmem:[#allocation20 + $0xc4] ss:$16 sps:$4 sm:$0xff]   ;;  %v13154_v21 = vld [vmem:[#allocation20 + $0xcc] ss:$16 sps:$4 sm:$0xff]   ;;  %v13149_v22 = vld [vmem:[#allocation20 + $0xc0] ss:$16 sps:$4 sm:$0xff]  }
 0x9a5   :  { %v13738_v23 = vpop.eup %13737 }
 0x9a6   :  { %v13740_v24 = vpop.eup %13739  ;;  %v4574_v25 = vadd.f32 1.0, %v13738_v23  ;;  %v13152_v23 = vld [vmem:[#allocation20 + $0xc8] ss:$16 sps:$4 sm:$0xff]  }
 0x9a7   :  { %v4580_v26 = vadd.f32 1.0, %v13740_v24  ;;  %v13742_v29 = vpop.eup %13741  ;;  %v13157_v24 = vld [vmem:[#allocation20 + $0xe4] ss:$16 sps:$4 sm:$0xff]  }
 0x9a8   :  { %13745 = vrcp.f32 %v4574_v25  ;;  %v13744_v28 = vpop.eup %13743  ;;  %v4587_v30 = vadd.f32 1.0, %v13742_v29  ;;  %v13160_v25 = vld [vmem:[#allocation20 + $0xec] ss:$16 sps:$4 sm:$0xff]   ;;  %v13158_v29 = vld [vmem:[#allocation20 + $0xe8] ss:$16 sps:$4 sm:$0xff]  }
 0x9a9   :  { %13747 = vrcp.f32 %v4580_v26  ;;  %v13155_v26 = vld [vmem:[#allocation20 + $0xe0] ss:$16 sps:$4 sm:$0xff]  }
 0x9aa   :  { %13749 = vrcp.f32 %v4587_v30  ;;  %v13169_v30 = vld [vmem:[#allocation20 + $0x124] ss:$16 sps:$4 sm:$0xff]  }
 0x9b2   :  { %v13746_v13 = vpop.eup %13745 }
 0x9b3   :  { %v13748_v14 = vpop.eup %13747  ;;  %v4591_v60 = vmul.f32 %v13746_v13, %v13744_v28  ;;  %v13163_v28 = vld [vmem:[#allocation20 + $0x104] ss:$16 sps:$4 sm:$0xff]   ;;  %v13166_v13 = vld [vmem:[#allocation20 + $0x10c] ss:$16 sps:$4 sm:$0xff]  }
 0x9b4   :  { %v4590_v31 = vmul.f32 %v13748_v14, %v15668_v51  ;;  %v13750_v5 = vpop.eup %13749  ;;  %v13161_v14 = vld [vmem:[#allocation20 + $0x100] ss:$16 sps:$4 sm:$0xff]  }
 0x9b6   :  { %v4592_v12 = vadd.f32 %v4591_v60, %v4590_v31  ;;  %v13164_v60 = vld [vmem:[#allocation20 + $0x108] ss:$16 sps:$4 sm:$0xff]   ;;  %v13172_v31 = vld [vmem:[#allocation20 + $0x12c] ss:$16 sps:$4 sm:$0xff]  }
 0x9b8   :  { %13751 = vtanh.f32 %v4592_v12  ;;  %v13167_v12 = vld [vmem:[#allocation20 + $0x120] ss:$16 sps:$4 sm:$0xff]  }
 0x9c2   :  { %v13752_v32 = vpop.eup %13751 }
 0x9c3   :  { %v4594_v35 = vmul.f32 %v13752_v32, %v13750_v5  ;;  %v13170_v5 = vld [vmem:[#allocation20 + $0x128] ss:$16 sps:$4 sm:$0xff]   ;;  %v13175_v32 = vld [vmem:[#allocation20 + $0x144] ss:$16 sps:$4 sm:$0xff]  }
 0x9c5   :  { %v4597_v38 = vmul.f32 %v4596_v33, %v4594_v35  ;;  %v4607_v41 = vmul.f32 %v4606_v34, %v4594_v35  ;;  %v13178_v33 = vld [vmem:[#allocation20 + $0x14c] ss:$16 sps:$4 sm:$0xff]   ;;  %v13173_v34 = vld [vmem:[#allocation20 + $0x140] ss:$16 sps:$4 sm:$0xff]   ;;  %v13176_v35 = vld [vmem:[#allocation20 + $0x148] ss:$16 sps:$4 sm:$0xff]  }
 0x9c7   :  { %v4600_v42 = vadd.f32 %v4599_v36, %v4597_v38  ;;  %v4610_v44 = vadd.f32 %v4609_v37, %v4607_v41  ;;  %v13181_v36 = vld [vmem:[#allocation20 + $0x164] ss:$16 sps:$4 sm:$0xff]   ;;  %v13184_v37 = vld [vmem:[#allocation20 + $0x16c] ss:$16 sps:$4 sm:$0xff]   ;;  %v13179_v38 = vld [vmem:[#allocation20 + $0x160] ss:$16 sps:$4 sm:$0xff]  }
 0x9c8   :  { %v13182_v41 = vld [vmem:[#allocation20 + $0x168] ss:$16 sps:$4 sm:$0xff]  }
 0x9c9   :  { %v4602_v40 = vrot.slane %v4600_v42, 4  ;;  %v4612_v51 = vrot.slane %v4610_v44, 4  ;;  %v13187_v42 = vld [vmem:[#allocation20 + $0x184] ss:$16 sps:$4 sm:$0xff]   ;;  %v13190_v44 = vld [vmem:[#allocation20 + $0x18c] ss:$16 sps:$4 sm:$0xff]  }
 0x9cb   :  { %4604 = vst [vmem:[#allocation2 + $0x30] sm:$0xf0] %v4602_v40  ;;  %4614 = vst [vmem:[#allocation2 + $0x8] sm:$0xf] %v4612_v51  ;;  %v13185_v40 = vld [vmem:[#allocation20 + $0x180] ss:$16 sps:$4 sm:$0xff]  }
 0x9cc   :  { %v13188_v51 = vld [vmem:[#allocation20 + $0x188] ss:$16 sps:$4 sm:$0xff]  }
 0x9d2   :  { %v4616_v49 = vld [vmem:[#allocation2 + $0x8] sm:$0xff]  ;;  %v4621_v39 = vld [vmem:[#allocation2 + $0x30] sm:$0xff] }
 0x9d3   :  { %v4624_v53 = vpack.c.bf16 %v4618_v50, %v4616_v49  ;;  %v15688_v4 = vpack.c.bf16 %v4621_v39, %v4619_v9  ;;  %v13196_v49 = vld [vmem:[#allocation20 + $0x1ac] ss:$16 sps:$4 sm:$0xff]   ;;  %v13191_v50 = vld [vmem:[#allocation20 + $0x1a0] ss:$16 sps:$4 sm:$0xff]   ;;  %v15704_v39 = vld [vmem:[#allocation21 + $0x8] ss:$16 sps:$4 sm:$0xff]  }
 0x9d4   :  { %v15722_v9 = vld [vmem:[#allocation21 + $0x44] ss:$16 sps:$4 sm:$0xff]  }
 0x9d5   :  { %5065 = vmatprep.mubr.bf16.mxu0 %v4624_v53  ;;  %5118 = vmatprep.mubr.bf16.mxu1 %v4624_v53 }
 0x9d6   :  { %5066 = vmatmul.mubr.bf16.vlgmr.msra.gmra.mrb[44].mxu0 %v15680_v54  ;;  %5119 = vmatmul.mubr.bf16.vlgmr.msra.gmra.mrb[44].mxu1 %v15680_v54 }
 0x9d7   :  { %5546 = vmatpush1.bf16.msra.mxu0 %v13113_v55  ;;  %5599 = vmatpush1.bf16.msra.mxu1 %v13116_v56  ;;  %v13202_v55 = vld [vmem:[#allocation20 + $0x1cc] ss:$16 sps:$4 sm:$0xff]   ;;  %v13197_v56 = vld [vmem:[#allocation20 + $0x1c0] ss:$16 sps:$4 sm:$0xff]  }
 0x9d8   :  { %5075 = vmatprep.mubr.bf16.mxu0 %v15684_v7  ;;  %5128 = vmatprep.mubr.bf16.mxu1 %v15684_v7 }
 0x9d9   :  { %5547 = vmatprep.subr.bf16.mxu0 %v13121_v46  ;;  %5600 = vmatprep.subr.bf16.mxu1 %v13124_v47  ;;  %v13208_v46 = vld [vmem:[#allocation20 + $0x1ec] ss:$16 sps:$4 sm:$0xff]   ;;  %v13203_v47 = vld [vmem:[#allocation20 + $0x1e0] ss:$16 sps:$4 sm:$0xff]  }
 0x9db   :  { %5548 = vmatpush1.bf16.msra.mxu0 %v13119_v61  ;;  %5601 = vmatpush1.bf16.msra.mxu1 %v13122_v1  ;;  %v13206_v61 = vld [vmem:[#allocation20 + $0x1e8] ss:$16 sps:$4 sm:$0xff]   ;;  %v15698_v1 = vld [vmem:[#allocation21 + $0x4] ss:$16 sps:$4 sm:$0xff]  }
 0x9dc   :  { %5549 = vmatprep.subr.bf16.mxu0 %v13127_v59  ;;  %5602 = vmatprep.subr.bf16.mxu1 %v13130_v43  ;;  %v15700_v59 = vld [vmem:[#allocation21 + $0xc] ss:$16 sps:$4 sm:$0xff]   ;;  %v15702_v43 = vld [vmem:[#allocation21] ss:$16 sps:$4 sm:$0xff]  }
 0x9de   :  { %5076 = vmatmul.mubr.bf16.gmra.mrb[48].mxu0 %v15688_v4  ;;  %5129 = vmatmul.mubr.bf16.gmra.mrb[48].mxu1 %v15688_v4 }
 0x9df   :  { %5550 = vmatpush1.bf16.msra.mxu0 %v13125_v0  ;;  %5603 = vmatpush1.bf16.msra.mxu1 %v13128_v8  ;;  %v15714_v0 = vld [vmem:[#allocation21 + $0x20] ss:$16 sps:$4 sm:$0xff]   ;;  %v15716_v8 = vld [vmem:[#allocation21 + $0x28] ss:$16 sps:$4 sm:$0xff]  }
 0x9e0   :  { %5577 = vmatprep.mubr.bf16.mxu0 %v4624_v53  ;;  %5630 = vmatprep.mubr.bf16.mxu1 %v4624_v53  ;;  %v13199_v53 = vld [vmem:[#allocation20 + $0x1c4] ss:$16 sps:$4 sm:$0xff]  }
 0x9e1   :  { %5551 = vmatprep.subr.bf16.mxu0 %v13133_v57  ;;  %5604 = vmatprep.subr.bf16.mxu1 %v13136_v15  ;;  %v15726_v57 = vld [vmem:[#allocation21 + $0x40] ss:$16 sps:$4 sm:$0xff]   ;;  %v15728_v15 = vld [vmem:[#allocation21 + $0x48] ss:$16 sps:$4 sm:$0xff]  }
 0x9e3   :  { %5552 = vmatpush1.bf16.msra.mxu0 %v13131_v27  ;;  %5605 = vmatpush1.bf16.msra.mxu1 %v13134_v45  ;;  %v15734_v27 = vld [vmem:[#allocation21 + $0x64] ss:$16 sps:$4 sm:$0xff]   ;;  %v15736_v45 = vld [vmem:[#allocation21 + $0x6c] ss:$16 sps:$4 sm:$0xff]  }
 0x9e4   :  { %5553 = vmatprep.subr.bf16.mxu0 %v13139_v11  ;;  %5606 = vmatprep.subr.bf16.mxu1 %v13142_v2  ;;  %v15738_v11 = vld [vmem:[#allocation21 + $0x60] ss:$16 sps:$4 sm:$0xff]   ;;  %v15740_v2 = vld [vmem:[#allocation21 + $0x68] ss:$16 sps:$4 sm:$0xff]  }
 0x9e7   :  { %5554 = vmatpush1.bf16.msra.mxu0 %v13137_v6  ;;  %5607 = vmatpush1.bf16.msra.mxu1 %v13140_v16  ;;  %v15746_v6 = vld [vmem:[#allocation21 + $0x84] ss:$16 sps:$4 sm:$0xff]   ;;  %v15748_v16 = vld [vmem:[#allocation21 + $0x8c] ss:$16 sps:$4 sm:$0xff]  }
 0x9e8   :  { %5555 = vmatprep.subr.bf16.mxu0 %v13145_v17  ;;  %5608 = vmatprep.subr.bf16.mxu1 %v13148_v18  ;;  %v15750_v17 = vld [vmem:[#allocation21 + $0x80] ss:$16 sps:$4 sm:$0xff]   ;;  %v15752_v18 = vld [vmem:[#allocation21 + $0x88] ss:$16 sps:$4 sm:$0xff]  }
 0x9eb   :  { %5556 = vmatpush1.bf16.msra.mxu0 %v13143_v19  ;;  %5609 = vmatpush1.bf16.msra.mxu1 %v13146_v58  ;;  %v15758_v19 = vld [vmem:[#allocation21 + $0xa0] ss:$16 sps:$4 sm:$0xff]   ;;  %v15760_v58 = vld [vmem:[#allocation21 + $0xa4] ss:$16 sps:$4 sm:$0xff]  }
 0x9ec   :  { %5557 = vmatprep.subr.bf16.mxu0 %v13151_v20  ;;  %5610 = vmatprep.subr.bf16.mxu1 %v13154_v21  ;;  %v15762_v20 = vld [vmem:[#allocation21 + $0xa8] ss:$16 sps:$4 sm:$0xff]   ;;  %v15764_v21 = vld [vmem:[#allocation21 + $0xac] ss:$16 sps:$4 sm:$0xff]  }
 0x9ef   :  { %5558 = vmatpush1.bf16.msra.mxu0 %v13149_v22  ;;  %5611 = vmatpush1.bf16.msra.mxu1 %v13152_v23  ;;  %v15766_v22 = vld [vmem:[#allocation21 + $0xc4] ss:$16 sps:$4 sm:$0xff]   ;;  %v15769_v23 = vld [vmem:[#allocation21 + $0xcc] ss:$16 sps:$4 sm:$0xff]  }
 0x9f0   :  { %5559 = vmatprep.subr.bf16.mxu0 %v13157_v24  ;;  %5612 = vmatprep.subr.bf16.mxu1 %v13160_v25  ;;  %v15774_v24 = vld [vmem:[#allocation21 + $0xc0] ss:$16 sps:$4 sm:$0xff]   ;;  %v15776_v25 = vld [vmem:[#allocation21 + $0xc8] ss:$16 sps:$4 sm:$0xff]  }
 0x9f3   :  { %5560 = vmatpush1.bf16.msra.mxu0 %v13155_v26  ;;  %5613 = vmatpush1.bf16.msra.mxu1 %v13158_v29  ;;  %v15780_v26 = vld [vmem:[#allocation21 + $0xe4] ss:$16 sps:$4 sm:$0xff]   ;;  %v15782_v29 = vld [vmem:[#allocation21 + $0xec] ss:$16 sps:$4 sm:$0xff]  }
 0x9f4   :  { %5561 = vmatprep.subr.bf16.mxu0 %v13163_v28  ;;  %5614 = vmatprep.subr.bf16.mxu1 %v13166_v13  ;;  %v15786_v28 = vld [vmem:[#allocation21 + $0xe0] ss:$16 sps:$4 sm:$0xff]   ;;  %v15788_v13 = vld [vmem:[#allocation21 + $0xe8] ss:$16 sps:$4 sm:$0xff]  }
 0x9f7   :  { %5562 = vmatpush1.bf16.msra.mxu0 %v13161_v14  ;;  %5615 = vmatpush1.bf16.msra.mxu1 %v13164_v60  ;;  %v15792_v14 = vld [vmem:[#allocation21 + $0x104] ss:$16 sps:$4 sm:$0xff]   ;;  %v15794_v60 = vld [vmem:[#allocation21 + $0x10c] ss:$16 sps:$4 sm:$0xff]  }
 0x9f8   :  { %5563 = vmatprep.subr.bf16.mxu0 %v13169_v30  ;;  %5616 = vmatprep.subr.bf16.mxu1 %v13172_v31  ;;  %v15798_v30 = vld [vmem:[#allocation21 + $0x100] ss:$16 sps:$4 sm:$0xff]   ;;  %v15800_v31 = vld [vmem:[#allocation21 + $0x108] ss:$16 sps:$4 sm:$0xff]  }
 0x9fb   :  { %5564 = vmatpush1.bf16.msra.mxu0 %v13167_v12  ;;  %5617 = vmatpush1.bf16.msra.mxu1 %v13170_v5  ;;  %v15804_v12 = vld [vmem:[#allocation21 + $0x124] ss:$16 sps:$4 sm:$0xff]   ;;  %v15806_v5 = vld [vmem:[#allocation21 + $0x12c] ss:$16 sps:$4 sm:$0xff]  }
 0x9fc   :  { %5565 = vmatprep.subr.bf16.mxu0 %v13175_v32  ;;  %5618 = vmatprep.subr.bf16.mxu1 %v13178_v33  ;;  %17211 = vst [vmem:[#allocation55_spill] sm:$0xff] %v15806_v5  ;;  %v15810_v32 = vld [vmem:[#allocation21 + $0x120] ss:$16 sps:$4 sm:$0xff]   ;;  %v15812_v33 = vld [vmem:[#allocation21 + $0x128] ss:$16 sps:$4 sm:$0xff]  }
 0x9fd   :  { %17212 = vst [vmem:[#allocation56_spill] sm:$0xff] %v15810_v32  ;;  %17213 = vst [vmem:[#allocation57_spill] sm:$0xff] %v15812_v33 }
 0x9ff   :  { %5566 = vmatpush1.bf16.msra.mxu0 %v13173_v34  ;;  %5619 = vmatpush1.bf16.msra.mxu1 %v13176_v35  ;;  %v15816_v34 = vld [vmem:[#allocation21 + $0x144] ss:$16 sps:$4 sm:$0xff]   ;;  %v15818_v35 = vld [vmem:[#allocation21 + $0x14c] ss:$16 sps:$4 sm:$0xff]  }
 0xa00   :  { %5567 = vmatprep.subr.bf16.mxu0 %v13181_v36  ;;  %5620 = vmatprep.subr.bf16.mxu1 %v13184_v37  ;;  %17214 = vst [vmem:[#allocation58_spill] sm:$0xff] %v15816_v34  ;;  %17215 = vst [vmem:[#allocation60_spill] sm:$0xff] %v15818_v35  ;;  %v15822_v36 = vld [vmem:[#allocation21 + $0x140] ss:$16 sps:$4 sm:$0xff]   ;;  %v15824_v37 = vld [vmem:[#allocation21 + $0x148] ss:$16 sps:$4 sm:$0xff]  }
 0xa01   :  { %17216 = vst [vmem:[#allocation62_spill] sm:$0xff] %v15822_v36  ;;  %17217 = vst [vmem:[#allocation59_spill] sm:$0xff] %v15824_v37 }
 0xa03   :  { %5568 = vmatpush1.bf16.msra.mxu0 %v13179_v38  ;;  %5621 = vmatpush1.bf16.msra.mxu1 %v13182_v41  ;;  %v15828_v38 = vld [vmem:[#allocation21 + $0x164] ss:$16 sps:$4 sm:$0xff]   ;;  %v15830_v41 = vld [vmem:[#allocation21 + $0x16c] ss:$16 sps:$4 sm:$0xff]  }
 0xa04   :  { %5569 = vmatprep.subr.bf16.mxu0 %v13187_v42  ;;  %5622 = vmatprep.subr.bf16.mxu1 %v13190_v44  ;;  %17218 = vst [vmem:[#allocation61_spill] sm:$0xff] %v15828_v38  ;;  %17219 = vst [vmem:[#allocation63_spill] sm:$0xff] %v15830_v41  ;;  %v15834_v42 = vld [vmem:[#allocation21 + $0x160] ss:$16 sps:$4 sm:$0xff]   ;;  %v15836_v44 = vld [vmem:[#allocation21 + $0x168] ss:$16 sps:$4 sm:$0xff]  }
 0xa05   :  { %17220 = vst [vmem:[#allocation64_spill] sm:$0xff] %v15834_v42  ;;  %17221 = vst [vmem:[#allocation65_spill] sm:$0xff] %v15836_v44 }
 0xa07   :  { %5570 = vmatpush1.bf16.msra.mxu0 %v13185_v40  ;;  %5623 = vmatpush1.bf16.msra.mxu1 %v13188_v51  ;;  %v15840_v40 = vld [vmem:[#allocation21 + $0x184] ss:$16 sps:$4 sm:$0xff]   ;;  %v15842_v51 = vld [vmem:[#allocation21 + $0x18c] ss:$16 sps:$4 sm:$0xff]  }
 0xa08   :  { %5571 = vmatprep.subr.bf16.mxu0 %v13193_v48  ;;  %5624 = vmatprep.subr.bf16.mxu1 %v13196_v49  ;;  %17222 = vst [vmem:[#allocation66_spill] sm:$0xff] %v15840_v40  ;;  %17223 = vst [vmem:[#allocation67_spill] sm:$0xff] %v15842_v51  ;;  %v15846_v48 = vld [vmem:[#allocation21 + $0x180] ss:$16 sps:$4 sm:$0xff]   ;;  %v15848_v49 = vld [vmem:[#allocation21 + $0x188] ss:$16 sps:$4 sm:$0xff]  }
 0xa09   :  { %17224 = vst [vmem:[#allocation68_spill] sm:$0xff] %v15846_v48  ;;  %17225 = vst [vmem:[#allocation69_spill] sm:$0xff] %v15848_v49 }
 0xa0b   :  { %5572 = vmatpush1.bf16.msra.mxu0 %v13191_v50  ;;  %5625 = vmatpush1.bf16.msra.mxu1 %v13194_v52  ;;  %v15852_v50 = vld [vmem:[#allocation21 + $0x1a4] ss:$16 sps:$4 sm:$0xff]   ;;  %v15854_v52 = vld [vmem:[#allocation21 + $0x1ac] ss:$16 sps:$4 sm:$0xff]  }
 0xa0c   :  { %5573 = vmatprep.subr.bf16.mxu0 %v13199_v53  ;;  %5626 = vmatprep.subr.bf16.mxu1 %v13202_v55  ;;  %17226 = vst [vmem:[#allocation70_spill] sm:$0xff] %v15852_v50  ;;  %17227 = vst [vmem:[#allocation71_spill] sm:$0xff] %v15854_v52  ;;  %v15858_v53 = vld [vmem:[#allocation21 + $0x1a0] ss:$16 sps:$4 sm:$0xff]   ;;  %v15860_v55 = vld [vmem:[#allocation21 + $0x1a8] ss:$16 sps:$4 sm:$0xff]  }
 0xa0d   :  { %17228 = vst [vmem:[#allocation72_spill] sm:$0xff] %v15858_v53  ;;  %17229 = vst [vmem:[#allocation73_spill] sm:$0xff] %v15860_v55 }
 0xa0f   :  { %5574 = vmatpush1.bf16.msra.mxu0 %v13197_v56  ;;  %5627 = vmatpush1.bf16.msra.mxu1 %v13200_v63  ;;  %v15864_v56 = vld [vmem:[#allocation21 + $0x1c4] ss:$16 sps:$4 sm:$0xff]   ;;  %v15866_v63 = vld [vmem:[#allocation21 + $0x1cc] ss:$16 sps:$4 sm:$0xff]  }
 0xa10   :  { %5575 = vmatprep.subr.bf16.mxu0 %v13205_v10  ;;  %5628 = vmatprep.subr.bf16.mxu1 %v13208_v46  ;;  %17230 = vst [vmem:[#allocation74_spill] sm:$0xff] %v15864_v56  ;;  %17231 = vst [vmem:[#allocation53_spill] sm:$0xff] %v15866_v63  ;;  %v4691_v10 = vld [vmem:[%s16859_s12] sm:$0xf] }
 0xa11   :  { %v15873_v46 = vld [vmem:[#allocation21 + $0x1c0] ss:$16 sps:$4 sm:$0xff]  }
 0xa12   :  { %17232 = vst [vmem:[#allocation54_spill] sm:$0xff] %v15873_v46 }
 0xa13   :  { %5576 = vmatpush1.bf16.msra.mxu0 %v13203_v47  ;;  %5629 = vmatpush1.bf16.msra.mxu1 %v13206_v61  ;;  %v15875_v47 = vld [vmem:[#allocation21 + $0x1c8] ss:$16 sps:$4 sm:$0xff]   ;;  %v15879_v61 = vld [vmem:[#allocation21 + $0x1e4] ss:$16 sps:$4 sm:$0xff]  }
 0xa14   :  { %6245 = vmatprep.subr.bf16.mxu0 %v15698_v1  ;;  %6286 = vmatprep.subr.bf16.mxu1 %v15700_v59  ;;  %17233 = vst [vmem:[#allocation75_spill] sm:$0xff] %v15875_v47  ;;  %17234 = vst [vmem:[#allocation76_spill] sm:$0xff] %v15879_v61 }
 0xa16   :  { %5578 = vmatmul.mubr.bf16.vlgmr.msra.gmra.mrb[52].mxu0 %v15680_v54  ;;  %5631 = vmatmul.mubr.bf16.vlgmr.msra.gmra.mrb[52].mxu1 %v15680_v54  ;;  %v15710_v54 = vld [vmem:[#allocation21 + $0x24] ss:$16 sps:$4 sm:$0xff]  }
 0xa17   :  { %5587 = vmatprep.mubr.bf16.mxu0 %v15684_v7  ;;  %5640 = vmatprep.mubr.bf16.mxu1 %v15684_v7  ;;  %v15712_v7 = vld [vmem:[#allocation21 + $0x2c] ss:$16 sps:$4 sm:$0xff]  }
 0xa18   :  { %6246 = vmatpush1.bf16.msra.mxu0 %v15702_v43  ;;  %6287 = vmatpush1.bf16.msra.mxu1 %v15704_v39 }
 0xa19   :  { %6247 = vmatprep.subr.bf16.mxu0 %v15710_v54  ;;  %6288 = vmatprep.subr.bf16.mxu1 %v15712_v7 }
 0xa1c   :  { %6248 = vmatpush1.bf16.msra.mxu0 %v15714_v0  ;;  %6289 = vmatpush1.bf16.msra.mxu1 %v15716_v8 }
 0xa1d   :  { %6249 = vmatprep.subr.bf16.mxu0 %v15722_v9 }
 0xa1e   :  { %5588 = vmatmul.mubr.bf16.gmra.mrb[56].mxu0 %v15688_v4  ;;  %5641 = vmatmul.mubr.bf16.gmra.mrb[56].mxu1 %v15688_v4  ;;  %v15724_v4 = vld [vmem:[#allocation21 + $0x4c] ss:$16 sps:$4 sm:$0xff]  }
 0xa1f   :  { %6290 = vmatprep.subr.bf16.mxu1 %v15724_v4 }
 0xa20   :  { %6250 = vmatpush1.bf16.msra.mxu0 %v15726_v57  ;;  %6291 = vmatpush1.bf16.msra.mxu1 %v15728_v15 }
 0xa21   :  { %6251 = vmatprep.subr.bf16.mxu0 %v15734_v27  ;;  %6292 = vmatprep.subr.bf16.mxu1 %v15736_v45 }
 0xa24   :  { %6252 = vmatpush1.bf16.msra.mxu0 %v15738_v11  ;;  %6293 = vmatpush1.bf16.msra.mxu1 %v15740_v2 }
 0xa25   :  { %6253 = vmatprep.subr.bf16.mxu0 %v15746_v6  ;;  %6294 = vmatprep.subr.bf16.mxu1 %v15748_v16 }
 0xa28   :  { %6254 = vmatpush1.bf16.msra.mxu0 %v15750_v17  ;;  %6295 = vmatpush1.bf16.msra.mxu1 %v15752_v18 }
 0xa29   :  { %6255 = vmatprep.subr.bf16.mxu0 %v15760_v58  ;;  %6296 = vmatprep.subr.bf16.mxu1 %v15764_v21 }
 0xa2c   :  { %6256 = vmatpush1.bf16.msra.mxu0 %v15758_v19  ;;  %6297 = vmatpush1.bf16.msra.mxu1 %v15762_v20 }
 0xa2d   :  { %6257 = vmatprep.subr.bf16.mxu0 %v15766_v22  ;;  %6298 = vmatprep.subr.bf16.mxu1 %v15769_v23 }
 0xa30   :  { %6258 = vmatpush1.bf16.msra.mxu0 %v15774_v24  ;;  %6299 = vmatpush1.bf16.msra.mxu1 %v15776_v25 }
 0xa31   :  { %6259 = vmatprep.subr.bf16.mxu0 %v15780_v26  ;;  %6300 = vmatprep.subr.bf16.mxu1 %v15782_v29 }
 0xa34   :  { %6260 = vmatpush1.bf16.msra.mxu0 %v15786_v28  ;;  %6301 = vmatpush1.bf16.msra.mxu1 %v15788_v13 }
 0xa35   :  { %6261 = vmatprep.subr.bf16.mxu0 %v15792_v14  ;;  %6302 = vmatprep.subr.bf16.mxu1 %v15794_v60 }
 0xa38   :  { %6262 = vmatpush1.bf16.msra.mxu0 %v15798_v30  ;;  %6303 = vmatpush1.bf16.msra.mxu1 %v15800_v31 }
 0xa39   :  { %6263 = vmatprep.subr.bf16.mxu0 %v15804_v12  ;;  %6304 = vmatprep.subr.bf16.mxu1 %v15806_v5 }
 0xa3c   :  { %6264 = vmatpush1.bf16.msra.mxu0 %v15810_v32  ;;  %6305 = vmatpush1.bf16.msra.mxu1 %v15812_v33 }
 0xa3d   :  { %6265 = vmatprep.subr.bf16.mxu0 %v15816_v34  ;;  %6306 = vmatprep.subr.bf16.mxu1 %v15818_v35 }
 0xa40   :  { %6266 = vmatpush1.bf16.msra.mxu0 %v15822_v36  ;;  %6307 = vmatpush1.bf16.msra.mxu1 %v15824_v37 }
 0xa41   :  { %6267 = vmatprep.subr.bf16.mxu0 %v15828_v38  ;;  %6308 = vmatprep.subr.bf16.mxu1 %v15830_v41 }
 0xa44   :  { %6268 = vmatpush1.bf16.msra.mxu0 %v15834_v42  ;;  %6309 = vmatpush1.bf16.msra.mxu1 %v15836_v44 }
 0xa45   :  { %6269 = vmatprep.subr.bf16.mxu0 %v15840_v40  ;;  %6310 = vmatprep.subr.bf16.mxu1 %v15842_v51  ;;  %v17239_v40 = vld [vmem:[#allocation52_spill] sm:$0xff] }
 0xa46   :  { %v15893_v44 = vrot.slane %v4691_v10, %v17239_v40 }
 0xa48   :  { %6270 = vmatpush1.bf16.msra.mxu0 %v15846_v48  ;;  %6311 = vmatpush1.bf16.msra.mxu1 %v15848_v49  ;;  %v17237_v48 = vld [vmem:[#allocation50_spill] sm:$0xff] }
 0xa49   :  { %6271 = vmatprep.subr.bf16.mxu0 %v15852_v50  ;;  %6312 = vmatprep.subr.bf16.mxu1 %v15854_v52  ;;  %v15881_v52 = vld [vmem:[#allocation21 + $0x1ec] ss:$16 sps:$4 sm:$0xff]   ;;  %v15887_v51 = vrot.slane %v4691_v10, %v17237_v48 }
 0xa4a   :  { %17235 = vst [vmem:[#allocation77_spill] sm:$0xff] %v15881_v52  ;;  %v17236_v50 = vld [vmem:[#allocation49_spill] sm:$0xff] }
 0xa4b   :  { %v15884_v49 = vrot.slane %v4691_v10, %v17236_v50 }
 0xa4c   :  { %6272 = vmatpush1.bf16.msra.mxu0 %v15858_v53  ;;  %6313 = vmatpush1.bf16.msra.mxu1 %v15860_v55  ;;  %v17238_v53 = vld [vmem:[#allocation51_spill] sm:$0xff] }
 0xa4d   :  { %6273 = vmatprep.subr.bf16.mxu0 %v15864_v56  ;;  %6314 = vmatprep.subr.bf16.mxu1 %v15866_v63  ;;  %v15890_v55 = vrot.slane %v4691_v10, %v17238_v53  ;;  %v15897_v63 = vld [vmem:[#allocation21 + $0x1e0] ss:$16 sps:$4 sm:$0xff]   ;;  %v15899_v56 = vld [vmem:[#allocation21 + $0x1e8] ss:$16 sps:$4 sm:$0xff]  }
 0xa4e   :  { %17240 = vst [vmem:[#allocation50_spill] sm:$0xff] %v15897_v63  ;;  %17241 = vst [vmem:[#allocation52_spill] sm:$0xff] %v15899_v56 }
 0xa50   :  { %6274 = vmatpush1.bf16.msra.mxu0 %v15873_v46  ;;  %6315 = vmatpush1.bf16.msra.mxu1 %v15875_v47 }
 0xa51   :  { %6275 = vmatprep.subr.bf16.mxu0 %v15879_v61  ;;  %6316 = vmatprep.subr.bf16.mxu1 %v15881_v52 }
 0xa54   :  { %6276 = vmatpush1.bf16.msra.mxu0 %v15897_v63  ;;  %6317 = vmatpush1.bf16.msra.mxu1 %v15899_v56 }
 0xa55   :  { %6767 = vmatprep.subr.bf16.mxu0 %v15698_v1  ;;  %6808 = vmatprep.subr.bf16.mxu1 %v15700_v59 }
 0xaa9   :  { %v5067_v42 = vpop.f32.mrb[44].mxu0  ;;  %v5120_v41 = vpop.f32.mrb[44].mxu1 }
 0xaaa   :  { %v5068_v38 = vadd.f32 %v5067_v42, %v15884_v49  ;;  %v5121_v37 = vadd.f32 %v5120_v41, %v15887_v51  ;;  %v5069_v10 = vpop.f32.mrb[45].mxu0  ;;  %v5122_v36 = vpop.f32.mrb[45].mxu1 }
 0xaab   :  { %v5070_v46 = vadd.f32 %v5069_v10, %v15890_v55  ;;  %v5123_v47 = vadd.f32 %v5122_v36, %v15893_v44  ;;  %v5071_v35 = vpop.f32.mrb[46].mxu0  ;;  %v5124_v34 = vpop.f32.mrb[46].mxu1 }
 0xaac   :  { %5651 = vst [vmem:[#allocation3] sm:$0xf] %v5068_v38  ;;  %v5663_v33 = vrot.slane %v5068_v38, 4  ;;  %5653 = vst [vmem:[#allocation3 + $0x10] sm:$0xf] %v5121_v37  ;;  %v5665_v32 = vrot.slane %v5121_v37, 4  ;;  %v5072_v61 = vadd.f32 %v5071_v35, %v15884_v49  ;;  %v5125_v52 = vadd.f32 %v5124_v34, %v15887_v51 }
 0xaad   :  { %v5073_v5 = vpop.f32.mrb[47].mxu0  ;;  %v5126_v42 = vpop.f32.mrb[47].mxu1  ;;  %5652 = vst [vmem:[#allocation3 + $0x8] sm:$0xf] %v5070_v46  ;;  %v5664_v41 = vrot.slane %v5070_v46, 4  ;;  %v5666_v36 = vrot.slane %v5123_v47, 4 }
 0xaae   :  { %5654 = vst [vmem:[#allocation3 + $0x18] sm:$0xf] %v5123_v47  ;;  %v5074_v10 = vadd.f32 %v5073_v5, %v15890_v55  ;;  %v5127_v38 = vadd.f32 %v5126_v42, %v15893_v44  ;;  %5671 = vst [vmem:[#allocation3 + $0x20] sm:$0xf] %v5663_v33  ;;  %v5703_v34 = vrot.slane %v5072_v61, 4  ;;  %v5705_v35 = vrot.slane %v5125_v52, 4 }
 0xaaf   :  { %5673 = vst [vmem:[#allocation3 + $0x30] sm:$0xf] %v5665_v32  ;;  %5691 = vst [vmem:[#allocation3 + $0x40] sm:$0xf] %v5072_v61 }
 0xab0   :  { %5693 = vst [vmem:[#allocation3 + $0x50] sm:$0xf] %v5125_v52  ;;  %5672 = vst [vmem:[#allocation3 + $0x28] sm:$0xf] %v5664_v41  ;;  %v5704_v37 = vrot.slane %v5074_v10, 4  ;;  %v5706_v46 = vrot.slane %v5127_v38, 4 }
 0xab1   :  { %5674 = vst [vmem:[#allocation3 + $0x38] sm:$0xf] %v5666_v36  ;;  %5692 = vst [vmem:[#allocation3 + $0x48] sm:$0xf] %v5074_v10  ;;  %v5077_v5 = vpop.f32.mrb[48].mxu0  ;;  %v5130_v1 = vpop.f32.mrb[48].mxu1 }
 0xab2   :  { %5694 = vst [vmem:[#allocation3 + $0x58] sm:$0xf] %v5127_v38  ;;  %5711 = vst [vmem:[#allocation3 + $0x60] sm:$0xf] %v5703_v34  ;;  %v5078_v59 = vadd.f32 %v5077_v5, %v15884_v49  ;;  %v5131_v32 = vadd.f32 %v5130_v1, %v15887_v51  ;;  %v5079_v33 = vpop.f32.mrb[49].mxu0  ;;  %v5132_v47 = vpop.f32.mrb[49].mxu1 }
 0xab3   :  { %5713 = vst [vmem:[#allocation3 + $0x70] sm:$0xf] %v5705_v35  ;;  %5712 = vst [vmem:[#allocation3 + $0x68] sm:$0xf] %v5704_v37  ;;  %v5080_v52 = vadd.f32 %v5079_v33, %v15890_v55  ;;  %v5133_v61 = vadd.f32 %v5132_v47, %v15893_v44  ;;  %v5081_v42 = vpop.f32.mrb[50].mxu0  ;;  %v5134_v41 = vpop.f32.mrb[50].mxu1 }
 0xab4   :  { %5714 = vst [vmem:[#allocation3 + $0x78] sm:$0xf] %v5706_v46  ;;  %5731 = vst [vmem:[#allocation3 + $0x80] sm:$0xf] %v5078_v59  ;;  %v5743_v36 = vrot.slane %v5078_v59, 4  ;;  %v5745_v10 = vrot.slane %v5131_v32, 4  ;;  %v5082_v38 = vadd.f32 %v5081_v42, %v15884_v49  ;;  %v5135_v34 = vadd.f32 %v5134_v41, %v15887_v51 }
 0xab5   :  { %5733 = vst [vmem:[#allocation3 + $0x90] sm:$0xf] %v5131_v32  ;;  %v5083_v35 = vpop.f32.mrb[51].mxu0  ;;  %v5136_v37 = vpop.f32.mrb[51].mxu1  ;;  %5732 = vst [vmem:[#allocation3 + $0x88] sm:$0xf] %v5080_v52 }
 0xab6   :  { %v5744_v46 = vrot.slane %v5080_v52, 4  ;;  %5734 = vst [vmem:[#allocation3 + $0x98] sm:$0xf] %v5133_v61  ;;  %v5746_v5 = vrot.slane %v5133_v61, 4  ;;  %v5084_v1 = vadd.f32 %v5083_v35, %v15890_v55  ;;  %v5137_v33 = vadd.f32 %v5136_v37, %v15893_v44  ;;  %5751 = vst [vmem:[#allocation3 + $0xa0] sm:$0xf] %v5743_v36 }
 0xab7   :  { %5753 = vst [vmem:[#allocation3 + $0xb0] sm:$0xf] %v5745_v10  ;;  %5771 = vst [vmem:[#allocation3 + $0xc0] sm:$0xf] %v5082_v38  ;;  %v5783_v59 = vrot.slane %v5082_v38, 4  ;;  %v5785_v32 = vrot.slane %v5135_v34, 4 }
 0xab8   :  { %5773 = vst [vmem:[#allocation3 + $0xd0] sm:$0xf] %v5135_v34  ;;  %5752 = vst [vmem:[#allocation3 + $0xa8] sm:$0xf] %v5744_v46  ;;  %v5784_v51 = vrot.slane %v5084_v1, 4  ;;  %v5786_v49 = vrot.slane %v5137_v33, 4 }
 0xab9   :  { %5754 = vst [vmem:[#allocation3 + $0xb8] sm:$0xf] %v5746_v5  ;;  %5772 = vst [vmem:[#allocation3 + $0xc8] sm:$0xf] %v5084_v1  ;;  %v5203_v44 = vld [vmem:[%s16860_s13] sm:$0xf] }
 0xaba   :  { %5774 = vst [vmem:[#allocation3 + $0xd8] sm:$0xf] %v5137_v33  ;;  %5791 = vst [vmem:[#allocation3 + $0xe0] sm:$0xf] %v5783_v59  ;;  %v5208_v55 = vrot.slane %v5203_v44, %v17236_v50  ;;  %v5216_v47 = vrot.slane %v5203_v44, %v17237_v48  ;;  %v15929_v52 = vrot.slane %v5203_v44, %v17238_v53  ;;  %s5839_s13 = sld [smem:[#allocation11]]  ;;  %v17266_v53 = vld [vmem:[#allocation77_spill] sm:$0xff] }
 0xabb   :  { %5793 = vst [vmem:[#allocation3 + $0xf0] sm:$0xf] %v5785_v32  ;;  %5792 = vst [vmem:[#allocation3 + $0xe8] sm:$0xf] %v5784_v51  ;;  %v15932_v61 = vrot.slane %v5203_v44, %v17239_v40  ;;  %v16015_v50 = vld [vmem:[#allocation21 + $0x4] ss:$16 sps:$4 sm:$0xff]  }
 0xabc   :  { %5794 = vst [vmem:[#allocation3 + $0xf8] sm:$0xf] %v5786_v49 }
 0xae9   :  { %v5579_v42 = vpop.f32.mrb[52].mxu0  ;;  %v5632_v41 = vpop.f32.mrb[52].mxu1 }
 0xaea   :  { %v5580_v36 = vadd.f32 %v5579_v42, %v5208_v55  ;;  %v5633_v10 = vadd.f32 %v5632_v41, %v5216_v47  ;;  %v5581_v38 = vpop.f32.mrb[53].mxu0  ;;  %v5634_v34 = vpop.f32.mrb[53].mxu1 }
 0xaeb   :  { %v5582_v35 = vadd.f32 %v5581_v38, %v15929_v52  ;;  %v5635_v37 = vadd.f32 %v5634_v34, %v15932_v61  ;;  %v5583_v46 = vpop.f32.mrb[54].mxu0  ;;  %v5636_v5 = vpop.f32.mrb[54].mxu1 }
 0xaec   :  { %5775 = vst [vmem:[#allocation3 + $0xc0] sm:$0xf0] %v5580_v36  ;;  %v5799_v48 = vrot.slane %v5580_v36, 4  ;;  %5777 = vst [vmem:[#allocation3 + $0xd0] sm:$0xf0] %v5633_v10  ;;  %v5801_v1 = vrot.slane %v5633_v10, 4  ;;  %v5584_v33 = vadd.f32 %v5583_v46, %v5208_v55  ;;  %v5637_v59 = vadd.f32 %v5636_v5, %v5216_v47 }
 0xaed   :  { %v5585_v40 = vpop.f32.mrb[55].mxu0  ;;  %v5638_v32 = vpop.f32.mrb[55].mxu1  ;;  %5776 = vst [vmem:[#allocation3 + $0xc8] sm:$0xf0] %v5582_v35  ;;  %v5800_v51 = vrot.slane %v5582_v35, 4  ;;  %v5802_v49 = vrot.slane %v5635_v37, 4 }
 0xaee   :  { %5778 = vst [vmem:[#allocation3 + $0xd8] sm:$0xf0] %v5635_v37  ;;  %v5586_v44 = vadd.f32 %v5585_v40, %v15929_v52  ;;  %v5639_v42 = vadd.f32 %v5638_v32, %v15932_v61  ;;  %5807 = vst [vmem:[#allocation3 + $0xe0] sm:$0xf0] %v5799_v48  ;;  %v5759_v41 = vrot.slane %v5584_v33, 4  ;;  %v5761_v36 = vrot.slane %v5637_v59, 4 }
 0xaef   :  { %5809 = vst [vmem:[#allocation3 + $0xf0] sm:$0xf0] %v5801_v1  ;;  %5735 = vst [vmem:[#allocation3 + $0x80] sm:$0xf0] %v5584_v33 }
 0xaf0   :  { %5737 = vst [vmem:[#allocation3 + $0x90] sm:$0xf0] %v5637_v59  ;;  %5808 = vst [vmem:[#allocation3 + $0xe8] sm:$0xf0] %v5800_v51  ;;  %v5760_v10 = vrot.slane %v5586_v44, 4  ;;  %v5762_v38 = vrot.slane %v5639_v42, 4 }
 0xaf1   :  { %5810 = vst [vmem:[#allocation3 + $0xf8] sm:$0xf0] %v5802_v49  ;;  %5736 = vst [vmem:[#allocation3 + $0x88] sm:$0xf0] %v5586_v44  ;;  %v5589_v34 = vpop.f32.mrb[56].mxu0  ;;  %v5642_v35 = vpop.f32.mrb[56].mxu1 }
 0xaf2   :  { %5738 = vst [vmem:[#allocation3 + $0x98] sm:$0xf0] %v5639_v42  ;;  %5767 = vst [vmem:[#allocation3 + $0xa0] sm:$0xf0] %v5759_v41  ;;  %v5590_v37 = vadd.f32 %v5589_v34, %v5208_v55  ;;  %v5643_v46 = vadd.f32 %v5642_v35, %v5216_v47  ;;  %v5591_v5 = vpop.f32.mrb[57].mxu0  ;;  %v5644_v48 = vpop.f32.mrb[57].mxu1 }
 0xaf3   :  { %5769 = vst [vmem:[#allocation3 + $0xb0] sm:$0xf0] %v5761_v36  ;;  %5768 = vst [vmem:[#allocation3 + $0xa8] sm:$0xf0] %v5760_v10  ;;  %v5592_v1 = vadd.f32 %v5591_v5, %v15929_v52  ;;  %v5645_v33 = vadd.f32 %v5644_v48, %v15932_v61  ;;  %v5593_v59 = vpop.f32.mrb[58].mxu0  ;;  %v5646_v40 = vpop.f32.mrb[58].mxu1 }
 0xaf4   :  { %5770 = vst [vmem:[#allocation3 + $0xb8] sm:$0xf0] %v5762_v38  ;;  %5695 = vst [vmem:[#allocation3 + $0x40] sm:$0xf0] %v5590_v37  ;;  %v5719_v32 = vrot.slane %v5590_v37, 4  ;;  %v5721_v51 = vrot.slane %v5643_v46, 4  ;;  %v5594_v49 = vadd.f32 %v5593_v59, %v5208_v55  ;;  %v5647_v44 = vadd.f32 %v5646_v40, %v5216_v47 }
 0xaf5   :  { %5697 = vst [vmem:[#allocation3 + $0x50] sm:$0xf0] %v5643_v46  ;;  %v5595_v42 = vpop.f32.mrb[59].mxu0  ;;  %v5648_v41 = vpop.f32.mrb[59].mxu1  ;;  %5696 = vst [vmem:[#allocation3 + $0x48] sm:$0xf0] %v5592_v1 }
 0xaf6   :  { %v5720_v36 = vrot.slane %v5592_v1, 4  ;;  %5698 = vst [vmem:[#allocation3 + $0x58] sm:$0xf0] %v5645_v33  ;;  %v5722_v10 = vrot.slane %v5645_v33, 4  ;;  %v5596_v38 = vadd.f32 %v5595_v42, %v15929_v52  ;;  %v5649_v34 = vadd.f32 %v5648_v41, %v15932_v61  ;;  %5727 = vst [vmem:[#allocation3 + $0x60] sm:$0xf0] %v5719_v32 }
 0xaf7   :  { %5729 = vst [vmem:[#allocation3 + $0x70] sm:$0xf0] %v5721_v51  ;;  %5655 = vst [vmem:[#allocation3] sm:$0xf0] %v5594_v49  ;;  %v5679_v35 = vrot.slane %v5594_v49, 4  ;;  %v5681_v37 = vrot.slane %v5647_v44, 4 }
 0xaf8   :  { %5657 = vst [vmem:[#allocation3 + $0x10] sm:$0xf0] %v5647_v44  ;;  %5728 = vst [vmem:[#allocation3 + $0x68] sm:$0xf0] %v5720_v36  ;;  %v5680_v55 = vrot.slane %v5596_v38, 4  ;;  %v5682_v47 = vrot.slane %v5649_v34, 4 }
 0xaf9   :  { %5730 = vst [vmem:[#allocation3 + $0x78] sm:$0xf0] %v5722_v10  ;;  %5656 = vst [vmem:[#allocation3 + $0x8] sm:$0xf0] %v5596_v38 }
 0xafa   :  { %5658 = vst [vmem:[#allocation3 + $0x18] sm:$0xf0] %v5649_v34  ;;  %5687 = vst [vmem:[#allocation3 + $0x20] sm:$0xf0] %v5679_v35 }
 0xafb   :  { %5689 = vst [vmem:[#allocation3 + $0x30] sm:$0xf0] %v5681_v37  ;;  %5688 = vst [vmem:[#allocation3 + $0x28] sm:$0xf0] %v5680_v55  ;;  %v5840_v55 = vstv %s5839_s13 }
 0xafc   :  { %5690 = vst [vmem:[#allocation3 + $0x38] sm:$0xf0] %v5682_v47  ;;  %v5847_v47 = vstv %s11841_s6 }
 0xafe   :  { %v5811_v46 = vld [vmem:[#allocation3] sm:$0xff] }
 0xaff   :  { %v11838_v52 = vmul.f32 -1.442695, %v5811_v46  ;;  %v5813_v33 = vld [vmem:[#allocation3 + $0x10] sm:$0xff] }
 0xb00   :  { %v5812_v5 = vld [vmem:[#allocation3 + $0x8] sm:$0xff] }
 0xb01   :  { %v11839_v61 = vmul.f32 -1.442695, %v5812_v5  ;;  %13753 = vpow2.f32 %v11838_v52  ;;  %v5814_v48 = vld [vmem:[#allocation3 + $0x18] sm:$0xff]  ;;  %v5843_v52 = vstv %s5842_s22  ;;  %v5850_v5 = vstv %s11842_s24 }
 0xb02   :  { %v11840_v1 = vmul.f32 -1.442695, %v5814_v48 }
 0xb03   :  { %13755 = vpow2.f32 %v11839_v61 }
 0xb04   :  { %13757 = vpow2.f32 %v11840_v1 }
 0xb05   :  { %13759 = vtanh.f32 %v5813_v33 }
 0xb0b   :  { %v13754_v59 = vpop.eup %13753 }
 0xb0c   :  { %v5818_v32 = vadd.f32 1.0, %v13754_v59 }
 0xb0d   :  { %v13756_v40 = vpop.eup %13755 }
 0xb0e   :  { %v5824_v51 = vadd.f32 1.0, %v13756_v40  ;;  %13761 = vrcp.f32 %v5818_v32  ;;  %v13758_v49 = vpop.eup %13757  ;;  %v17244_v40 = vld [vmem:[#allocation57_spill] sm:$0xff]  ;;  %v17245_v32 = vld [vmem:[#allocation58_spill] sm:$0xff] }
 0xb0f   :  { %v13760_v44 = vpop.eup %13759  ;;  %v5831_v36 = vadd.f32 1.0, %v13758_v49  ;;  %v17247_v49 = vld [vmem:[#allocation62_spill] sm:$0xff] }
 0xb10   :  { %13763 = vrcp.f32 %v5824_v51  ;;  %v17246_v51 = vld [vmem:[#allocation60_spill] sm:$0xff] }
 0xb11   :  { %13765 = vrcp.f32 %v5831_v36  ;;  %v17251_v36 = vld [vmem:[#allocation64_spill] sm:$0xff] }
 0xb18   :  { %v13762_v42 = vpop.eup %13761 }
 0xb19   :  { %v5835_v10 = vmul.f32 %v13762_v42, %v13760_v44  ;;  %v17248_v44 = vld [vmem:[#allocation59_spill] sm:$0xff]  ;;  %v17249_v42 = vld [vmem:[#allocation61_spill] sm:$0xff] }
 0xb1a   :  { %v13764_v41 = vpop.eup %13763 }
 0xb1b   :  { %v5834_v38 = vmul.f32 0.0, %v13764_v41  ;;  %v13766_v35 = vpop.eup %13765  ;;  %v17250_v41 = vld [vmem:[#allocation63_spill] sm:$0xff] }
 0xb1d   :  { %v15942_v34 = vadd.f32 %v5835_v10, %v5834_v38  ;;  %v17252_v10 = vld [vmem:[#allocation65_spill] sm:$0xff]  ;;  %v17253_v38 = vld [vmem:[#allocation66_spill] sm:$0xff] }
 0xb1f   :  { %13767 = vtanh.f32 %v15942_v34 }
 0xb29   :  { %v13768_v37 = vpop.eup %13767 }
 0xb2a   :  { %v5838_v46 = vmul.f32 %v13768_v37, %v13766_v35  ;;  %v17254_v35 = vld [vmem:[#allocation67_spill] sm:$0xff]  ;;  %v17255_v37 = vld [vmem:[#allocation68_spill] sm:$0xff] }
 0xb2c   :  { %v5841_v61 = vmul.f32 %v5840_v55, %v5838_v46  ;;  %v5848_v48 = vmul.f32 %v5847_v47, %v5838_v46  ;;  %v11910_v1 = vpack.c.bf16 %v5838_v46, %v5838_v46  ;;  %v17256_v55 = vld [vmem:[#allocation69_spill] sm:$0xff]  ;;  %v17257_v47 = vld [vmem:[#allocation70_spill] sm:$0xff]  ;;  %v17258_v46 = vld [vmem:[#allocation71_spill] sm:$0xff] }
 0xb2e   :  { %v5844_v33 = vadd.f32 %v5843_v52, %v5841_v61  ;;  %v5851_v59 = vadd.f32 %v5850_v5, %v5848_v48  ;;  %11911 = vmatprep.mubr.msk.bf16.mxu0 %vm14987_vm3, %v11910_v1  ;;  %11919 = vmatprep.mubr.msk.bf16.mxu1 %vm14987_vm3, %v11910_v1  ;;  %v17259_v52 = vld [vmem:[#allocation72_spill] sm:$0xff]  ;;  %v17260_v5 = vld [vmem:[#allocation73_spill] sm:$0xff]  ;;  %v17261_v61 = vld [vmem:[#allocation74_spill] sm:$0xff] }
 0xb2f   :  { %11914 = vmatmul.mubr.msk.bf16.vlgmr.msra.gmra.mrb[60].mxu0 %vm14991_vm4, %v11910_v1  ;;  %11922 = vmatmul.mubr.msk.bf16.vlgmr.msra.gmra.mrb[60].mxu1 %vm14991_vm4, %v11910_v1  ;;  %v17262_v48 = vld [vmem:[#allocation53_spill] sm:$0xff]  ;;  %v17263_v1 = vld [vmem:[#allocation54_spill] sm:$0xff] }
 0xb30   :  { %5845 = vst [vmem:[#allocation2] sm:$0xf] %v5844_v33  ;;  %5852 = vst [vmem:[#allocation2 + $0x38] sm:$0xf0] %v5851_v59  ;;  %6768 = vmatpush1.bf16.msra.mxu0 %v15702_v43  ;;  %6809 = vmatpush1.bf16.msra.mxu1 %v15704_v39  ;;  %v17242_v43 = vld [vmem:[#allocation55_spill] sm:$0xff]  ;;  %v17243_v39 = vld [vmem:[#allocation56_spill] sm:$0xff] }
 0xb31   :  { %6769 = vmatprep.subr.bf16.mxu0 %v15710_v54  ;;  %6810 = vmatprep.subr.bf16.mxu1 %v15712_v7  ;;  %v17264_v33 = vld [vmem:[#allocation75_spill] sm:$0xff]  ;;  %v17265_v59 = vld [vmem:[#allocation76_spill] sm:$0xff]  ;;  %17267 = vst [vmem:[#allocation55_spill] sm:$0xff] %v16015_v50 }
 0xb34   :  { %6770 = vmatpush1.bf16.msra.mxu0 %v15714_v0  ;;  %6811 = vmatpush1.bf16.msra.mxu1 %v15716_v8 }
 0xb35   :  { %6771 = vmatprep.subr.bf16.mxu0 %v15722_v9  ;;  %6812 = vmatprep.subr.bf16.mxu1 %v15724_v4 }
 0xb38   :  { %6772 = vmatpush1.bf16.msra.mxu0 %v15726_v57  ;;  %6813 = vmatpush1.bf16.msra.mxu1 %v15728_v15 }
 0xb39   :  { %6773 = vmatprep.subr.bf16.mxu0 %v15734_v27  ;;  %6814 = vmatprep.subr.bf16.mxu1 %v15736_v45 }
 0xb3c   :  { %6774 = vmatpush1.bf16.msra.mxu0 %v15738_v11  ;;  %6815 = vmatpush1.bf16.msra.mxu1 %v15740_v2 }
 0xb3d   :  { %6775 = vmatprep.subr.bf16.mxu0 %v15746_v6  ;;  %6816 = vmatprep.subr.bf16.mxu1 %v15748_v16 }
 0xb40   :  { %6776 = vmatpush1.bf16.msra.mxu0 %v15750_v17  ;;  %6817 = vmatpush1.bf16.msra.mxu1 %v15752_v18 }
 0xb41   :  { %6777 = vmatprep.subr.bf16.mxu0 %v15760_v58  ;;  %6818 = vmatprep.subr.bf16.mxu1 %v15764_v21 }
 0xb44   :  { %6778 = vmatpush1.bf16.msra.mxu0 %v15758_v19  ;;  %6819 = vmatpush1.bf16.msra.mxu1 %v15762_v20 }
 0xb45   :  { %6779 = vmatprep.subr.bf16.mxu0 %v15766_v22  ;;  %6820 = vmatprep.subr.bf16.mxu1 %v15769_v23 }
 0xb48   :  { %6780 = vmatpush1.bf16.msra.mxu0 %v15774_v24  ;;  %6821 = vmatpush1.bf16.msra.mxu1 %v15776_v25 }
 0xb49   :  { %6781 = vmatprep.subr.bf16.mxu0 %v15780_v26  ;;  %6822 = vmatprep.subr.bf16.mxu1 %v15782_v29 }
 0xb4c   :  { %6782 = vmatpush1.bf16.msra.mxu0 %v15786_v28  ;;  %6823 = vmatpush1.bf16.msra.mxu1 %v15788_v13 }
 0xb4d   :  { %6783 = vmatprep.subr.bf16.mxu0 %v15792_v14  ;;  %6824 = vmatprep.subr.bf16.mxu1 %v15794_v60 }
 0xb50   :  { %6784 = vmatpush1.bf16.msra.mxu0 %v15798_v30  ;;  %6825 = vmatpush1.bf16.msra.mxu1 %v15800_v31 }
 0xb51   :  { %6785 = vmatprep.subr.bf16.mxu0 %v15804_v12  ;;  %6826 = vmatprep.subr.bf16.mxu1 %v17242_v43 }
 0xb54   :  { %6786 = vmatpush1.bf16.msra.mxu0 %v17243_v39  ;;  %6827 = vmatpush1.bf16.msra.mxu1 %v17244_v40 }
 0xb55   :  { %6787 = vmatprep.subr.bf16.mxu0 %v17245_v32  ;;  %6828 = vmatprep.subr.bf16.mxu1 %v17246_v51 }
 0xb58   :  { %6788 = vmatpush1.bf16.msra.mxu0 %v17247_v49  ;;  %6829 = vmatpush1.bf16.msra.mxu1 %v17248_v44 }
 0xb59   :  { %6789 = vmatprep.subr.bf16.mxu0 %v17249_v42  ;;  %6830 = vmatprep.subr.bf16.mxu1 %v17250_v41 }
 0xb5c   :  { %6790 = vmatpush1.bf16.msra.mxu0 %v17251_v36  ;;  %6831 = vmatpush1.bf16.msra.mxu1 %v17252_v10  ;;  %v5859_v10 = vld [vmem:[#allocation3 + $0x30] sm:$0xff] }
 0xb5d   :  { %6791 = vmatprep.subr.bf16.mxu0 %v17253_v38  ;;  %6832 = vmatprep.subr.bf16.mxu1 %v17254_v35  ;;  %v5860_v38 = vld [vmem:[#allocation3 + $0x38] sm:$0xff] }
 0xb60   :  { %6792 = vmatpush1.bf16.msra.mxu0 %v17255_v37  ;;  %6833 = vmatpush1.bf16.msra.mxu1 %v17256_v55 }
 0xb61   :  { %6793 = vmatprep.subr.bf16.mxu0 %v17257_v47  ;;  %6834 = vmatprep.subr.bf16.mxu1 %v17258_v46 }
 0xb64   :  { %6794 = vmatpush1.bf16.msra.mxu0 %v17259_v52  ;;  %6835 = vmatpush1.bf16.msra.mxu1 %v17260_v5  ;;  %v16017_v52 = vld [vmem:[#allocation21 + $0xc] ss:$16 sps:$4 sm:$0xff]  }
 0xb65   :  { %6795 = vmatprep.subr.bf16.mxu0 %v17261_v61  ;;  %6836 = vmatprep.subr.bf16.mxu1 %v17262_v48  ;;  %17268 = vst [vmem:[#allocation56_spill] sm:$0xff] %v16017_v52  ;;  %v5857_v48 = vld [vmem:[#allocation3 + $0x20] sm:$0xff]  ;;  %v5858_v5 = vld [vmem:[#allocation3 + $0x28] sm:$0xff] }
 0xb68   :  { %6796 = vmatpush1.bf16.msra.mxu0 %v17263_v1  ;;  %6837 = vmatpush1.bf16.msra.mxu1 %v17264_v33 }
 0xb69   :  { %6797 = vmatprep.subr.bf16.mxu0 %v17265_v59  ;;  %6838 = vmatprep.subr.bf16.mxu1 %v17266_v53 }
 0xb6c   :  { %6798 = vmatpush1.bf16.msra.mxu0 %v15897_v63  ;;  %6839 = vmatpush1.bf16.msra.mxu1 %v15899_v56 }
 0xb6d   :  { %7283 = vmatprep.subr.bf16.mxu0 %v16015_v50  ;;  %7324 = vmatprep.subr.bf16.mxu1 %v16017_v52 }
 0xc02   :  { %v6279_v1 = vpop.f32.mrb[60].mxu0  ;;  %v6320_v61 = vpop.f32.mrb[60].mxu1 }
 0xc03   :  { %v6327_v33 = vadd.f32 %v6279_v1, %v5857_v48  ;;  %v6281_v59 = vpop.f32.mrb[61].mxu0  ;;  %v6322_v46 = vpop.f32.mrb[61].mxu1  ;;  %v6329_v36 = vadd.f32 %v6320_v61, %v5859_v10 }
 0xc04   :  { %v6328_v53 = vadd.f32 %v6281_v59, %v5858_v5  ;;  %v6283_v47 = vpop.f32.mrb[62].mxu0  ;;  %v6324_v63 = vpop.f32.mrb[62].mxu1  ;;  %v6330_v50 = vadd.f32 %v6322_v46, %v5860_v38  ;;  %v6359_v46 = vstv %s11927_s19  ;;  %v16027_v59 = vld [vmem:[#allocation21 + $0x8] ss:$16 sps:$4 sm:$0xff]  }
 0xc05   :  { %v11923_v55 = vmul.f32 -1.442695, %v6327_v33  ;;  %v6284_v56 = vpop.f32.mrb[63].mxu0  ;;  %v6325_v37 = vpop.f32.mrb[63].mxu1 }
 0xc06   :  { %v11924_v35 = vmul.f32 -1.442695, %v6328_v53  ;;  %v11925_v52 = vmul.f32 -1.442695, %v6330_v50 }
 0xc07   :  { %13769 = vpow2.f32 %v11923_v55 }
 0xc08   :  { %13771 = vpow2.f32 %v11924_v35 }
 0xc09   :  { %13773 = vpow2.f32 %v11925_v52  ;;  %v6369_v52 = vstv %s11929_s7  ;;  %s9479_s7 = sld [smem:[#allocation11]] }
 0xc0a   :  { %13775 = vtanh.f32 %v6329_v36  ;;  %v6366_v36 = vstv %s11928_s26 }
 0xc11   :  { %v13770_v41 = vpop.eup %13769 }
 0xc12   :  { %v13772_v42 = vpop.eup %13771  ;;  %v6334_v48 = vadd.f32 1.0, %v13770_v41  ;;  %v6356_v41 = vstv %s11926_s14 }
 0xc13   :  { %v6340_v1 = vadd.f32 1.0, %v13772_v42  ;;  %v13774_v63 = vpop.eup %13773 }
 0xc14   :  { %13777 = vrcp.f32 %v6334_v48  ;;  %v13776_v47 = vpop.eup %13775  ;;  %v6347_v55 = vadd.f32 1.0, %v13774_v63 }
 0xc15   :  { %13779 = vrcp.f32 %v6340_v1 }
 0xc16   :  { %13781 = vrcp.f32 %v6347_v55 }
 0xc1e   :  { %v13778_v56 = vpop.eup %13777 }
 0xc1f   :  { %v13780_v37 = vpop.eup %13779  ;;  %v6351_v53 = vmul.f32 %v13778_v56, %v13776_v47 }
 0xc20   :  { %v6350_v35 = vmul.f32 %v13780_v37, %v15942_v34  ;;  %v13782_v50 = vpop.eup %13781  ;;  %v16025_v34 = vld [vmem:[#allocation21] ss:$16 sps:$4 sm:$0xff]  }
 0xc22   :  { %v16022_v38 = vadd.f32 %v6351_v53, %v6350_v35 }
 0xc24   :  { %13783 = vtanh.f32 %v16022_v38 }
 0xc2e   :  { %v13784_v42 = vpop.eup %13783 }
 0xc2f   :  { %v6354_v10 = vmul.f32 %v13784_v42, %v13782_v50 }
 0xc31   :  { %v6357_v5 = vmul.f32 %v6356_v41, %v6354_v10  ;;  %v6367_v61 = vmul.f32 %v6366_v36, %v6354_v10  ;;  %v11997_v33 = vpack.c.bf16 %v6354_v10, %v6354_v10 }
 0xc33   :  { %v6360_v48 = vadd.f32 %v6359_v46, %v6357_v5  ;;  %v6370_v1 = vadd.f32 %v6369_v52, %v6367_v61  ;;  %11998 = vmatprep.mubr.msk.bf16.mxu0 %vm14987_vm3, %v11997_v33  ;;  %12006 = vmatprep.mubr.msk.bf16.mxu1 %vm14987_vm3, %v11997_v33 }
 0xc34   :  { %12001 = vmatmul.mubr.msk.bf16.vlgmr.msra.gmra.mrb[64].mxu0 %vm14991_vm4, %v11997_v33  ;;  %12009 = vmatmul.mubr.msk.bf16.vlgmr.msra.gmra.mrb[64].mxu1 %vm14991_vm4, %v11997_v33 }
 0xc35   :  { %v6362_v63 = vrot.slane %v6360_v48, 4  ;;  %v6372_v47 = vrot.slane %v6370_v1, 4  ;;  %7284 = vmatpush1.bf16.msra.mxu0 %v16025_v34  ;;  %7325 = vmatpush1.bf16.msra.mxu1 %v16027_v59  ;;  %v6878_v48 = vstv %s12013_s17  ;;  %v6885_v1 = vstv %s12015_s30  ;;  %s12449_s17 = sld [smem:[#allocation12 + $0x7]]  ;;  %s9482_s30 = sld [smem:[#allocation12]] }
 0xc36   :  { %7285 = vmatprep.subr.bf16.mxu0 %v15710_v54  ;;  %7326 = vmatprep.subr.bf16.mxu1 %v15712_v7  ;;  %v17269_v54 = vld [vmem:[#allocation61_spill] sm:$0xff]  ;;  %v17270_v7 = vld [vmem:[#allocation63_spill] sm:$0xff] }
 0xc37   :  { %6364 = vst [vmem:[#allocation2] sm:$0xf0] %v6362_v63  ;;  %6374 = vst [vmem:[#allocation2 + $0x38] sm:$0xf] %v6372_v47  ;;  %v6881_v47 = vstv %s12014_s0 }
 0xc39   :  { %7286 = vmatpush1.bf16.msra.mxu0 %v15714_v0  ;;  %7327 = vmatpush1.bf16.msra.mxu1 %v15716_v8  ;;  %v17271_v0 = vld [vmem:[#allocation64_spill] sm:$0xff]  ;;  %v17272_v8 = vld [vmem:[#allocation65_spill] sm:$0xff] }
 0xc3a   :  { %7287 = vmatprep.subr.bf16.mxu0 %v15722_v9  ;;  %7328 = vmatprep.subr.bf16.mxu1 %v15724_v4  ;;  %v17273_v9 = vld [vmem:[#allocation66_spill] sm:$0xff]  ;;  %v17274_v4 = vld [vmem:[#allocation67_spill] sm:$0xff] }
 0xc3d   :  { %7288 = vmatpush1.bf16.msra.mxu0 %v15726_v57  ;;  %7329 = vmatpush1.bf16.msra.mxu1 %v15728_v15  ;;  %v17275_v57 = vld [vmem:[#allocation68_spill] sm:$0xff]  ;;  %v17276_v15 = vld [vmem:[#allocation69_spill] sm:$0xff] }
 0xc3e   :  { %7289 = vmatprep.subr.bf16.mxu0 %v15734_v27  ;;  %7330 = vmatprep.subr.bf16.mxu1 %v15736_v45  ;;  %v17277_v27 = vld [vmem:[#allocation70_spill] sm:$0xff]  ;;  %v17278_v45 = vld [vmem:[#allocation71_spill] sm:$0xff] }
 0xc41   :  { %7290 = vmatpush1.bf16.msra.mxu0 %v15738_v11  ;;  %7331 = vmatpush1.bf16.msra.mxu1 %v15740_v2  ;;  %v17279_v11 = vld [vmem:[#allocation72_spill] sm:$0xff]  ;;  %v17280_v2 = vld [vmem:[#allocation73_spill] sm:$0xff] }
 0xc42   :  { %7291 = vmatprep.subr.bf16.mxu0 %v15746_v6  ;;  %7332 = vmatprep.subr.bf16.mxu1 %v15748_v16  ;;  %v17281_v6 = vld [vmem:[#allocation74_spill] sm:$0xff]  ;;  %v17282_v16 = vld [vmem:[#allocation53_spill] sm:$0xff] }
 0xc45   :  { %7292 = vmatpush1.bf16.msra.mxu0 %v15750_v17  ;;  %7333 = vmatpush1.bf16.msra.mxu1 %v15752_v18  ;;  %v17283_v17 = vld [vmem:[#allocation54_spill] sm:$0xff]  ;;  %v17284_v18 = vld [vmem:[#allocation75_spill] sm:$0xff] }
 0xc46   :  { %7293 = vmatprep.subr.bf16.mxu0 %v15760_v58  ;;  %7334 = vmatprep.subr.bf16.mxu1 %v15764_v21  ;;  %v17286_v58 = vld [vmem:[#allocation77_spill] sm:$0xff]  ;;  %v17288_v21 = vld [vmem:[#allocation52_spill] sm:$0xff] }
 0xc49   :  { %7294 = vmatpush1.bf16.msra.mxu0 %v15758_v19  ;;  %7335 = vmatpush1.bf16.msra.mxu1 %v15762_v20  ;;  %v17285_v19 = vld [vmem:[#allocation76_spill] sm:$0xff]  ;;  %v17287_v20 = vld [vmem:[#allocation50_spill] sm:$0xff] }
 0xc4a   :  { %7295 = vmatprep.subr.bf16.mxu0 %v15766_v22  ;;  %7336 = vmatprep.subr.bf16.mxu1 %v15769_v23  ;;  %v17289_v22 = vld [vmem:[#allocation55_spill] sm:$0xff]  ;;  %v17290_v23 = vld [vmem:[#allocation56_spill] sm:$0xff] }
 0xc4d   :  { %7296 = vmatpush1.bf16.msra.mxu0 %v15774_v24  ;;  %7337 = vmatpush1.bf16.msra.mxu1 %v15776_v25  ;;  %v6379_v24 = vld [vmem:[#allocation3 + $0x40] sm:$0xff] }
 0xc4e   :  { %7297 = vmatprep.subr.bf16.mxu0 %v15780_v26  ;;  %7338 = vmatprep.subr.bf16.mxu1 %v15782_v29 }
 0xc51   :  { %7298 = vmatpush1.bf16.msra.mxu0 %v15786_v28  ;;  %7339 = vmatpush1.bf16.msra.mxu1 %v15788_v13  ;;  %v6380_v28 = vld [vmem:[#allocation3 + $0x48] sm:$0xff] }
 0xc52   :  { %7299 = vmatprep.subr.bf16.mxu0 %v15792_v14  ;;  %7340 = vmatprep.subr.bf16.mxu1 %v15794_v60 }
 0xc55   :  { %7300 = vmatpush1.bf16.msra.mxu0 %v15798_v30  ;;  %7341 = vmatpush1.bf16.msra.mxu1 %v15800_v31 }
 0xc56   :  { %7301 = vmatprep.subr.bf16.mxu0 %v15804_v12  ;;  %7342 = vmatprep.subr.bf16.mxu1 %v17242_v43 }
 0xc59   :  { %7302 = vmatpush1.bf16.msra.mxu0 %v17243_v39  ;;  %7343 = vmatpush1.bf16.msra.mxu1 %v17244_v40 }
 0xc5a   :  { %7303 = vmatprep.subr.bf16.mxu0 %v17245_v32  ;;  %7344 = vmatprep.subr.bf16.mxu1 %v17246_v51  ;;  %v6382_v32 = vld [vmem:[#allocation3 + $0x58] sm:$0xff] }
 0xc5d   :  { %7304 = vmatpush1.bf16.msra.mxu0 %v17247_v49  ;;  %7345 = vmatpush1.bf16.msra.mxu1 %v17248_v44  ;;  %v6381_v49 = vld [vmem:[#allocation3 + $0x50] sm:$0xff] }
 0xc5e   :  { %7305 = vmatprep.subr.bf16.mxu0 %v17269_v54  ;;  %7346 = vmatprep.subr.bf16.mxu1 %v17270_v7  ;;  %v6888_v54 = vstv %s12016_s16 }
 0xc61   :  { %7306 = vmatpush1.bf16.msra.mxu0 %v17271_v0  ;;  %7347 = vmatpush1.bf16.msra.mxu1 %v17272_v8 }
 0xc62   :  { %7307 = vmatprep.subr.bf16.mxu0 %v17273_v9  ;;  %7348 = vmatprep.subr.bf16.mxu1 %v17274_v4  ;;  %v16107_v9 = vld [vmem:[#allocation21 + $0x2c] ss:$16 sps:$4 sm:$0xff]  }
 0xc65   :  { %7308 = vmatpush1.bf16.msra.mxu0 %v17275_v57  ;;  %7349 = vmatpush1.bf16.msra.mxu1 %v17276_v15  ;;  %v16119_v15 = vld [vmem:[#allocation21 + $0x20] ss:$16 sps:$4 sm:$0xff]  }
 0xc66   :  { %7309 = vmatprep.subr.bf16.mxu0 %v17277_v27  ;;  %7350 = vmatprep.subr.bf16.mxu1 %v17278_v45  ;;  %v16121_v27 = vld [vmem:[#allocation21 + $0x28] ss:$16 sps:$4 sm:$0xff]   ;;  %v16125_v45 = vld [vmem:[#allocation21 + $0x44] ss:$16 sps:$4 sm:$0xff]  }
 0xc69   :  { %7310 = vmatpush1.bf16.msra.mxu0 %v17279_v11  ;;  %7351 = vmatpush1.bf16.msra.mxu1 %v17280_v2  ;;  %v16127_v11 = vld [vmem:[#allocation21 + $0x4c] ss:$16 sps:$4 sm:$0xff]   ;;  %v16131_v2 = vld [vmem:[#allocation21 + $0x40] ss:$16 sps:$4 sm:$0xff]  }
 0xc6a   :  { %7311 = vmatprep.subr.bf16.mxu0 %v17281_v6  ;;  %7352 = vmatprep.subr.bf16.mxu1 %v17282_v16  ;;  %v16133_v6 = vld [vmem:[#allocation21 + $0x48] ss:$16 sps:$4 sm:$0xff]   ;;  %v16137_v16 = vld [vmem:[#allocation21 + $0x64] ss:$16 sps:$4 sm:$0xff]  }
 0xc6d   :  { %7312 = vmatpush1.bf16.msra.mxu0 %v17283_v17  ;;  %7353 = vmatpush1.bf16.msra.mxu1 %v17284_v18  ;;  %v16139_v17 = vld [vmem:[#allocation21 + $0x6c] ss:$16 sps:$4 sm:$0xff]   ;;  %v16143_v18 = vld [vmem:[#allocation21 + $0x60] ss:$16 sps:$4 sm:$0xff]  }
 0xc6e   :  { %7313 = vmatprep.subr.bf16.mxu0 %v17285_v19  ;;  %7354 = vmatprep.subr.bf16.mxu1 %v17286_v58  ;;  %v16145_v19 = vld [vmem:[#allocation21 + $0x68] ss:$16 sps:$4 sm:$0xff]   ;;  %v16151_v58 = vld [vmem:[#allocation21 + $0x84] ss:$16 sps:$4 sm:$0xff]  }
 0xc71   :  { %7314 = vmatpush1.bf16.msra.mxu0 %v17287_v20  ;;  %7355 = vmatpush1.bf16.msra.mxu1 %v17288_v21  ;;  %v16153_v20 = vld [vmem:[#allocation21 + $0x8c] ss:$16 sps:$4 sm:$0xff]   ;;  %v16155_v21 = vld [vmem:[#allocation21 + $0x80] ss:$16 sps:$4 sm:$0xff]  }
 0xc72   :  { %7805 = vmatprep.subr.bf16.mxu0 %v17289_v22  ;;  %7846 = vmatprep.subr.bf16.mxu1 %v17290_v23 }
 0xd07   :  { %v6801_v25 = vpop.f32.mrb[64].mxu0  ;;  %v6842_v26 = vpop.f32.mrb[64].mxu1 }
 0xd08   :  { %v6849_v29 = vadd.f32 %v6801_v25, %v6379_v24  ;;  %v6803_v13 = vpop.f32.mrb[65].mxu0  ;;  %v6844_v14 = vpop.f32.mrb[65].mxu1  ;;  %v6851_v56 = vadd.f32 %v6842_v26, %v6381_v49  ;;  %v16157_v24 = vld [vmem:[#allocation21 + $0x88] ss:$16 sps:$4 sm:$0xff]   ;;  %v16163_v25 = vld [vmem:[#allocation21 + $0xa4] ss:$16 sps:$4 sm:$0xff]  }
 0xd09   :  { %v6850_v60 = vadd.f32 %v6803_v13, %v6380_v28  ;;  %v6805_v30 = vpop.f32.mrb[66].mxu0  ;;  %v6846_v31 = vpop.f32.mrb[66].mxu1  ;;  %v6852_v51 = vadd.f32 %v6844_v14, %v6382_v32  ;;  %v16165_v26 = vld [vmem:[#allocation21 + $0xac] ss:$16 sps:$4 sm:$0xff]   ;;  %v16169_v28 = vld [vmem:[#allocation21 + $0xa8] ss:$16 sps:$4 sm:$0xff]  }
 0xd0a   :  { %v12010_v12 = vmul.f32 -1.442695, %v6849_v29  ;;  %v6806_v43 = vpop.f32.mrb[67].mxu0  ;;  %v6847_v39 = vpop.f32.mrb[67].mxu1  ;;  %v16167_v29 = vld [vmem:[#allocation21 + $0xa0] ss:$16 sps:$4 sm:$0xff]  }
 0xd0b   :  { %v12011_v40 = vmul.f32 -1.442695, %v6850_v60  ;;  %v12012_v44 = vmul.f32 -1.442695, %v6852_v51  ;;  %v16175_v13 = vld [vmem:[#allocation21 + $0xc4] ss:$16 sps:$4 sm:$0xff]  }
 0xd0c   :  { %13785 = vpow2.f32 %v12010_v12  ;;  %v16177_v14 = vld [vmem:[#allocation21 + $0xcc] ss:$16 sps:$4 sm:$0xff]   ;;  %v16179_v60 = vld [vmem:[#allocation21 + $0xc0] ss:$16 sps:$4 sm:$0xff]   ;;  %v16181_v30 = vld [vmem:[#allocation21 + $0xc8] ss:$16 sps:$4 sm:$0xff]  }
 0xd0d   :  { %13787 = vpow2.f32 %v12011_v40  ;;  %v16187_v31 = vld [vmem:[#allocation21 + $0xe4] ss:$16 sps:$4 sm:$0xff]   ;;  %v16189_v12 = vld [vmem:[#allocation21 + $0xec] ss:$16 sps:$4 sm:$0xff]   ;;  %v16191_v43 = vld [vmem:[#allocation21 + $0xe0] ss:$16 sps:$4 sm:$0xff]  }
 0xd0e   :  { %13789 = vpow2.f32 %v12012_v44  ;;  %v16193_v39 = vld [vmem:[#allocation21 + $0xe8] ss:$16 sps:$4 sm:$0xff]   ;;  %v16199_v40 = vld [vmem:[#allocation21 + $0x104] ss:$16 sps:$4 sm:$0xff]   ;;  %v16201_v32 = vld [vmem:[#allocation21 + $0x10c] ss:$16 sps:$4 sm:$0xff]  }
 0xd0f   :  { %13791 = vtanh.f32 %v6851_v56  ;;  %v16203_v51 = vld [vmem:[#allocation21 + $0x100] ss:$16 sps:$4 sm:$0xff]   ;;  %v16205_v49 = vld [vmem:[#allocation21 + $0x108] ss:$16 sps:$4 sm:$0xff]   ;;  %v16211_v44 = vld [vmem:[#allocation21 + $0x124] ss:$16 sps:$4 sm:$0xff]  }
 0xd10   :  { %v16213_v56 = vld [vmem:[#allocation21 + $0x12c] ss:$16 sps:$4 sm:$0xff]  }
 0xd16   :  { %v13786_v37 = vpop.eup %13785 }
 0xd17   :  { %v13788_v53 = vpop.eup %13787  ;;  %v6856_v55 = vadd.f32 1.0, %v13786_v37  ;;  %v16215_v37 = vld [vmem:[#allocation21 + $0x120] ss:$16 sps:$4 sm:$0xff]  }
 0xd18   :  { %v6862_v35 = vadd.f32 1.0, %v13788_v53  ;;  %v13790_v50 = vpop.eup %13789  ;;  %v16217_v53 = vld [vmem:[#allocation21 + $0x128] ss:$16 sps:$4 sm:$0xff]  }
 0xd19   :  { %13793 = vrcp.f32 %v6856_v55  ;;  %v13792_v42 = vpop.eup %13791  ;;  %v6869_v46 = vadd.f32 1.0, %v13790_v50  ;;  %v16223_v55 = vld [vmem:[#allocation21 + $0x144] ss:$16 sps:$4 sm:$0xff]   ;;  %v16227_v50 = vld [vmem:[#allocation21 + $0x140] ss:$16 sps:$4 sm:$0xff]  }
 0xd1a   :  { %13795 = vrcp.f32 %v6862_v35  ;;  %v16225_v35 = vld [vmem:[#allocation21 + $0x14c] ss:$16 sps:$4 sm:$0xff]   ;;  %17291 = vst [vmem:[#allocation57_spill] sm:$0xff] %v16227_v50 }
 0xd1b   :  { %13797 = vrcp.f32 %v6869_v46  ;;  %v16241_v46 = vld [vmem:[#allocation21 + $0x168] ss:$16 sps:$4 sm:$0xff]  }
 0xd1c   :  { %17296 = vst [vmem:[#allocation61_spill] sm:$0xff] %v16241_v46 }
 0xd23   :  { %v13794_v41 = vpop.eup %13793 }
 0xd24   :  { %v13796_v36 = vpop.eup %13795  ;;  %v6873_v10 = vmul.f32 %v13794_v41, %v13792_v42  ;;  %v16229_v42 = vld [vmem:[#allocation21 + $0x148] ss:$16 sps:$4 sm:$0xff]   ;;  %v16235_v41 = vld [vmem:[#allocation21 + $0x164] ss:$16 sps:$4 sm:$0xff]  }
 0xd25   :  { %v6872_v52 = vmul.f32 %v13796_v36, %v16022_v38  ;;  %v13798_v61 = vpop.eup %13797  ;;  %v16105_v38 = vld [vmem:[#allocation21 + $0x24] ss:$16 sps:$4 sm:$0xff]   ;;  %17292 = vst [vmem:[#allocation58_spill] sm:$0xff] %v16229_v42  ;;  %17293 = vst [vmem:[#allocation60_spill] sm:$0xff] %v16235_v41  ;;  %v16237_v36 = vld [vmem:[#allocation21 + $0x16c] ss:$16 sps:$4 sm:$0xff]  }
 0xd26   :  { %17294 = vst [vmem:[#allocation62_spill] sm:$0xff] %v16237_v36 }
 0xd27   :  { %v16102_v5 = vadd.f32 %v6873_v10, %v6872_v52  ;;  %v16239_v10 = vld [vmem:[#allocation21 + $0x160] ss:$16 sps:$4 sm:$0xff]  }
 0xd28   :  { %17295 = vst [vmem:[#allocation59_spill] sm:$0xff] %v16239_v10  ;;  %v16247_v52 = vld [vmem:[#allocation21 + $0x180] ss:$16 sps:$4 sm:$0xff]  }
 0xd29   :  { %13799 = vtanh.f32 %v16102_v5  ;;  %17297 = vst [vmem:[#allocation63_spill] sm:$0xff] %v16247_v52 }
 0xd33   :  { %v13800_v33 = vpop.eup %13799 }
 0xd34   :  { %v6876_v63 = vmul.f32 %v13800_v33, %v13798_v61  ;;  %v16249_v61 = vld [vmem:[#allocation21 + $0x184] ss:$16 sps:$4 sm:$0xff]   ;;  %v16251_v33 = vld [vmem:[#allocation21 + $0x188] ss:$16 sps:$4 sm:$0xff]  }
 0xd35   :  { %17298 = vst [vmem:[#allocation64_spill] sm:$0xff] %v16249_v61  ;;  %17299 = vst [vmem:[#allocation65_spill] sm:$0xff] %v16251_v33 }
 0xd36   :  { %v6879_v7 = vmul.f32 %v6878_v48, %v6876_v63  ;;  %v6886_v0 = vmul.f32 %v6885_v1, %v6876_v63  ;;  %v12084_v8 = vpack.c.bf16 %v6876_v63, %v6876_v63  ;;  %v16253_v48 = vld [vmem:[#allocation21 + $0x18c] ss:$16 sps:$4 sm:$0xff]   ;;  %v16255_v1 = vld [vmem:[#allocation21 + $0x1a4] ss:$16 sps:$4 sm:$0xff]  }
 0xd37   :  { %17300 = vst [vmem:[#allocation66_spill] sm:$0xff] %v16253_v48  ;;  %17301 = vst [vmem:[#allocation67_spill] sm:$0xff] %v16255_v1  ;;  %v16258_v63 = vld [vmem:[#allocation21 + $0x1ac] ss:$16 sps:$4 sm:$0xff]  }
 0xd38   :  { %v6882_v4 = vadd.f32 %v6881_v47, %v6879_v7  ;;  %v6889_v57 = vadd.f32 %v6888_v54, %v6886_v0  ;;  %12085 = vmatprep.mubr.msk.bf16.mxu0 %vm14987_vm3, %v12084_v8  ;;  %12093 = vmatprep.mubr.msk.bf16.mxu1 %vm14987_vm3, %v12084_v8  ;;  %17302 = vst [vmem:[#allocation68_spill] sm:$0xff] %v16258_v63  ;;  %v16263_v47 = vld [vmem:[#allocation21 + $0x1a0] ss:$16 sps:$4 sm:$0xff]   ;;  %v16265_v54 = vld [vmem:[#allocation21 + $0x1a8] ss:$16 sps:$4 sm:$0xff]  }
 0xd39   :  { %12088 = vmatmul.mubr.msk.bf16.vlgmr.msra.gmra.mrb[68].mxu0 %vm14991_vm4, %v12084_v8  ;;  %12096 = vmatmul.mubr.msk.bf16.vlgmr.msra.gmra.mrb[68].mxu1 %vm14991_vm4, %v12084_v8  ;;  %17303 = vst [vmem:[#allocation69_spill] sm:$0xff] %v16263_v47  ;;  %17304 = vst [vmem:[#allocation70_spill] sm:$0xff] %v16265_v54  ;;  %v16269_v7 = vld [vmem:[#allocation21 + $0x1c4] ss:$16 sps:$4 sm:$0xff]   ;;  %v16271_v0 = vld [vmem:[#allocation21 + $0x1cc] ss:$16 sps:$4 sm:$0xff]  }
 0xd3a   :  { %6883 = vst [vmem:[#allocation2 + $0x10] sm:$0xf] %v6882_v4  ;;  %6890 = vst [vmem:[#allocation2 + $0x28] sm:$0xf0] %v6889_v57  ;;  %7806 = vmatpush1.bf16.msra.mxu0 %v16025_v34  ;;  %7847 = vmatpush1.bf16.msra.mxu1 %v16027_v59  ;;  %v16275_v8 = vld [vmem:[#allocation21 + $0x1c0] ss:$16 sps:$4 sm:$0xff]  }
 0xd3b   :  { %7807 = vmatprep.subr.bf16.mxu0 %v16105_v38  ;;  %7848 = vmatprep.subr.bf16.mxu1 %v16107_v9  ;;  %17305 = vst [vmem:[#allocation71_spill] sm:$0xff] %v16269_v7  ;;  %17306 = vst [vmem:[#allocation72_spill] sm:$0xff] %v16271_v0  ;;  %v16277_v4 = vld [vmem:[#allocation21 + $0x1c8] ss:$16 sps:$4 sm:$0xff]   ;;  %v16281_v57 = vld [vmem:[#allocation21 + $0x1e4] ss:$16 sps:$4 sm:$0xff]  }
 0xd3c   :  { %17307 = vst [vmem:[#allocation73_spill] sm:$0xff] %v16275_v8  ;;  %17308 = vst [vmem:[#allocation74_spill] sm:$0xff] %v16277_v4 }
 0xd3d   :  { %17309 = vst [vmem:[#allocation53_spill] sm:$0xff] %v16281_v57 }
 0xd3e   :  { %7808 = vmatpush1.bf16.msra.mxu0 %v16119_v15  ;;  %7849 = vmatpush1.bf16.msra.mxu1 %v16121_v27 }
 0xd3f   :  { %7809 = vmatprep.subr.bf16.mxu0 %v16125_v45  ;;  %7850 = vmatprep.subr.bf16.mxu1 %v16127_v11 }
 0xd42   :  { %7810 = vmatpush1.bf16.msra.mxu0 %v16131_v2  ;;  %7851 = vmatpush1.bf16.msra.mxu1 %v16133_v6 }
 0xd43   :  { %7811 = vmatprep.subr.bf16.mxu0 %v16137_v16  ;;  %7852 = vmatprep.subr.bf16.mxu1 %v16139_v17 }
 0xd46   :  { %7812 = vmatpush1.bf16.msra.mxu0 %v16143_v18  ;;  %7853 = vmatpush1.bf16.msra.mxu1 %v16145_v19 }
 0xd47   :  { %7813 = vmatprep.subr.bf16.mxu0 %v16151_v58  ;;  %7854 = vmatprep.subr.bf16.mxu1 %v16153_v20 }
 0xd4a   :  { %7814 = vmatpush1.bf16.msra.mxu0 %v16155_v21  ;;  %7855 = vmatpush1.bf16.msra.mxu1 %v16157_v24 }
 0xd4b   :  { %7815 = vmatprep.subr.bf16.mxu0 %v16163_v25  ;;  %7856 = vmatprep.subr.bf16.mxu1 %v16165_v26 }
 0xd4e   :  { %7816 = vmatpush1.bf16.msra.mxu0 %v16167_v29  ;;  %7857 = vmatpush1.bf16.msra.mxu1 %v16169_v28 }
 0xd4f   :  { %7817 = vmatprep.subr.bf16.mxu0 %v16175_v13  ;;  %7858 = vmatprep.subr.bf16.mxu1 %v16177_v14 }
 0xd52   :  { %7818 = vmatpush1.bf16.msra.mxu0 %v16179_v60  ;;  %7859 = vmatpush1.bf16.msra.mxu1 %v16181_v30 }
 0xd53   :  { %7819 = vmatprep.subr.bf16.mxu0 %v16187_v31  ;;  %7860 = vmatprep.subr.bf16.mxu1 %v16189_v12 }
 0xd56   :  { %7820 = vmatpush1.bf16.msra.mxu0 %v16191_v43  ;;  %7861 = vmatpush1.bf16.msra.mxu1 %v16193_v39 }
 0xd57   :  { %7821 = vmatprep.subr.bf16.mxu0 %v16199_v40  ;;  %7862 = vmatprep.subr.bf16.mxu1 %v16201_v32 }
 0xd5a   :  { %7822 = vmatpush1.bf16.msra.mxu0 %v16203_v51  ;;  %7863 = vmatpush1.bf16.msra.mxu1 %v16205_v49 }
 0xd5b   :  { %7823 = vmatprep.subr.bf16.mxu0 %v16211_v44  ;;  %7864 = vmatprep.subr.bf16.mxu1 %v16213_v56 }
 0xd5e   :  { %7824 = vmatpush1.bf16.msra.mxu0 %v16215_v37  ;;  %7865 = vmatpush1.bf16.msra.mxu1 %v16217_v53 }
 0xd5f   :  { %7825 = vmatprep.subr.bf16.mxu0 %v16223_v55  ;;  %7866 = vmatprep.subr.bf16.mxu1 %v16225_v35 }
 0xd62   :  { %7826 = vmatpush1.bf16.msra.mxu0 %v16227_v50  ;;  %7867 = vmatpush1.bf16.msra.mxu1 %v16229_v42 }
 0xd63   :  { %7827 = vmatprep.subr.bf16.mxu0 %v16235_v41  ;;  %7868 = vmatprep.subr.bf16.mxu1 %v16237_v36  ;;  %v6897_v36 = vld [vmem:[#allocation3 + $0x70] sm:$0xff] }
 0xd66   :  { %7828 = vmatpush1.bf16.msra.mxu0 %v16239_v10  ;;  %7869 = vmatpush1.bf16.msra.mxu1 %v16241_v46 }
 0xd67   :  { %7829 = vmatprep.subr.bf16.mxu0 %v16249_v61  ;;  %7870 = vmatprep.subr.bf16.mxu1 %v16253_v48 }
 0xd6a   :  { %7830 = vmatpush1.bf16.msra.mxu0 %v16247_v52  ;;  %7871 = vmatpush1.bf16.msra.mxu1 %v16251_v33 }
 0xd6b   :  { %7831 = vmatprep.subr.bf16.mxu0 %v16255_v1  ;;  %7872 = vmatprep.subr.bf16.mxu1 %v16258_v63  ;;  %v16283_v1 = vld [vmem:[#allocation21 + $0x1ec] ss:$16 sps:$4 sm:$0xff]   ;;  %v16287_v63 = vld [vmem:[#allocation21 + $0x1e0] ss:$16 sps:$4 sm:$0xff]  }
 0xd6c   :  { %17310 = vst [vmem:[#allocation54_spill] sm:$0xff] %v16283_v1  ;;  %17311 = vst [vmem:[#allocation75_spill] sm:$0xff] %v16287_v63 }
 0xd6e   :  { %7832 = vmatpush1.bf16.msra.mxu0 %v16263_v47  ;;  %7873 = vmatpush1.bf16.msra.mxu1 %v16265_v54  ;;  %v16289_v47 = vld [vmem:[#allocation21 + $0x1e8] ss:$16 sps:$4 sm:$0xff]  }
 0xd6f   :  { %7833 = vmatprep.subr.bf16.mxu0 %v16269_v7  ;;  %7874 = vmatprep.subr.bf16.mxu1 %v16271_v0  ;;  %17312 = vst [vmem:[#allocation76_spill] sm:$0xff] %v16289_v47  ;;  %v6895_v0 = vld [vmem:[#allocation3 + $0x60] sm:$0xff]  ;;  %v6896_v54 = vld [vmem:[#allocation3 + $0x68] sm:$0xff] }
 0xd72   :  { %7834 = vmatpush1.bf16.msra.mxu0 %v16275_v8  ;;  %7875 = vmatpush1.bf16.msra.mxu1 %v16277_v4 }
 0xd73   :  { %7835 = vmatprep.subr.bf16.mxu0 %v16281_v57  ;;  %7876 = vmatprep.subr.bf16.mxu1 %v16283_v1 }
 0xd76   :  { %7836 = vmatpush1.bf16.msra.mxu0 %v16287_v63  ;;  %7877 = vmatpush1.bf16.msra.mxu1 %v16289_v47  ;;  %v6898_v47 = vld [vmem:[#allocation3 + $0x78] sm:$0xff] }
 0xd77   :  { %8321 = vmatprep.subr.bf16.mxu0 %v17289_v22  ;;  %8362 = vmatprep.subr.bf16.mxu1 %v17290_v23 }
 0xe0c   :  { %v7317_v8 = vpop.f32.mrb[68].mxu0  ;;  %v7358_v7 = vpop.f32.mrb[68].mxu1 }
 0xe0d   :  { %v7365_v4 = vadd.f32 %v7317_v8, %v6895_v0  ;;  %v7319_v33 = vpop.f32.mrb[69].mxu0  ;;  %v7360_v52 = vpop.f32.mrb[69].mxu1  ;;  %v7367_v41 = vadd.f32 %v7358_v7, %v6897_v36 }
 0xe0e   :  { %v7366_v48 = vadd.f32 %v7319_v33, %v6896_v54  ;;  %v7321_v61 = vpop.f32.mrb[70].mxu0  ;;  %v7362_v57 = vpop.f32.mrb[70].mxu1  ;;  %v7368_v22 = vadd.f32 %v7360_v52, %v6898_v47  ;;  %v17067_v47 = vstv %s16305_s9  ;;  %v17068_v54 = vstv %s16307_s21 }
 0xe0f   :  { %v12097_v46 = vmul.f32 -1.442695, %v7365_v4  ;;  %v7322_v1 = vpop.f32.mrb[71].mxu0  ;;  %v7363_v10 = vpop.f32.mrb[71].mxu1 }
 0xe10   :  { %v12098_v63 = vmul.f32 -1.442695, %v7366_v48  ;;  %v12099_v23 = vmul.f32 -1.442695, %v7368_v22 }
 0xe11   :  { %13801 = vpow2.f32 %v12097_v46 }
 0xe12   :  { %13803 = vpow2.f32 %v12098_v63 }
 0xe13   :  { %13805 = vpow2.f32 %v12099_v23 }
 0xe14   :  { %13807 = vtanh.f32 %v7367_v41  ;;  %v17070_v41 = vstv %s16303_s27 }
 0xe1b   :  { %v13802_v42 = vpop.eup %13801 }
 0xe1c   :  { %v13804_v50 = vpop.eup %13803  ;;  %v7372_v0 = vadd.f32 1.0, %v13802_v42  ;;  %v17069_v42 = vstv %s16301_s5 }
 0xe1d   :  { %v7378_v8 = vadd.f32 1.0, %v13804_v50  ;;  %v13806_v61 = vpop.eup %13805 }
 0xe1e   :  { %13809 = vrcp.f32 %v7372_v0  ;;  %v13808_v33 = vpop.eup %13807  ;;  %v7385_v46 = vadd.f32 1.0, %v13806_v61  ;;  %v17315_v61 = vld [vmem:[#allocation60_spill] sm:$0xff] }
 0xe1f   :  { %13811 = vrcp.f32 %v7378_v8 }
 0xe20   :  { %13813 = vrcp.f32 %v7385_v46  ;;  %v17320_v46 = vld [vmem:[#allocation66_spill] sm:$0xff] }
 0xe28   :  { %v13810_v1 = vpop.eup %13809 }
 0xe29   :  { %v13812_v10 = vpop.eup %13811  ;;  %v7389_v48 = vmul.f32 %v13810_v1, %v13808_v33  ;;  %v17316_v33 = vld [vmem:[#allocation62_spill] sm:$0xff]  ;;  %v17317_v1 = vld [vmem:[#allocation59_spill] sm:$0xff] }
 0xe2a   :  { %v7388_v63 = vmul.f32 %v13812_v10, %v16102_v5  ;;  %v13814_v5 = vpop.eup %13813  ;;  %v17318_v10 = vld [vmem:[#allocation61_spill] sm:$0xff] }
 0xe2c   :  { %v16298_v52 = vadd.f32 %v7389_v48, %v7388_v63  ;;  %v17319_v48 = vld [vmem:[#allocation64_spill] sm:$0xff]  ;;  %v17321_v63 = vld [vmem:[#allocation63_spill] sm:$0xff] }
 0xe2e   :  { %13815 = vtanh.f32 %v16298_v52 }
 0xe38   :  { %v13816_v50 = vpop.eup %13815 }
 0xe39   :  { %v7392_v36 = vmul.f32 %v13816_v50, %v13814_v5  ;;  %v17322_v5 = vld [vmem:[#allocation65_spill] sm:$0xff]  ;;  %v17323_v50 = vld [vmem:[#allocation67_spill] sm:$0xff] }
 0xe3b   :  { %v7395_v7 = vmul.f32 %v17069_v42, %v7392_v36  ;;  %v7405_v4 = vmul.f32 %v17070_v41, %v7392_v36  ;;  %v12171_v57 = vpack.c.bf16 %v7392_v36, %v7392_v36  ;;  %v17324_v36 = vld [vmem:[#allocation68_spill] sm:$0xff] }
 0xe3c   :  { %v17334_v42 = vld [vmem:[#allocation76_spill] sm:$0xff] }
 0xe3d   :  { %v7398_v22 = vadd.f32 %v17067_v47, %v7395_v7  ;;  %v7408_v23 = vadd.f32 %v17068_v54, %v7405_v4  ;;  %12172 = vmatprep.mubr.msk.bf16.mxu0 %vm14987_vm3, %v12171_v57  ;;  %12180 = vmatprep.mubr.msk.bf16.mxu1 %vm14987_vm3, %v12171_v57  ;;  %v17325_v7 = vld [vmem:[#allocation69_spill] sm:$0xff]  ;;  %v17326_v4 = vld [vmem:[#allocation70_spill] sm:$0xff]  ;;  %v17333_v54 = vld [vmem:[#allocation75_spill] sm:$0xff] }
 0xe3e   :  { %12175 = vmatmul.mubr.msk.bf16.vlgmr.msra.gmra.mrb[72].mxu0 %vm14991_vm4, %v12171_v57  ;;  %12183 = vmatmul.mubr.msk.bf16.vlgmr.msra.gmra.mrb[72].mxu1 %vm14991_vm4, %v12171_v57  ;;  %v17327_v57 = vld [vmem:[#allocation71_spill] sm:$0xff]  ;;  %v17332_v47 = vld [vmem:[#allocation54_spill] sm:$0xff] }
 0xe3f   :  { %v7400_v0 = vrot.slane %v7398_v22, 4  ;;  %v7410_v8 = vrot.slane %v7408_v23, 4  ;;  %8322 = vmatpush1.bf16.msra.mxu0 %v16025_v34  ;;  %8363 = vmatpush1.bf16.msra.mxu1 %v16027_v59  ;;  %v17313_v34 = vld [vmem:[#allocation57_spill] sm:$0xff]  ;;  %v17314_v59 = vld [vmem:[#allocation58_spill] sm:$0xff]  ;;  %v17328_v22 = vld [vmem:[#allocation72_spill] sm:$0xff] }
 0xe40   :  { %8323 = vmatprep.subr.bf16.mxu0 %v16105_v38  ;;  %8364 = vmatprep.subr.bf16.mxu1 %v16107_v9  ;;  %v17329_v23 = vld [vmem:[#allocation73_spill] sm:$0xff] }
 0xe41   :  { %7402 = vst [vmem:[#allocation2 + $0x10] sm:$0xf0] %v7400_v0  ;;  %7412 = vst [vmem:[#allocation2 + $0x28] sm:$0xf] %v7410_v8  ;;  %v17330_v0 = vld [vmem:[#allocation74_spill] sm:$0xff]  ;;  %v17331_v8 = vld [vmem:[#allocation53_spill] sm:$0xff] }
 0xe42   :  { %v16391_v41 = vld [vmem:[#allocation21 + $0x4] ss:$16 sps:$4 sm:$0xff]  }
 0xe43   :  { %8324 = vmatpush1.bf16.msra.mxu0 %v16119_v15  ;;  %8365 = vmatpush1.bf16.msra.mxu1 %v16121_v27  ;;  %17335 = vst [vmem:[#allocation77_spill] sm:$0xff] %v16391_v41 }
 0xe44   :  { %8325 = vmatprep.subr.bf16.mxu0 %v16125_v45  ;;  %8366 = vmatprep.subr.bf16.mxu1 %v16127_v11 }
 0xe47   :  { %8326 = vmatpush1.bf16.msra.mxu0 %v16131_v2  ;;  %8367 = vmatpush1.bf16.msra.mxu1 %v16133_v6 }
 0xe48   :  { %8327 = vmatprep.subr.bf16.mxu0 %v16137_v16  ;;  %8368 = vmatprep.subr.bf16.mxu1 %v16139_v17 }
 0xe4b   :  { %8328 = vmatpush1.bf16.msra.mxu0 %v16143_v18  ;;  %8369 = vmatpush1.bf16.msra.mxu1 %v16145_v19 }
 0xe4c   :  { %8329 = vmatprep.subr.bf16.mxu0 %v16151_v58  ;;  %8370 = vmatprep.subr.bf16.mxu1 %v16153_v20 }
 0xe4f   :  { %8330 = vmatpush1.bf16.msra.mxu0 %v16155_v21  ;;  %8371 = vmatpush1.bf16.msra.mxu1 %v16157_v24 }
 0xe50   :  { %8331 = vmatprep.subr.bf16.mxu0 %v16163_v25  ;;  %8372 = vmatprep.subr.bf16.mxu1 %v16165_v26 }
 0xe53   :  { %8332 = vmatpush1.bf16.msra.mxu0 %v16167_v29  ;;  %8373 = vmatpush1.bf16.msra.mxu1 %v16169_v28 }
 0xe54   :  { %8333 = vmatprep.subr.bf16.mxu0 %v16175_v13  ;;  %8374 = vmatprep.subr.bf16.mxu1 %v16177_v14 }
 0xe57   :  { %8334 = vmatpush1.bf16.msra.mxu0 %v16179_v60  ;;  %8375 = vmatpush1.bf16.msra.mxu1 %v16181_v30 }
 0xe58   :  { %8335 = vmatprep.subr.bf16.mxu0 %v16187_v31  ;;  %8376 = vmatprep.subr.bf16.mxu1 %v16189_v12 }
 0xe5b   :  { %8336 = vmatpush1.bf16.msra.mxu0 %v16191_v43  ;;  %8377 = vmatpush1.bf16.msra.mxu1 %v16193_v39 }
 0xe5c   :  { %8337 = vmatprep.subr.bf16.mxu0 %v16199_v40  ;;  %8378 = vmatprep.subr.bf16.mxu1 %v16201_v32 }
 0xe5f   :  { %8338 = vmatpush1.bf16.msra.mxu0 %v16203_v51  ;;  %8379 = vmatpush1.bf16.msra.mxu1 %v16205_v49 }
 0xe60   :  { %8339 = vmatprep.subr.bf16.mxu0 %v16211_v44  ;;  %8380 = vmatprep.subr.bf16.mxu1 %v16213_v56 }
 0xe63   :  { %8340 = vmatpush1.bf16.msra.mxu0 %v16215_v37  ;;  %8381 = vmatpush1.bf16.msra.mxu1 %v16217_v53 }
 0xe64   :  { %8341 = vmatprep.subr.bf16.mxu0 %v16223_v55  ;;  %8382 = vmatprep.subr.bf16.mxu1 %v16225_v35 }
 0xe67   :  { %8342 = vmatpush1.bf16.msra.mxu0 %v17313_v34  ;;  %8383 = vmatpush1.bf16.msra.mxu1 %v17314_v59 }
 0xe68   :  { %8343 = vmatprep.subr.bf16.mxu0 %v17315_v61  ;;  %8384 = vmatprep.subr.bf16.mxu1 %v17316_v33 }
 0xe6b   :  { %8344 = vmatpush1.bf16.msra.mxu0 %v17317_v1  ;;  %8385 = vmatpush1.bf16.msra.mxu1 %v17318_v10  ;;  %v7419_v10 = vld [vmem:[#allocation3 + $0x90] sm:$0xff] }
 0xe6c   :  { %8345 = vmatprep.subr.bf16.mxu0 %v17319_v48  ;;  %8386 = vmatprep.subr.bf16.mxu1 %v17320_v46  ;;  %v7420_v48 = vld [vmem:[#allocation3 + $0x98] sm:$0xff] }
 0xe6f   :  { %8346 = vmatpush1.bf16.msra.mxu0 %v17321_v63  ;;  %8387 = vmatpush1.bf16.msra.mxu1 %v17322_v5 }
 0xe70   :  { %8347 = vmatprep.subr.bf16.mxu0 %v17323_v50  ;;  %8388 = vmatprep.subr.bf16.mxu1 %v17324_v36 }
 0xe73   :  { %8348 = vmatpush1.bf16.msra.mxu0 %v17325_v7  ;;  %8389 = vmatpush1.bf16.msra.mxu1 %v17326_v4  ;;  %v16393_v7 = vld [vmem:[#allocation21 + $0xc] ss:$16 sps:$4 sm:$0xff]  }
 0xe74   :  { %8349 = vmatprep.subr.bf16.mxu0 %v17327_v57  ;;  %8390 = vmatprep.subr.bf16.mxu1 %v17328_v22  ;;  %17336 = vst [vmem:[#allocation50_spill] sm:$0xff] %v16393_v7  ;;  %v7417_v22 = vld [vmem:[#allocation3 + $0x80] sm:$0xff]  ;;  %v7418_v4 = vld [vmem:[#allocation3 + $0x88] sm:$0xff] }
 0xe77   :  { %8350 = vmatpush1.bf16.msra.mxu0 %v17329_v23  ;;  %8391 = vmatpush1.bf16.msra.mxu1 %v17330_v0 }
 0xe78   :  { %8351 = vmatprep.subr.bf16.mxu0 %v17331_v8  ;;  %8392 = vmatprep.subr.bf16.mxu1 %v17332_v47 }
 0xe7b   :  { %8352 = vmatpush1.bf16.msra.mxu0 %v17333_v54  ;;  %8393 = vmatpush1.bf16.msra.mxu1 %v17334_v42 }
 0xe7c   :  { %8843 = vmatprep.subr.bf16.mxu0 %v16391_v41  ;;  %8884 = vmatprep.subr.bf16.mxu1 %v16393_v7 }
 0xf11   :  { %v7839_v23 = vpop.f32.mrb[72].mxu0  ;;  %v7880_v57 = vpop.f32.mrb[72].mxu1 }
 0xf12   :  { %v7887_v0 = vadd.f32 %v7839_v23, %v7417_v22  ;;  %v7841_v8 = vpop.f32.mrb[73].mxu0  ;;  %v7882_v36 = vpop.f32.mrb[73].mxu1  ;;  %v7889_v1 = vadd.f32 %v7880_v57, %v7419_v10  ;;  %v16405_v57 = vld [vmem:[#allocation21] ss:$16 sps:$4 sm:$0xff]  }
 0xf13   :  { %v7888_v47 = vadd.f32 %v7841_v8, %v7418_v4  ;;  %v7843_v50 = vpop.f32.mrb[74].mxu0  ;;  %v7884_v54 = vpop.f32.mrb[74].mxu1  ;;  %v7890_v41 = vadd.f32 %v7882_v36, %v7420_v48  ;;  %v17338_v36 = vstv %s16301_s5  ;;  %v17339_v8 = vstv %s16307_s21  ;;  %s14482_s5 = smov [#allocation35]  }
 0xf14   :  { %v12184_v5 = vmul.f32 -1.442695, %v7887_v0  ;;  %v7844_v42 = vpop.f32.mrb[75].mxu0  ;;  %v7885_v63 = vpop.f32.mrb[75].mxu1  ;;  %v16407_v0 = vld [vmem:[#allocation21 + $0x8] ss:$16 sps:$4 sm:$0xff]  }
 0xf15   :  { %v12185_v46 = vmul.f32 -1.442695, %v7888_v47  ;;  %v12186_v7 = vmul.f32 -1.442695, %v7890_v41 }
 0xf16   :  { %13817 = vpow2.f32 %v12184_v5  ;;  %v17337_v5 = vstv %s16303_s27  ;;  %s11038_s27 = sshll.u32 %s14482_s5, 4  ;;  %s11039_s27 = int_to_ptr.vmem [resolvable:$true] %s11038_s27 }
 0xf17   :  { %13819 = vpow2.f32 %v12185_v46  ;;  %p14412_p3 = scmp.lt.s32.totalorder %s11039_s27, %s11039_s27 }
 0xf18   :  { %13821 = vpow2.f32 %v12186_v7 }
 0xf19   :  { %13823 = vtanh.f32 %v7889_v1 }
 0xf20   :  { %v13818_v33 = vpop.eup %13817 }
 0xf21   :  { %v13820_v61 = vpop.eup %13819  ;;  %v7894_v22 = vadd.f32 1.0, %v13818_v33 }
 0xf22   :  { %v7900_v23 = vadd.f32 1.0, %v13820_v61  ;;  %v13822_v42 = vpop.eup %13821 }
 0xf23   :  { %13825 = vrcp.f32 %v7894_v22  ;;  %v13824_v54 = vpop.eup %13823  ;;  %v7907_v63 = vadd.f32 1.0, %v13822_v42 }
 0xf24   :  { %13827 = vrcp.f32 %v7900_v23 }
 0xf25   :  { %13829 = vrcp.f32 %v7907_v63 }
 0xf2d   :  { %v13826_v47 = vpop.eup %13825 }
 0xf2e   :  { %v13828_v46 = vpop.eup %13827  ;;  %v7911_v48 = vmul.f32 %v13826_v47, %v13824_v54 }
 0xf2f   :  { %v7910_v41 = vmul.f32 %v13828_v46, %v16298_v52  ;;  %v13830_v61 = vpop.eup %13829  ;;  %v17340_v52 = vstv %s16305_s9  ;;  %s14407_s9 = scalar_lea.vmem %s11039_s27, 64 }
 0xf30   :  { %p14408_p2 = scmp.ne.s32.totalorder %s11039_s27, %s14407_s9  ;;  %p14413_p4 = scmp.lt.s32.totalorder %s14407_s9, %s14407_s9 }
 0xf31   :  { %v16398_v10 = vadd.f32 %v7911_v48, %v7910_v41 }
 0xf32   :  { %p14414_p5 = por %p14413_p4, %p14412_p3 }
 0xf33   :  { %13831 = vtanh.f32 %v16398_v10 }
 0xf34   :  { %p14415_p6 = pnand %p14414_p5, %p14408_p2 }
 0xf3d   :  { %v13832_v33 = vpop.eup %13831 }
 0xf3e   :  { %v7914_v1 = vmul.f32 %v13832_v33, %v13830_v61 }
 0xf40   :  { %v7917_v50 = vmul.f32 %v7914_v1, %v17337_v5  ;;  %v7924_v7 = vmul.f32 %v7914_v1, %v17338_v36  ;;  %v12258_v4 = vpack.c.bf16 %v7914_v1, %v7914_v1 }
 0xf42   :  { %v7920_v22 = vadd.f32 %v7917_v50, %v17339_v8  ;;  %v7927_v23 = vadd.f32 %v7924_v7, %v17340_v52  ;;  %12259 = vmatprep.mubr.msk.bf16.mxu0 %vm14987_vm3, %v12258_v4  ;;  %12267 = vmatprep.mubr.msk.bf16.mxu1 %vm14987_vm3, %v12258_v4  ;;  %v8432_v8 = vstv %s12274_s4 }
 0xf43   :  { %12262 = vmatmul.mubr.msk.bf16.vlgmr.msra.gmra.mrb[76].mxu0 %vm14991_vm4, %v12258_v4  ;;  %12270 = vmatmul.mubr.msk.bf16.vlgmr.msra.gmra.mrb[76].mxu1 %vm14991_vm4, %v12258_v4 }
 0xf44   :  { %7921 = vst [vmem:[#allocation2 + $0x20] sm:$0xf] %v7920_v22  ;;  %7928 = vst [vmem:[#allocation2 + $0x18] sm:$0xf0] %v7927_v23  ;;  %8844 = vmatpush1.bf16.msra.mxu0 %v16405_v57  ;;  %8885 = vmatpush1.bf16.msra.mxu1 %v16407_v0  ;;  %v8442_v22 = vstv %s12276_s28  ;;  %v8435_v23 = vstv %s12275_s11 }
 0xf45   :  { %8845 = vmatprep.subr.bf16.mxu0 %v16105_v38  ;;  %8886 = vmatprep.subr.bf16.mxu1 %v16107_v9  ;;  %v17341_v38 = vld [vmem:[#allocation60_spill] sm:$0xff]  ;;  %v17342_v9 = vld [vmem:[#allocation62_spill] sm:$0xff] }
 0xf48   :  { %8846 = vmatpush1.bf16.msra.mxu0 %v16119_v15  ;;  %8887 = vmatpush1.bf16.msra.mxu1 %v16121_v27  ;;  %v17343_v15 = vld [vmem:[#allocation59_spill] sm:$0xff]  ;;  %v17344_v27 = vld [vmem:[#allocation61_spill] sm:$0xff] }
 0xf49   :  { %8847 = vmatprep.subr.bf16.mxu0 %v16125_v45  ;;  %8888 = vmatprep.subr.bf16.mxu1 %v16127_v11  ;;  %v17345_v45 = vld [vmem:[#allocation64_spill] sm:$0xff]  ;;  %v17346_v11 = vld [vmem:[#allocation66_spill] sm:$0xff] }
 0xf4c   :  { %8848 = vmatpush1.bf16.msra.mxu0 %v16131_v2  ;;  %8889 = vmatpush1.bf16.msra.mxu1 %v16133_v6  ;;  %v17347_v2 = vld [vmem:[#allocation63_spill] sm:$0xff]  ;;  %v17348_v6 = vld [vmem:[#allocation65_spill] sm:$0xff] }
 0xf4d   :  { %8849 = vmatprep.subr.bf16.mxu0 %v16137_v16  ;;  %8890 = vmatprep.subr.bf16.mxu1 %v16139_v17  ;;  %v17349_v16 = vld [vmem:[#allocation67_spill] sm:$0xff]  ;;  %v17350_v17 = vld [vmem:[#allocation68_spill] sm:$0xff] }
 0xf50   :  { %8850 = vmatpush1.bf16.msra.mxu0 %v16143_v18  ;;  %8891 = vmatpush1.bf16.msra.mxu1 %v16145_v19  ;;  %v17351_v18 = vld [vmem:[#allocation69_spill] sm:$0xff]  ;;  %v17352_v19 = vld [vmem:[#allocation70_spill] sm:$0xff] }
 0xf51   :  { %8851 = vmatprep.subr.bf16.mxu0 %v16151_v58  ;;  %8892 = vmatprep.subr.bf16.mxu1 %v16153_v20  ;;  %v17353_v58 = vld [vmem:[#allocation71_spill] sm:$0xff]  ;;  %v17354_v20 = vld [vmem:[#allocation72_spill] sm:$0xff] }
 0xf54   :  { %8852 = vmatpush1.bf16.msra.mxu0 %v16155_v21  ;;  %8893 = vmatpush1.bf16.msra.mxu1 %v16157_v24  ;;  %v17355_v21 = vld [vmem:[#allocation73_spill] sm:$0xff]  ;;  %v17356_v24 = vld [vmem:[#allocation74_spill] sm:$0xff] }
 0xf55   :  { %8853 = vmatprep.subr.bf16.mxu0 %v16163_v25  ;;  %8894 = vmatprep.subr.bf16.mxu1 %v16165_v26  ;;  %v17357_v25 = vld [vmem:[#allocation53_spill] sm:$0xff]  ;;  %v17358_v26 = vld [vmem:[#allocation54_spill] sm:$0xff] }
 0xf58   :  { %8854 = vmatpush1.bf16.msra.mxu0 %v16167_v29  ;;  %8895 = vmatpush1.bf16.msra.mxu1 %v16169_v28  ;;  %v17359_v29 = vld [vmem:[#allocation75_spill] sm:$0xff]  ;;  %v17360_v28 = vld [vmem:[#allocation76_spill] sm:$0xff] }
 0xf59   :  { %8855 = vmatprep.subr.bf16.mxu0 %v16175_v13  ;;  %8896 = vmatprep.subr.bf16.mxu1 %v16177_v14  ;;  %v17361_v13 = vld [vmem:[#allocation77_spill] sm:$0xff]  ;;  %v17362_v14 = vld [vmem:[#allocation50_spill] sm:$0xff] }
 0xf5c   :  { %8856 = vmatpush1.bf16.msra.mxu0 %v16179_v60  ;;  %8897 = vmatpush1.bf16.msra.mxu1 %v16181_v30  ;;  %v7933_v60 = vld [vmem:[#allocation3 + $0xa0] sm:$0xff] }
 0xf5d   :  { %8857 = vmatprep.subr.bf16.mxu0 %v16187_v31  ;;  %8898 = vmatprep.subr.bf16.mxu1 %v16189_v12 }
 0xf60   :  { %8858 = vmatpush1.bf16.msra.mxu0 %v16191_v43  ;;  %8899 = vmatpush1.bf16.msra.mxu1 %v16193_v39  ;;  %v7934_v43 = vld [vmem:[#allocation3 + $0xa8] sm:$0xff] }
 0xf61   :  { %8859 = vmatprep.subr.bf16.mxu0 %v16199_v40  ;;  %8900 = vmatprep.subr.bf16.mxu1 %v16201_v32 }
 0xf64   :  { %8860 = vmatpush1.bf16.msra.mxu0 %v16203_v51  ;;  %8901 = vmatpush1.bf16.msra.mxu1 %v16205_v49 }
 0xf65   :  { %8861 = vmatprep.subr.bf16.mxu0 %v16211_v44  ;;  %8902 = vmatprep.subr.bf16.mxu1 %v16213_v56 }
 0xf68   :  { %8862 = vmatpush1.bf16.msra.mxu0 %v16215_v37  ;;  %8903 = vmatpush1.bf16.msra.mxu1 %v16217_v53 }
 0xf69   :  { %8863 = vmatprep.subr.bf16.mxu0 %v16223_v55  ;;  %8904 = vmatprep.subr.bf16.mxu1 %v16225_v35  ;;  %v7936_v55 = vld [vmem:[#allocation3 + $0xb8] sm:$0xff] }
 0xf6c   :  { %8864 = vmatpush1.bf16.msra.mxu0 %v17313_v34  ;;  %8905 = vmatpush1.bf16.msra.mxu1 %v17314_v59  ;;  %v7935_v34 = vld [vmem:[#allocation3 + $0xb0] sm:$0xff] }
 0xf6d   :  { %8865 = vmatprep.subr.bf16.mxu0 %v17341_v38  ;;  %8906 = vmatprep.subr.bf16.mxu1 %v17342_v9  ;;  %v8445_v38 = vstv %s12277_s10 }
 0xf70   :  { %8866 = vmatpush1.bf16.msra.mxu0 %v17343_v15  ;;  %8907 = vmatpush1.bf16.msra.mxu1 %v17344_v27 }
 0xf71   :  { %8867 = vmatprep.subr.bf16.mxu0 %v17345_v45  ;;  %8908 = vmatprep.subr.bf16.mxu1 %v17346_v11  ;;  %v13412_v45 = vld [vmem:[#allocation21 + $0x2c] ss:$16 sps:$4 sm:$0xff]  }
 0xf74   :  { %8868 = vmatpush1.bf16.msra.mxu0 %v17347_v2  ;;  %8909 = vmatpush1.bf16.msra.mxu1 %v17348_v6 }
 0xf75   :  { %8869 = vmatprep.subr.bf16.mxu0 %v17349_v16  ;;  %8910 = vmatprep.subr.bf16.mxu1 %v17350_v17  ;;  %v13407_v17 = vld [vmem:[#allocation21 + $0x20] ss:$16 sps:$4 sm:$0xff]  }
 0xf78   :  { %8870 = vmatpush1.bf16.msra.mxu0 %v17351_v18  ;;  %8911 = vmatpush1.bf16.msra.mxu1 %v17352_v19  ;;  %v13410_v18 = vld [vmem:[#allocation21 + $0x28] ss:$16 sps:$4 sm:$0xff]   ;;  %v13415_v19 = vld [vmem:[#allocation21 + $0x44] ss:$16 sps:$4 sm:$0xff]  }
 0xf79   :  { %8871 = vmatprep.subr.bf16.mxu0 %v17353_v58  ;;  %8912 = vmatprep.subr.bf16.mxu1 %v17354_v20  ;;  %v13418_v58 = vld [vmem:[#allocation21 + $0x4c] ss:$16 sps:$4 sm:$0xff]   ;;  %v13413_v20 = vld [vmem:[#allocation21 + $0x40] ss:$16 sps:$4 sm:$0xff]  }
 0xf7c   :  { %8872 = vmatpush1.bf16.msra.mxu0 %v17355_v21  ;;  %8913 = vmatpush1.bf16.msra.mxu1 %v17356_v24  ;;  %v13416_v21 = vld [vmem:[#allocation21 + $0x48] ss:$16 sps:$4 sm:$0xff]   ;;  %v13421_v24 = vld [vmem:[#allocation21 + $0x64] ss:$16 sps:$4 sm:$0xff]  }
 0xf7d   :  { %8873 = vmatprep.subr.bf16.mxu0 %v17357_v25  ;;  %8914 = vmatprep.subr.bf16.mxu1 %v17358_v26  ;;  %v13424_v25 = vld [vmem:[#allocation21 + $0x6c] ss:$16 sps:$4 sm:$0xff]   ;;  %v13427_v26 = vld [vmem:[#allocation21 + $0x84] ss:$16 sps:$4 sm:$0xff]  }
 0xf80   :  { %8874 = vmatpush1.bf16.msra.mxu0 %v17359_v29  ;;  %8915 = vmatpush1.bf16.msra.mxu1 %v17360_v28  ;;  %v13430_v29 = vld [vmem:[#allocation21 + $0x8c] ss:$16 sps:$4 sm:$0xff]   ;;  %v13425_v28 = vld [vmem:[#allocation21 + $0x80] ss:$16 sps:$4 sm:$0xff]  }
 0xf81   :  { %9359 = vmatprep.subr.bf16.mxu0 %v17361_v13  ;;  %9400 = vmatprep.subr.bf16.mxu1 %v17362_v14  ;;  %v13428_v13 = vld [vmem:[#allocation21 + $0x88] ss:$16 sps:$4 sm:$0xff]   ;;  %v13433_v14 = vld [vmem:[#allocation21 + $0xa4] ss:$16 sps:$4 sm:$0xff]  }
0x1016   :  { %v8355_v30 = vpop.f32.mrb[76].mxu0  ;;  %v8396_v31 = vpop.f32.mrb[76].mxu1 }
0x1017   :  { %v8403_v12 = vadd.f32 %v8355_v30, %v7933_v60  ;;  %v8357_v39 = vpop.f32.mrb[77].mxu0  ;;  %v8398_v40 = vpop.f32.mrb[77].mxu1  ;;  %v8405_v42 = vadd.f32 %v8396_v31, %v7935_v34  ;;  %v13436_v60 = vld [vmem:[#allocation21 + $0xac] ss:$16 sps:$4 sm:$0xff]   ;;  %v13431_v30 = vld [vmem:[#allocation21 + $0xa0] ss:$16 sps:$4 sm:$0xff]  }
0x1018   :  { %v8404_v32 = vadd.f32 %v8357_v39, %v7934_v43  ;;  %v8359_v51 = vpop.f32.mrb[78].mxu0  ;;  %v8400_v49 = vpop.f32.mrb[78].mxu1  ;;  %v8406_v35 = vadd.f32 %v8398_v40, %v7936_v55  ;;  %v13434_v31 = vld [vmem:[#allocation21 + $0xa8] ss:$16 sps:$4 sm:$0xff]   ;;  %v13442_v43 = vld [vmem:[#allocation21 + $0xcc] ss:$16 sps:$4 sm:$0xff]  }
0x1019   :  { %v12271_v44 = vmul.f32 -1.442695, %v8403_v12  ;;  %v8360_v56 = vpop.f32.mrb[79].mxu0  ;;  %v8401_v37 = vpop.f32.mrb[79].mxu1  ;;  %v13439_v12 = vld [vmem:[#allocation21 + $0xc4] ss:$16 sps:$4 sm:$0xff]  }
0x101a   :  { %v12272_v53 = vmul.f32 -1.442695, %v8404_v32  ;;  %v12273_v59 = vmul.f32 -1.442695, %v8406_v35  ;;  %v13437_v39 = vld [vmem:[#allocation21 + $0xc0] ss:$16 sps:$4 sm:$0xff]  }
0x101b   :  { %13833 = vpow2.f32 %v12271_v44  ;;  %v13440_v40 = vld [vmem:[#allocation21 + $0xc8] ss:$16 sps:$4 sm:$0xff]   ;;  %v13445_v32 = vld [vmem:[#allocation21 + $0xe4] ss:$16 sps:$4 sm:$0xff]   ;;  %v13448_v51 = vld [vmem:[#allocation21 + $0xec] ss:$16 sps:$4 sm:$0xff]  }
0x101c   :  { %13835 = vpow2.f32 %v12272_v53  ;;  %v13443_v49 = vld [vmem:[#allocation21 + $0xe0] ss:$16 sps:$4 sm:$0xff]   ;;  %v13446_v44 = vld [vmem:[#allocation21 + $0xe8] ss:$16 sps:$4 sm:$0xff]   ;;  %v13451_v56 = vld [vmem:[#allocation21 + $0x104] ss:$16 sps:$4 sm:$0xff]  }
0x101d   :  { %13837 = vpow2.f32 %v12273_v59  ;;  %v13454_v37 = vld [vmem:[#allocation21 + $0x10c] ss:$16 sps:$4 sm:$0xff]   ;;  %v13449_v53 = vld [vmem:[#allocation21 + $0x100] ss:$16 sps:$4 sm:$0xff]   ;;  %v13452_v55 = vld [vmem:[#allocation21 + $0x108] ss:$16 sps:$4 sm:$0xff]  }
0x101e   :  { %13839 = vtanh.f32 %v8405_v42  ;;  %v13457_v35 = vld [vmem:[#allocation21 + $0x124] ss:$16 sps:$4 sm:$0xff]   ;;  %v13460_v34 = vld [vmem:[#allocation21 + $0x12c] ss:$16 sps:$4 sm:$0xff]   ;;  %v13455_v59 = vld [vmem:[#allocation21 + $0x120] ss:$16 sps:$4 sm:$0xff]  }
0x101f   :  { %v13458_v42 = vld [vmem:[#allocation21 + $0x128] ss:$16 sps:$4 sm:$0xff]  }
0x1025   :  { %v13834_v54 = vpop.eup %13833 }
0x1026   :  { %v13836_v47 = vpop.eup %13835  ;;  %v8410_v46 = vadd.f32 1.0, %v13834_v54  ;;  %v13463_v54 = vld [vmem:[#allocation21 + $0x144] ss:$16 sps:$4 sm:$0xff]  }
0x1027   :  { %v8416_v48 = vadd.f32 1.0, %v13836_v47  ;;  %v13838_v63 = vpop.eup %13837  ;;  %v13466_v47 = vld [vmem:[#allocation21 + $0x14c] ss:$16 sps:$4 sm:$0xff]  }
0x1028   :  { %13841 = vrcp.f32 %v8410_v46  ;;  %v13840_v41 = vpop.eup %13839  ;;  %v8423_v5 = vadd.f32 1.0, %v13838_v63  ;;  %v13461_v46 = vld [vmem:[#allocation21 + $0x140] ss:$16 sps:$4 sm:$0xff]   ;;  %v13469_v63 = vld [vmem:[#allocation21 + $0x164] ss:$16 sps:$4 sm:$0xff]  }
0x1029   :  { %13843 = vrcp.f32 %v8416_v48  ;;  %v13464_v48 = vld [vmem:[#allocation21 + $0x148] ss:$16 sps:$4 sm:$0xff]  }
0x102a   :  { %13845 = vrcp.f32 %v8423_v5  ;;  %v13475_v5 = vld [vmem:[#allocation21 + $0x184] ss:$16 sps:$4 sm:$0xff]  }
0x1032   :  { %v13842_v61 = vpop.eup %13841 }
0x1033   :  { %v13844_v33 = vpop.eup %13843  ;;  %v8427_v1 = vmul.f32 %v13842_v61, %v13840_v41  ;;  %v13472_v41 = vld [vmem:[#allocation21 + $0x16c] ss:$16 sps:$4 sm:$0xff]   ;;  %v13467_v61 = vld [vmem:[#allocation21 + $0x160] ss:$16 sps:$4 sm:$0xff]  }
0x1034   :  { %v8426_v50 = vmul.f32 %v13844_v33, %v16398_v10  ;;  %v13846_v7 = vpop.eup %13845  ;;  %v13409_v10 = vld [vmem:[#allocation21 + $0x24] ss:$16 sps:$4 sm:$0xff]   ;;  %v13470_v33 = vld [vmem:[#allocation21 + $0x168] ss:$16 sps:$4 sm:$0xff]  }
0x1036   :  { %v16486_v36 = vadd.f32 %v8427_v1, %v8426_v50  ;;  %v13473_v1 = vld [vmem:[#allocation21 + $0x180] ss:$16 sps:$4 sm:$0xff]   ;;  %v13476_v50 = vld [vmem:[#allocation21 + $0x188] ss:$16 sps:$4 sm:$0xff]  }
0x1038   :  { %13847 = vtanh.f32 %v16486_v36 }
0x1042   :  { %v13848_v4 = vpop.eup %13847 }
0x1043   :  { %v8430_v52 = vmul.f32 %v13848_v4, %v13846_v7  ;;  %v13478_v7 = vld [vmem:[#allocation21 + $0x18c] ss:$16 sps:$4 sm:$0xff]   ;;  %v13481_v4 = vld [vmem:[#allocation21 + $0x1a4] ss:$16 sps:$4 sm:$0xff]  }
0x1045   :  { %v8433_v9 = vmul.f32 %v8432_v8, %v8430_v52  ;;  %v8443_v15 = vmul.f32 %v8442_v22, %v8430_v52  ;;  %v12345_v27 = vpack.c.bf16 %v8430_v52, %v8430_v52  ;;  %v13484_v8 = vld [vmem:[#allocation21 + $0x1ac] ss:$16 sps:$4 sm:$0xff]   ;;  %v13479_v22 = vld [vmem:[#allocation21 + $0x1a0] ss:$16 sps:$4 sm:$0xff]   ;;  %v13482_v52 = vld [vmem:[#allocation21 + $0x1a8] ss:$16 sps:$4 sm:$0xff]  }
0x1047   :  { %v8436_v11 = vadd.f32 %v8435_v23, %v8433_v9  ;;  %v8446_v2 = vadd.f32 %v8445_v38, %v8443_v15  ;;  %12346 = vmatprep.mubr.msk.bf16.mxu0 %vm14987_vm3, %v12345_v27  ;;  %12354 = vmatprep.mubr.msk.bf16.mxu1 %vm14987_vm3, %v12345_v27  ;;  %v13487_v23 = vld [vmem:[#allocation21 + $0x1c4] ss:$16 sps:$4 sm:$0xff]   ;;  %v13490_v38 = vld [vmem:[#allocation21 + $0x1cc] ss:$16 sps:$4 sm:$0xff]   ;;  %v13485_v9 = vld [vmem:[#allocation21 + $0x1c0] ss:$16 sps:$4 sm:$0xff]  }
0x1048   :  { %12349 = vmatmul.mubr.msk.bf16.vlgmr.msra.gmra.mrb[80].mxu0 %vm14991_vm4, %v12345_v27  ;;  %12357 = vmatmul.mubr.msk.bf16.vlgmr.msra.gmra.mrb[80].mxu1 %vm14991_vm4, %v12345_v27  ;;  %v13488_v15 = vld [vmem:[#allocation21 + $0x1c8] ss:$16 sps:$4 sm:$0xff]   ;;  %v13493_v27 = vld [vmem:[#allocation21 + $0x1e4] ss:$16 sps:$4 sm:$0xff]  }
0x1049   :  { %v8438_v6 = vrot.slane %v8436_v11, 4  ;;  %v8448_v16 = vrot.slane %v8446_v2, 4  ;;  %9360 = vmatpush1.bf16.msra.mxu0 %v16405_v57  ;;  %9401 = vmatpush1.bf16.msra.mxu1 %v16407_v0  ;;  %v13419_v57 = vld [vmem:[#allocation21 + $0x60] ss:$16 sps:$4 sm:$0xff]   ;;  %v13422_v0 = vld [vmem:[#allocation21 + $0x68] ss:$16 sps:$4 sm:$0xff]  }
0x104a   :  { %9361 = vmatprep.subr.bf16.mxu0 %v13409_v10  ;;  %9402 = vmatprep.subr.bf16.mxu1 %v13412_v45  ;;  %v13496_v10 = vld [vmem:[#allocation21 + $0x1ec] ss:$16 sps:$4 sm:$0xff]   ;;  %v13491_v45 = vld [vmem:[#allocation21 + $0x1e0] ss:$16 sps:$4 sm:$0xff]   ;;  %v13494_v11 = vld [vmem:[#allocation21 + $0x1e8] ss:$16 sps:$4 sm:$0xff]  }
0x104b   :  { %8440 = vst [vmem:[#allocation2 + $0x20] sm:$0xf0] %v8438_v6  ;;  %8450 = vst [vmem:[#allocation2 + $0x18] sm:$0xf] %v8448_v16  ;;  %v8455_v2 = vld [vmem:[#allocation3 + $0xc0] sm:$0xff] }
0x104d   :  { %9362 = vmatpush1.bf16.msra.mxu0 %v13407_v17  ;;  %9403 = vmatpush1.bf16.msra.mxu1 %v13410_v18  ;;  %v8456_v18 = vld [vmem:[#allocation3 + $0xc8] sm:$0xff] }
0x104e   :  { %9363 = vmatprep.subr.bf16.mxu0 %v13415_v19  ;;  %9404 = vmatprep.subr.bf16.mxu1 %v13418_v58 }
0x1051   :  { %9364 = vmatpush1.bf16.msra.mxu0 %v13413_v20  ;;  %9405 = vmatpush1.bf16.msra.mxu1 %v13416_v21 }
0x1052   :  { %9365 = vmatprep.subr.bf16.mxu0 %v13421_v24  ;;  %9406 = vmatprep.subr.bf16.mxu1 %v13424_v25 }
0x1055   :  { %9366 = vmatpush1.bf16.msra.mxu0 %v13419_v57  ;;  %9407 = vmatpush1.bf16.msra.mxu1 %v13422_v0 }
0x1056   :  { %9367 = vmatprep.subr.bf16.mxu0 %v13427_v26  ;;  %9408 = vmatprep.subr.bf16.mxu1 %v13430_v29  ;;  %v8458_v29 = vld [vmem:[#allocation3 + $0xd8] sm:$0xff] }
0x1059   :  { %9368 = vmatpush1.bf16.msra.mxu0 %v13425_v28  ;;  %9409 = vmatpush1.bf16.msra.mxu1 %v13428_v13  ;;  %v8457_v13 = vld [vmem:[#allocation3 + $0xd0] sm:$0xff] }
0x105a   :  { %9369 = vmatprep.subr.bf16.mxu0 %v13433_v14  ;;  %9410 = vmatprep.subr.bf16.mxu1 %v13436_v60 }
0x105d   :  { %9370 = vmatpush1.bf16.msra.mxu0 %v13431_v30  ;;  %9411 = vmatpush1.bf16.msra.mxu1 %v13434_v31 }
0x105e   :  { %9371 = vmatprep.subr.bf16.mxu0 %v13439_v12  ;;  %9412 = vmatprep.subr.bf16.mxu1 %v13442_v43 }
0x1061   :  { %9372 = vmatpush1.bf16.msra.mxu0 %v13437_v39  ;;  %9413 = vmatpush1.bf16.msra.mxu1 %v13440_v40 }
0x1062   :  { %9373 = vmatprep.subr.bf16.mxu0 %v13445_v32  ;;  %9414 = vmatprep.subr.bf16.mxu1 %v13448_v51 }
0x1065   :  { %9374 = vmatpush1.bf16.msra.mxu0 %v13443_v49  ;;  %9415 = vmatpush1.bf16.msra.mxu1 %v13446_v44 }
0x1066   :  { %9375 = vmatprep.subr.bf16.mxu0 %v13451_v56  ;;  %9416 = vmatprep.subr.bf16.mxu1 %v13454_v37 }
0x1069   :  { %9376 = vmatpush1.bf16.msra.mxu0 %v13449_v53  ;;  %9417 = vmatpush1.bf16.msra.mxu1 %v13452_v55 }
0x106a   :  { %9377 = vmatprep.subr.bf16.mxu0 %v13457_v35  ;;  %9418 = vmatprep.subr.bf16.mxu1 %v13460_v34  ;;  %v8954_v35 = vstv %s12361_s1  ;;  %v8961_v34 = vstv %s12363_s8 }
0x106d   :  { %9378 = vmatpush1.bf16.msra.mxu0 %v13455_v59  ;;  %9419 = vmatpush1.bf16.msra.mxu1 %v13458_v42  ;;  %v8957_v42 = vstv %s12362_s2 }
0x106e   :  { %9379 = vmatprep.subr.bf16.mxu0 %v13463_v54  ;;  %9420 = vmatprep.subr.bf16.mxu1 %v13466_v47  ;;  %v8964_v54 = vstv %s12364_s3 }
0x1071   :  { %9380 = vmatpush1.bf16.msra.mxu0 %v13461_v46  ;;  %9421 = vmatpush1.bf16.msra.mxu1 %v13464_v48 }
0x1072   :  { %9381 = vmatprep.subr.bf16.mxu0 %v13469_v63  ;;  %9422 = vmatprep.subr.bf16.mxu1 %v13472_v41  ;;  %v17363_v41 = vmov 0  }
0x1075   :  { %9382 = vmatpush1.bf16.msra.mxu0 %v13467_v61  ;;  %9423 = vmatpush1.bf16.msra.mxu1 %v13470_v33  ;;  %v13499_v61 = vld [vmem:[%s16862_s15 + $0x4] ss:$8 sps:$4 sm:$0xff]   ;;  %v13497_v33 = vld [vmem:[%s16862_s15] ss:$8 sps:$4 sm:$0xff]  }
0x1076   :  { %9383 = vmatprep.subr.bf16.mxu0 %v13475_v5  ;;  %9424 = vmatprep.subr.bf16.mxu1 %v13478_v7  ;;  %v13503_v5 = vld [vmem:[%s16862_s15 + $0x20] ss:$8 sps:$4 sm:$0xff]   ;;  %v13506_v7 = vld [vmem:[%s16862_s15 + $0x30] ss:$8 sps:$4 sm:$0xff]  }
0x1079   :  { %9384 = vmatpush1.bf16.msra.mxu0 %v13473_v1  ;;  %9425 = vmatpush1.bf16.msra.mxu1 %v13476_v50  ;;  %v13505_v1 = vld [vmem:[%s16862_s15 + $0x24] ss:$8 sps:$4 sm:$0xff]   ;;  %v13508_v50 = vld [vmem:[%s16862_s15 + $0x34] ss:$8 sps:$4 sm:$0xff]  }
0x107a   :  { %9385 = vmatprep.subr.bf16.mxu0 %v13481_v4  ;;  %9426 = vmatprep.subr.bf16.mxu1 %v13484_v8  ;;  %v13511_v4 = vld [vmem:[%s16862_s15 + $0x44] ss:$8 sps:$4 sm:$0xff]   ;;  %v13509_v8 = vld [vmem:[%s16862_s15 + $0x40] ss:$8 sps:$4 sm:$0xff]  }
0x107d   :  { %9386 = vmatpush1.bf16.msra.mxu0 %v13479_v22  ;;  %9427 = vmatpush1.bf16.msra.mxu1 %v13482_v52  ;;  %v13514_v22 = vld [vmem:[%s16862_s15 + $0x54] ss:$8 sps:$4 sm:$0xff]   ;;  %v13512_v52 = vld [vmem:[%s16862_s15 + $0x50] ss:$8 sps:$4 sm:$0xff]  }
0x107e   :  { %9387 = vmatprep.subr.bf16.mxu0 %v13487_v23  ;;  %9428 = vmatprep.subr.bf16.mxu1 %v13490_v38  ;;  %v13517_v23 = vld [vmem:[%s16862_s15 + $0x64] ss:$8 sps:$4 sm:$0xff]   ;;  %v13515_v38 = vld [vmem:[%s16862_s15 + $0x60] ss:$8 sps:$4 sm:$0xff]  }
0x1081   :  { %9388 = vmatpush1.bf16.msra.mxu0 %v13485_v9  ;;  %9429 = vmatpush1.bf16.msra.mxu1 %v13488_v15  ;;  %v13520_v9 = vld [vmem:[%s16862_s15 + $0x74] ss:$8 sps:$4 sm:$0xff]   ;;  %v13518_v15 = vld [vmem:[%s16862_s15 + $0x70] ss:$8 sps:$4 sm:$0xff]  }
0x1082   :  { %9389 = vmatprep.subr.bf16.mxu0 %v13493_v27  ;;  %9430 = vmatprep.subr.bf16.mxu1 %v13496_v10  ;;  %v13523_v27 = vld [vmem:[%s16862_s15 + $0x84] ss:$8 sps:$4 sm:$0xff]   ;;  %v13521_v10 = vld [vmem:[%s16862_s15 + $0x80] ss:$8 sps:$4 sm:$0xff]  }
0x1085   :  { %9390 = vmatpush1.bf16.msra.mxu0 %v13491_v45  ;;  %9431 = vmatpush1.bf16.msra.mxu1 %v13494_v11  ;;  %v13526_v45 = vld [vmem:[%s16862_s15 + $0x94] ss:$8 sps:$4 sm:$0xff]   ;;  %v13524_v11 = vld [vmem:[%s16862_s15 + $0x90] ss:$8 sps:$4 sm:$0xff]  }
0x1086   :  { %9705 = vmatprep.subr.bf16.mxu0 %v13499_v61 }
0x111b   :  { %v8877_v6 = vpop.f32.mrb[80].mxu0  ;;  %v8918_v16 = vpop.f32.mrb[80].mxu1 }
0x111c   :  { %v8925_v17 = vadd.f32 %v8877_v6, %v8455_v2  ;;  %v8879_v19 = vpop.f32.mrb[81].mxu0  ;;  %v8920_v58 = vpop.f32.mrb[81].mxu1  ;;  %v8927_v60 = vadd.f32 %v8918_v16, %v8457_v13  ;;  %v13529_v2 = vld [vmem:[%s16862_s15 + $0xa4] ss:$8 sps:$4 sm:$0xff]   ;;  %v13527_v6 = vld [vmem:[%s16862_s15 + $0xa0] ss:$8 sps:$4 sm:$0xff]  }
0x111d   :  { %v8926_v20 = vadd.f32 %v8879_v19, %v8456_v18  ;;  %v8881_v21 = vpop.f32.mrb[82].mxu0  ;;  %v8922_v24 = vpop.f32.mrb[82].mxu1  ;;  %v8928_v28 = vadd.f32 %v8920_v58, %v8458_v29  ;;  %v13532_v16 = vld [vmem:[%s16862_s15 + $0xb4] ss:$8 sps:$4 sm:$0xff]   ;;  %v13535_v18 = vld [vmem:[%s16862_s15 + $0xc4] ss:$8 sps:$4 sm:$0xff]  }
0x111e   :  { %v12358_v25 = vmul.f32 -1.442695, %v8925_v17  ;;  %v8882_v57 = vpop.f32.mrb[83].mxu0  ;;  %v8923_v0 = vpop.f32.mrb[83].mxu1  ;;  %v13530_v17 = vld [vmem:[%s16862_s15 + $0xb0] ss:$8 sps:$4 sm:$0xff]  }
0x111f   :  { %v12359_v26 = vmul.f32 -1.442695, %v8926_v20  ;;  %v12360_v14 = vmul.f32 -1.442695, %v8928_v28  ;;  %v13533_v19 = vld [vmem:[%s16862_s15 + $0xc0] ss:$8 sps:$4 sm:$0xff]  }
0x1120   :  { %13849 = vpow2.f32 %v12358_v25  ;;  %v13536_v58 = vld [vmem:[%s16862_s15 + $0xd0] ss:$8 sps:$4 sm:$0xff]   ;;  %v13538_v20 = vld [vmem:[%s16862_s15 + $0xd4] ss:$8 sps:$4 sm:$0xff]   ;;  %v13541_v21 = vld [vmem:[%s16862_s15 + $0xe4] ss:$8 sps:$4 sm:$0xff]  }
0x1121   :  { %13851 = vpow2.f32 %v12359_v26  ;;  %v13539_v24 = vld [vmem:[%s16862_s15 + $0xe0] ss:$8 sps:$4 sm:$0xff]   ;;  %v13544_v25 = vld [vmem:[%s16862_s15 + $0xf4] ss:$8 sps:$4 sm:$0xff]   ;;  %v13542_v57 = vld [vmem:[%s16862_s15 + $0xf0] ss:$8 sps:$4 sm:$0xff]  }
0x1122   :  { %13853 = vpow2.f32 %v12360_v14  ;;  %v8971_v0 = vld [vmem:[#allocation3 + $0xe0] sm:$0xff]  ;;  %v8972_v13 = vld [vmem:[#allocation3 + $0xe8] sm:$0xff]  ;;  %s12448_s15 = sld [smem:[#allocation11 + $0x7]] }
0x1123   :  { %13855 = vtanh.f32 %v8927_v60 }
0x112a   :  { %v13850_v30 = vpop.eup %13849 }
0x112b   :  { %v13852_v31 = vpop.eup %13851  ;;  %v8932_v12 = vadd.f32 1.0, %v13850_v30 }
0x112c   :  { %v8938_v43 = vadd.f32 1.0, %v13852_v31  ;;  %v13854_v39 = vpop.eup %13853 }
0x112d   :  { %13857 = vrcp.f32 %v8932_v12  ;;  %v13856_v40 = vpop.eup %13855  ;;  %v8945_v44 = vadd.f32 1.0, %v13854_v39 }
0x112e   :  { %13859 = vrcp.f32 %v8938_v43 }
0x112f   :  { %13861 = vrcp.f32 %v8945_v44  ;;  %v8973_v44 = vld [vmem:[#allocation3 + $0xf0] sm:$0xff] }
0x1137   :  { %v13858_v32 = vpop.eup %13857 }
0x1138   :  { %v13860_v51 = vpop.eup %13859  ;;  %v8949_v49 = vmul.f32 %v13858_v32, %v13856_v40 }
0x1139   :  { %v8948_v56 = vmul.f32 %v13860_v51, %v16486_v36  ;;  %v13862_v53 = vpop.eup %13861  ;;  %v8974_v51 = vld [vmem:[#allocation3 + $0xf8] sm:$0xff] }
0x113b   :  { %v16500_v37 = vadd.f32 %v8949_v49, %v8948_v56 }
0x113d   :  { %13863 = vtanh.f32 %v16500_v37 }
0x1147   :  { %v13864_v55 = vpop.eup %13863 }
0x1148   :  { %v8952_v59 = vmul.f32 %v13864_v55, %v13862_v53 }
0x114a   :  { %v8955_v47 = vmul.f32 %v8954_v35, %v8952_v59  ;;  %v8962_v46 = vmul.f32 %v8961_v34, %v8952_v59  ;;  %v12432_v48 = vpack.c.bf16 %v8952_v59, %v8952_v59 }
0x114c   :  { %v8958_v36 = vadd.f32 %v8957_v42, %v8955_v47  ;;  %v8965_v63 = vadd.f32 %v8964_v54, %v8962_v46  ;;  %12433 = vmatprep.mubr.msk.bf16.mxu0 %vm14987_vm3, %v12432_v48  ;;  %12441 = vmatprep.mubr.msk.bf16.mxu1 %vm14987_vm3, %v12432_v48 }
0x114d   :  { %12436 = vmatmul.mubr.msk.bf16.vlgmr.msra.gmra.mrb[84].mxu0 %vm14991_vm4, %v12432_v48  ;;  %12444 = vmatmul.mubr.msk.bf16.vlgmr.msra.gmra.mrb[84].mxu1 %vm14991_vm4, %v12432_v48 }
0x114e   :  { %8959 = vst [vmem:[#allocation2 + $0x30] sm:$0xf] %v8958_v36  ;;  %8966 = vst [vmem:[#allocation2 + $0x8] sm:$0xf0] %v8965_v63  ;;  %9867 = vmatprep.mubr.bf16.mxu1 %v17363_v41  ;;  %9706 = vmatpush1.bf16.msra.mxu0 %v13497_v33 }
0x114f   :  { %9707 = vmatprep.subr.bf16.mxu0 %v13502_v62 }
0x1152   :  { %9708 = vmatpush1.bf16.msra.mxu0 %v13500_v3  ;;  %v9470_v3 = vstv %s12448_s15  ;;  %s17366_s15 = sld [smem:[#allocation90_spill]] }
0x1153   :  { %9709 = vmatprep.subr.bf16.mxu0 %v13505_v1  ;;  %v9480_v1 = vstv %s9479_s7 }
0x1156   :  { %9710 = vmatpush1.bf16.msra.mxu0 %v13503_v5 }
0x1157   :  { %9711 = vmatprep.subr.bf16.mxu0 %v13508_v50  ;;  %v9473_v50 = vstv %s12449_s17 }
0x115a   :  { %9712 = vmatpush1.bf16.msra.mxu0 %v13506_v7  ;;  %v9483_v7 = vstv %s9482_s30 }
0x115b   :  { %9713 = vmatprep.subr.bf16.mxu0 %v13511_v4 }
0x115e   :  { %9714 = vmatpush1.bf16.msra.mxu0 %v13509_v8 }
0x115f   :  { %9715 = vmatprep.subr.bf16.mxu0 %v13514_v22 }
0x1162   :  { %9716 = vmatpush1.bf16.msra.mxu0 %v13512_v52 }
0x1163   :  { %9717 = vmatprep.subr.bf16.mxu0 %v13517_v23 }
0x1166   :  { %9718 = vmatpush1.bf16.msra.mxu0 %v13515_v38  ;;  %v9491_v38 = vld [vmem:[#allocation2 + $0x10] sm:$0xff] }
0x1167   :  { %9719 = vmatprep.subr.bf16.mxu0 %v13520_v9 }
0x116a   :  { %9720 = vmatpush1.bf16.msra.mxu0 %v13518_v15  ;;  %v9492_v15 = vld [vmem:[#allocation2 + $0x18] sm:$0xff] }
0x116b   :  { %9721 = vmatprep.subr.bf16.mxu0 %v13523_v27  ;;  %v9494_v27 = vld [vmem:[#allocation2 + $0x28] sm:$0xff] }
0x116e   :  { %9722 = vmatpush1.bf16.msra.mxu0 %v13521_v10 }
0x116f   :  { %9723 = vmatprep.subr.bf16.mxu0 %v13526_v45  ;;  %v9489_v45 = vld [vmem:[#allocation2] sm:$0xff] }
0x1172   :  { %9724 = vmatpush1.bf16.msra.mxu0 %v13524_v11  ;;  %v9497_v11 = vpack.c.bf16 %v9491_v38, %v9489_v45 }
0x1173   :  { %9725 = vmatprep.subr.bf16.mxu0 %v13529_v2  ;;  %v9496_v2 = vld [vmem:[#allocation2 + $0x38] sm:$0xff] }
0x1176   :  { %9726 = vmatpush1.bf16.msra.mxu0 %v13527_v6  ;;  %v9500_v6 = vpack.c.bf16 %v9496_v2, %v9494_v27 }
0x1177   :  { %9727 = vmatprep.subr.bf16.mxu0 %v13532_v16 }
0x117a   :  { %9728 = vmatpush1.bf16.msra.mxu0 %v13530_v17  ;;  %v9493_v17 = vld [vmem:[#allocation2 + $0x20] sm:$0xff] }
0x117b   :  { %9729 = vmatprep.subr.bf16.mxu0 %v13535_v18 }
0x117e   :  { %9730 = vmatpush1.bf16.msra.mxu0 %v13533_v19  ;;  %v9533_v19 = vld [vmem:[#allocation24] sm:$0x3] }
0x117f   :  { %9731 = vmatprep.subr.bf16.mxu0 %v13538_v20 }
0x1182   :  { %9732 = vmatpush1.bf16.msra.mxu0 %v13536_v58  ;;  %v17364_v58 = vld [vmem:[#allocation49_spill] sm:$0xff] }
0x1183   :  { %9733 = vmatprep.subr.bf16.mxu0 %v13541_v21  ;;  %v9538_v20 = vrot.slane %v9533_v19, %v17364_v58 }
0x1186   :  { %9734 = vmatpush1.bf16.msra.mxu0 %v13539_v24 }
0x1187   :  { %9735 = vmatprep.subr.bf16.mxu0 %v13544_v25 }
0x118a   :  { %9736 = vmatpush1.bf16.msra.mxu0 %v13542_v57  ;;  %v17365_v57 = vld [vmem:[#allocation51_spill] sm:$0xff] }
0x1220   :  { %v9393_v26 = vpop.f32.mrb[84].mxu0  ;;  %v9434_v29 = vpop.f32.mrb[84].mxu1 }
0x1221   :  { %v9441_v28 = vadd.f32 %v9393_v26, %v8971_v0  ;;  %v9395_v14 = vpop.f32.mrb[85].mxu0  ;;  %v9436_v60 = vpop.f32.mrb[85].mxu1  ;;  %v9443_v53 = vadd.f32 %v9434_v29, %v8973_v44  ;;  %v9542_v0 = vrot.slane %v9533_v19, %v17365_v57 }
0x1222   :  { %v9442_v30 = vadd.f32 %v9395_v14, %v8972_v13  ;;  %v9397_v31 = vpop.f32.mrb[86].mxu0  ;;  %v9438_v12 = vpop.f32.mrb[86].mxu1  ;;  %v9444_v49 = vadd.f32 %v9436_v60, %v8974_v51 }
0x1223   :  { %v12445_v43 = vmul.f32 -1.442695, %v9441_v28  ;;  %v9398_v39 = vpop.f32.mrb[87].mxu0  ;;  %v9439_v40 = vpop.f32.mrb[87].mxu1 }
0x1224   :  { %v12446_v32 = vmul.f32 -1.442695, %v9442_v30  ;;  %v12447_v56 = vmul.f32 -1.442695, %v9444_v49 }
0x1225   :  { %13865 = vpow2.f32 %v12445_v43 }
0x1226   :  { %13867 = vpow2.f32 %v12446_v32 }
0x1227   :  { %13869 = vpow2.f32 %v12447_v56 }
0x1228   :  { %13871 = vtanh.f32 %v9443_v53 }
0x122f   :  { %v13866_v55 = vpop.eup %13865 }
0x1230   :  { %v13868_v35 = vpop.eup %13867  ;;  %v9448_v34 = vadd.f32 1.0, %v13866_v55 }
0x1231   :  { %v9454_v59 = vadd.f32 1.0, %v13868_v35  ;;  %v13870_v42 = vpop.eup %13869  ;;  %v16631_v35 = vld [vmem:[#allocation27 + $0x4] ss:$8 sps:$4 sm:$0xff]  }
0x1232   :  { %13873 = vrcp.f32 %v9448_v34  ;;  %v13872_v54 = vpop.eup %13871  ;;  %v9461_v36 = vadd.f32 1.0, %v13870_v42  ;;  %v16633_v34 = vld [vmem:[#allocation27] ss:$8 sps:$4 sm:$0xff]   ;;  %9835 = vmatprep.subr.bf16.mxu1 %v16631_v35  ;;  %10149 = vmatprep.subr.bf16.mxu0 %v16631_v35  ;;  %v16640_v42 = vld [vmem:[#allocation27 + $0x10] ss:$8 sps:$4 sm:$0xff]  }
0x1233   :  { %13875 = vrcp.f32 %v9454_v59  ;;  %v16635_v59 = vld [vmem:[#allocation27 + $0x14] ss:$8 sps:$4 sm:$0xff]   ;;  %9836 = vmatpush1.bf16.msra.mxu1 %v16633_v34 }
0x1234   :  { %13877 = vrcp.f32 %v9461_v36  ;;  %9837 = vmatprep.subr.bf16.mxu1 %v16635_v59 }
0x1237   :  { %9838 = vmatpush1.bf16.msra.mxu1 %v16640_v42 }
0x123c   :  { %v13874_v47 = vpop.eup %13873 }
0x123d   :  { %v13876_v46 = vpop.eup %13875  ;;  %v9465_v48 = vmul.f32 %v13874_v47, %v13872_v54  ;;  %v16644_v54 = vld [vmem:[#allocation27 + $0x24] ss:$8 sps:$4 sm:$0xff]   ;;  %v16648_v47 = vld [vmem:[#allocation27 + $0x20] ss:$8 sps:$4 sm:$0xff]  }
0x123e   :  { %v9464_v63 = vmul.f32 %v13876_v46, %v16500_v37  ;;  %v13878_v33 = vpop.eup %13877  ;;  %9839 = vmatprep.subr.bf16.mxu1 %v16644_v54  ;;  %v16652_v46 = vld [vmem:[#allocation27 + $0x34] ss:$8 sps:$4 sm:$0xff]  }
0x123f   :  { %9840 = vmatpush1.bf16.msra.mxu1 %v16648_v47 }
0x1240   :  { %v9466_v61 = vadd.f32 %v9465_v48, %v9464_v63  ;;  %v16656_v48 = vld [vmem:[#allocation27 + $0x30] ss:$8 sps:$4 sm:$0xff]   ;;  %9841 = vmatprep.subr.bf16.mxu1 %v16652_v46 }
0x1242   :  { %13879 = vtanh.f32 %v9466_v61 }
0x1243   :  { %9842 = vmatpush1.bf16.msra.mxu1 %v16656_v48 }
0x1244   :  { %9917 = vmatprep.subr.bf16.mxu1 %v16631_v35 }
0x124c   :  { %v13880_v62 = vpop.eup %13879 }
0x124d   :  { %v9468_v5 = vmul.f32 %v13880_v62, %v13878_v33 }
0x124f   :  { %v9471_v4 = vmul.f32 %v9470_v3, %v9468_v5  ;;  %v9481_v8 = vmul.f32 %v9480_v1, %v9468_v5 }
0x1251   :  { %v9474_v22 = vadd.f32 %v9473_v50, %v9471_v4  ;;  %v9484_v52 = vadd.f32 %v9483_v7, %v9481_v8 }
0x1253   :  { %v9476_v23 = vrot.slane %v9474_v22, 4  ;;  %v9486_v37 = vrot.slane %v9484_v52, 4 }
0x1255   :  { %9478 = vst [vmem:[#allocation2 + $0x30] sm:$0xf0] %v9476_v23  ;;  %9488 = vst [vmem:[#allocation2 + $0x8] sm:$0xf] %v9486_v37 }
0x125c   :  { %v9490_v9 = vld [vmem:[#allocation2 + $0x8] sm:$0xff]  ;;  %v9495_v16 = vld [vmem:[#allocation2 + $0x30] sm:$0xff] }
0x125d   :  { %v9498_v10 = vpack.c.bf16 %v9492_v15, %v9490_v9  ;;  %v9499_v18 = vpack.c.bf16 %v9495_v16, %v9493_v17 }
0x125f   :  { %9737 = vmatprep.mubr.bf16.mxu0 %v9498_v10 }
0x1260   :  { %9738 = vmatmul.mubr.bf16.vlgmr.msra.gmra.mrb[88].mxu0 %v9497_v11 }
0x1261   :  { %9747 = vmatprep.mubr.bf16.mxu0 %v9500_v6  ;;  %10150 = vmatpush1.bf16.msra.mxu0 %v16633_v34 }
0x1262   :  { %10151 = vmatprep.subr.bf16.mxu0 %v16635_v59 }
0x1265   :  { %10152 = vmatpush1.bf16.msra.mxu0 %v16640_v42 }
0x1266   :  { %10153 = vmatprep.subr.bf16.mxu0 %v16644_v54 }
0x1268   :  { %9748 = vmatmul.mubr.bf16.gmra.mrb[92].mxu0 %v9499_v18 }
0x1269   :  { %10181 = vmatprep.mubr.bf16.mxu0 %v17363_v41  ;;  %10154 = vmatpush1.bf16.msra.mxu0 %v16648_v47 }
0x126a   :  { %10155 = vmatprep.subr.bf16.mxu0 %v16652_v46 }
0x126d   :  { %10156 = vmatpush1.bf16.msra.mxu0 %v16656_v48 }
0x126e   :  { %10306 = vmatprep.subr.bf16.mxu0 %v16631_v35 }
0x1333   :  { %v9739_v21 = vpop.f32.mrb[88].mxu0 }
0x1334   :  { %v16611_v24 = vadd.f32 %v9739_v21, %v9538_v20  ;;  %v9741_v25 = vpop.f32.mrb[89].mxu0 }
0x1335   :  { %v9743_v26 = vpop.f32.mrb[90].mxu0  ;;  %v16627_v51 = vadd.f32 %v9741_v25, %v9542_v0 }
0x1336   :  { %v12482_v29 = vmul.f32 -1.442695, %v16611_v24  ;;  %v16615_v28 = vadd.f32 %v9743_v26, %v9538_v20  ;;  %v9745_v13 = vpop.f32.mrb[91].mxu0 }
0x1337   :  { %v16617_v14 = vadd.f32 %v9745_v13, %v9542_v0  ;;  %v12483_v36 = vmul.f32 -1.442695, %v16627_v51 }
0x1338   :  { %13881 = vpow2.f32 %v12482_v29 }
0x1339   :  { %13883 = vtanh.f32 %v16627_v51 }
0x133b   :  { %v9749_v60 = vpop.f32.mrb[92].mxu0 }
0x133c   :  { %v16619_v30 = vadd.f32 %v9749_v60, %v9538_v20  ;;  %v9751_v31 = vpop.f32.mrb[93].mxu0 }
0x133d   :  { %v16621_v12 = vadd.f32 %v9751_v31, %v9542_v0  ;;  %v9753_v43 = vpop.f32.mrb[94].mxu0 }
0x133e   :  { %v16623_v39 = vadd.f32 %v9753_v43, %v9538_v20  ;;  %v9755_v40 = vpop.f32.mrb[95].mxu0 }
0x133f   :  { %v16625_v32 = vadd.f32 %v9755_v40, %v9542_v0 }
0x1342   :  { %v13882_v49 = vpop.eup %13881 }
0x1343   :  { %v9761_v44 = vadd.f32 1.0, %v13882_v49  ;;  %v13884_v56 = vpop.eup %13883 }
0x1345   :  { %13885 = vrcp.f32 %v9761_v44 }
0x1346   :  { %13887 = vpow2.f32 %v12483_v36 }
0x134f   :  { %v13886_v53 = vpop.eup %13885 }
0x1350   :  { %v9772_v55 = vmul.f32 %v13886_v53, %v13884_v56  ;;  %v13888_v63 = vpop.eup %13887  ;;  %v9771_v33 = vmul.f32 0.0, %v13886_v53 }
0x1351   :  { %v9768_v61 = vadd.f32 1.0, %v13888_v63 }
0x1352   :  { %9774 = vrot.lane.b32.xlu0 %v9772_v55, %s14475_s18 }
0x1353   :  { %13889 = vrcp.f32 %v9768_v61 }
0x135d   :  { %v13890_v1 = vpop.eup %13889 }
0x13c4   :  { %v9775_v62 = vpop.permute.xlu0 %9774 }
0x13c5   :  { %v9777_v3 = vadd.f32 %v9775_v62, %v9771_v33 }
0x13c7   :  { %13891 = vtanh.f32 %v9777_v3  ;;  %v9898_v2 = vrot.slane %v9777_v3, 4 }
0x13d1   :  { %v13892_v5 = vpop.eup %13891 }
0x13d2   :  { %v9779_v50 = vmul.f32 %v13892_v5, %v13890_v1 }
0x13d4   :  { %v9780_v7 = vpack.c.bf16 %v9779_v50, %v9779_v50 }
0x13d6   :  { %9790 = vrot.lane.b32.xlu0 %v9780_v7, %s14475_s18 }
0x1448   :  { %v9791_v4 = vpop.permute.xlu0 %9790 }
0x1449   :  { %12492 = vmatmul.mubr.msk.bf16.vlgmr.msra.gmra.mrb[88].mxu1 %vm437_vm0, %v9791_v4 }
0x144a   :  { %9918 = vmatpush1.bf16.msra.mxu1 %v16633_v34  ;;  %9949 = vmatprep.mubr.bf16.mxu1 %v17363_v41 }
0x144b   :  { %9919 = vmatprep.subr.bf16.mxu1 %v16635_v59 }
0x144e   :  { %9920 = vmatpush1.bf16.msra.mxu1 %v16640_v42 }
0x144f   :  { %9921 = vmatprep.subr.bf16.mxu1 %v16644_v54 }
0x1452   :  { %9922 = vmatpush1.bf16.msra.mxu1 %v16648_v47 }
0x1453   :  { %9923 = vmatprep.subr.bf16.mxu1 %v16652_v46 }
0x1456   :  { %9924 = vmatpush1.bf16.msra.mxu1 %v16656_v48 }
0x1457   :  { %9992 = vmatprep.subr.bf16.mxu1 %v16631_v35 }
0x151c   :  { %v9869_v8 = vpop.f32.mrb[88].mxu1 }
0x151d   :  { %v9878_v22 = vrot.slane %v9869_v8, 4  ;;  %v9871_v52 = vpop.f32.mrb[89].mxu1 }
0x151e   :  { %v9873_v23 = vpop.f32.mrb[90].mxu1  ;;  %v9879_v15 = vrot.slane %v9871_v52, 4 }
0x151f   :  { %v9882_v37 = vadd.f32 %v9878_v22, %v16611_v24  ;;  %v9874_v38 = vpop.f32.mrb[91].mxu1 }
0x1520   :  { %v9883_v27 = vadd.f32 %v9879_v15, %v16627_v51 }
0x1521   :  { %v12493_v9 = vmul.f32 -1.442695, %v9882_v37 }
0x1522   :  { %v12494_v18 = vmul.f32 -1.442695, %v9883_v27 }
0x1523   :  { %13893 = vpow2.f32 %v12493_v9 }
0x1524   :  { %13895 = vtanh.f32 %v9883_v27 }
0x152d   :  { %v13894_v10 = vpop.eup %13893 }
0x152e   :  { %v9887_v45 = vadd.f32 1.0, %v13894_v10  ;;  %v13896_v11 = vpop.eup %13895 }
0x1530   :  { %13897 = vrcp.f32 %v9887_v45 }
0x1531   :  { %13899 = vpow2.f32 %v12494_v18 }
0x153a   :  { %v13898_v6 = vpop.eup %13897 }
0x153b   :  { %v9901_v16 = vmul.f32 %v13898_v6, %v13896_v11  ;;  %v9900_v17 = vmul.f32 %v13898_v6, %v9898_v2  ;;  %v13900_v19 = vpop.eup %13899 }
0x153c   :  { %v9894_v20 = vadd.f32 1.0, %v13900_v19 }
0x153d   :  { %9903 = vrot.lane.b32.xlu1 %v9901_v16, %s14475_s18 }
0x153e   :  { %13901 = vrcp.f32 %v9894_v20 }
0x1548   :  { %v13902_v25 = vpop.eup %13901 }
0x15af   :  { %v9904_v21 = vpop.permute.xlu1 %9903 }
0x15b0   :  { %v9906_v24 = vadd.f32 %v9904_v21, %v9900_v17 }
0x15b2   :  { %13903 = vtanh.f32 %v9906_v24  ;;  %v9974_v63 = vrot.slane %v9906_v24, 4 }
0x15bc   :  { %v13904_v0 = vpop.eup %13903 }
0x15bd   :  { %v9908_v26 = vmul.f32 %v13904_v0, %v13902_v25 }
0x15bf   :  { %v9909_v29 = vpack.c.bf16 %v9908_v26, %v9908_v26 }
0x15c1   :  { %v9911_v13 = vrot.slane %v9909_v29, 2 }
0x15c3   :  { %9912 = vrot.lane.b32.xlu1 %v9911_v13, %s14475_s18 }
0x1635   :  { %v9913_v60 = vpop.permute.xlu1 %9912 }
0x1636   :  { %12495 = vmatmul.mubr.msk.bf16.vlgmr.msra.gmra.mrb[92].mxu1 %vm437_vm0, %v9913_v60 }
0x1637   :  { %9993 = vmatpush1.bf16.msra.mxu1 %v16633_v34  ;;  %10024 = vmatprep.mubr.bf16.mxu1 %v17363_v41 }
0x1638   :  { %9994 = vmatprep.subr.bf16.mxu1 %v16635_v59 }
0x163b   :  { %9995 = vmatpush1.bf16.msra.mxu1 %v16640_v42 }
0x163c   :  { %9996 = vmatprep.subr.bf16.mxu1 %v16644_v54 }
0x163f   :  { %9997 = vmatpush1.bf16.msra.mxu1 %v16648_v47 }
0x1640   :  { %9998 = vmatprep.subr.bf16.mxu1 %v16652_v46 }
0x1643   :  { %9999 = vmatpush1.bf16.msra.mxu1 %v16656_v48 }
0x1644   :  { %10074 = vmatprep.subr.bf16.mxu1 %v16631_v35 }
0x1709   :  { %v9951_v31 = vpop.f32.mrb[92].mxu1 }
0x170a   :  { %v9958_v43 = vadd.f32 %v9951_v31, %v16615_v28  ;;  %v9953_v40 = vpop.f32.mrb[93].mxu1 }
0x170b   :  { %v9955_v51 = vpop.f32.mrb[94].mxu1  ;;  %v9959_v56 = vadd.f32 %v9953_v40, %v16617_v14 }
0x170c   :  { %v12496_v49 = vmul.f32 -1.442695, %v9958_v43  ;;  %v9956_v44 = vpop.f32.mrb[95].mxu1 }
0x170d   :  { %v12497_v3 = vmul.f32 -1.442695, %v9959_v56 }
0x170e   :  { %13905 = vpow2.f32 %v12496_v49 }
0x170f   :  { %13907 = vtanh.f32 %v9959_v56 }
0x1718   :  { %v13906_v53 = vpop.eup %13905 }
0x1719   :  { %v9963_v55 = vadd.f32 1.0, %v13906_v53  ;;  %v13908_v36 = vpop.eup %13907 }
0x171b   :  { %13909 = vrcp.f32 %v9963_v55 }
0x171c   :  { %13911 = vpow2.f32 %v12497_v3 }
0x1725   :  { %v13910_v61 = vpop.eup %13909 }
0x1726   :  { %v9977_v33 = vmul.f32 %v13910_v61, %v13908_v36  ;;  %v9976_v62 = vmul.f32 %v13910_v61, %v9974_v63  ;;  %v13912_v1 = vpop.eup %13911 }
0x1727   :  { %v9970_v5 = vadd.f32 1.0, %v13912_v1 }
0x1728   :  { %9979 = vrot.lane.b32.xlu0 %v9977_v33, %s14475_s18 }
0x1729   :  { %13913 = vrcp.f32 %v9970_v5 }
0x1733   :  { %v13914_v4 = vpop.eup %13913 }
0x179a   :  { %v9980_v50 = vpop.permute.xlu0 %9979 }
0x179b   :  { %v9982_v7 = vadd.f32 %v9980_v50, %v9976_v62 }
0x179d   :  { %13915 = vtanh.f32 %v9982_v7  ;;  %v10055_v18 = vrot.slane %v9982_v7, 4 }
0x17a7   :  { %v13916_v8 = vpop.eup %13915 }
0x17a8   :  { %v9984_v22 = vmul.f32 %v13916_v8, %v13914_v4 }
0x17aa   :  { %v9985_v52 = vpack.c.bf16 %v9984_v22, %v9984_v22 }
0x17ac   :  { %9987 = vrot.lane.b32.xlu1 %v9985_v52, %s14475_s18 }
0x181e   :  { %v9988_v23 = vpop.permute.xlu1 %9987 }
0x181f   :  { %12498 = vmatmul.mubr.msk.bf16.vlgmr.msra.gmra.mrb[96].mxu1 %vm437_vm0, %v9988_v23 }
0x1820   :  { %10075 = vmatpush1.bf16.msra.mxu1 %v16633_v34  ;;  %10106 = vmatprep.mubr.bf16.mxu1 %v17363_v41 }
0x1821   :  { %10076 = vmatprep.subr.bf16.mxu1 %v16635_v59 }
0x1824   :  { %10077 = vmatpush1.bf16.msra.mxu1 %v16640_v42 }
0x1825   :  { %10078 = vmatprep.subr.bf16.mxu1 %v16644_v54 }
0x1828   :  { %10079 = vmatpush1.bf16.msra.mxu1 %v16648_v47 }
0x1829   :  { %10080 = vmatprep.subr.bf16.mxu1 %v16652_v46 }
0x182c   :  { %10081 = vmatpush1.bf16.msra.mxu1 %v16656_v48 }
0x182d   :  { %10231 = vmatprep.subr.bf16.mxu1 %v16631_v35 }
0x18f2   :  { %v10026_v37 = vpop.f32.mrb[96].mxu1 }
0x18f3   :  { %v10035_v38 = vrot.slane %v10026_v37, 4  ;;  %v10028_v9 = vpop.f32.mrb[97].mxu1 }
0x18f4   :  { %v10030_v15 = vpop.f32.mrb[98].mxu1  ;;  %v10036_v11 = vrot.slane %v10028_v9, 4 }
0x18f5   :  { %v10039_v27 = vadd.f32 %v10035_v38, %v16615_v28  ;;  %v10031_v10 = vpop.f32.mrb[99].mxu1 }
0x18f6   :  { %v10040_v2 = vadd.f32 %v10036_v11, %v16617_v14 }
0x18f7   :  { %v12499_v45 = vmul.f32 -1.442695, %v10039_v27 }
0x18f8   :  { %v12500_v21 = vmul.f32 -1.442695, %v10040_v2 }
0x18f9   :  { %13917 = vpow2.f32 %v12499_v45 }
0x18fa   :  { %13919 = vtanh.f32 %v10040_v2 }
0x1903   :  { %v13918_v6 = vpop.eup %13917 }
0x1904   :  { %v10044_v16 = vadd.f32 1.0, %v13918_v6  ;;  %v13920_v17 = vpop.eup %13919  ;;  %v13559_v6 = vld [vmem:[#allocation23 + $0x4] ss:$8 sps:$4 sm:$0xff]  }
0x1906   :  { %13921 = vrcp.f32 %v10044_v16 }
0x1907   :  { %13923 = vpow2.f32 %v12500_v21 }
0x1910   :  { %v13922_v19 = vpop.eup %13921 }
0x1911   :  { %v10058_v35 = vmul.f32 %v13922_v19, %v13920_v17  ;;  %v10057_v20 = vmul.f32 %v13922_v19, %v10055_v18  ;;  %v13924_v28 = vpop.eup %13923 }
0x1912   :  { %v10051_v24 = vadd.f32 1.0, %v13924_v28 }
0x1913   :  { %10060 = vrot.lane.b32.xlu0 %v10058_v35, %s14475_s18 }
0x1914   :  { %13925 = vrcp.f32 %v10051_v24  ;;  %v10381_v24 = vld [vmem:[#allocation2 + $0x38] sm:$0xf0] }
0x191e   :  { %v13926_v14 = vpop.eup %13925 }
0x1985   :  { %v10061_v25 = vpop.permute.xlu0 %10060 }
0x1986   :  { %v10063_v0 = vadd.f32 %v10061_v25, %v10057_v20  ;;  %v10383_v25 = vpack.c.bf16 %v10381_v24, %v10381_v24 }
0x1988   :  { %13927 = vtanh.f32 %v10063_v0  ;;  %v10131_v61 = vrot.slane %v10063_v0, 4  ;;  %v13557_v0 = vld [vmem:[#allocation23] ss:$8 sps:$4 sm:$0xff]  }
0x1992   :  { %v13928_v26 = vpop.eup %13927 }
0x1993   :  { %v10065_v29 = vmul.f32 %v13928_v26, %v13926_v14  ;;  %v13562_v14 = vld [vmem:[#allocation23 + $0x14] ss:$8 sps:$4 sm:$0xff]  }
0x1995   :  { %v10066_v13 = vpack.c.bf16 %v10065_v29, %v10065_v29  ;;  %v10431_v29 = vrot.slane %v10383_v25, 2 }
0x1997   :  { %v10068_v60 = vrot.slane %v10066_v13, 2  ;;  %v13560_v13 = vld [vmem:[#allocation23 + $0x10] ss:$8 sps:$4 sm:$0xff]  }
0x1999   :  { %10069 = vrot.lane.b32.xlu1 %v10068_v60, %s14475_s18  ;;  %v13565_v60 = vld [vmem:[#allocation23 + $0x24] ss:$8 sps:$4 sm:$0xff]  }
0x1a0b   :  { %v10070_v31 = vpop.permute.xlu1 %10069 }
0x1a0c   :  { %12501 = vmatmul.mubr.msk.bf16.vlgmr.msra.gmra.mrb[100].mxu1 %vm437_vm0, %v10070_v31  ;;  %v13563_v31 = vld [vmem:[#allocation23 + $0x20] ss:$8 sps:$4 sm:$0xff]  }
0x1a0d   :  { %10232 = vmatpush1.bf16.msra.mxu1 %v16633_v34  ;;  %10263 = vmatprep.mubr.bf16.mxu1 %v17363_v41 }
0x1a0e   :  { %10233 = vmatprep.subr.bf16.mxu1 %v16635_v59 }
0x1a11   :  { %10234 = vmatpush1.bf16.msra.mxu1 %v16640_v42 }
0x1a12   :  { %10235 = vmatprep.subr.bf16.mxu1 %v16644_v54 }
0x1a15   :  { %10236 = vmatpush1.bf16.msra.mxu1 %v16648_v47 }
0x1a16   :  { %10237 = vmatprep.subr.bf16.mxu1 %v16652_v46 }
0x1a19   :  { %10238 = vmatpush1.bf16.msra.mxu1 %v16656_v48 }
0x1a1a   :  { %10594 = vmatprep.subr.bf16.mxu1 %v13559_v6 }
0x1adf   :  { %v10108_v43 = vpop.f32.mrb[100].mxu1 }
0x1ae0   :  { %v10115_v40 = vadd.f32 %v10108_v43, %v16619_v30  ;;  %v10110_v51 = vpop.f32.mrb[101].mxu1  ;;  %v13568_v43 = vld [vmem:[#allocation23 + $0x34] ss:$8 sps:$4 sm:$0xff]  }
0x1ae1   :  { %v10112_v49 = vpop.f32.mrb[102].mxu1  ;;  %v10116_v53 = vadd.f32 %v10110_v51, %v16621_v12  ;;  %v13571_v51 = vld [vmem:[#allocation23 + $0x44] ss:$8 sps:$4 sm:$0xff]  }
0x1ae2   :  { %v12502_v44 = vmul.f32 -1.442695, %v10115_v40  ;;  %v10113_v56 = vpop.f32.mrb[103].mxu1  ;;  %v13566_v40 = vld [vmem:[#allocation23 + $0x30] ss:$8 sps:$4 sm:$0xff]  }
0x1ae3   :  { %v12503_v1 = vmul.f32 -1.442695, %v10116_v53  ;;  %v13569_v49 = vld [vmem:[#allocation23 + $0x40] ss:$8 sps:$4 sm:$0xff]   ;;  %v13572_v56 = vld [vmem:[#allocation23 + $0x50] ss:$8 sps:$4 sm:$0xff]  }
0x1ae4   :  { %13929 = vpow2.f32 %v12502_v44  ;;  %v13574_v44 = vld [vmem:[#allocation23 + $0x54] ss:$8 sps:$4 sm:$0xff]  }
0x1ae5   :  { %13931 = vtanh.f32 %v10116_v53  ;;  %v13577_v53 = vld [vmem:[#allocation23 + $0x64] ss:$8 sps:$4 sm:$0xff]  }
0x1aee   :  { %v13930_v55 = vpop.eup %13929 }
0x1aef   :  { %v10120_v36 = vadd.f32 1.0, %v13930_v55  ;;  %v13932_v63 = vpop.eup %13931  ;;  %v13575_v55 = vld [vmem:[#allocation23 + $0x60] ss:$8 sps:$4 sm:$0xff]  }
0x1af1   :  { %13933 = vrcp.f32 %v10120_v36  ;;  %v13580_v36 = vld [vmem:[#allocation23 + $0x74] ss:$8 sps:$4 sm:$0xff]  }
0x1af2   :  { %13935 = vpow2.f32 %v12503_v1  ;;  %v13589_v1 = vld [vmem:[#allocation23 + $0xa4] ss:$8 sps:$4 sm:$0xff]  }
0x1afb   :  { %v13934_v33 = vpop.eup %13933 }
0x1afc   :  { %v10134_v62 = vmul.f32 %v13934_v33, %v13932_v63  ;;  %v10133_v3 = vmul.f32 %v13934_v33, %v10131_v61  ;;  %v13936_v5 = vpop.eup %13935  ;;  %v13578_v63 = vld [vmem:[#allocation23 + $0x70] ss:$8 sps:$4 sm:$0xff]   ;;  %v13583_v61 = vld [vmem:[#allocation23 + $0x84] ss:$8 sps:$4 sm:$0xff]   ;;  %v13581_v33 = vld [vmem:[#allocation23 + $0x80] ss:$8 sps:$4 sm:$0xff]  }
0x1afd   :  { %v10127_v50 = vadd.f32 1.0, %v13936_v5  ;;  %v13587_v5 = vld [vmem:[#allocation23 + $0xa0] ss:$8 sps:$4 sm:$0xff]  }
0x1afe   :  { %10136 = vrot.lane.b32.xlu0 %v10134_v62, %s14475_s18  ;;  %v13586_v62 = vld [vmem:[#allocation23 + $0x94] ss:$8 sps:$4 sm:$0xff]  }
0x1aff   :  { %13937 = vrcp.f32 %v10127_v50  ;;  %v13592_v50 = vld [vmem:[#allocation23 + $0xb4] ss:$8 sps:$4 sm:$0xff]  }
0x1b09   :  { %v13938_v8 = vpop.eup %13937 }
0x1b70   :  { %v10137_v7 = vpop.permute.xlu0 %10136 }
0x1b71   :  { %v10139_v4 = vadd.f32 %v10137_v7, %v10133_v3  ;;  %v13584_v3 = vld [vmem:[#allocation23 + $0x90] ss:$8 sps:$4 sm:$0xff]  }
0x1b72   :  { %v13590_v7 = vld [vmem:[#allocation23 + $0xb0] ss:$8 sps:$4 sm:$0xff]  }
0x1b73   :  { %13939 = vtanh.f32 %v10139_v4 }
0x1b7d   :  { %v13940_v22 = vpop.eup %13939 }
0x1b7e   :  { %v10141_v52 = vmul.f32 %v13940_v22, %v13938_v8  ;;  %v13593_v8 = vld [vmem:[#allocation23 + $0xc0] ss:$8 sps:$4 sm:$0xff]   ;;  %v13598_v22 = vld [vmem:[#allocation23 + $0xd4] ss:$8 sps:$4 sm:$0xff]  }
0x1b80   :  { %v10142_v23 = vpack.c.bf16 %v10141_v52, %v10141_v52  ;;  %v13596_v52 = vld [vmem:[#allocation23 + $0xd0] ss:$8 sps:$4 sm:$0xff]  }
0x1b82   :  { %10144 = vrot.lane.b32.xlu1 %v10142_v23, %s14475_s18  ;;  %v13601_v23 = vld [vmem:[#allocation23 + $0xe4] ss:$8 sps:$4 sm:$0xff]  }
0x1bf4   :  { %v10145_v37 = vpop.permute.xlu1 %10144 }
0x1bf5   :  { %12504 = vmatmul.mubr.msk.bf16.vlgmr.msra.gmra.mrb[96].mxu0 %vm437_vm0, %v10145_v37  ;;  %v13599_v37 = vld [vmem:[#allocation23 + $0xe0] ss:$8 sps:$4 sm:$0xff]  }
0x1bf6   :  { %10307 = vmatpush1.bf16.msra.mxu0 %v16633_v34  ;;  %10338 = vmatprep.mubr.bf16.mxu0 %v17363_v41 }
0x1bf7   :  { %10308 = vmatprep.subr.bf16.mxu0 %v16635_v59 }
0x1bfa   :  { %10309 = vmatpush1.bf16.msra.mxu0 %v16640_v42 }
0x1bfb   :  { %10310 = vmatprep.subr.bf16.mxu0 %v16644_v54 }
0x1bfe   :  { %10311 = vmatpush1.bf16.msra.mxu0 %v16648_v47 }
0x1bff   :  { %10312 = vmatprep.subr.bf16.mxu0 %v16652_v46  ;;  %v10212_v46 = vrot.slane %v10139_v4, 4  ;;  %v13595_v4 = vld [vmem:[#allocation23 + $0xc4] ss:$8 sps:$4 sm:$0xff]  }
0x1c02   :  { %10313 = vmatpush1.bf16.msra.mxu0 %v16656_v48 }
0x1cc8   :  { %v10183_v38 = vpop.f32.mrb[96].mxu0 }
0x1cc9   :  { %v10192_v9 = vrot.slane %v10183_v38, 4  ;;  %v10185_v15 = vpop.f32.mrb[97].mxu0  ;;  %v13604_v38 = vld [vmem:[#allocation23 + $0xf4] ss:$8 sps:$4 sm:$0xff]  }
0x1cca   :  { %v10187_v27 = vpop.f32.mrb[98].mxu0  ;;  %v10193_v59 = vrot.slane %v10185_v15, 4  ;;  %v13602_v15 = vld [vmem:[#allocation23 + $0xf0] ss:$8 sps:$4 sm:$0xff]  }
0x1ccb   :  { %v10196_v34 = vadd.f32 %v10192_v9, %v16619_v30  ;;  %v10188_v10 = vpop.f32.mrb[99].mxu0  ;;  %v10380_v9 = vld [vmem:[#allocation2 + $0x30] sm:$0xf0] }
0x1ccc   :  { %v10197_v42 = vadd.f32 %v10193_v59, %v16621_v12  ;;  %v10382_v27 = vpack.c.bf16 %v10380_v9, %v10380_v9  ;;  %v13608_v9 = vld [vmem:[#allocation29 + $0x18] sm:$0xff]  }
0x1ccd   :  { %v12505_v41 = vmul.f32 -1.442695, %v10196_v34 }
0x1cce   :  { %v12506_v30 = vmul.f32 -1.442695, %v10197_v42  ;;  %v10430_v34 = vrot.slane %v10382_v27, 2 }
0x1ccf   :  { %13941 = vpow2.f32 %v12505_v41 }
0x1cd0   :  { %13943 = vtanh.f32 %v10197_v42 }
0x1cd9   :  { %v13942_v45 = vpop.eup %13941 }
0x1cda   :  { %v10201_v54 = vadd.f32 1.0, %v13942_v45  ;;  %v13944_v47 = vpop.eup %13943 }
0x1cdc   :  { %13945 = vrcp.f32 %v10201_v54 }
0x1cdd   :  { %13947 = vpow2.f32 %v12506_v30 }
0x1ce6   :  { %v13946_v11 = vpop.eup %13945 }
0x1ce7   :  { %v10215_v48 = vmul.f32 %v13946_v11, %v13944_v47  ;;  %v10214_v2 = vmul.f32 %v13946_v11, %v10212_v46  ;;  %v13948_v16 = vpop.eup %13947 }
0x1ce8   :  { %v10208_v17 = vadd.f32 1.0, %v13948_v16 }
0x1ce9   :  { %10217 = vrot.lane.b32.xlu0 %v10215_v48, %s14475_s18 }
0x1cea   :  { %13949 = vrcp.f32 %v10208_v17  ;;  %v10416_v17 = vld [vmem:[#allocation26] sm:$0x3] }
0x1ceb   :  { %v10425_v25 = vrot.slane %v10416_v17, %v17365_v57 }
0x1cf4   :  { %v13950_v12 = vpop.eup %13949 }
0x1d5b   :  { %v10218_v18 = vpop.permute.xlu0 %10217 }
0x1d5c   :  { %v16734_v19 = vadd.f32 %v10218_v18, %v10214_v2  ;;  %v10421_v18 = vrot.slane %v10416_v17, %v17364_v58 }
0x1d5e   :  { %13951 = vtanh.f32 %v16734_v19  ;;  %v10288_v2 = vrot.slane %v16734_v19, 4 }
0x1d68   :  { %v13952_v35 = vpop.eup %13951 }
0x1d69   :  { %v10222_v20 = vmul.f32 %v13952_v35, %v13950_v12 }
0x1d6b   :  { %v10223_v21 = vpack.c.bf16 %v10222_v20, %v10222_v20 }
0x1d6d   :  { %v10225_v28 = vrot.slane %v10223_v21, 2 }
0x1d6f   :  { %10226 = vrot.lane.b32.xlu1 %v10225_v28, %s14475_s18 }
0x1de1   :  { %v10227_v26 = vpop.permute.xlu1 %10226 }
0x1de2   :  { %12507 = vmatmul.mubr.msk.bf16.vlgmr.msra.gmra.mrb[104].mxu1 %vm437_vm0, %v10227_v26 }
0x1de3   :  { %10595 = vmatpush1.bf16.msra.mxu1 %v13557_v0  ;;  %10626 = vmatprep.mubr.bf16.mxu1 %v10431_v29 }
0x1de4   :  { %10596 = vmatprep.subr.bf16.mxu1 %v13562_v14 }
0x1de7   :  { %10597 = vmatpush1.bf16.msra.mxu1 %v13560_v13 }
0x1de8   :  { %10598 = vmatprep.subr.bf16.mxu1 %v13565_v60 }
0x1deb   :  { %10599 = vmatpush1.bf16.msra.mxu1 %v13563_v31 }
0x1dec   :  { %10600 = vmatprep.subr.bf16.mxu1 %v13568_v43 }
0x1def   :  { %10601 = vmatpush1.bf16.msra.mxu1 %v13566_v40 }
0x1df0   :  { %10602 = vmatprep.subr.bf16.mxu1 %v13571_v51 }
0x1df3   :  { %10603 = vmatpush1.bf16.msra.mxu1 %v13569_v49 }
0x1df4   :  { %10604 = vmatprep.subr.bf16.mxu1 %v13574_v44 }
0x1df7   :  { %10605 = vmatpush1.bf16.msra.mxu1 %v13572_v56 }
0x1df8   :  { %10606 = vmatprep.subr.bf16.mxu1 %v13577_v53 }
0x1dfb   :  { %10607 = vmatpush1.bf16.msra.mxu1 %v13575_v55  ;;  %v13605_v55 = vld [vmem:[#allocation29] sm:$0xff]  }
0x1dfc   :  { %10608 = vmatprep.subr.bf16.mxu1 %v13580_v36  ;;  %v14480_v36 = vmov 0.0  }
0x1dfd   :  { %12597 = vmatprep.subr.bf16.mxu0 %v14480_v36 }
0x1dff   :  { %10609 = vmatpush1.bf16.msra.mxu1 %v13578_v63  ;;  %v13606_v63 = vld [vmem:[#allocation29 + $0x8] sm:$0xff]  }
0x1e00   :  { %10610 = vmatprep.subr.bf16.mxu1 %v13583_v61  ;;  %v13607_v61 = vld [vmem:[#allocation29 + $0x10] sm:$0xff]  }
0x1e03   :  { %10611 = vmatpush1.bf16.msra.mxu1 %v13581_v33 }
0x1e04   :  { %10612 = vmatprep.subr.bf16.mxu1 %v13586_v62 }
0x1e07   :  { %10613 = vmatpush1.bf16.msra.mxu1 %v13584_v3 }
0x1e08   :  { %10614 = vmatprep.subr.bf16.mxu1 %v13589_v1 }
0x1e0b   :  { %10615 = vmatpush1.bf16.msra.mxu1 %v13587_v5 }
0x1e0c   :  { %10616 = vmatprep.subr.bf16.mxu1 %v13592_v50 }
0x1e0f   :  { %10617 = vmatpush1.bf16.msra.mxu1 %v13590_v7 }
0x1e10   :  { %10618 = vmatprep.subr.bf16.mxu1 %v13595_v4 }
0x1e13   :  { %10619 = vmatpush1.bf16.msra.mxu1 %v13593_v8 }
0x1e14   :  { %10620 = vmatprep.subr.bf16.mxu1 %v13598_v22 }
0x1e17   :  { %10621 = vmatpush1.bf16.msra.mxu1 %v13596_v52 }
0x1e18   :  { %10622 = vmatprep.subr.bf16.mxu1 %v13601_v23 }
0x1e1b   :  { %10623 = vmatpush1.bf16.msra.mxu1 %v13599_v37 }
0x1e1c   :  { %10624 = vmatprep.subr.bf16.mxu1 %v13604_v38 }
0x1e1f   :  { %10625 = vmatpush1.bf16.msra.mxu1 %v13602_v15 }
0x1e20   :  { %12641 = vmatprep.subr.bf16.mxu1 %v14480_v36 }
0x1e22   :  { %10627 = vmatmul.mubr.bf16.vlgmr.msra.gmra.mrb[108].mxu1 %v10430_v34 }
0x1e23   :  { %12649 = vmatprep.mubr.msk.bf16.mxu1 %vm14481_vm5, %v14480_v36 }
0x1eb5   :  { %v10265_v10 = vpop.f32.mrb[104].mxu1 }
0x1eb6   :  { %v10272_v41 = vadd.f32 %v10265_v10, %v16623_v39  ;;  %v10267_v59 = vpop.f32.mrb[105].mxu1 }
0x1eb7   :  { %v10269_v42 = vpop.f32.mrb[106].mxu1  ;;  %v10273_v47 = vadd.f32 %v10267_v59, %v16625_v32 }
0x1eb8   :  { %v12508_v45 = vmul.f32 -1.442695, %v10272_v41  ;;  %v10270_v54 = vpop.f32.mrb[107].mxu1 }
0x1eb9   :  { %v12509_v60 = vmul.f32 -1.442695, %v10273_v47 }
0x1eba   :  { %13953 = vpow2.f32 %v12508_v45 }
0x1ebb   :  { %13955 = vtanh.f32 %v10273_v47 }
0x1ec4   :  { %v13954_v46 = vpop.eup %13953 }
0x1ec5   :  { %v10277_v11 = vadd.f32 1.0, %v13954_v46  ;;  %v13956_v48 = vpop.eup %13955 }
0x1ec7   :  { %13957 = vrcp.f32 %v10277_v11 }
0x1ed1   :  { %v13958_v6 = vpop.eup %13957 }
0x1ed2   :  { %v10291_v30 = vmul.f32 %v13958_v6, %v13956_v48  ;;  %v10290_v16 = vmul.f32 %v13958_v6, %v10288_v2  ;;  %v13609_v48 = vld [vmem:[%s16867_s20] sm:$0xff]   ;;  %v13610_v6 = vld [vmem:[%s16867_s20 + $0x8] sm:$0xff]  }
0x1ed4   :  { %10293 = vrot.lane.b32.xlu0 %v10291_v30, %s14475_s18  ;;  %v13611_v30 = vld [vmem:[%s16867_s20 + $0x10] sm:$0xff]  }
0x1ef5   :  { %v10628_v12 = vpop.f32.mrb[108].mxu1 }
0x1ef6   :  { %v10629_v35 = vadd.f32 %v10628_v12, %v10421_v18  ;;  %v10630_v20 = vpop.f32.mrb[109].mxu1  ;;  %v13612_v12 = vld [vmem:[%s16867_s20 + $0x18] sm:$0xff]  }
0x1ef7   :  { %v10632_v21 = vpop.f32.mrb[110].mxu1  ;;  %v10631_v0 = vadd.f32 %v10630_v20, %v10425_v25  ;;  %v13615_v25 = vld [vmem:[%s16870_s23 + $0x10] sm:$0xff]  }
0x1ef8   :  { %v12545_v28 = vmul.f32 -1.442695, %v10629_v35  ;;  %v10633_v24 = vpop.f32.mrb[111].mxu1  ;;  %v13613_v21 = vld [vmem:[%s16870_s23] sm:$0xff]  }
0x1ef9   :  { %v12546_v33 = vmul.f32 -1.442695, %v10631_v0  ;;  %v13614_v24 = vld [vmem:[%s16870_s23 + $0x8] sm:$0xff]  }
0x1efa   :  { %13959 = vpow2.f32 %v12545_v28 }
0x1efb   :  { %13961 = vtanh.f32 %v10631_v0  ;;  %v13616_v0 = vld [vmem:[%s16870_s23 + $0x18] sm:$0xff]  }
0x1f04   :  { %v13960_v14 = vpop.eup %13959 }
0x1f05   :  { %v10638_v19 = vadd.f32 1.0, %v13960_v14  ;;  %v13962_v26 = vpop.eup %13961  ;;  %v13617_v14 = vld [vmem:[%s16870_s23 + $0x20] sm:$0xff]  }
0x1f07   :  { %13963 = vrcp.f32 %v10638_v19  ;;  %v13618_v19 = vld [vmem:[%s16870_s23 + $0x28] sm:$0xff]  }
0x1f08   :  { %13965 = vpow2.f32 %v12509_v60 }
0x1f11   :  { %v13964_v29 = vpop.eup %13963 }
0x1f12   :  { %v10648_v13 = vmul.f32 %v13964_v29, %v13962_v26  ;;  %v13966_v58 = vpop.eup %13965 }
0x1f13   :  { %v10284_v31 = vadd.f32 1.0, %v13966_v58  ;;  %v13619_v58 = vld [vmem:[%s16870_s23 + $0x30] sm:$0xff]  }
0x1f15   :  { %13967 = vrcp.f32 %v10284_v31  ;;  %v13620_v31 = vld [vmem:[%s16870_s23 + $0x38] sm:$0xff]  }
0x1f1f   :  { %v13968_v51 = vpop.eup %13967 }
0x1f46   :  { %v10294_v43 = vpop.permute.xlu0 %10293 }
0x1f47   :  { %v10296_v40 = vadd.f32 %v10294_v43, %v10290_v16  ;;  %v13621_v43 = vld [vmem:[%s17366_s15] sm:$0xff]  }
0x1f48   :  { %12642 = vmatpush3.bf16.msra.mxu1 %v13621_v43 }
0x1f49   :  { %13969 = vtanh.f32 %v10296_v40  ;;  %12643 = vmatprep.subr.bf16.mxu1 %v14480_v36 }
0x1f4a   :  { %13971 = vtanh.f32 %v10648_v13 }
0x1f4b   :  { %13973 = vpow2.f32 %v12546_v33  ;;  %v13623_v33 = vld [vmem:[%s17366_s15 + $0x10] sm:$0xff]  }
0x1f53   :  { %v13970_v49 = vpop.eup %13969 }
0x1f54   :  { %v10298_v57 = vmul.f32 %v13970_v49, %v13968_v51  ;;  %v13972_v56 = vpop.eup %13971  ;;  %v12557_v49 = vld [vmem:[#allocation30] ss:$0 sm:$0xff] }
0x1f55   :  { %v13974_v8 = vpop.eup %13973 }
0x1f56   :  { %v10299_v44 = vpack.c.bf16 %v10298_v57, %v10298_v57  ;;  %v10645_v52 = vadd.f32 1.0, %v13974_v8 }
0x1f58   :  { %10301 = vrot.lane.b32.xlu1 %v10299_v44, %s14475_s18 }
0x1f5c   :  { %10651 = vrot.lane.b32.xlu1 %v13972_v56, %s14475_s18 }
0x1fca   :  { %v10302_v53 = vpop.permute.xlu1 %10301 }
0x1fcb   :  { %12510 = vmatmul.mubr.msk.bf16.vlgmr.msra.gmra.mrb[100].mxu0 %vm437_vm0, %v10302_v53 }
0x1fcc   :  { %12598 = vmatpush3.bf16.msra.mxu0 %v13605_v55  ;;  %12605 = vmatprep.mubr.msk.bf16.mxu0 %vm14481_vm5, %v14480_v36 }
0x1fcd   :  { %12599 = vmatprep.subr.bf16.mxu0 %v14480_v36 }
0x1fce   :  { %v10652_v15 = vpop.permute.xlu1 %10651 }
0x1fd0   :  { %12600 = vmatpush3.bf16.msra.mxu0 %v13606_v63 }
0x1fd1   :  { %12601 = vmatprep.subr.bf16.mxu0 %v14480_v36 }
0x1fd4   :  { %12602 = vmatpush3.bf16.msra.mxu0 %v13607_v61 }
0x1fd5   :  { %12603 = vmatprep.subr.bf16.mxu0 %v14480_v36 }
0x1fd8   :  { %12604 = vmatpush3.bf16.msra.mxu0 %v13608_v9 }
0x1fd9   :  { %12609 = vmatprep.subr.bf16.mxu0 %v14480_v36 }
0x209e   :  { %v10340_v62 = vpop.f32.mrb[100].mxu0 }
0x209f   :  { %v10349_v3 = vrot.slane %v10340_v62, 4  ;;  %v10342_v1 = vpop.f32.mrb[101].mxu0  ;;  %v13624_v62 = vld [vmem:[%s17366_s15 + $0x18] sm:$0xff]  }
0x20a0   :  { %v10344_v5 = vpop.f32.mrb[102].mxu0  ;;  %v10350_v22 = vrot.slane %v10342_v1, 4 }
0x20a1   :  { %v10353_v50 = vadd.f32 %v10349_v3, %v16623_v39  ;;  %v10345_v7 = vpop.f32.mrb[103].mxu0  ;;  %v12558_v3 = vld [vmem:[#allocation32] ss:$0 sm:$0xff] }
0x20a2   :  { %v10354_v23 = vadd.f32 %v10350_v22, %v16625_v32  ;;  %v10369_v32 = vrot.slane %v10296_v40, 4  ;;  %v13622_v40 = vld [vmem:[%s17366_s15 + $0x8] sm:$0xff]  }
0x20a3   :  { %v12511_v4 = vmul.f32 -1.442695, %v10353_v50  ;;  %12644 = vmatpush3.bf16.msra.mxu1 %v13622_v40 }
0x20a4   :  { %v12512_v45 = vmul.f32 -1.442695, %v10354_v23  ;;  %12645 = vmatprep.subr.bf16.mxu1 %v14480_v36 }
0x20a5   :  { %13975 = vpow2.f32 %v12511_v4 }
0x20a6   :  { %13977 = vrcp.f32 %v10645_v52  ;;  %v12567_v52 = vld [vmem:[#allocation33] ss:$0 sm:$0xff] }
0x20a7   :  { %13979 = vtanh.f32 %v10354_v23  ;;  %12646 = vmatpush3.bf16.msra.mxu1 %v13623_v33 }
0x20a8   :  { %12647 = vmatprep.subr.bf16.mxu1 %v14480_v36 }
0x20ab   :  { %12648 = vmatpush3.bf16.msra.mxu1 %v13624_v62 }
0x20af   :  { %v13976_v37 = vpop.eup %13975 }
0x20b0   :  { %v10358_v38 = vadd.f32 1.0, %v13976_v37  ;;  %v13978_v39 = vpop.eup %13977 }
0x20b1   :  { %v13980_v27 = vpop.eup %13979  ;;  %v10654_v10 = vmul.f32 %v13978_v39, %v10652_v15 }
0x20b2   :  { %13981 = vrcp.f32 %v10358_v38 }
0x20b3   :  { %v10664_v42 = vpack.c.bf16 %v10654_v10, %v10654_v10  ;;  %13983 = vpow2.f32 %v12512_v45 }
0x20bc   :  { %v13982_v34 = vpop.eup %13981 }
0x20bd   :  { %v10372_v41 = vmul.f32 %v13982_v34, %v13980_v27  ;;  %v10371_v59 = vmul.f32 %v13982_v34, %v10369_v32  ;;  %v13984_v54 = vpop.eup %13983 }
0x20be   :  { %v10365_v47 = vadd.f32 1.0, %v13984_v54 }
0x20bf   :  { %10374 = vrot.lane.b32.xlu0 %v10372_v41, %s14475_s18 }
0x20c0   :  { %13985 = vrcp.f32 %v10365_v47 }
0x20c3   :  { %10674 = vrot.lane.b32.xlu0 %v10664_v42, %s14475_s18 }
0x20ca   :  { %v13986_v16 = vpop.eup %13985 }
0x2131   :  { %v10375_v46 = vpop.permute.xlu0 %10374 }
0x2132   :  { %v10377_v11 = vadd.f32 %v10375_v46, %v10371_v59 }
0x2134   :  { %13987 = vtanh.f32 %v10377_v11 }
0x2135   :  { %v10675_v2 = vpop.permute.xlu0 %10674 }
0x2136   :  { %12606 = vmatmul.mubr.msk.bf16.vlgmr.msra.gmra.mrb[104].mxu0 %vm437_vm0, %v10675_v2 }
0x2137   :  { %12610 = vmatpush3.bf16.msra.mxu0 %v13609_v48  ;;  %12617 = vmatprep.mubr.msk.bf16.mxu0 %vm14481_vm5, %v14480_v36 }
0x2138   :  { %12611 = vmatprep.subr.bf16.mxu0 %v14480_v36 }
0x213b   :  { %12612 = vmatpush3.bf16.msra.mxu0 %v13610_v6 }
0x213c   :  { %12613 = vmatprep.subr.bf16.mxu0 %v14480_v36 }
0x213e   :  { %v13988_v17 = vpop.eup %13987 }
0x213f   :  { %v10379_v18 = vmul.f32 %v13988_v17, %v13986_v16  ;;  %12614 = vmatpush3.bf16.msra.mxu0 %v13611_v30 }
0x2140   :  { %12615 = vmatprep.subr.bf16.mxu0 %v14480_v36 }
0x2141   :  { %v10655_v35 = vpack.c.bf16 %v10379_v18, %v10379_v18 }
0x2143   :  { %v10744_v20 = vrot.slane %v10655_v35, 2  ;;  %12616 = vmatpush3.bf16.msra.mxu0 %v13612_v12 }
0x2144   :  { %12621 = vmatprep.subr.bf16.mxu0 %v14480_v36 }
0x2145   :  { %10745 = vrot.lane.b32.xlu1 %v10744_v20, %s14475_s18 }
0x21b7   :  { %v10746_v28 = vpop.permute.xlu1 %10745 }
0x21b8   :  { %12618 = vmatmul.mubr.msk.bf16.vlgmr.msra.gmra.mrb[108].mxu0 %vm437_vm0, %v10746_v28 }
0x21b9   :  { %12622 = vmatpush3.bf16.msra.mxu0 %v13613_v21  ;;  %12637 = vmatprep.mubr.msk.bf16.mxu0 %vm14481_vm5, %v14480_v36 }
0x21ba   :  { %12623 = vmatprep.subr.bf16.mxu0 %v14480_v36 }
0x21bd   :  { %12624 = vmatpush3.bf16.msra.mxu0 %v13614_v24 }
0x21be   :  { %12625 = vmatprep.subr.bf16.mxu0 %v14480_v36 }
0x21c1   :  { %12626 = vmatpush3.bf16.msra.mxu0 %v13615_v25 }
0x21c2   :  { %12627 = vmatprep.subr.bf16.mxu0 %v14480_v36 }
0x21c5   :  { %12628 = vmatpush3.bf16.msra.mxu0 %v13616_v0 }
0x21c6   :  { %12629 = vmatprep.subr.bf16.mxu0 %v14480_v36 }
0x21c9   :  { %12630 = vmatpush3.bf16.msra.mxu0 %v13617_v14 }
0x21ca   :  { %12631 = vmatprep.subr.bf16.mxu0 %v14480_v36 }
0x21cd   :  { %12632 = vmatpush3.bf16.msra.mxu0 %v13618_v19 }
0x21ce   :  { %12633 = vmatprep.subr.bf16.mxu0 %v14480_v36 }
0x21d1   :  { %12634 = vmatpush3.bf16.msra.mxu0 %v13619_v58 }
0x21d2   :  { %12635 = vmatprep.subr.bf16.mxu0 %v14480_v36 }
0x21d5   :  { %12636 = vmatpush3.bf16.msra.mxu0 %v13620_v31 }
0x2209   :  { %v10737_v26 = vpop.f32.mrb[104].mxu0 }
0x220a   :  { %v12607_v29 = vpop.f32.mrb[105].mxu0 }
0x220b   :  { %v10740_v13 = vpop.f32.mrb[106].mxu0 }
0x220c   :  { %v12608_v60 = vpop.f32.mrb[107].mxu0 }
0x228b   :  { %v10808_v51 = vpop.f32.mrb[108].mxu0 }
0x228c   :  { %v10809_v57 = vadd.f32 %v10808_v51, %v10737_v26  ;;  %v12619_v44 = vpop.f32.mrb[109].mxu0 }
0x228d   :  { %v10811_v56 = vpop.f32.mrb[110].mxu0 }
0x228e   :  { %v10821_v53 = vadd.f32 %v12557_v49, %v10809_v57  ;;  %v12620_v55 = vpop.f32.mrb[111].mxu0 }
0x2290   :  { %v10822_v63 = vmax.f32 %v10821_v53, 0.0 }
0x2292   :  { %v10823_v61 = vpack.c.bf16 %v10822_v63, %v10822_v63 }
0x2294   :  { %12638 = vmatmul.mubr.bf16.vlgmr.msra.gmra.mrb[112].mxu0 %v10823_v61 }
0x2367   :  { %v10929_v1 = vpop.f32.mrb[112].mxu0 }
0x2368   :  { %v10930_v5 = vadd.f32 %v12558_v3, %v10929_v1  ;;  %v12639_v50 = vpop.f32.mrb[113].mxu0 }
0x2369   :  { %v10932_v7 = vpop.f32.mrb[114].mxu0 }
0x236a   :  { %v10935_v4 = vmax.f32 %v10930_v5, 0.0  ;;  %v12640_v8 = vpop.f32.mrb[115].mxu0 }
0x236c   :  { %v10936_v22 = vpack.c.bf16 %v10935_v4, %v10935_v4 }
0x236e   :  { %12650 = vmatmul.mubr.msk.bf16.vlgmr.msra.gmra.mrb[112].mxu1 %vm437_vm0, %v10936_v22 }
0x2441   :  { %v11013_v23 = vpop.f32.mrb[112].mxu1 }
0x2442   :  { %v11014_v37 = vadd.f32 %v12567_v52, %v11013_v23  ;;  %v12651_v36 = vpop.f32.mrb[113].mxu1 }
0x2443   :  { %v11016_v38 = vpop.f32.mrb[114].mxu1 }
0x2444   :  { %v12652_v9 = vpop.f32.mrb[115].mxu1  ;;  %v11020_v39 = vsel %vm11019_vm6, %v11014_v37, -inf }
0x2445   :  { %11021 = vmax.xlane.f32.xlu0 %v11020_v39 }
0x24d2   :  { %v11022_v15 = vpop.xlane.xlu0 %11021 }
0x24d3   :  { %v11023_v27 = vsub.f32 %v11014_v37, %v11022_v15 }
0x24d5   :  { %v11024_v32 = vmul.f32 1.442695, %v11023_v27 }
0x24d7   :  { %13989 = vpow2.f32 %v11024_v32 }
0x24e1   :  { %v13990_v34 = vpop.eup %13989 }
0x24e2   :  { %v11026_v10 = vsel %vm11019_vm6, %v13990_v34, 0.0 }
0x24e3   :  { %11027 = vadd.xlane.f32.xlu1 %v11026_v10 }
0x2570   :  { %v11028_v41 = vpop.xlane.xlu1 %11027 }
0x2571   :  { %13991 = vrcp.f32 %v11028_v41 }
0x257b   :  { %v13992_v59 = vpop.eup %13991 }
0x257c   :  { %v11030_v42 = vmul.f32 %v13992_v59, %v13990_v34 }
0x257e   :  { %11031 = vst.msk [vmem:[#allocation35] sm:$0xf] %vm11019_vm6, %v11030_v42 }
0x257f   :  { %14418 = shalt.err (!%p14415_p6)
}
0x2580   :  { %s17367_s28 = sld [smem:[#allocation91_spill]] }
0x2586   :  { %s14419_s11 = scalar_lea.hbm %s17367_s28, 64 }
0x2587   :  { %p14420_p7 = scmp.ne.s32.totalorder %s17367_s28, %s14419_s11  ;;  %p14423_p8 = scmp.lt.u32.totalorder %s14419_s11, %s17367_s28 }
0x2589   :  { %p14425_p9 = pnand %p14423_p8, %p14420_p7 }
0x258b   :  { %14428 = shalt.err (!%p14425_p9)
}
0x258c   :  { %11041 = dma.vmem_to_hbm [thread:$0]  %s11039_s27, 64, %s17367_s28, [#allocation6]  }
0x258d   :  { %14453 = dma.done.wait [#allocation6], 64  }
0x258e   :  { %14454 = vsyncadd [#allocation6], 4294967232 }
0x258f   :  { %11045 = vsyncpa [#allocation5], 1 }
0x2590   :  { %11046 = vsyncpa [#allocation16], 1 }
0x2591   :  { %11047 = vsyncpa [#allocation19], 1 }
0x2592   :  { %11048 = vsyncpa [#allocation22], 1 }
0x2593   :  { %11049 = vsyncpa [#allocation25], 1 }
0x2594   :  { %11050 = vsyncpa [#allocation28], 1 }
0x2595   :  { %11051 = vsyncpa [#allocation31], 1 }
0x2596   :  { %11052 = vsyncpa [#allocation34], 1 }
0x2597   :  { %11053 = vsyncpa [#allocation6], 1 }
0x2598   :  { %11054 = vsyncpa [#allocation7], 1 }
0x2599   :  { %11055 = vsyncpa [#allocation13], 1 }
0x259a   :  { %11056 = vsyncpa [#allocation8], 1 }
0x259b   :  { %11057 = vsyncpa [#allocation10], 1 }

</bundles_post_ra>
